<compile_context>
chip_gen: v7x
topology: tpu7x:2x2x1
jax: 0.10.0
libtpu: 0.0.40
codegen_flags: <defaults>
</compile_context>

<pallas_src>
import jax
import jax.numpy as jnp
from jax.experimental import pallas as pl
from jax.experimental.pallas import tpu as pltpu  # noqa: F401

EPS = 1e-5
CPAD = 128      # lane-dense channel padding
KPAD = 128      # contraction-dim padding granularity


def _round_up(x, m):
    return (x + m - 1) // m * m


# ---------------------------------------------------------------- kernels ----
def _bn_relu(ys, gamma, beta, count):
    """Single-pass BatchNorm (training stats over the union of the rows of all
    slabs in `ys`, biased variance, eps=1e-5) + ReLU applied to every slab."""
    s = ys[0]
    q = ys[0] * ys[0]
    for y in ys[1:]:
        s = s + y
        q = q + y * y
    inv_n = 1.0 / float(count)
    mean = jnp.sum(s, axis=0, keepdims=True) * inv_n
    var = jnp.sum(q, axis=0, keepdims=True) * inv_n - mean * mean
    var = jnp.maximum(var, 0.0)                       # guard f32 cancellation
    scale = gamma * jax.lax.rsqrt(var + EPS)
    shift = beta - mean * scale
    return [jnp.maximum(y * scale + shift, 0.0) for y in ys]


def _conv_block(p_refs, w_ref, b_ref, g_ref, be_ref):
    """conv (4 parity matmuls, bf16 operands, f32 accum) + bias + BN + ReLU +
    fused 2x2 maxpool (elementwise max over the four parities)."""
    w = w_ref[...]
    b = b_ref[...]
    ys = [jnp.dot(p[...], w, preferred_element_type=jnp.float32) + b
          for p in p_refs]
    zs = _bn_relu(ys, g_ref[...], be_ref[...], 4 * p_refs[0].shape[0])
    return jnp.maximum(jnp.maximum(zs[0], zs[1]), jnp.maximum(zs[2], zs[3]))


def _conv_block_kernel(p00, p01, p10, p11, w_ref, b_ref, g_ref, be_ref, o_ref):
    o_ref[...] = _conv_block((p00, p01, p10, p11),
                             w_ref, b_ref, g_ref, be_ref).astype(o_ref.dtype)


def _tail_kernel(p00, p01, p10, p11, w3_ref, b3_ref, g3_ref, be3_ref,
                 wf1_ref, bf1_ref, g4_ref, be4_ref,
                 wf2_ref, bf2_ref, g5_ref, be5_ref,
                 wf3_ref, bf3_ref, o_ref):
    # conv block 3 (spatial collapses to 1x1 after pooling -> (N, 128) slab;
    # flatten is identity on the real 32 channels)
    x = _conv_block((p00, p01, p10, p11), w3_ref, b3_ref, g3_ref, be3_ref)
    n = x.shape[0]
    # fc1 + bn4 + relu
    h = jnp.dot(x.astype(jnp.bfloat16), wf1_ref[...],
                preferred_element_type=jnp.float32) + bf1_ref[...]
    (h,) = _bn_relu([h], g4_ref[...], be4_ref[...], n)
    # fc2 + bn5 + relu
    h = jnp.dot(h.astype(jnp.bfloat16), wf2_ref[...],
                preferred_element_type=jnp.float32) + bf2_ref[...]
    (h,) = _bn_relu([h], g5_ref[...], be5_ref[...], n)
    # fc3
    o_ref[...] = (jnp.dot(h.astype(jnp.bfloat16), wf3_ref[...],
                          preferred_element_type=jnp.float32) + bf3_ref[...])


# --------------------------------------------------------------- wrappers ----
def _full_spec(shape):
    return pl.BlockSpec(shape, lambda i: (0,) * len(shape))


def conv_block(slabs, w, b, g, be):
    slabs = [s.astype(jnp.bfloat16) for s in slabs]
    m = slabs[0].shape[0]
    args = list(slabs) + [w, b, g, be]
    return pl.pallas_call(
        _conv_block_kernel,
        grid=(1,),
        out_shape=jax.ShapeDtypeStruct((m, CPAD), jnp.bfloat16),
        in_specs=[_full_spec(a.shape) for a in args],
        out_specs=_full_spec((m, CPAD)),
    )(*args)


def tail_block(slabs, p):
    slabs = [s.astype(jnp.bfloat16) for s in slabs]
    n = slabs[0].shape[0]
    args = list(slabs) + [p["w3"], p["b3"], p["g3"], p["be3"],
                          p["wf1"], p["bf1"], p["g4"], p["be4"],
                          p["wf2"], p["bf2"], p["g5"], p["be5"],
                          p["wf3"], p["bf3"]]
    return pl.pallas_call(
        _tail_kernel,
        grid=(1,),
        out_shape=jax.ShapeDtypeStruct((n, CPAD), jnp.float32),
        in_specs=[_full_spec(a.shape) for a in args],
        out_specs=_full_spec((n, CPAD)),
    )(*args)


# ------------------------------------------------------------------- glue ----
def im2col_pool_parity(x, k):
    """x: (N, H, W, C). Valid kxk conv -> (oh, ow), then 2x2 pool -> (oh2, ow2).
    Returns 4 patch slabs (one per output-position parity), each of shape
    (N*oh2*ow2, round_up(k*k*C, 128)), column order (ki, kj, c)."""
    n, h, w, c = x.shape
    oh, ow = h - k + 1, w - k + 1
    oh2, ow2 = oh // 2, ow // 2
    kdim = k * k * c
    kp = _round_up(kdim, KPAD)
    slabs = []
    for di in range(2):
        for dj in range(2):
            cols = []
            for ki in range(k):
                for kj in range(k):
                    cols.append(
                        x[:, di + ki: di + ki + 2 * oh2: 2,
                             dj + kj: dj + kj + 2 * ow2: 2, :])
            pch = jnp.stack(cols, axis=3)              # (N, oh2, ow2, k*k, C)
            pch = pch.reshape(n * oh2 * ow2, kdim)
            slabs.append(jnp.pad(pch, ((0, 0), (0, kp - kdim))))
    return slabs, (n, oh2, ow2)


def _conv_weight(w, cin_pad):
    """PyTorch (Cout, Cin, kh, kw) -> bf16 (round_up(kh*kw*cin_pad,128), 128)
    matching the (ki, kj, c) im2col column order; padding rows/cols are 0."""
    cout, cin, kh, kw = w.shape
    wt = jnp.transpose(w, (2, 3, 1, 0))
    wt = jnp.pad(wt, ((0, 0), (0, 0), (0, cin_pad - cin), (0, CPAD - cout)))
    wt = wt.reshape(kh * kw * cin_pad, CPAD)
    kdim = wt.shape[0]
    wt = jnp.pad(wt, ((0, _round_up(kdim, KPAD) - kdim), (0, 0)))
    return wt.astype(jnp.bfloat16)


def _fc_weight(w):
    """PyTorch (out, in) -> bf16 (128, 128) stored as (in, out), zero-padded."""
    out_c, in_c = w.shape
    return jnp.pad(w.T, ((0, CPAD - in_c), (0, CPAD - out_c))).astype(jnp.bfloat16)


def _vec(v):
    return jnp.pad(v, (0, CPAD - v.shape[0])).reshape(1, CPAD).astype(jnp.float32)


def init_params(key):
    def u(k, shape, fan_in):
        bound = 1.0 / jnp.sqrt(float(fan_in))
        return jax.random.uniform(k, shape, jnp.float32, -bound, bound)

    ks = jax.random.split(key, 12)
    p = {}
    p["w1"] = _conv_weight(u(ks[0], (6, 1, 5, 5), 25), 1)
    p["b1"] = _vec(u(ks[1], (6,), 25))
    p["w2"] = _conv_weight(u(ks[2], (16, 6, 5, 5), 150), CPAD)
    p["b2"] = _vec(u(ks[3], (16,), 150))
    p["w3"] = _conv_weight(u(ks[4], (32, 16, 3, 3), 144), CPAD)
    p["b3"] = _vec(u(ks[5], (32,), 144))
    p["wf1"] = _fc_weight(u(ks[6], (120, 32), 32))
    p["bf1"] = _vec(u(ks[7], (120,), 32))
    p["wf2"] = _fc_weight(u(ks[8], (84, 120), 120))
    p["bf2"] = _vec(u(ks[9], (84,), 120))
    p["wf3"] = _fc_weight(u(ks[10], (10, 84), 84))
    p["bf3"] = _vec(u(ks[11], (10,), 84))
    # BatchNorm affine params: gamma=1 / beta=0 for real channels,
    # gamma=0 for padded lanes so they stay exactly zero through every block.
    for i, c in zip(range(1, 6), (6, 16, 32, 120, 84)):
        p[f"g{i}"] = jnp.zeros((CPAD,), jnp.float32).at[:c].set(1.0).reshape(1, CPAD)
        p[f"be{i}"] = jnp.zeros((1, CPAD), jnp.float32)
    return p


def lenet5_forward(x_nchw, p):
    x = jnp.transpose(x_nchw, (0, 2, 3, 1)).astype(jnp.float32)   # -> NHWC

    # block 1: conv1 (1->6, 5x5) + bn1 + relu + maxpool2
    slabs, (n, oh2, ow2) = im2col_pool_parity(x, 5)
    y = conv_block(slabs, p["w1"], p["b1"], p["g1"], p["be1"])    # (N*144, 128)
    y = y.reshape(n, oh2, ow2, CPAD)

    # block 2: conv2 (6->16, 5x5) + bn2 + relu + maxpool2
    slabs, (n, oh2, ow2) = im2col_pool_parity(y, 5)
    y = conv_block(slabs, p["w2"], p["b2"], p["g2"], p["be2"])    # (N*16, 128)
    y = y.reshape(n, oh2, ow2, CPAD)

    # tail: conv3 (16->32, 3x3) + bn3 + relu + maxpool2 + fc1/bn4 + fc2/bn5 + fc3
    slabs, _ = im2col_pool_parity(y, 3)
    logits = tail_block(slabs, p)                                 # (N, 128) f32
    return logits[:, :10]


if __name__ == "__main__":
    key = jax.random.PRNGKey(0)
    k_params, k_x = jax.random.split(key)
    params = init_params(k_params)
    # LeNet5 as defined requires 28x28 inputs (32*1*1 after the third pool).
    x = jax.random.normal(k_x, (2, 1, 28, 28), jnp.float32)

    out = jax.block_until_ready(jax.jit(lenet5_forward)(x, params))
    assert out.shape == (2, 10) and out.dtype == jnp.float32
    print("KERNEL_OK")
</pallas_src>

<mosaic_0001>
module attributes {stable_mosaic.version = 11 : i64} {
  func.func @_conv_block_kernel(%arg0: i32, %arg1: memref<288x128xbf16, #tpu.memory_space<vmem>>, %arg2: memref<288x128xbf16, #tpu.memory_space<vmem>>, %arg3: memref<288x128xbf16, #tpu.memory_space<vmem>>, %arg4: memref<288x128xbf16, #tpu.memory_space<vmem>>, %arg5: memref<128x128xbf16, #tpu.memory_space<vmem>>, %arg6: memref<1x128xf32, #tpu.memory_space<vmem>>, %arg7: memref<1x128xf32, #tpu.memory_space<vmem>>, %arg8: memref<1x128xf32, #tpu.memory_space<vmem>>, %arg9: memref<288x128xbf16, #tpu.memory_space<vmem>>) attributes {dimension_semantics = [#tpu.dimension_semantics<arbitrary>], iteration_bounds = array<i64: 1>, scalar_prefetch = 0 : i64, scratch_operands = 0 : i64, tpu.core_type = #tpu.core_type<tc>, window_params = [{pipeline_mode = #tpu.pipeline_mode<synchronous>, transform_indices = @transform_0, window_bounds = array<i64: 288, 128>}, {pipeline_mode = #tpu.pipeline_mode<synchronous>, transform_indices = @transform_1, window_bounds = array<i64: 288, 128>}, {pipeline_mode = #tpu.pipeline_mode<synchronous>, transform_indices = @transform_2, window_bounds = array<i64: 288, 128>}, {pipeline_mode = #tpu.pipeline_mode<synchronous>, transform_indices = @transform_3, window_bounds = array<i64: 288, 128>}, {pipeline_mode = #tpu.pipeline_mode<synchronous>, transform_indices = @transform_4, window_bounds = array<i64: 128, 128>}, {pipeline_mode = #tpu.pipeline_mode<synchronous>, transform_indices = @transform_5, window_bounds = array<i64: 1, 128>}, {pipeline_mode = #tpu.pipeline_mode<synchronous>, transform_indices = @transform_6, window_bounds = array<i64: 1, 128>}, {pipeline_mode = #tpu.pipeline_mode<synchronous>, transform_indices = @transform_7, window_bounds = array<i64: 1, 128>}, {pipeline_mode = #tpu.pipeline_mode<synchronous>, transform_indices = @transform_8, window_bounds = array<i64: 288, 128>}]} {
    %c0 = arith.constant 0 : index
    %c0_0 = arith.constant 0 : index
    %0 = vector.load %arg5[%c0, %c0_0] : memref<128x128xbf16, #tpu.memory_space<vmem>>, vector<128x128xbf16>
    %c0_1 = arith.constant 0 : index
    %c0_2 = arith.constant 0 : index
    %1 = vector.load %arg6[%c0_1, %c0_2] : memref<1x128xf32, #tpu.memory_space<vmem>>, vector<1x128xf32>
    %c0_3 = arith.constant 0 : index
    %c0_4 = arith.constant 0 : index
    %2 = vector.load %arg1[%c0_3, %c0_4] : memref<288x128xbf16, #tpu.memory_space<vmem>>, vector<288x128xbf16>
    %cst = arith.constant dense<0.000000e+00> : vector<288x128xf32>
    %3 = tpu.matmul %2, %0, %cst {dimension_numbers = #tpu.dot_dimension_numbers<[1], [0], [0], [1], [0, 0, 1, 1], [], []>} : vector<288x128xbf16>, vector<128x128xbf16>, vector<288x128xf32> -> vector<288x128xf32>
    %4 = vector.broadcast %1 : vector<1x128xf32> to vector<288x128xf32>
    %5 = arith.addf %3, %4 : vector<288x128xf32>
    %c0_5 = arith.constant 0 : index
    %c0_6 = arith.constant 0 : index
    %6 = vector.load %arg2[%c0_5, %c0_6] : memref<288x128xbf16, #tpu.memory_space<vmem>>, vector<288x128xbf16>
    %cst_7 = arith.constant dense<0.000000e+00> : vector<288x128xf32>
    %7 = tpu.matmul %6, %0, %cst_7 {dimension_numbers = #tpu.dot_dimension_numbers<[1], [0], [0], [1], [0, 0, 1, 1], [], []>} : vector<288x128xbf16>, vector<128x128xbf16>, vector<288x128xf32> -> vector<288x128xf32>
    %8 = vector.broadcast %1 : vector<1x128xf32> to vector<288x128xf32>
    %9 = arith.addf %7, %8 : vector<288x128xf32>
    %c0_8 = arith.constant 0 : index
    %c0_9 = arith.constant 0 : index
    %10 = vector.load %arg3[%c0_8, %c0_9] : memref<288x128xbf16, #tpu.memory_space<vmem>>, vector<288x128xbf16>
    %cst_10 = arith.constant dense<0.000000e+00> : vector<288x128xf32>
    %11 = tpu.matmul %10, %0, %cst_10 {dimension_numbers = #tpu.dot_dimension_numbers<[1], [0], [0], [1], [0, 0, 1, 1], [], []>} : vector<288x128xbf16>, vector<128x128xbf16>, vector<288x128xf32> -> vector<288x128xf32>
    %12 = vector.broadcast %1 : vector<1x128xf32> to vector<288x128xf32>
    %13 = arith.addf %11, %12 : vector<288x128xf32>
    %c0_11 = arith.constant 0 : index
    %c0_12 = arith.constant 0 : index
    %14 = vector.load %arg4[%c0_11, %c0_12] : memref<288x128xbf16, #tpu.memory_space<vmem>>, vector<288x128xbf16>
    %cst_13 = arith.constant dense<0.000000e+00> : vector<288x128xf32>
    %15 = tpu.matmul %14, %0, %cst_13 {dimension_numbers = #tpu.dot_dimension_numbers<[1], [0], [0], [1], [0, 0, 1, 1], [], []>} : vector<288x128xbf16>, vector<128x128xbf16>, vector<288x128xf32> -> vector<288x128xf32>
    %16 = vector.broadcast %1 : vector<1x128xf32> to vector<288x128xf32>
    %17 = arith.addf %15, %16 : vector<288x128xf32>
    %c0_14 = arith.constant 0 : index
    %c0_15 = arith.constant 0 : index
    %18 = vector.load %arg7[%c0_14, %c0_15] : memref<1x128xf32, #tpu.memory_space<vmem>>, vector<1x128xf32>
    %c0_16 = arith.constant 0 : index
    %c0_17 = arith.constant 0 : index
    %19 = vector.load %arg8[%c0_16, %c0_17] : memref<1x128xf32, #tpu.memory_space<vmem>>, vector<1x128xf32>
    %20 = arith.mulf %5, %5 : vector<288x128xf32>
    %21 = arith.addf %5, %9 : vector<288x128xf32>
    %22 = arith.mulf %9, %9 : vector<288x128xf32>
    %23 = arith.addf %20, %22 : vector<288x128xf32>
    %24 = arith.addf %21, %13 : vector<288x128xf32>
    %25 = arith.mulf %13, %13 : vector<288x128xf32>
    %26 = arith.addf %23, %25 : vector<288x128xf32>
    %27 = arith.addf %24, %17 : vector<288x128xf32>
    %28 = arith.mulf %17, %17 : vector<288x128xf32>
    %29 = arith.addf %26, %28 : vector<288x128xf32>
    %cst_18 = arith.constant dense<0.000000e+00> : vector<128xf32>
    %30 = vector.multi_reduction <add>, %27, %cst_18 [0] : vector<288x128xf32> to vector<128xf32>
    %31 = vector.shape_cast %30 : vector<128xf32> to vector<1x128xf32>
    %cst_19 = arith.constant 8.68055562E-4 : f32
    %32 = vector.broadcast %cst_19 : f32 to vector<1x128xf32>
    %33 = arith.mulf %31, %32 : vector<1x128xf32>
    %cst_20 = arith.constant dense<0.000000e+00> : vector<128xf32>
    %34 = vector.multi_reduction <add>, %29, %cst_20 [0] : vector<288x128xf32> to vector<128xf32>
    %35 = vector.shape_cast %34 : vector<128xf32> to vector<1x128xf32>
    %cst_21 = arith.constant 8.68055562E-4 : f32
    %36 = vector.broadcast %cst_21 : f32 to vector<1x128xf32>
    %37 = arith.mulf %35, %36 : vector<1x128xf32>
    %38 = arith.mulf %33, %33 : vector<1x128xf32>
    %39 = arith.subf %37, %38 : vector<1x128xf32>
    %cst_22 = arith.constant 0.000000e+00 : f32
    %40 = vector.broadcast %cst_22 : f32 to vector<1x128xf32>
    %41 = arith.maximumf %39, %40 : vector<1x128xf32>
    %cst_23 = arith.constant 9.99999974E-6 : f32
    %42 = vector.broadcast %cst_23 : f32 to vector<1x128xf32>
    %43 = arith.addf %41, %42 : vector<1x128xf32>
    %44 = math.rsqrt %43 : vector<1x128xf32>
    %45 = arith.mulf %18, %44 : vector<1x128xf32>
    %46 = arith.mulf %33, %45 : vector<1x128xf32>
    %47 = arith.subf %19, %46 : vector<1x128xf32>
    %48 = vector.broadcast %45 : vector<1x128xf32> to vector<288x128xf32>
    %49 = arith.mulf %5, %48 : vector<288x128xf32>
    %50 = vector.broadcast %47 : vector<1x128xf32> to vector<288x128xf32>
    %51 = arith.addf %49, %50 : vector<288x128xf32>
    %cst_24 = arith.constant 0.000000e+00 : f32
    %52 = vector.broadcast %cst_24 : f32 to vector<288x128xf32>
    %53 = arith.maximumf %51, %52 : vector<288x128xf32>
    %54 = vector.broadcast %45 : vector<1x128xf32> to vector<288x128xf32>
    %55 = arith.mulf %9, %54 : vector<288x128xf32>
    %56 = vector.broadcast %47 : vector<1x128xf32> to vector<288x128xf32>
    %57 = arith.addf %55, %56 : vector<288x128xf32>
    %cst_25 = arith.constant 0.000000e+00 : f32
    %58 = vector.broadcast %cst_25 : f32 to vector<288x128xf32>
    %59 = arith.maximumf %57, %58 : vector<288x128xf32>
    %60 = vector.broadcast %45 : vector<1x128xf32> to vector<288x128xf32>
    %61 = arith.mulf %13, %60 : vector<288x128xf32>
    %62 = vector.broadcast %47 : vector<1x128xf32> to vector<288x128xf32>
    %63 = arith.addf %61, %62 : vector<288x128xf32>
    %cst_26 = arith.constant 0.000000e+00 : f32
    %64 = vector.broadcast %cst_26 : f32 to vector<288x128xf32>
    %65 = arith.maximumf %63, %64 : vector<288x128xf32>
    %66 = vector.broadcast %45 : vector<1x128xf32> to vector<288x128xf32>
    %67 = arith.mulf %17, %66 : vector<288x128xf32>
    %68 = vector.broadcast %47 : vector<1x128xf32> to vector<288x128xf32>
    %69 = arith.addf %67, %68 : vector<288x128xf32>
    %cst_27 = arith.constant 0.000000e+00 : f32
    %70 = vector.broadcast %cst_27 : f32 to vector<288x128xf32>
    %71 = arith.maximumf %69, %70 : vector<288x128xf32>
    %72 = arith.maximumf %53, %59 : vector<288x128xf32>
    %73 = arith.maximumf %65, %71 : vector<288x128xf32>
    %74 = arith.maximumf %72, %73 : vector<288x128xf32>
    %75 = arith.truncf %74 : vector<288x128xf32> to vector<288x128xbf16>
    %c0_28 = arith.constant 0 : index
    %c0_29 = arith.constant 0 : index
    %76 = vector.load %arg9[%c0_28, %c0_29] : memref<288x128xbf16, #tpu.memory_space<vmem>>, vector<288x128xbf16>
    tpu.vector_store %arg9[%c0_28, %c0_29], %75 {strides = array<i32>} : memref<288x128xbf16, #tpu.memory_space<vmem>>, vector<288x128xbf16>,
    return
  }
  func.func @transform_0(%arg0: i32) -> (i32, i32) {
    %c0_i32 = arith.constant 0 : i32
    %c0_i32_0 = arith.constant 0 : i32
    %c0_i32_1 = arith.constant 0 : i32
    return %c0_i32, %c0_i32_0 : i32, i32
  }
  func.func @transform_1(%arg0: i32) -> (i32, i32) {
    %c0_i32 = arith.constant 0 : i32
    %c0_i32_0 = arith.constant 0 : i32
    %c0_i32_1 = arith.constant 0 : i32
    return %c0_i32, %c0_i32_0 : i32, i32
  }
  func.func @transform_2(%arg0: i32) -> (i32, i32) {
    %c0_i32 = arith.constant 0 : i32
    %c0_i32_0 = arith.constant 0 : i32
    %c0_i32_1 = arith.constant 0 : i32
    return %c0_i32, %c0_i32_0 : i32, i32
  }
  func.func @transform_3(%arg0: i32) -> (i32, i32) {
    %c0_i32 = arith.constant 0 : i32
    %c0_i32_0 = arith.constant 0 : i32
    %c0_i32_1 = arith.constant 0 : i32
    return %c0_i32, %c0_i32_0 : i32, i32
  }
  func.func @transform_4(%arg0: i32) -> (i32, i32) {
    %c0_i32 = arith.constant 0 : i32
    %c0_i32_0 = arith.constant 0 : i32
    %c0_i32_1 = arith.constant 0 : i32
    return %c0_i32, %c0_i32_0 : i32, i32
  }
  func.func @transform_5(%arg0: i32) -> (i32, i32) {
    %c0_i32 = arith.constant 0 : i32
    %c0_i32_0 = arith.constant 0 : i32
    %c0_i32_1 = arith.constant 0 : i32
    return %c0_i32, %c0_i32_0 : i32, i32
  }
  func.func @transform_6(%arg0: i32) -> (i32, i32) {
    %c0_i32 = arith.constant 0 : i32
    %c0_i32_0 = arith.constant 0 : i32
    %c0_i32_1 = arith.constant 0 : i32
    return %c0_i32, %c0_i32_0 : i32, i32
  }
  func.func @transform_7(%arg0: i32) -> (i32, i32) {
    %c0_i32 = arith.constant 0 : i32
    %c0_i32_0 = arith.constant 0 : i32
    %c0_i32_1 = arith.constant 0 : i32
    return %c0_i32, %c0_i32_0 : i32, i32
  }
  func.func @transform_8(%arg0: i32) -> (i32, i32) {
    %c0_i32 = arith.constant 0 : i32
    %c0_i32_0 = arith.constant 0 : i32
    %c0_i32_1 = arith.constant 0 : i32
    return %c0_i32, %c0_i32_0 : i32, i32
  }
}

module attributes {stable_mosaic.version = 11 : i64} {
  func.func @_conv_block_kernel(%arg0: i32, %arg1: memref<32x3200xbf16, #tpu.memory_space<vmem>>, %arg2: memref<32x3200xbf16, #tpu.memory_space<vmem>>, %arg3: memref<32x3200xbf16, #tpu.memory_space<vmem>>, %arg4: memref<32x3200xbf16, #tpu.memory_space<vmem>>, %arg5: memref<3200x128xbf16, #tpu.memory_space<vmem>>, %arg6: memref<1x128xf32, #tpu.memory_space<vmem>>, %arg7: memref<1x128xf32, #tpu.memory_space<vmem>>, %arg8: memref<1x128xf32, #tpu.memory_space<vmem>>, %arg9: memref<32x128xbf16, #tpu.memory_space<vmem>>) attributes {dimension_semantics = [#tpu.dimension_semantics<arbitrary>], iteration_bounds = array<i64: 1>, scalar_prefetch = 0 : i64, scratch_operands = 0 : i64, tpu.core_type = #tpu.core_type<tc>, window_params = [{pipeline_mode = #tpu.pipeline_mode<synchronous>, transform_indices = @transform_0, window_bounds = array<i64: 32, 3200>}, {pipeline_mode = #tpu.pipeline_mode<synchronous>, transform_indices = @transform_1, window_bounds = array<i64: 32, 3200>}, {pipeline_mode = #tpu.pipeline_mode<synchronous>, transform_indices = @transform_2, window_bounds = array<i64: 32, 3200>}, {pipeline_mode = #tpu.pipeline_mode<synchronous>, transform_indices = @transform_3, window_bounds = array<i64: 32, 3200>}, {pipeline_mode = #tpu.pipeline_mode<synchronous>, transform_indices = @transform_4, window_bounds = array<i64: 3200, 128>}, {pipeline_mode = #tpu.pipeline_mode<synchronous>, transform_indices = @transform_5, window_bounds = array<i64: 1, 128>}, {pipeline_mode = #tpu.pipeline_mode<synchronous>, transform_indices = @transform_6, window_bounds = array<i64: 1, 128>}, {pipeline_mode = #tpu.pipeline_mode<synchronous>, transform_indices = @transform_7, window_bounds = array<i64: 1, 128>}, {pipeline_mode = #tpu.pipeline_mode<synchronous>, transform_indices = @transform_8, window_bounds = array<i64: 32, 128>}]} {
    %c0 = arith.constant 0 : index
    %c0_0 = arith.constant 0 : index
    %0 = vector.load %arg5[%c0, %c0_0] : memref<3200x128xbf16, #tpu.memory_space<vmem>>, vector<3200x128xbf16>
    %c0_1 = arith.constant 0 : index
    %c0_2 = arith.constant 0 : index
    %1 = vector.load %arg6[%c0_1, %c0_2] : memref<1x128xf32, #tpu.memory_space<vmem>>, vector<1x128xf32>
    %c0_3 = arith.constant 0 : index
    %c0_4 = arith.constant 0 : index
    %2 = vector.load %arg1[%c0_3, %c0_4] : memref<32x3200xbf16, #tpu.memory_space<vmem>>, vector<32x3200xbf16>
    %cst = arith.constant dense<0.000000e+00> : vector<32x128xf32>
    %3 = tpu.matmul %2, %0, %cst {dimension_numbers = #tpu.dot_dimension_numbers<[1], [0], [0], [1], [0, 0, 1, 1], [], []>} : vector<32x3200xbf16>, vector<3200x128xbf16>, vector<32x128xf32> -> vector<32x128xf32>
    %4 = vector.broadcast %1 : vector<1x128xf32> to vector<32x128xf32>
    %5 = arith.addf %3, %4 : vector<32x128xf32>
    %c0_5 = arith.constant 0 : index
    %c0_6 = arith.constant 0 : index
    %6 = vector.load %arg2[%c0_5, %c0_6] : memref<32x3200xbf16, #tpu.memory_space<vmem>>, vector<32x3200xbf16>
    %cst_7 = arith.constant dense<0.000000e+00> : vector<32x128xf32>
    %7 = tpu.matmul %6, %0, %cst_7 {dimension_numbers = #tpu.dot_dimension_numbers<[1], [0], [0], [1], [0, 0, 1, 1], [], []>} : vector<32x3200xbf16>, vector<3200x128xbf16>, vector<32x128xf32> -> vector<32x128xf32>
    %8 = vector.broadcast %1 : vector<1x128xf32> to vector<32x128xf32>
    %9 = arith.addf %7, %8 : vector<32x128xf32>
    %c0_8 = arith.constant 0 : index
    %c0_9 = arith.constant 0 : index
    %10 = vector.load %arg3[%c0_8, %c0_9] : memref<32x3200xbf16, #tpu.memory_space<vmem>>, vector<32x3200xbf16>
    %cst_10 = arith.constant dense<0.000000e+00> : vector<32x128xf32>
    %11 = tpu.matmul %10, %0, %cst_10 {dimension_numbers = #tpu.dot_dimension_numbers<[1], [0], [0], [1], [0, 0, 1, 1], [], []>} : vector<32x3200xbf16>, vector<3200x128xbf16>, vector<32x128xf32> -> vector<32x128xf32>
    %12 = vector.broadcast %1 : vector<1x128xf32> to vector<32x128xf32>
    %13 = arith.addf %11, %12 : vector<32x128xf32>
    %c0_11 = arith.constant 0 : index
    %c0_12 = arith.constant 0 : index
    %14 = vector.load %arg4[%c0_11, %c0_12] : memref<32x3200xbf16, #tpu.memory_space<vmem>>, vector<32x3200xbf16>
    %cst_13 = arith.constant dense<0.000000e+00> : vector<32x128xf32>
    %15 = tpu.matmul %14, %0, %cst_13 {dimension_numbers = #tpu.dot_dimension_numbers<[1], [0], [0], [1], [0, 0, 1, 1], [], []>} : vector<32x3200xbf16>, vector<3200x128xbf16>, vector<32x128xf32> -> vector<32x128xf32>
    %16 = vector.broadcast %1 : vector<1x128xf32> to vector<32x128xf32>
    %17 = arith.addf %15, %16 : vector<32x128xf32>
    %c0_14 = arith.constant 0 : index
    %c0_15 = arith.constant 0 : index
    %18 = vector.load %arg7[%c0_14, %c0_15] : memref<1x128xf32, #tpu.memory_space<vmem>>, vector<1x128xf32>
    %c0_16 = arith.constant 0 : index
    %c0_17 = arith.constant 0 : index
    %19 = vector.load %arg8[%c0_16, %c0_17] : memref<1x128xf32, #tpu.memory_space<vmem>>, vector<1x128xf32>
    %20 = arith.mulf %5, %5 : vector<32x128xf32>
    %21 = arith.addf %5, %9 : vector<32x128xf32>
    %22 = arith.mulf %9, %9 : vector<32x128xf32>
    %23 = arith.addf %20, %22 : vector<32x128xf32>
    %24 = arith.addf %21, %13 : vector<32x128xf32>
    %25 = arith.mulf %13, %13 : vector<32x128xf32>
    %26 = arith.addf %23, %25 : vector<32x128xf32>
    %27 = arith.addf %24, %17 : vector<32x128xf32>
    %28 = arith.mulf %17, %17 : vector<32x128xf32>
    %29 = arith.addf %26, %28 : vector<32x128xf32>
    %cst_18 = arith.constant dense<0.000000e+00> : vector<128xf32>
    %30 = vector.multi_reduction <add>, %27, %cst_18 [0] : vector<32x128xf32> to vector<128xf32>
    %31 = vector.shape_cast %30 : vector<128xf32> to vector<1x128xf32>
    %cst_19 = arith.constant 7.812500e-03 : f32
    %32 = vector.broadcast %cst_19 : f32 to vector<1x128xf32>
    %33 = arith.mulf %31, %32 : vector<1x128xf32>
    %cst_20 = arith.constant dense<0.000000e+00> : vector<128xf32>
    %34 = vector.multi_reduction <add>, %29, %cst_20 [0] : vector<32x128xf32> to vector<128xf32>
    %35 = vector.shape_cast %34 : vector<128xf32> to vector<1x128xf32>
    %cst_21 = arith.constant 7.812500e-03 : f32
    %36 = vector.broadcast %cst_21 : f32 to vector<1x128xf32>
    %37 = arith.mulf %35, %36 : vector<1x128xf32>
    %38 = arith.mulf %33, %33 : vector<1x128xf32>
    %39 = arith.subf %37, %38 : vector<1x128xf32>
    %cst_22 = arith.constant 0.000000e+00 : f32
    %40 = vector.broadcast %cst_22 : f32 to vector<1x128xf32>
    %41 = arith.maximumf %39, %40 : vector<1x128xf32>
    %cst_23 = arith.constant 9.99999974E-6 : f32
    %42 = vector.broadcast %cst_23 : f32 to vector<1x128xf32>
    %43 = arith.addf %41, %42 : vector<1x128xf32>
    %44 = math.rsqrt %43 : vector<1x128xf32>
    %45 = arith.mulf %18, %44 : vector<1x128xf32>
    %46 = arith.mulf %33, %45 : vector<1x128xf32>
    %47 = arith.subf %19, %46 : vector<1x128xf32>
    %48 = vector.broadcast %45 : vector<1x128xf32> to vector<32x128xf32>
    %49 = arith.mulf %5, %48 : vector<32x128xf32>
    %50 = vector.broadcast %47 : vector<1x128xf32> to vector<32x128xf32>
    %51 = arith.addf %49, %50 : vector<32x128xf32>
    %cst_24 = arith.constant 0.000000e+00 : f32
    %52 = vector.broadcast %cst_24 : f32 to vector<32x128xf32>
    %53 = arith.maximumf %51, %52 : vector<32x128xf32>
    %54 = vector.broadcast %45 : vector<1x128xf32> to vector<32x128xf32>
    %55 = arith.mulf %9, %54 : vector<32x128xf32>
    %56 = vector.broadcast %47 : vector<1x128xf32> to vector<32x128xf32>
    %57 = arith.addf %55, %56 : vector<32x128xf32>
    %cst_25 = arith.constant 0.000000e+00 : f32
    %58 = vector.broadcast %cst_25 : f32 to vector<32x128xf32>
    %59 = arith.maximumf %57, %58 : vector<32x128xf32>
    %60 = vector.broadcast %45 : vector<1x128xf32> to vector<32x128xf32>
    %61 = arith.mulf %13, %60 : vector<32x128xf32>
    %62 = vector.broadcast %47 : vector<1x128xf32> to vector<32x128xf32>
    %63 = arith.addf %61, %62 : vector<32x128xf32>
    %cst_26 = arith.constant 0.000000e+00 : f32
    %64 = vector.broadcast %cst_26 : f32 to vector<32x128xf32>
    %65 = arith.maximumf %63, %64 : vector<32x128xf32>
    %66 = vector.broadcast %45 : vector<1x128xf32> to vector<32x128xf32>
    %67 = arith.mulf %17, %66 : vector<32x128xf32>
    %68 = vector.broadcast %47 : vector<1x128xf32> to vector<32x128xf32>
    %69 = arith.addf %67, %68 : vector<32x128xf32>
    %cst_27 = arith.constant 0.000000e+00 : f32
    %70 = vector.broadcast %cst_27 : f32 to vector<32x128xf32>
    %71 = arith.maximumf %69, %70 : vector<32x128xf32>
    %72 = arith.maximumf %53, %59 : vector<32x128xf32>
    %73 = arith.maximumf %65, %71 : vector<32x128xf32>
    %74 = arith.maximumf %72, %73 : vector<32x128xf32>
    %75 = arith.truncf %74 : vector<32x128xf32> to vector<32x128xbf16>
    %c0_28 = arith.constant 0 : index
    %c0_29 = arith.constant 0 : index
    %76 = vector.load %arg9[%c0_28, %c0_29] : memref<32x128xbf16, #tpu.memory_space<vmem>>, vector<32x128xbf16>
    tpu.vector_store %arg9[%c0_28, %c0_29], %75 {strides = array<i32>} : memref<32x128xbf16, #tpu.memory_space<vmem>>, vector<32x128xbf16>,
    return
  }
  func.func @transform_0(%arg0: i32) -> (i32, i32) {
    %c0_i32 = arith.constant 0 : i32
    %c0_i32_0 = arith.constant 0 : i32
    %c0_i32_1 = arith.constant 0 : i32
    return %c0_i32, %c0_i32_0 : i32, i32
  }
  func.func @transform_1(%arg0: i32) -> (i32, i32) {
    %c0_i32 = arith.constant 0 : i32
    %c0_i32_0 = arith.constant 0 : i32
    %c0_i32_1 = arith.constant 0 : i32
    return %c0_i32, %c0_i32_0 : i32, i32
  }
  func.func @transform_2(%arg0: i32) -> (i32, i32) {
    %c0_i32 = arith.constant 0 : i32
    %c0_i32_0 = arith.constant 0 : i32
    %c0_i32_1 = arith.constant 0 : i32
    return %c0_i32, %c0_i32_0 : i32, i32
  }
  func.func @transform_3(%arg0: i32) -> (i32, i32) {
    %c0_i32 = arith.constant 0 : i32
    %c0_i32_0 = arith.constant 0 : i32
    %c0_i32_1 = arith.constant 0 : i32
    return %c0_i32, %c0_i32_0 : i32, i32
  }
  func.func @transform_4(%arg0: i32) -> (i32, i32) {
    %c0_i32 = arith.constant 0 : i32
    %c0_i32_0 = arith.constant 0 : i32
    %c0_i32_1 = arith.constant 0 : i32
    return %c0_i32, %c0_i32_0 : i32, i32
  }
  func.func @transform_5(%arg0: i32) -> (i32, i32) {
    %c0_i32 = arith.constant 0 : i32
    %c0_i32_0 = arith.constant 0 : i32
    %c0_i32_1 = arith.constant 0 : i32
    return %c0_i32, %c0_i32_0 : i32, i32
  }
  func.func @transform_6(%arg0: i32) -> (i32, i32) {
    %c0_i32 = arith.constant 0 : i32
    %c0_i32_0 = arith.constant 0 : i32
    %c0_i32_1 = arith.constant 0 : i32
    return %c0_i32, %c0_i32_0 : i32, i32
  }
  func.func @transform_7(%arg0: i32) -> (i32, i32) {
    %c0_i32 = arith.constant 0 : i32
    %c0_i32_0 = arith.constant 0 : i32
    %c0_i32_1 = arith.constant 0 : i32
    return %c0_i32, %c0_i32_0 : i32, i32
  }
  func.func @transform_8(%arg0: i32) -> (i32, i32) {
    %c0_i32 = arith.constant 0 : i32
    %c0_i32_0 = arith.constant 0 : i32
    %c0_i32_1 = arith.constant 0 : i32
    return %c0_i32, %c0_i32_0 : i32, i32
  }
}

module attributes {stable_mosaic.version = 11 : i64} {
  func.func @_tail_kernel(%arg0: i32, %arg1: memref<2x1152xbf16, #tpu.memory_space<vmem>>, %arg2: memref<2x1152xbf16, #tpu.memory_space<vmem>>, %arg3: memref<2x1152xbf16, #tpu.memory_space<vmem>>, %arg4: memref<2x1152xbf16, #tpu.memory_space<vmem>>, %arg5: memref<1152x128xbf16, #tpu.memory_space<vmem>>, %arg6: memref<1x128xf32, #tpu.memory_space<vmem>>, %arg7: memref<1x128xf32, #tpu.memory_space<vmem>>, %arg8: memref<1x128xf32, #tpu.memory_space<vmem>>, %arg9: memref<128x128xbf16, #tpu.memory_space<vmem>>, %arg10: memref<1x128xf32, #tpu.memory_space<vmem>>, %arg11: memref<1x128xf32, #tpu.memory_space<vmem>>, %arg12: memref<1x128xf32, #tpu.memory_space<vmem>>, %arg13: memref<128x128xbf16, #tpu.memory_space<vmem>>, %arg14: memref<1x128xf32, #tpu.memory_space<vmem>>, %arg15: memref<1x128xf32, #tpu.memory_space<vmem>>, %arg16: memref<1x128xf32, #tpu.memory_space<vmem>>, %arg17: memref<128x128xbf16, #tpu.memory_space<vmem>>, %arg18: memref<1x128xf32, #tpu.memory_space<vmem>>, %arg19: memref<2x128xf32, #tpu.memory_space<vmem>>) attributes {dimension_semantics = [#tpu.dimension_semantics<arbitrary>], iteration_bounds = array<i64: 1>, scalar_prefetch = 0 : i64, scratch_operands = 0 : i64, tpu.core_type = #tpu.core_type<tc>, window_params = [{pipeline_mode = #tpu.pipeline_mode<synchronous>, transform_indices = @transform_0, window_bounds = array<i64: 2, 1152>}, {pipeline_mode = #tpu.pipeline_mode<synchronous>, transform_indices = @transform_1, window_bounds = array<i64: 2, 1152>}, {pipeline_mode = #tpu.pipeline_mode<synchronous>, transform_indices = @transform_2, window_bounds = array<i64: 2, 1152>}, {pipeline_mode = #tpu.pipeline_mode<synchronous>, transform_indices = @transform_3, window_bounds = array<i64: 2, 1152>}, {pipeline_mode = #tpu.pipeline_mode<synchronous>, transform_indices = @transform_4, window_bounds = array<i64: 1152, 128>}, {pipeline_mode = #tpu.pipeline_mode<synchronous>, transform_indices = @transform_5, window_bounds = array<i64: 1, 128>}, {pipeline_mode = #tpu.pipeline_mode<synchronous>, transform_indices = @transform_6, window_bounds = array<i64: 1, 128>}, {pipeline_mode = #tpu.pipeline_mode<synchronous>, transform_indices = @transform_7, window_bounds = array<i64: 1, 128>}, {pipeline_mode = #tpu.pipeline_mode<synchronous>, transform_indices = @transform_8, window_bounds = array<i64: 128, 128>}, {pipeline_mode = #tpu.pipeline_mode<synchronous>, transform_indices = @transform_9, window_bounds = array<i64: 1, 128>}, {pipeline_mode = #tpu.pipeline_mode<synchronous>, transform_indices = @transform_10, window_bounds = array<i64: 1, 128>}, {pipeline_mode = #tpu.pipeline_mode<synchronous>, transform_indices = @transform_11, window_bounds = array<i64: 1, 128>}, {pipeline_mode = #tpu.pipeline_mode<synchronous>, transform_indices = @transform_12, window_bounds = array<i64: 128, 128>}, {pipeline_mode = #tpu.pipeline_mode<synchronous>, transform_indices = @transform_13, window_bounds = array<i64: 1, 128>}, {pipeline_mode = #tpu.pipeline_mode<synchronous>, transform_indices = @transform_14, window_bounds = array<i64: 1, 128>}, {pipeline_mode = #tpu.pipeline_mode<synchronous>, transform_indices = @transform_15, window_bounds = array<i64: 1, 128>}, {pipeline_mode = #tpu.pipeline_mode<synchronous>, transform_indices = @transform_16, window_bounds = array<i64: 128, 128>}, {pipeline_mode = #tpu.pipeline_mode<synchronous>, transform_indices = @transform_17, window_bounds = array<i64: 1, 128>}, {pipeline_mode = #tpu.pipeline_mode<synchronous>, transform_indices = @transform_18, window_bounds = array<i64: 2, 128>}]} {
    %c0 = arith.constant 0 : index
    %c0_0 = arith.constant 0 : index
    %0 = vector.load %arg5[%c0, %c0_0] : memref<1152x128xbf16, #tpu.memory_space<vmem>>, vector<1152x128xbf16>
    %c0_1 = arith.constant 0 : index
    %c0_2 = arith.constant 0 : index
    %1 = vector.load %arg6[%c0_1, %c0_2] : memref<1x128xf32, #tpu.memory_space<vmem>>, vector<1x128xf32>
    %c0_3 = arith.constant 0 : index
    %c0_4 = arith.constant 0 : index
    %2 = vector.load %arg1[%c0_3, %c0_4] : memref<2x1152xbf16, #tpu.memory_space<vmem>>, vector<2x1152xbf16>
    %cst = arith.constant dense<0.000000e+00> : vector<2x128xf32>
    %3 = tpu.matmul %2, %0, %cst {dimension_numbers = #tpu.dot_dimension_numbers<[1], [0], [0], [1], [0, 0, 1, 1], [], []>} : vector<2x1152xbf16>, vector<1152x128xbf16>, vector<2x128xf32> -> vector<2x128xf32>
    %4 = vector.broadcast %1 : vector<1x128xf32> to vector<2x128xf32>
    %5 = arith.addf %3, %4 : vector<2x128xf32>
    %c0_5 = arith.constant 0 : index
    %c0_6 = arith.constant 0 : index
    %6 = vector.load %arg2[%c0_5, %c0_6] : memref<2x1152xbf16, #tpu.memory_space<vmem>>, vector<2x1152xbf16>
    %cst_7 = arith.constant dense<0.000000e+00> : vector<2x128xf32>
    %7 = tpu.matmul %6, %0, %cst_7 {dimension_numbers = #tpu.dot_dimension_numbers<[1], [0], [0], [1], [0, 0, 1, 1], [], []>} : vector<2x1152xbf16>, vector<1152x128xbf16>, vector<2x128xf32> -> vector<2x128xf32>
    %8 = vector.broadcast %1 : vector<1x128xf32> to vector<2x128xf32>
    %9 = arith.addf %7, %8 : vector<2x128xf32>
    %c0_8 = arith.constant 0 : index
    %c0_9 = arith.constant 0 : index
    %10 = vector.load %arg3[%c0_8, %c0_9] : memref<2x1152xbf16, #tpu.memory_space<vmem>>, vector<2x1152xbf16>
    %cst_10 = arith.constant dense<0.000000e+00> : vector<2x128xf32>
    %11 = tpu.matmul %10, %0, %cst_10 {dimension_numbers = #tpu.dot_dimension_numbers<[1], [0], [0], [1], [0, 0, 1, 1], [], []>} : vector<2x1152xbf16>, vector<1152x128xbf16>, vector<2x128xf32> -> vector<2x128xf32>
    %12 = vector.broadcast %1 : vector<1x128xf32> to vector<2x128xf32>
    %13 = arith.addf %11, %12 : vector<2x128xf32>
    %c0_11 = arith.constant 0 : index
    %c0_12 = arith.constant 0 : index
    %14 = vector.load %arg4[%c0_11, %c0_12] : memref<2x1152xbf16, #tpu.memory_space<vmem>>, vector<2x1152xbf16>
    %cst_13 = arith.constant dense<0.000000e+00> : vector<2x128xf32>
    %15 = tpu.matmul %14, %0, %cst_13 {dimension_numbers = #tpu.dot_dimension_numbers<[1], [0], [0], [1], [0, 0, 1, 1], [], []>} : vector<2x1152xbf16>, vector<1152x128xbf16>, vector<2x128xf32> -> vector<2x128xf32>
    %16 = vector.broadcast %1 : vector<1x128xf32> to vector<2x128xf32>
    %17 = arith.addf %15, %16 : vector<2x128xf32>
    %c0_14 = arith.constant 0 : index
    %c0_15 = arith.constant 0 : index
    %18 = vector.load %arg7[%c0_14, %c0_15] : memref<1x128xf32, #tpu.memory_space<vmem>>, vector<1x128xf32>
    %c0_16 = arith.constant 0 : index
    %c0_17 = arith.constant 0 : index
    %19 = vector.load %arg8[%c0_16, %c0_17] : memref<1x128xf32, #tpu.memory_space<vmem>>, vector<1x128xf32>
    %20 = arith.mulf %5, %5 : vector<2x128xf32>
    %21 = arith.addf %5, %9 : vector<2x128xf32>
    %22 = arith.mulf %9, %9 : vector<2x128xf32>
    %23 = arith.addf %20, %22 : vector<2x128xf32>
    %24 = arith.addf %21, %13 : vector<2x128xf32>
    %25 = arith.mulf %13, %13 : vector<2x128xf32>
    %26 = arith.addf %23, %25 : vector<2x128xf32>
    %27 = arith.addf %24, %17 : vector<2x128xf32>
    %28 = arith.mulf %17, %17 : vector<2x128xf32>
    %29 = arith.addf %26, %28 : vector<2x128xf32>
    %cst_18 = arith.constant dense<0.000000e+00> : vector<128xf32>
    %30 = vector.multi_reduction <add>, %27, %cst_18 [0] : vector<2x128xf32> to vector<128xf32>
    %31 = vector.shape_cast %30 : vector<128xf32> to vector<1x128xf32>
    %cst_19 = arith.constant 1.250000e-01 : f32
    %32 = vector.broadcast %cst_19 : f32 to vector<1x128xf32>
    %33 = arith.mulf %31, %32 : vector<1x128xf32>
    %cst_20 = arith.constant dense<0.000000e+00> : vector<128xf32>
    %34 = vector.multi_reduction <add>, %29, %cst_20 [0] : vector<2x128xf32> to vector<128xf32>
    %35 = vector.shape_cast %34 : vector<128xf32> to vector<1x128xf32>
    %cst_21 = arith.constant 1.250000e-01 : f32
    %36 = vector.broadcast %cst_21 : f32 to vector<1x128xf32>
    %37 = arith.mulf %35, %36 : vector<1x128xf32>
    %38 = arith.mulf %33, %33 : vector<1x128xf32>
    %39 = arith.subf %37, %38 : vector<1x128xf32>
    %cst_22 = arith.constant 0.000000e+00 : f32
    %40 = vector.broadcast %cst_22 : f32 to vector<1x128xf32>
    %41 = arith.maximumf %39, %40 : vector<1x128xf32>
    %cst_23 = arith.constant 9.99999974E-6 : f32
    %42 = vector.broadcast %cst_23 : f32 to vector<1x128xf32>
    %43 = arith.addf %41, %42 : vector<1x128xf32>
    %44 = math.rsqrt %43 : vector<1x128xf32>
    %45 = arith.mulf %18, %44 : vector<1x128xf32>
    %46 = arith.mulf %33, %45 : vector<1x128xf32>
    %47 = arith.subf %19, %46 : vector<1x128xf32>
    %48 = vector.broadcast %45 : vector<1x128xf32> to vector<2x128xf32>
    %49 = arith.mulf %5, %48 : vector<2x128xf32>
    %50 = vector.broadcast %47 : vector<1x128xf32> to vector<2x128xf32>
    %51 = arith.addf %49, %50 : vector<2x128xf32>
    %cst_24 = arith.constant 0.000000e+00 : f32
    %52 = vector.broadcast %cst_24 : f32 to vector<2x128xf32>
    %53 = arith.maximumf %51, %52 : vector<2x128xf32>
    %54 = vector.broadcast %45 : vector<1x128xf32> to vector<2x128xf32>
    %55 = arith.mulf %9, %54 : vector<2x128xf32>
    %56 = vector.broadcast %47 : vector<1x128xf32> to vector<2x128xf32>
    %57 = arith.addf %55, %56 : vector<2x128xf32>
    %cst_25 = arith.constant 0.000000e+00 : f32
    %58 = vector.broadcast %cst_25 : f32 to vector<2x128xf32>
    %59 = arith.maximumf %57, %58 : vector<2x128xf32>
    %60 = vector.broadcast %45 : vector<1x128xf32> to vector<2x128xf32>
    %61 = arith.mulf %13, %60 : vector<2x128xf32>
    %62 = vector.broadcast %47 : vector<1x128xf32> to vector<2x128xf32>
    %63 = arith.addf %61, %62 : vector<2x128xf32>
    %cst_26 = arith.constant 0.000000e+00 : f32
    %64 = vector.broadcast %cst_26 : f32 to vector<2x128xf32>
    %65 = arith.maximumf %63, %64 : vector<2x128xf32>
    %66 = vector.broadcast %45 : vector<1x128xf32> to vector<2x128xf32>
    %67 = arith.mulf %17, %66 : vector<2x128xf32>
    %68 = vector.broadcast %47 : vector<1x128xf32> to vector<2x128xf32>
    %69 = arith.addf %67, %68 : vector<2x128xf32>
    %cst_27 = arith.constant 0.000000e+00 : f32
    %70 = vector.broadcast %cst_27 : f32 to vector<2x128xf32>
    %71 = arith.maximumf %69, %70 : vector<2x128xf32>
    %72 = arith.maximumf %53, %59 : vector<2x128xf32>
    %73 = arith.maximumf %65, %71 : vector<2x128xf32>
    %74 = arith.maximumf %72, %73 : vector<2x128xf32>
    %75 = arith.truncf %74 : vector<2x128xf32> to vector<2x128xbf16>
    %c0_28 = arith.constant 0 : index
    %c0_29 = arith.constant 0 : index
    %76 = vector.load %arg9[%c0_28, %c0_29] : memref<128x128xbf16, #tpu.memory_space<vmem>>, vector<128x128xbf16>
    %cst_30 = arith.constant dense<0.000000e+00> : vector<2x128xf32>
    %77 = tpu.matmul %75, %76, %cst_30 {dimension_numbers = #tpu.dot_dimension_numbers<[1], [0], [0], [1], [0, 0, 1, 1], [], []>} : vector<2x128xbf16>, vector<128x128xbf16>, vector<2x128xf32> -> vector<2x128xf32>
    %c0_31 = arith.constant 0 : index
    %c0_32 = arith.constant 0 : index
    %78 = vector.load %arg10[%c0_31, %c0_32] : memref<1x128xf32, #tpu.memory_space<vmem>>, vector<1x128xf32>
    %79 = vector.broadcast %78 : vector<1x128xf32> to vector<2x128xf32>
    %80 = arith.addf %77, %79 : vector<2x128xf32>
    %c0_33 = arith.constant 0 : index
    %c0_34 = arith.constant 0 : index
    %81 = vector.load %arg11[%c0_33, %c0_34] : memref<1x128xf32, #tpu.memory_space<vmem>>, vector<1x128xf32>
    %c0_35 = arith.constant 0 : index
    %c0_36 = arith.constant 0 : index
    %82 = vector.load %arg12[%c0_35, %c0_36] : memref<1x128xf32, #tpu.memory_space<vmem>>, vector<1x128xf32>
    %83 = arith.mulf %80, %80 : vector<2x128xf32>
    %cst_37 = arith.constant dense<0.000000e+00> : vector<128xf32>
    %84 = vector.multi_reduction <add>, %80, %cst_37 [0] : vector<2x128xf32> to vector<128xf32>
    %85 = vector.shape_cast %84 : vector<128xf32> to vector<1x128xf32>
    %cst_38 = arith.constant 5.000000e-01 : f32
    %86 = vector.broadcast %cst_38 : f32 to vector<1x128xf32>
    %87 = arith.mulf %85, %86 : vector<1x128xf32>
    %cst_39 = arith.constant dense<0.000000e+00> : vector<128xf32>
    %88 = vector.multi_reduction <add>, %83, %cst_39 [0] : vector<2x128xf32> to vector<128xf32>
    %89 = vector.shape_cast %88 : vector<128xf32> to vector<1x128xf32>
    %cst_40 = arith.constant 5.000000e-01 : f32
    %90 = vector.broadcast %cst_40 : f32 to vector<1x128xf32>
    %91 = arith.mulf %89, %90 : vector<1x128xf32>
    %92 = arith.mulf %87, %87 : vector<1x128xf32>
    %93 = arith.subf %91, %92 : vector<1x128xf32>
    %cst_41 = arith.constant 0.000000e+00 : f32
    %94 = vector.broadcast %cst_41 : f32 to vector<1x128xf32>
    %95 = arith.maximumf %93, %94 : vector<1x128xf32>
    %cst_42 = arith.constant 9.99999974E-6 : f32
    %96 = vector.broadcast %cst_42 : f32 to vector<1x128xf32>
    %97 = arith.addf %95, %96 : vector<1x128xf32>
    %98 = math.rsqrt %97 : vector<1x128xf32>
    %99 = arith.mulf %81, %98 : vector<1x128xf32>
    %100 = arith.mulf %87, %99 : vector<1x128xf32>
    %101 = arith.subf %82, %100 : vector<1x128xf32>
    %102 = vector.broadcast %99 : vector<1x128xf32> to vector<2x128xf32>
    %103 = arith.mulf %80, %102 : vector<2x128xf32>
    %104 = vector.broadcast %101 : vector<1x128xf32> to vector<2x128xf32>
    %105 = arith.addf %103, %104 : vector<2x128xf32>
    %cst_43 = arith.constant 0.000000e+00 : f32
    %106 = vector.broadcast %cst_43 : f32 to vector<2x128xf32>
    %107 = arith.maximumf %105, %106 : vector<2x128xf32>
    %108 = arith.truncf %107 : vector<2x128xf32> to vector<2x128xbf16>
    %c0_44 = arith.constant 0 : index
    %c0_45 = arith.constant 0 : index
    %109 = vector.load %arg13[%c0_44, %c0_45] : memref<128x128xbf16, #tpu.memory_space<vmem>>, vector<128x128xbf16>
    %cst_46 = arith.constant dense<0.000000e+00> : vector<2x128xf32>
    %110 = tpu.matmul %108, %109, %cst_46 {dimension_numbers = #tpu.dot_dimension_numbers<[1], [0], [0], [1], [0, 0, 1, 1], [], []>} : vector<2x128xbf16>, vector<128x128xbf16>, vector<2x128xf32> -> vector<2x128xf32>
    %c0_47 = arith.constant 0 : index
    %c0_48 = arith.constant 0 : index
    %111 = vector.load %arg14[%c0_47, %c0_48] : memref<1x128xf32, #tpu.memory_space<vmem>>, vector<1x128xf32>
    %112 = vector.broadcast %111 : vector<1x128xf32> to vector<2x128xf32>
    %113 = arith.addf %110, %112 : vector<2x128xf32>
    %c0_49 = arith.constant 0 : index
    %c0_50 = arith.constant 0 : index
    %114 = vector.load %arg15[%c0_49, %c0_50] : memref<1x128xf32, #tpu.memory_space<vmem>>, vector<1x128xf32>
    %c0_51 = arith.constant 0 : index
    %c0_52 = arith.constant 0 : index
    %115 = vector.load %arg16[%c0_51, %c0_52] : memref<1x128xf32, #tpu.memory_space<vmem>>, vector<1x128xf32>
    %116 = arith.mulf %113, %113 : vector<2x128xf32>
    %cst_53 = arith.constant dense<0.000000e+00> : vector<128xf32>
    %117 = vector.multi_reduction <add>, %113, %cst_53 [0] : vector<2x128xf32> to vector<128xf32>
    %118 = vector.shape_cast %117 : vector<128xf32> to vector<1x128xf32>
    %cst_54 = arith.constant 5.000000e-01 : f32
    %119 = vector.broadcast %cst_54 : f32 to vector<1x128xf32>
    %120 = arith.mulf %118, %119 : vector<1x128xf32>
    %cst_55 = arith.constant dense<0.000000e+00> : vector<128xf32>
    %121 = vector.multi_reduction <add>, %116, %cst_55 [0] : vector<2x128xf32> to vector<128xf32>
    %122 = vector.shape_cast %121 : vector<128xf32> to vector<1x128xf32>
    %cst_56 = arith.constant 5.000000e-01 : f32
    %123 = vector.broadcast %cst_56 : f32 to vector<1x128xf32>
    %124 = arith.mulf %122, %123 : vector<1x128xf32>
    %125 = arith.mulf %120, %120 : vector<1x128xf32>
    %126 = arith.subf %124, %125 : vector<1x128xf32>
    %cst_57 = arith.constant 0.000000e+00 : f32
    %127 = vector.broadcast %cst_57 : f32 to vector<1x128xf32>
    %128 = arith.maximumf %126, %127 : vector<1x128xf32>
    %cst_58 = arith.constant 9.99999974E-6 : f32
    %129 = vector.broadcast %cst_58 : f32 to vector<1x128xf32>
    %130 = arith.addf %128, %129 : vector<1x128xf32>
    %131 = math.rsqrt %130 : vector<1x128xf32>
    %132 = arith.mulf %114, %131 : vector<1x128xf32>
    %133 = arith.mulf %120, %132 : vector<1x128xf32>
    %134 = arith.subf %115, %133 : vector<1x128xf32>
    %135 = vector.broadcast %132 : vector<1x128xf32> to vector<2x128xf32>
    %136 = arith.mulf %113, %135 : vector<2x128xf32>
    %137 = vector.broadcast %134 : vector<1x128xf32> to vector<2x128xf32>
    %138 = arith.addf %136, %137 : vector<2x128xf32>
    %cst_59 = arith.constant 0.000000e+00 : f32
    %139 = vector.broadcast %cst_59 : f32 to vector<2x128xf32>
    %140 = arith.maximumf %138, %139 : vector<2x128xf32>
    %141 = arith.truncf %140 : vector<2x128xf32> to vector<2x128xbf16>
    %c0_60 = arith.constant 0 : index
    %c0_61 = arith.constant 0 : index
    %142 = vector.load %arg17[%c0_60, %c0_61] : memref<128x128xbf16, #tpu.memory_space<vmem>>, vector<128x128xbf16>
    %cst_62 = arith.constant dense<0.000000e+00> : vector<2x128xf32>
    %143 = tpu.matmul %141, %142, %cst_62 {dimension_numbers = #tpu.dot_dimension_numbers<[1], [0], [0], [1], [0, 0, 1, 1], [], []>} : vector<2x128xbf16>, vector<128x128xbf16>, vector<2x128xf32> -> vector<2x128xf32>
    %c0_63 = arith.constant 0 : index
    %c0_64 = arith.constant 0 : index
    %144 = vector.load %arg18[%c0_63, %c0_64] : memref<1x128xf32, #tpu.memory_space<vmem>>, vector<1x128xf32>
    %145 = vector.broadcast %144 : vector<1x128xf32> to vector<2x128xf32>
    %146 = arith.addf %143, %145 : vector<2x128xf32>
    %c0_65 = arith.constant 0 : index
    %c0_66 = arith.constant 0 : index
    %147 = vector.load %arg19[%c0_65, %c0_66] : memref<2x128xf32, #tpu.memory_space<vmem>>, vector<2x128xf32>
    tpu.vector_store %arg19[%c0_65, %c0_66], %146 {strides = array<i32>} : memref<2x128xf32, #tpu.memory_space<vmem>>, vector<2x128xf32>,
    return
  }
  func.func @transform_0(%arg0: i32) -> (i32, i32) {
    %c0_i32 = arith.constant 0 : i32
    %c0_i32_0 = arith.constant 0 : i32
    %c0_i32_1 = arith.constant 0 : i32
    return %c0_i32, %c0_i32_0 : i32, i32
  }
  func.func @transform_1(%arg0: i32) -> (i32, i32) {
    %c0_i32 = arith.constant 0 : i32
    %c0_i32_0 = arith.constant 0 : i32
    %c0_i32_1 = arith.constant 0 : i32
    return %c0_i32, %c0_i32_0 : i32, i32
  }
  func.func @transform_2(%arg0: i32) -> (i32, i32) {
    %c0_i32 = arith.constant 0 : i32
    %c0_i32_0 = arith.constant 0 : i32
    %c0_i32_1 = arith.constant 0 : i32
    return %c0_i32, %c0_i32_0 : i32, i32
  }
  func.func @transform_3(%arg0: i32) -> (i32, i32) {
    %c0_i32 = arith.constant 0 : i32
    %c0_i32_0 = arith.constant 0 : i32
    %c0_i32_1 = arith.constant 0 : i32
    return %c0_i32, %c0_i32_0 : i32, i32
  }
  func.func @transform_4(%arg0: i32) -> (i32, i32) {
    %c0_i32 = arith.constant 0 : i32
    %c0_i32_0 = arith.constant 0 : i32
    %c0_i32_1 = arith.constant 0 : i32
    return %c0_i32, %c0_i32_0 : i32, i32
  }
  func.func @transform_5(%arg0: i32) -> (i32, i32) {
    %c0_i32 = arith.constant 0 : i32
    %c0_i32_0 = arith.constant 0 : i32
    %c0_i32_1 = arith.constant 0 : i32
    return %c0_i32, %c0_i32_0 : i32, i32
  }
  func.func @transform_6(%arg0: i32) -> (i32, i32) {
    %c0_i32 = arith.constant 0 : i32
    %c0_i32_0 = arith.constant 0 : i32
    %c0_i32_1 = arith.constant 0 : i32
    return %c0_i32, %c0_i32_0 : i32, i32
  }
  func.func @transform_7(%arg0: i32) -> (i32, i32) {
    %c0_i32 = arith.constant 0 : i32
    %c0_i32_0 = arith.constant 0 : i32
    %c0_i32_1 = arith.constant 0 : i32
    return %c0_i32, %c0_i32_0 : i32, i32
  }
  func.func @transform_8(%arg0: i32) -> (i32, i32) {
    %c0_i32 = arith.constant 0 : i32
    %c0_i32_0 = arith.constant 0 : i32
    %c0_i32_1 = arith.constant 0 : i32
    return %c0_i32, %c0_i32_0 : i32, i32
  }
  func.func @transform_9(%arg0: i32) -> (i32, i32) {
    %c0_i32 = arith.constant 0 : i32
    %c0_i32_0 = arith.constant 0 : i32
    %c0_i32_1 = arith.constant 0 : i32
    return %c0_i32, %c0_i32_0 : i32, i32
  }
  func.func @transform_10(%arg0: i32) -> (i32, i32) {
    %c0_i32 = arith.constant 0 : i32
    %c0_i32_0 = arith.constant 0 : i32
    %c0_i32_1 = arith.constant 0 : i32
    return %c0_i32, %c0_i32_0 : i32, i32
  }
  func.func @transform_11(%arg0: i32) -> (i32, i32) {
    %c0_i32 = arith.constant 0 : i32
    %c0_i32_0 = arith.constant 0 : i32
    %c0_i32_1 = arith.constant 0 : i32
    return %c0_i32, %c0_i32_0 : i32, i32
  }
  func.func @transform_12(%arg0: i32) -> (i32, i32) {
    %c0_i32 = arith.constant 0 : i32
    %c0_i32_0 = arith.constant 0 : i32
    %c0_i32_1 = arith.constant 0 : i32
    return %c0_i32, %c0_i32_0 : i32, i32
  }
  func.func @transform_13(%arg0: i32) -> (i32, i32) {
    %c0_i32 = arith.constant 0 : i32
    %c0_i32_0 = arith.constant 0 : i32
    %c0_i32_1 = arith.constant 0 : i32
    return %c0_i32, %c0_i32_0 : i32, i32
  }
  func.func @transform_14(%arg0: i32) -> (i32, i32) {
    %c0_i32 = arith.constant 0 : i32
    %c0_i32_0 = arith.constant 0 : i32
    %c0_i32_1 = arith.constant 0 : i32
    return %c0_i32, %c0_i32_0 : i32, i32
  }
  func.func @transform_15(%arg0: i32) -> (i32, i32) {
    %c0_i32 = arith.constant 0 : i32
    %c0_i32_0 = arith.constant 0 : i32
    %c0_i32_1 = arith.constant 0 : i32
    return %c0_i32, %c0_i32_0 : i32, i32
  }
  func.func @transform_16(%arg0: i32) -> (i32, i32) {
    %c0_i32 = arith.constant 0 : i32
    %c0_i32_0 = arith.constant 0 : i32
    %c0_i32_1 = arith.constant 0 : i32
    return %c0_i32, %c0_i32_0 : i32, i32
  }
  func.func @transform_17(%arg0: i32) -> (i32, i32) {
    %c0_i32 = arith.constant 0 : i32
    %c0_i32_0 = arith.constant 0 : i32
    %c0_i32_1 = arith.constant 0 : i32
    return %c0_i32, %c0_i32_0 : i32, i32
  }
  func.func @transform_18(%arg0: i32) -> (i32, i32) {
    %c0_i32 = arith.constant 0 : i32
    %c0_i32_0 = arith.constant 0 : i32
    %c0_i32_1 = arith.constant 0 : i32
    return %c0_i32, %c0_i32_0 : i32, i32
  }
}

</mosaic_0001>

<bundles_post_ra>
// kernel: lenet5_forward.3
= control target key start
LH: loop header
LB: loop body
LE: loop exit
PB: predicated region body
PF: predicated region fallthrough
CT: control target
= control target key end

     0   :  { %s6184_s4 = inlined_call_operand.vmem [shape: bf16[128,128], index: 4, kind: input, shape index: {}]   ;;  %s6185_s0 = inlined_call_operand.vmem [shape: bf16[288,128], index: 0, kind: input, shape index: {}]   ;;  %s6186_s1 = inlined_call_operand.vmem [shape: bf16[288,128], index: 1, kind: input, shape index: {}]   ;;  %s6187_s2 = inlined_call_operand.vmem [shape: bf16[288,128], index: 2, kind: input, shape index: {}]   ;;  %s6188_s3 = inlined_call_operand.vmem [shape: bf16[288,128], index: 3, kind: input, shape index: {}]   ;;  %s6189_s5 = inlined_call_operand.vmem [shape: f32[1,128], index: 5, kind: input, shape index: {}]   ;;  %s6190_s6 = inlined_call_operand.vmem [shape: f32[1,128], index: 6, kind: input, shape index: {}]   ;;  %s6191_s7 = inlined_call_operand.vmem [shape: f32[1,128], index: 7, kind: input, shape index: {}]   ;;  %s6192_s8 = inlined_call_operand.vmem [shape: bf16[288,128], index: 8, kind: output, shape index: {}]  }
   0x1   :  { %v3147_v0 = vld [vmem:[%s6184_s4] sm:$0xff]   ;;  %v3148_v1 = vld [vmem:[%s6184_s4 + $0x8] sm:$0xff]   ;;  %v3284_v2 = vld [vmem:[%s6184_s4 + $0x10] sm:$0xff]  }
   0x2   :  { %2939 = vmatprep.subr.bf16.mxu0 %v3147_v0  ;;  %2991 = vmatprep.subr.bf16.mxu1 %v3147_v0  ;;  %v3289_v3 = vld [vmem:[%s6184_s4 + $0x18] sm:$0xff]   ;;  %v3155_v4 = vld [vmem:[%s6185_s0] sm:$0xff]   ;;  %v3315_v7 = vld [vmem:[%s6184_s4 + $0x28] sm:$0xff]  }
   0x3   :  { %2940 = vmatpush3.bf16.msra.mxu0 %v3147_v0  ;;  %2992 = vmatpush3.bf16.msra.mxu1 %v3147_v0  ;;  %v3156_v5 = vld [vmem:[%s6186_s1] sm:$0xff]   ;;  %v3324_v8 = vld [vmem:[%s6184_s4 + $0x30] sm:$0xff]   ;;  %v3333_v9 = vld [vmem:[%s6184_s4 + $0x38] sm:$0xff]  }
   0x4   :  { %2941 = vmatprep.subr.bf16.mxu0 %v3148_v1  ;;  %2993 = vmatprep.subr.bf16.mxu1 %v3148_v1  ;;  %v3306_v6 = vld [vmem:[%s6184_s4 + $0x20] sm:$0xff]   ;;  %v3157_v10 = vld [vmem:[%s6185_s0 + $0x8] sm:$0xff]   ;;  %v3159_v12 = vld [vmem:[%s6185_s0 + $0x10] sm:$0xff]  }
   0x5   :  { %2955 = vmatprep.mubr.bf16.mxu0 %v3155_v4  ;;  %3007 = vmatprep.mubr.bf16.mxu1 %v3156_v5  ;;  %v3158_v11 = vld [vmem:[%s6186_s1 + $0x8] sm:$0xff]   ;;  %v3160_v13 = vld [vmem:[%s6186_s1 + $0x10] sm:$0xff]   ;;  %v3161_v14 = vld [vmem:[%s6185_s0 + $0x18] sm:$0xff]  }
   0x6   :  { %v3162_v15 = vld [vmem:[%s6186_s1 + $0x18] sm:$0xff]   ;;  %v3163_v16 = vld [vmem:[%s6185_s0 + $0x20] sm:$0xff]   ;;  %v3165_v18 = vld [vmem:[%s6185_s0 + $0x28] sm:$0xff]  }
   0x7   :  { %2942 = vmatpush3.bf16.msra.mxu0 %v3148_v1  ;;  %2994 = vmatpush3.bf16.msra.mxu1 %v3148_v1  ;;  %v3164_v17 = vld [vmem:[%s6186_s1 + $0x20] sm:$0xff]   ;;  %v3166_v19 = vld [vmem:[%s6186_s1 + $0x28] sm:$0xff]   ;;  %v3167_v20 = vld [vmem:[%s6185_s0 + $0x30] sm:$0xff]  }
   0x8   :  { %2943 = vmatprep.subr.bf16.mxu0 %v3284_v2  ;;  %2995 = vmatprep.subr.bf16.mxu1 %v3284_v2  ;;  %v3168_v21 = vld [vmem:[%s6186_s1 + $0x30] sm:$0xff]   ;;  %v3169_v22 = vld [vmem:[%s6185_s0 + $0x38] sm:$0xff]   ;;  %v3171_v24 = vld [vmem:[%s6185_s0 + $0x40] sm:$0xff]  }
   0x9   :  { %v3170_v23 = vld [vmem:[%s6186_s1 + $0x38] sm:$0xff]   ;;  %v3172_v25 = vld [vmem:[%s6186_s1 + $0x40] sm:$0xff]   ;;  %v3173_v26 = vld [vmem:[%s6185_s0 + $0x48] sm:$0xff]  }
   0xa   :  { %v3174_v27 = vld [vmem:[%s6186_s1 + $0x48] sm:$0xff]   ;;  %v3175_v28 = vld [vmem:[%s6185_s0 + $0x50] sm:$0xff]   ;;  %v3177_v30 = vld [vmem:[%s6185_s0 + $0x58] sm:$0xff]  }
   0xb   :  { %2944 = vmatpush3.bf16.msra.mxu0 %v3284_v2  ;;  %2996 = vmatpush3.bf16.msra.mxu1 %v3284_v2  ;;  %v3176_v29 = vld [vmem:[%s6186_s1 + $0x50] sm:$0xff]   ;;  %v3178_v31 = vld [vmem:[%s6186_s1 + $0x58] sm:$0xff]   ;;  %v3179_v32 = vld [vmem:[%s6185_s0 + $0x60] sm:$0xff]  }
   0xc   :  { %2945 = vmatprep.subr.bf16.mxu0 %v3289_v3  ;;  %2997 = vmatprep.subr.bf16.mxu1 %v3289_v3  ;;  %v3180_v33 = vld [vmem:[%s6186_s1 + $0x60] sm:$0xff]   ;;  %v3181_v34 = vld [vmem:[%s6185_s0 + $0x68] sm:$0xff]   ;;  %v3183_v36 = vld [vmem:[%s6185_s0 + $0x70] sm:$0xff]  }
   0xd   :  { %v3182_v35 = vld [vmem:[%s6186_s1 + $0x68] sm:$0xff]   ;;  %v3184_v37 = vld [vmem:[%s6186_s1 + $0x70] sm:$0xff]   ;;  %v3185_v38 = vld [vmem:[%s6185_s0 + $0x78] sm:$0xff]  }
   0xe   :  { %v3186_v39 = vld [vmem:[%s6186_s1 + $0x78] sm:$0xff]   ;;  %v3187_v40 = vld [vmem:[%s6185_s0 + $0x80] sm:$0xff]   ;;  %v3189_v42 = vld [vmem:[%s6185_s0 + $0x88] sm:$0xff]  }
   0xf   :  { %2946 = vmatpush3.bf16.msra.mxu0 %v3289_v3  ;;  %2998 = vmatpush3.bf16.msra.mxu1 %v3289_v3  ;;  %v3188_v41 = vld [vmem:[%s6186_s1 + $0x80] sm:$0xff]   ;;  %v3190_v43 = vld [vmem:[%s6186_s1 + $0x88] sm:$0xff]   ;;  %v3195_v48 = vld [vmem:[%s6187_s2 + $0x10] sm:$0xff]  }
  0x10   :  { %2947 = vmatprep.subr.bf16.mxu0 %v3306_v6  ;;  %2999 = vmatprep.subr.bf16.mxu1 %v3306_v6  ;;  %v3191_v44 = vld [vmem:[%s6187_s2] sm:$0xff]   ;;  %v3193_v46 = vld [vmem:[%s6187_s2 + $0x8] sm:$0xff]   ;;  %v3196_v49 = vld [vmem:[%s6188_s3 + $0x10] sm:$0xff]  }
  0x11   :  { %v3192_v45 = vld [vmem:[%s6188_s3] sm:$0xff]   ;;  %v3194_v47 = vld [vmem:[%s6188_s3 + $0x8] sm:$0xff]   ;;  %v3197_v50 = vld [vmem:[%s6187_s2 + $0x18] sm:$0xff]  }
  0x12   :  { %v3198_v51 = vld [vmem:[%s6188_s3 + $0x18] sm:$0xff]   ;;  %v3199_v52 = vld [vmem:[%s6187_s2 + $0x20] sm:$0xff]   ;;  %v3201_v54 = vld [vmem:[%s6187_s2 + $0x28] sm:$0xff]  }
  0x13   :  { %2948 = vmatpush3.bf16.msra.mxu0 %v3306_v6  ;;  %3000 = vmatpush3.bf16.msra.mxu1 %v3306_v6  ;;  %v3200_v53 = vld [vmem:[%s6188_s3 + $0x20] sm:$0xff]   ;;  %v3202_v55 = vld [vmem:[%s6188_s3 + $0x28] sm:$0xff]   ;;  %v3203_v56 = vld [vmem:[%s6187_s2 + $0x30] sm:$0xff]  }
  0x14   :  { %2949 = vmatprep.subr.bf16.mxu0 %v3315_v7  ;;  %3001 = vmatprep.subr.bf16.mxu1 %v3315_v7  ;;  %v3204_v57 = vld [vmem:[%s6188_s3 + $0x30] sm:$0xff]   ;;  %v3205_v58 = vld [vmem:[%s6187_s2 + $0x38] sm:$0xff]   ;;  %v3207_v60 = vld [vmem:[%s6187_s2 + $0x40] sm:$0xff]  }
  0x15   :  { %v3206_v59 = vld [vmem:[%s6188_s3 + $0x38] sm:$0xff]   ;;  %v3208_v61 = vld [vmem:[%s6188_s3 + $0x40] sm:$0xff]   ;;  %v3209_v62 = vld [vmem:[%s6187_s2 + $0x48] sm:$0xff]  }
  0x16   :  { %v3210_v63 = vld [vmem:[%s6188_s3 + $0x48] sm:$0xff]   ;;  %v3215_v4 = vld [vmem:[%s6187_s2 + $0x60] sm:$0xff]  }
  0x17   :  { %2950 = vmatpush3.bf16.msra.mxu0 %v3315_v7  ;;  %3002 = vmatpush3.bf16.msra.mxu1 %v3315_v7  ;;  %v3216_v5 = vld [vmem:[%s6188_s3 + $0x60] sm:$0xff]  }
  0x18   :  { %2951 = vmatprep.subr.bf16.mxu0 %v3324_v8  ;;  %3003 = vmatprep.subr.bf16.mxu1 %v3324_v8 }
  0x1b   :  { %2952 = vmatpush3.bf16.msra.mxu0 %v3324_v8  ;;  %3004 = vmatpush3.bf16.msra.mxu1 %v3324_v8 }
  0x1c   :  { %2953 = vmatprep.subr.bf16.mxu0 %v3333_v9  ;;  %3005 = vmatprep.subr.bf16.mxu1 %v3333_v9 }
  0x1f   :  { %2954 = vmatpush3.bf16.msra.mxu0 %v3333_v9  ;;  %3006 = vmatpush3.bf16.msra.mxu1 %v3333_v9 }
  0x20   :  { %3043 = vmatprep.subr.bf16.mxu0 %v3147_v0  ;;  %3095 = vmatprep.subr.bf16.mxu1 %v3147_v0 }
  0x22   :  { %2956 = vmatmul.mubr.bf16.vlgmr.msra.gmra.mrb[0].mxu0 %v3157_v10  ;;  %3008 = vmatmul.mubr.bf16.vlgmr.msra.gmra.mrb[0].mxu1 %v3158_v11  ;;  %v3221_v10 = vld [vmem:[%s6187_s2 + $0x78] sm:$0xff]  }
  0x23   :  { %3044 = vmatpush3.bf16.msra.mxu0 %v3147_v0  ;;  %3096 = vmatpush3.bf16.msra.mxu1 %v3147_v0  ;;  %v3211_v0 = vld [vmem:[%s6187_s2 + $0x50] sm:$0xff]   ;;  %v3222_v11 = vld [vmem:[%s6188_s3 + $0x78] sm:$0xff]  }
  0x24   :  { %2959 = vmatprep.mubr.bf16.mxu0 %v3159_v12  ;;  %3011 = vmatprep.mubr.bf16.mxu1 %v3160_v13  ;;  %v3223_v12 = vld [vmem:[%s6187_s2 + $0x80] sm:$0xff]  }
  0x25   :  { %3045 = vmatprep.subr.bf16.mxu0 %v3148_v1  ;;  %3097 = vmatprep.subr.bf16.mxu1 %v3148_v1  ;;  %v3224_v13 = vld [vmem:[%s6188_s3 + $0x80] sm:$0xff]  }
  0x27   :  { %3046 = vmatpush3.bf16.msra.mxu0 %v3148_v1  ;;  %3098 = vmatpush3.bf16.msra.mxu1 %v3148_v1  ;;  %v3212_v1 = vld [vmem:[%s6188_s3 + $0x50] sm:$0xff]  }
  0x28   :  { %3047 = vmatprep.subr.bf16.mxu0 %v3284_v2  ;;  %3099 = vmatprep.subr.bf16.mxu1 %v3284_v2 }
  0x2a   :  { %2960 = vmatmul.mubr.bf16.gmra.mrb[4].mxu0 %v3161_v14  ;;  %3012 = vmatmul.mubr.bf16.gmra.mrb[4].mxu1 %v3162_v15  ;;  %v3225_v14 = vld [vmem:[%s6187_s2 + $0x88] sm:$0xff]  }
  0x2b   :  { %2963 = vmatprep.mubr.bf16.mxu0 %v3163_v16  ;;  %3015 = vmatprep.mubr.bf16.mxu1 %v3164_v17  ;;  %v3226_v15 = vld [vmem:[%s6188_s3 + $0x88] sm:$0xff]  }
  0x2c   :  { %3048 = vmatpush3.bf16.msra.mxu0 %v3284_v2  ;;  %3100 = vmatpush3.bf16.msra.mxu1 %v3284_v2  ;;  %v3213_v2 = vld [vmem:[%s6187_s2 + $0x58] sm:$0xff]  }
  0x2d   :  { %3049 = vmatprep.subr.bf16.mxu0 %v3289_v3  ;;  %3101 = vmatprep.subr.bf16.mxu1 %v3289_v3 }
  0x30   :  { %3050 = vmatpush3.bf16.msra.mxu0 %v3289_v3  ;;  %3102 = vmatpush3.bf16.msra.mxu1 %v3289_v3  ;;  %v3214_v3 = vld [vmem:[%s6188_s3 + $0x58] sm:$0xff]  }
  0x31   :  { %3051 = vmatprep.subr.bf16.mxu0 %v3306_v6  ;;  %3103 = vmatprep.subr.bf16.mxu1 %v3306_v6 }
  0x32   :  { %2964 = vmatmul.mubr.bf16.gmra.mrb[8].mxu0 %v3165_v18  ;;  %3016 = vmatmul.mubr.bf16.gmra.mrb[8].mxu1 %v3166_v19 }
  0x33   :  { %2967 = vmatprep.mubr.bf16.mxu0 %v3167_v20  ;;  %3019 = vmatprep.mubr.bf16.mxu1 %v3168_v21 }
  0x34   :  { %3052 = vmatpush3.bf16.msra.mxu0 %v3306_v6  ;;  %3104 = vmatpush3.bf16.msra.mxu1 %v3306_v6  ;;  %v3217_v6 = vld [vmem:[%s6187_s2 + $0x68] sm:$0xff]  }
  0x35   :  { %3053 = vmatprep.subr.bf16.mxu0 %v3315_v7  ;;  %3105 = vmatprep.subr.bf16.mxu1 %v3315_v7 }
  0x38   :  { %3054 = vmatpush3.bf16.msra.mxu0 %v3315_v7  ;;  %3106 = vmatpush3.bf16.msra.mxu1 %v3315_v7  ;;  %v3218_v7 = vld [vmem:[%s6188_s3 + $0x68] sm:$0xff]  }
  0x39   :  { %3055 = vmatprep.subr.bf16.mxu0 %v3324_v8  ;;  %3107 = vmatprep.subr.bf16.mxu1 %v3324_v8 }
  0x3a   :  { %2968 = vmatmul.mubr.bf16.gmra.mrb[12].mxu0 %v3169_v22  ;;  %3020 = vmatmul.mubr.bf16.gmra.mrb[12].mxu1 %v3170_v23 }
  0x3b   :  { %2971 = vmatprep.mubr.bf16.mxu0 %v3171_v24  ;;  %3023 = vmatprep.mubr.bf16.mxu1 %v3172_v25 }
  0x3c   :  { %3056 = vmatpush3.bf16.msra.mxu0 %v3324_v8  ;;  %3108 = vmatpush3.bf16.msra.mxu1 %v3324_v8  ;;  %v3219_v8 = vld [vmem:[%s6187_s2 + $0x70] sm:$0xff]  }
  0x3d   :  { %3057 = vmatprep.subr.bf16.mxu0 %v3333_v9  ;;  %3109 = vmatprep.subr.bf16.mxu1 %v3333_v9 }
  0x40   :  { %3058 = vmatpush3.bf16.msra.mxu0 %v3333_v9  ;;  %3110 = vmatpush3.bf16.msra.mxu1 %v3333_v9  ;;  %v3220_v9 = vld [vmem:[%s6188_s3 + $0x70] sm:$0xff]  }
  0x42   :  { %2972 = vmatmul.mubr.bf16.gmra.mrb[16].mxu0 %v3173_v26  ;;  %3024 = vmatmul.mubr.bf16.gmra.mrb[16].mxu1 %v3174_v27 }
  0x43   :  { %2975 = vmatprep.mubr.bf16.mxu0 %v3175_v28  ;;  %3027 = vmatprep.mubr.bf16.mxu1 %v3176_v29 }
  0x4a   :  { %2976 = vmatmul.mubr.bf16.gmra.mrb[20].mxu0 %v3177_v30  ;;  %3028 = vmatmul.mubr.bf16.gmra.mrb[20].mxu1 %v3178_v31 }
  0x4b   :  { %2979 = vmatprep.mubr.bf16.mxu0 %v3179_v32  ;;  %3031 = vmatprep.mubr.bf16.mxu1 %v3180_v33  ;;  %v3578_v32 = vld [vmem:[%s6189_s5] ss:$0 sm:$0xff] }
  0x52   :  { %2980 = vmatmul.mubr.bf16.gmra.mrb[24].mxu0 %v3181_v34  ;;  %3032 = vmatmul.mubr.bf16.gmra.mrb[24].mxu1 %v3182_v35 }
  0x53   :  { %2983 = vmatprep.mubr.bf16.mxu0 %v3183_v36  ;;  %3035 = vmatprep.mubr.bf16.mxu1 %v3184_v37 }
  0x5a   :  { %2984 = vmatmul.mubr.bf16.gmra.mrb[28].mxu0 %v3185_v38  ;;  %3036 = vmatmul.mubr.bf16.gmra.mrb[28].mxu1 %v3186_v39 }
  0x5b   :  { %2987 = vmatprep.mubr.bf16.mxu0 %v3187_v40  ;;  %3039 = vmatprep.mubr.bf16.mxu1 %v3188_v41 }
  0x62   :  { %2988 = vmatmul.mubr.bf16.gmra.mrb[32].mxu0 %v3189_v42  ;;  %3040 = vmatmul.mubr.bf16.gmra.mrb[32].mxu1 %v3190_v43 }
  0x63   :  { %3059 = vmatprep.mubr.bf16.mxu0 %v3191_v44  ;;  %3111 = vmatprep.mubr.bf16.mxu1 %v3192_v45 }
  0x6a   :  { %3060 = vmatmul.mubr.bf16.vlgmr.msra.gmra.mrb[36].mxu0 %v3193_v46  ;;  %3112 = vmatmul.mubr.bf16.vlgmr.msra.gmra.mrb[36].mxu1 %v3194_v47 }
  0x6b   :  { %3063 = vmatprep.mubr.bf16.mxu0 %v3195_v48  ;;  %3115 = vmatprep.mubr.bf16.mxu1 %v3196_v49 }
  0x72   :  { %3064 = vmatmul.mubr.bf16.gmra.mrb[40].mxu0 %v3197_v50  ;;  %3116 = vmatmul.mubr.bf16.gmra.mrb[40].mxu1 %v3198_v51 }
  0x73   :  { %3067 = vmatprep.mubr.bf16.mxu0 %v3199_v52  ;;  %3119 = vmatprep.mubr.bf16.mxu1 %v3200_v53 }
  0x7a   :  { %3068 = vmatmul.mubr.bf16.gmra.mrb[44].mxu0 %v3201_v54  ;;  %3120 = vmatmul.mubr.bf16.gmra.mrb[44].mxu1 %v3202_v55 }
  0x7b   :  { %3071 = vmatprep.mubr.bf16.mxu0 %v3203_v56  ;;  %3123 = vmatprep.mubr.bf16.mxu1 %v3204_v57 }
  0x82   :  { %3072 = vmatmul.mubr.bf16.gmra.mrb[48].mxu0 %v3205_v58  ;;  %3124 = vmatmul.mubr.bf16.gmra.mrb[48].mxu1 %v3206_v59 }
  0x83   :  { %3075 = vmatprep.mubr.bf16.mxu0 %v3207_v60  ;;  %3127 = vmatprep.mubr.bf16.mxu1 %v3208_v61 }
  0x8a   :  { %3076 = vmatmul.mubr.bf16.gmra.mrb[52].mxu0 %v3209_v62  ;;  %3128 = vmatmul.mubr.bf16.gmra.mrb[52].mxu1 %v3210_v63 }
  0x8b   :  { %3079 = vmatprep.mubr.bf16.mxu0 %v3211_v0  ;;  %3131 = vmatprep.mubr.bf16.mxu1 %v3212_v1 }
  0x92   :  { %3080 = vmatmul.mubr.bf16.gmra.mrb[56].mxu0 %v3213_v2  ;;  %3132 = vmatmul.mubr.bf16.gmra.mrb[56].mxu1 %v3214_v3 }
  0x93   :  { %3083 = vmatprep.mubr.bf16.mxu0 %v3215_v4  ;;  %3135 = vmatprep.mubr.bf16.mxu1 %v3216_v5 }
  0x9a   :  { %3084 = vmatmul.mubr.bf16.gmra.mrb[60].mxu0 %v3217_v6  ;;  %3136 = vmatmul.mubr.bf16.gmra.mrb[60].mxu1 %v3218_v7 }
  0x9b   :  { %3087 = vmatprep.mubr.bf16.mxu0 %v3219_v8  ;;  %3139 = vmatprep.mubr.bf16.mxu1 %v3220_v9 }
  0xa2   :  { %3088 = vmatmul.mubr.bf16.gmra.mrb[64].mxu0 %v3221_v10  ;;  %3140 = vmatmul.mubr.bf16.gmra.mrb[64].mxu1 %v3222_v11 }
  0xa3   :  { %3091 = vmatprep.mubr.bf16.mxu0 %v3223_v12  ;;  %3143 = vmatprep.mubr.bf16.mxu1 %v3224_v13 }
  0xaa   :  { %3092 = vmatmul.mubr.bf16.gmra.mrb[68].mxu0 %v3225_v14  ;;  %3144 = vmatmul.mubr.bf16.gmra.mrb[68].mxu1 %v3226_v15 }
  0xf5   :  { %v2957_v16 = vpop.f32.mrb[0].mxu0  ;;  %v3009_v17 = vpop.f32.mrb[0].mxu1 }
  0xf6   :  { %v279_v18 = vpop.f32.mrb[1].mxu0  ;;  %v600_v19 = vpop.f32.mrb[1].mxu1  ;;  %v3581_v35 = vadd.f32 %v2957_v16, %v3578_v32  ;;  %v3584_v36 = vadd.f32 %v3009_v17, %v3578_v32 }
  0xf7   :  { %v2958_v20 = vpop.f32.mrb[2].mxu0  ;;  %v3010_v21 = vpop.f32.mrb[2].mxu1  ;;  %v3595_v43 = vadd.f32 %v3578_v32, %v279_v18  ;;  %v3598_v44 = vadd.f32 %v3578_v32, %v600_v19 }
  0xf8   :  { %v282_v22 = vpop.f32.mrb[3].mxu0  ;;  %v603_v23 = vpop.f32.mrb[3].mxu1  ;;  %6418 = vst [vmem:[#allocation2_spill] sm:$0xff] %v3581_v35  ;;  %6419 = vst [vmem:[#allocation3_spill] sm:$0xff] %v3584_v36  ;;  %v1389_v45 = vmul.f32 %v3581_v35, %v3581_v35  ;;  %v3604_v46 = vadd.f32 %v3584_v36, %v3581_v35  ;;  %v1461_v47 = vmul.f32 %v3584_v36, %v3584_v36 }
  0xf9   :  { %6420 = vst [vmem:[#allocation4_spill] sm:$0xff] %v3595_v43  ;;  %6421 = vst [vmem:[#allocation5_spill] sm:$0xff] %v3598_v44  ;;  %v3609_v48 = vadd.f32 %v2958_v20, %v3578_v32  ;;  %v3612_v49 = vadd.f32 %v3010_v21, %v3578_v32  ;;  %v3615_v50 = vadd.f32 %v3578_v32, %v282_v22 }
  0xfa   :  { %v3618_v51 = vadd.f32 %v3578_v32, %v603_v23  ;;  %v1387_v56 = vmul.f32 %v3595_v43, %v3595_v43  ;;  %v1459_v57 = vmul.f32 %v3598_v44, %v3598_v44  ;;  %v3642_v62 = vadd.f32 %v1461_v47, %v1389_v45 }
  0xfb   :  { %6422 = vst [vmem:[#allocation6_spill] sm:$0xff] %v3609_v48  ;;  %6423 = vst [vmem:[#allocation7_spill] sm:$0xff] %v3612_v49  ;;  %v3646_v63 = vadd.f32 %v3598_v44, %v3595_v43  ;;  %v1390_v4 = vmul.f32 %v3609_v48, %v3609_v48  ;;  %v1462_v5 = vmul.f32 %v3612_v49, %v3612_v49 }
  0xfc   :  { %6424 = vst [vmem:[#allocation8_spill] sm:$0xff] %v3615_v50  ;;  %6425 = vst [vmem:[#allocation9_spill] sm:$0xff] %v3618_v51  ;;  %v1388_v6 = vmul.f32 %v3615_v50, %v3615_v50  ;;  %v1460_v7 = vmul.f32 %v3618_v51, %v3618_v51  ;;  %v3670_v16 = vadd.f32 %v1459_v57, %v1387_v56 }
  0xfd   :  { %v2961_v24 = vpop.f32.mrb[4].mxu0  ;;  %v3013_v25 = vpop.f32.mrb[4].mxu1  ;;  %v3674_v17 = vadd.f32 %v3612_v49, %v3609_v48 }
  0xfe   :  { %v295_v26 = vpop.f32.mrb[5].mxu0  ;;  %v616_v27 = vpop.f32.mrb[5].mxu1  ;;  %v3621_v52 = vadd.f32 %v2961_v24, %v3578_v32  ;;  %v3624_v53 = vadd.f32 %v3013_v25, %v3578_v32  ;;  %v3690_v24 = vadd.f32 %v1462_v5, %v1390_v4  ;;  %v3694_v25 = vadd.f32 %v3618_v51, %v3615_v50 }
  0xff   :  { %v2962_v28 = vpop.f32.mrb[6].mxu0  ;;  %v3014_v29 = vpop.f32.mrb[6].mxu1  ;;  %v3627_v54 = vadd.f32 %v3578_v32, %v295_v26  ;;  %v3630_v55 = vadd.f32 %v3578_v32, %v616_v27  ;;  %v3696_v26 = vadd.f32 %v1460_v7, %v1388_v6 }
 0x100   :  { %v298_v30 = vpop.f32.mrb[7].mxu0  ;;  %v619_v31 = vpop.f32.mrb[7].mxu1  ;;  %6426 = vst [vmem:[#allocation10_spill] sm:$0xff] %v3621_v52  ;;  %6427 = vst [vmem:[#allocation11_spill] sm:$0xff] %v3624_v53  ;;  %v3637_v58 = vadd.f32 %v2962_v28, %v3578_v32  ;;  %v3640_v59 = vadd.f32 %v3014_v29, %v3578_v32  ;;  %v1393_v10 = vmul.f32 %v3621_v52, %v3621_v52 }
 0x101   :  { %6428 = vst [vmem:[#allocation12_spill] sm:$0xff] %v3627_v54  ;;  %6429 = vst [vmem:[#allocation13_spill] sm:$0xff] %v3630_v55  ;;  %v3649_v0 = vadd.f32 %v3578_v32, %v298_v30  ;;  %v3652_v1 = vadd.f32 %v3578_v32, %v619_v31  ;;  %v1465_v11 = vmul.f32 %v3624_v53, %v3624_v53 }
 0x102   :  { %6430 = vst [vmem:[#allocation14_spill] sm:$0xff] %v3637_v58  ;;  %6431 = vst [vmem:[#allocation15_spill] sm:$0xff] %v3640_v59  ;;  %v1391_v12 = vmul.f32 %v3627_v54, %v3627_v54  ;;  %v1463_v13 = vmul.f32 %v3630_v55, %v3630_v55  ;;  %v1394_v18 = vmul.f32 %v3637_v58, %v3637_v58 }
 0x103   :  { %6432 = vst [vmem:[#allocation16_spill] sm:$0xff] %v3649_v0  ;;  %6433 = vst [vmem:[#allocation17_spill] sm:$0xff] %v3652_v1  ;;  %v1466_v19 = vmul.f32 %v3640_v59, %v3640_v59  ;;  %v1392_v20 = vmul.f32 %v3649_v0, %v3649_v0  ;;  %v1464_v21 = vmul.f32 %v3652_v1, %v3652_v1 }
 0x104   :  { %v3700_v27 = vadd.f32 %v3624_v53, %v3621_v52  ;;  %v3702_v28 = vadd.f32 %v1465_v11, %v1393_v10  ;;  %v3706_v29 = vadd.f32 %v3630_v55, %v3627_v54  ;;  %v3708_v30 = vadd.f32 %v1463_v13, %v1391_v12 }
 0x105   :  { %v2965_v33 = vpop.f32.mrb[8].mxu0  ;;  %v3017_v34 = vpop.f32.mrb[8].mxu1  ;;  %v3712_v31 = vadd.f32 %v3640_v59, %v3637_v58  ;;  %v3726_v4 = vadd.f32 %v1464_v21, %v1392_v20 }
 0x106   :  { %v311_v37 = vpop.f32.mrb[9].mxu0  ;;  %v632_v38 = vpop.f32.mrb[9].mxu1  ;;  %v3685_v22 = vadd.f32 %v2965_v33, %v3578_v32  ;;  %v3688_v23 = vadd.f32 %v3017_v34, %v3578_v32  ;;  %v3714_v33 = vadd.f32 %v1466_v19, %v1394_v18  ;;  %v3718_v34 = vadd.f32 %v3652_v1, %v3649_v0 }
 0x107   :  { %v3586_v39 = vpop.f32.mrb[10].mxu0  ;;  %v3588_v40 = vpop.f32.mrb[10].mxu1  ;;  %v3721_v45 = vadd.f32 %v3578_v32, %v311_v37  ;;  %v3724_v47 = vadd.f32 %v3578_v32, %v632_v38 }
 0x108   :  { %v3590_v41 = vpop.f32.mrb[11].mxu0  ;;  %v3592_v42 = vpop.f32.mrb[11].mxu1  ;;  %6434 = vst [vmem:[#allocation18_spill] sm:$0xff] %v3685_v22  ;;  %6435 = vst [vmem:[#allocation19_spill] sm:$0xff] %v3688_v23  ;;  %v1397_v5 = vmul.f32 %v3685_v22, %v3685_v22  ;;  %v3732_v6 = vadd.f32 %v3688_v23, %v3685_v22  ;;  %v1469_v7 = vmul.f32 %v3688_v23, %v3688_v23 }
 0x109   :  { %6436 = vst [vmem:[#allocation20_spill] sm:$0xff] %v3721_v45  ;;  %6437 = vst [vmem:[#allocation21_spill] sm:$0xff] %v3724_v47  ;;  %v3738_v38 = vadd.f32 %v3586_v39, %v3578_v32  ;;  %v3742_v11 = vadd.f32 %v3588_v40, %v3578_v32  ;;  %v3746_v12 = vadd.f32 %v3578_v32, %v3590_v41 }
 0x10a   :  { %v3750_v13 = vadd.f32 %v3578_v32, %v3592_v42  ;;  %v1395_v42 = vmul.f32 %v3721_v45, %v3721_v45  ;;  %v1467_v59 = vmul.f32 %v3724_v47, %v3724_v47  ;;  %v3774_v53 = vadd.f32 %v1469_v7, %v1397_v5 }
 0x10b   :  { %6438 = vst [vmem:[#allocation22_spill] sm:$0xff] %v3738_v38  ;;  %6439 = vst [vmem:[#allocation23_spill] sm:$0xff] %v3742_v11  ;;  %v1398_v55 = vmul.f32 %v3738_v38, %v3738_v38  ;;  %v3806_v36 = vadd.f32 %v3742_v11, %v3738_v38 }
 0x10c   :  { %6440 = vst [vmem:[#allocation24_spill] sm:$0xff] %v3746_v12  ;;  %6441 = vst [vmem:[#allocation25_spill] sm:$0xff] %v3750_v13  ;;  %v1468_v5 = vmul.f32 %v3750_v13, %v3750_v13  ;;  %v3802_v49 = vadd.f32 %v1467_v59, %v1395_v42  ;;  %v3826_v54 = vadd.f32 %v3750_v13, %v3746_v12 }
 0x10d   :  { %v2969_v60 = vpop.f32.mrb[12].mxu0  ;;  %v3021_v61 = vpop.f32.mrb[12].mxu1 }
 0x10e   :  { %v327_v2 = vpop.f32.mrb[13].mxu0  ;;  %v648_v3 = vpop.f32.mrb[13].mxu1  ;;  %v3753_v20 = vadd.f32 %v2969_v60, %v3578_v32  ;;  %v3756_v39 = vadd.f32 %v3021_v61, %v3578_v32 }
 0x10f   :  { %v2970_v8 = vpop.f32.mrb[14].mxu0  ;;  %v3022_v9 = vpop.f32.mrb[14].mxu1  ;;  %v3759_v21 = vadd.f32 %v3578_v32, %v327_v2  ;;  %v3762_v40 = vadd.f32 %v3578_v32, %v648_v3  ;;  %v3778_v2 = vadd.f32 %v3724_v47, %v3721_v45 }
 0x110   :  { %v330_v14 = vpop.f32.mrb[15].mxu0  ;;  %v651_v15 = vpop.f32.mrb[15].mxu1  ;;  %6442 = vst [vmem:[#allocation26_spill] sm:$0xff] %v3753_v20  ;;  %6443 = vst [vmem:[#allocation27_spill] sm:$0xff] %v3756_v39  ;;  %v3769_v60 = vadd.f32 %v2970_v8, %v3578_v32  ;;  %v3772_v61 = vadd.f32 %v3022_v9, %v3578_v32  ;;  %v1470_v8 = vmul.f32 %v3742_v11, %v3742_v11 }
 0x111   :  { %6444 = vst [vmem:[#allocation28_spill] sm:$0xff] %v3759_v21  ;;  %6445 = vst [vmem:[#allocation29_spill] sm:$0xff] %v3762_v40  ;;  %v3781_v3 = vadd.f32 %v3578_v32, %v330_v14  ;;  %v3784_v1 = vadd.f32 %v3578_v32, %v651_v15  ;;  %v1396_v9 = vmul.f32 %v3746_v12, %v3746_v12 }
 0x112   :  { %6446 = vst [vmem:[#allocation30_spill] sm:$0xff] %v3769_v60  ;;  %6447 = vst [vmem:[#allocation31_spill] sm:$0xff] %v3772_v61  ;;  %v1401_v7 = vmul.f32 %v3753_v20, %v3753_v20  ;;  %v1473_v14 = vmul.f32 %v3756_v39, %v3756_v39  ;;  %v1399_v15 = vmul.f32 %v3759_v21, %v3759_v21 }
 0x113   :  { %6448 = vst [vmem:[#allocation32_spill] sm:$0xff] %v3781_v3  ;;  %6449 = vst [vmem:[#allocation33_spill] sm:$0xff] %v3784_v1  ;;  %v1471_v47 = vmul.f32 %v3762_v40, %v3762_v40  ;;  %v1402_v51 = vmul.f32 %v3769_v60, %v3769_v60  ;;  %v1474_v44 = vmul.f32 %v3772_v61, %v3772_v61 }
 0x114   :  { %v1400_v58 = vmul.f32 %v3781_v3, %v3781_v3  ;;  %v1472_v52 = vmul.f32 %v3784_v1, %v3784_v1  ;;  %v3822_v0 = vadd.f32 %v1470_v8, %v1398_v55  ;;  %v3828_v48 = vadd.f32 %v1468_v5, %v1396_v9 }
 0x115   :  { %v2973_v56 = vpop.f32.mrb[16].mxu0  ;;  %v3025_v57 = vpop.f32.mrb[16].mxu1  ;;  %v3832_v35 = vadd.f32 %v3756_v39, %v3753_v20  ;;  %v3834_v43 = vadd.f32 %v1473_v14, %v1401_v7  ;;  %v3840_v55 = vadd.f32 %v1471_v47, %v1399_v15  ;;  %v3844_v8 = vadd.f32 %v3772_v61, %v3769_v60 }
 0x116   :  { %v343_v10 = vpop.f32.mrb[17].mxu0  ;;  %v664_v37 = vpop.f32.mrb[17].mxu1  ;;  %v3817_v59 = vadd.f32 %v2973_v56, %v3578_v32  ;;  %v3820_v42 = vadd.f32 %v3025_v57, %v3578_v32  ;;  %v3838_v57 = vadd.f32 %v3762_v40, %v3759_v21  ;;  %v3846_v13 = vadd.f32 %v1474_v44, %v1402_v51 }
 0x117   :  { %v2974_v18 = vpop.f32.mrb[18].mxu0  ;;  %v3026_v19 = vpop.f32.mrb[18].mxu1  ;;  %6452 = vst [vmem:[#allocation36_spill] sm:$0xff] %v3840_v55  ;;  %6453 = vst [vmem:[#allocation37_spill] sm:$0xff] %v3844_v8  ;;  %v3850_v39 = vadd.f32 %v3784_v1, %v3781_v3  ;;  %v3853_v7 = vadd.f32 %v3578_v32, %v343_v10  ;;  %v3856_v14 = vadd.f32 %v3578_v32, %v664_v37 }
 0x118   :  { %v346_v41 = vpop.f32.mrb[19].mxu0  ;;  %v667_v23 = vpop.f32.mrb[19].mxu1  ;;  %6450 = vst [vmem:[#allocation34_spill] sm:$0xff] %v3817_v59  ;;  %6451 = vst [vmem:[#allocation35_spill] sm:$0xff] %v3820_v42  ;;  %v3858_v47 = vadd.f32 %v1472_v52, %v1400_v58  ;;  %v1405_v15 = vmul.f32 %v3817_v59, %v3817_v59  ;;  %v3864_v61 = vadd.f32 %v3820_v42, %v3817_v59 }
 0x119   :  { %6454 = vst [vmem:[#allocation38_spill] sm:$0xff] %v3846_v13  ;;  %6455 = vst [vmem:[#allocation39_spill] sm:$0xff] %v3850_v39  ;;  %v1477_v44 = vmul.f32 %v3820_v42, %v3820_v42  ;;  %v3869_v51 = vadd.f32 %v2974_v18, %v3578_v32  ;;  %v3872_v10 = vadd.f32 %v3026_v19, %v3578_v32 }
 0x11a   :  { %6456 = vst [vmem:[#allocation40_spill] sm:$0xff] %v3853_v7  ;;  %6457 = vst [vmem:[#allocation41_spill] sm:$0xff] %v3856_v14  ;;  %v3875_v37 = vadd.f32 %v3578_v32, %v346_v41  ;;  %v3878_v52 = vadd.f32 %v3578_v32, %v667_v23  ;;  %v1403_v19 = vmul.f32 %v3853_v7, %v3853_v7 }
 0x11b   :  { %6458 = vst [vmem:[#allocation42_spill] sm:$0xff] %v3858_v47  ;;  %6459 = vst [vmem:[#allocation43_spill] sm:$0xff] %v3864_v61  ;;  %v1475_v41 = vmul.f32 %v3856_v14, %v3856_v14  ;;  %v3902_v59 = vadd.f32 %v1477_v44, %v1405_v15  ;;  %v1478_v3 = vmul.f32 %v3872_v10, %v3872_v10 }
 0x11c   :  { %6460 = vst [vmem:[#allocation44_spill] sm:$0xff] %v3869_v51  ;;  %6461 = vst [vmem:[#allocation45_spill] sm:$0xff] %v3872_v10  ;;  %v1404_v15 = vmul.f32 %v3875_v37, %v3875_v37  ;;  %v1476_v44 = vmul.f32 %v3878_v52, %v3878_v52  ;;  %v3934_v61 = vadd.f32 %v3872_v10, %v3869_v51 }
 0x11d   :  { %v2977_v22 = vpop.f32.mrb[20].mxu0  ;;  %v3029_v45 = vpop.f32.mrb[20].mxu1  ;;  %6462 = vst [vmem:[#allocation46_spill] sm:$0xff] %v3875_v37  ;;  %6463 = vst [vmem:[#allocation47_spill] sm:$0xff] %v3878_v52  ;;  %v3930_v47 = vadd.f32 %v1475_v41, %v1403_v19  ;;  %v3942_v8 = vadd.f32 %v3878_v52, %v3875_v37 }
 0x11e   :  { %v359_v11 = vpop.f32.mrb[21].mxu0  ;;  %v680_v38 = vpop.f32.mrb[21].mxu1  ;;  %v3881_v58 = vadd.f32 %v2977_v22, %v3578_v32  ;;  %v3884_v1 = vadd.f32 %v3029_v45, %v3578_v32  ;;  %6470 = vst [vmem:[#allocation54_spill] sm:$0xff] %v3902_v59  ;;  %6475 = vst [vmem:[#allocation59_spill] sm:$0xff] %v3934_v61 }
 0x11f   :  { %v2978_v50 = vpop.f32.mrb[22].mxu0  ;;  %v3030_v56 = vpop.f32.mrb[22].mxu1  ;;  %v3887_v42 = vadd.f32 %v3578_v32, %v359_v11  ;;  %v3890_v18 = vadd.f32 %v3578_v32, %v680_v38  ;;  %v3906_v38 = vadd.f32 %v3856_v14, %v3853_v7  ;;  %6474 = vst [vmem:[#allocation58_spill] sm:$0xff] %v3930_v47 }
 0x120   :  { %v362_v9 = vpop.f32.mrb[23].mxu0  ;;  %v683_v5 = vpop.f32.mrb[23].mxu1  ;;  %6464 = vst [vmem:[#allocation48_spill] sm:$0xff] %v3881_v58  ;;  %6465 = vst [vmem:[#allocation49_spill] sm:$0xff] %v3884_v1  ;;  %v3897_v23 = vadd.f32 %v2978_v50, %v3578_v32  ;;  %v3900_v22 = vadd.f32 %v3030_v56, %v3578_v32  ;;  %v1406_v56 = vmul.f32 %v3869_v51, %v3869_v51 }
 0x121   :  { %6466 = vst [vmem:[#allocation50_spill] sm:$0xff] %v3887_v42  ;;  %6467 = vst [vmem:[#allocation51_spill] sm:$0xff] %v3890_v18  ;;  %v3909_v11 = vadd.f32 %v3578_v32, %v362_v9  ;;  %v3912_v60 = vadd.f32 %v3578_v32, %v683_v5  ;;  %v1409_v5 = vmul.f32 %v3881_v58, %v3881_v58 }
 0x122   :  { %6468 = vst [vmem:[#allocation52_spill] sm:$0xff] %v3897_v23  ;;  %6469 = vst [vmem:[#allocation53_spill] sm:$0xff] %v3900_v22  ;;  %v1481_v7 = vmul.f32 %v3884_v1, %v3884_v1  ;;  %v1407_v21 = vmul.f32 %v3887_v42, %v3887_v42  ;;  %v1479_v12 = vmul.f32 %v3890_v18, %v3890_v18 }
 0x123   :  { %6471 = vst [vmem:[#allocation55_spill] sm:$0xff] %v3906_v38  ;;  %6472 = vst [vmem:[#allocation56_spill] sm:$0xff] %v3909_v11  ;;  %v1410_v39 = vmul.f32 %v3897_v23, %v3897_v23  ;;  %v1482_v13 = vmul.f32 %v3900_v22, %v3900_v22  ;;  %v1408_v55 = vmul.f32 %v3909_v11, %v3909_v11 }
 0x124   :  { %6473 = vst [vmem:[#allocation57_spill] sm:$0xff] %v3912_v60  ;;  %v1480_v19 = vmul.f32 %v3912_v60, %v3912_v60  ;;  %v3951_v10 = vadd.f32 %v1478_v3, %v1406_v56  ;;  %v3953_v51 = vadd.f32 %v1476_v44, %v1404_v15  ;;  %v3963_v52 = vadd.f32 %v3884_v1, %v3881_v58 }
 0x125   :  { %v2981_v45 = vpop.f32.mrb[24].mxu0  ;;  %v3033_v40 = vpop.f32.mrb[24].mxu1  ;;  %v3965_v37 = vadd.f32 %v1481_v7, %v1409_v5  ;;  %v3971_v3 = vadd.f32 %v1479_v12, %v1407_v21  ;;  %v3975_v56 = vadd.f32 %v3900_v22, %v3897_v23 }
 0x126   :  { %v375_v20 = vpop.f32.mrb[25].mxu0  ;;  %v696_v50 = vpop.f32.mrb[25].mxu1  ;;  %v3949_v41 = vadd.f32 %v2981_v45, %v3578_v32  ;;  %v3956_v47 = vadd.f32 %v3033_v40, %v3578_v32  ;;  %v3969_v45 = vadd.f32 %v3890_v18, %v3887_v42  ;;  %v3977_v40 = vadd.f32 %v1482_v13, %v1410_v39 }
 0x127   :  { %v2982_v14 = vpop.f32.mrb[26].mxu0  ;;  %v3034_v9 = vpop.f32.mrb[26].mxu1  ;;  %v3959_v61 = vadd.f32 %v3578_v32, %v375_v20  ;;  %v3981_v20 = vadd.f32 %v3912_v60, %v3909_v11  ;;  %v3984_v15 = vadd.f32 %v3578_v32, %v696_v50  ;;  %v3986_v5 = vadd.f32 %v1480_v19, %v1408_v55 }
 0x128   :  { %v378_v38 = vpop.f32.mrb[27].mxu0  ;;  %v699_v59 = vpop.f32.mrb[27].mxu1  ;;  %6476 = vst [vmem:[#allocation60_spill] sm:$0xff] %v3949_v41  ;;  %6477 = vst [vmem:[#allocation61_spill] sm:$0xff] %v3956_v47  ;;  %v1413_v12 = vmul.f32 %v3949_v41, %v3949_v41  ;;  %v3998_v1 = vadd.f32 %v3956_v47, %v3949_v41  ;;  %v1485_v50 = vmul.f32 %v3956_v47, %v3956_v47 }
 0x129   :  { %6478 = vst [vmem:[#allocation62_spill] sm:$0xff] %v3959_v61  ;;  %6479 = vst [vmem:[#allocation63_spill] sm:$0xff] %v3984_v15  ;;  %v1411_v55 = vmul.f32 %v3959_v61, %v3959_v61  ;;  %v4005_v19 = vadd.f32 %v2982_v14, %v3578_v32  ;;  %v1483_v14 = vmul.f32 %v3984_v15, %v3984_v15 }
 0x12a   :  { %6480 = vst [vmem:[#allocation64_spill] sm:$0xff] %v3986_v5  ;;  %6483 = vst [vmem:[#allocation67_spill] sm:$0xff] %v3998_v1  ;;  %v4021_v11 = vadd.f32 %v3034_v9, %v3578_v32  ;;  %v4024_v42 = vadd.f32 %v3578_v32, %v378_v38  ;;  %v4039_v5 = vadd.f32 %v1485_v50, %v1413_v12 }
 0x12b   :  { %6484 = vst [vmem:[#allocation68_spill] sm:$0xff] %v4005_v19  ;;  %v4043_v38 = vadd.f32 %v3984_v15, %v3959_v61  ;;  %v4061_v50 = vadd.f32 %v1483_v14, %v1411_v55 }
 0x12c   :  { %6487 = vst [vmem:[#allocation71_spill] sm:$0xff] %v4021_v11  ;;  %6488 = vst [vmem:[#allocation72_spill] sm:$0xff] %v4024_v42 }
 0x12d   :  { %v2985_v7 = vpop.f32.mrb[28].mxu0  ;;  %v3037_v44 = vpop.f32.mrb[28].mxu1  ;;  %6493 = vst [vmem:[#allocation77_spill] sm:$0xff] %v4039_v5  ;;  %6496 = vst [vmem:[#allocation80_spill] sm:$0xff] %v4061_v50 }
 0x12e   :  { %v3991_v21 = vadd.f32 %v2985_v7, %v3578_v32  ;;  %v3994_v13 = vadd.f32 %v3037_v44, %v3578_v32  ;;  %v391_v39 = vpop.f32.mrb[29].mxu0  ;;  %v712_v22 = vpop.f32.mrb[29].mxu1 }
 0x12f   :  { %v2986_v7 = vpop.f32.mrb[30].mxu0  ;;  %v3038_v60 = vpop.f32.mrb[30].mxu1 }
 0x130   :  { %6481 = vst [vmem:[#allocation65_spill] sm:$0xff] %v3991_v21  ;;  %6482 = vst [vmem:[#allocation66_spill] sm:$0xff] %v3994_v13  ;;  %v1417_v44 = vmul.f32 %v3991_v21, %v3991_v21  ;;  %v4011_v18 = vadd.f32 %v3994_v13, %v3991_v21  ;;  %v1489_v41 = vmul.f32 %v3994_v13, %v3994_v13  ;;  %v394_v23 = vpop.f32.mrb[31].mxu0  ;;  %v715_v58 = vpop.f32.mrb[31].mxu1 }
 0x131   :  { %v4016_v47 = vadd.f32 %v2986_v7, %v3578_v32  ;;  %v4027_v21 = vadd.f32 %v3038_v60, %v3578_v32  ;;  %v4034_v13 = vadd.f32 %v3578_v32, %v394_v23  ;;  %v4037_v1 = vadd.f32 %v3578_v32, %v715_v58 }
 0x132   :  { %6485 = vst [vmem:[#allocation69_spill] sm:$0xff] %v4011_v18  ;;  %v4029_v18 = vadd.f32 %v1489_v41, %v1417_v44  ;;  %v1414_v23 = vmul.f32 %v4005_v19, %v4005_v19  ;;  %v1486_v44 = vmul.f32 %v4021_v11, %v4021_v11 }
 0x133   :  { %6486 = vst [vmem:[#allocation70_spill] sm:$0xff] %v4016_v47  ;;  %6489 = vst [vmem:[#allocation73_spill] sm:$0xff] %v4027_v21  ;;  %v1418_v7 = vmul.f32 %v4016_v47, %v4016_v47  ;;  %v4047_v60 = vadd.f32 %v4027_v21, %v4016_v47  ;;  %v1490_v9 = vmul.f32 %v4027_v21, %v4027_v21 }
 0x134   :  { %6490 = vst [vmem:[#allocation74_spill] sm:$0xff] %v4029_v18  ;;  %6491 = vst [vmem:[#allocation75_spill] sm:$0xff] %v4034_v13  ;;  %v1416_v58 = vmul.f32 %v4034_v13, %v4034_v13  ;;  %v4057_v41 = vadd.f32 %v4037_v1, %v4034_v13  ;;  %v1488_v12 = vmul.f32 %v4037_v1, %v4037_v1 }
 0x135   :  { %6492 = vst [vmem:[#allocation76_spill] sm:$0xff] %v4037_v1  ;;  %6494 = vst [vmem:[#allocation78_spill] sm:$0xff] %v4047_v60  ;;  %v4066_v21 = vadd.f32 %v3578_v32, %v699_v59  ;;  %v4068_v15 = vadd.f32 %v1490_v9, %v1418_v7  ;;  %v2989_v47 = vpop.f32.mrb[32].mxu0  ;;  %v3041_v61 = vpop.f32.mrb[32].mxu1  ;;  %v1412_v60 = vmul.f32 %v4024_v42, %v4024_v42 }
 0x136   :  { %6495 = vst [vmem:[#allocation79_spill] sm:$0xff] %v4057_v41  ;;  %v4072_v13 = vadd.f32 %v1488_v12, %v1416_v58  ;;  %v4075_v41 = vadd.f32 %v2989_v47, %v3578_v32  ;;  %v4078_v55 = vadd.f32 %v3041_v61, %v3578_v32  ;;  %v407_v14 = vpop.f32.mrb[33].mxu0  ;;  %v728_v1 = vpop.f32.mrb[33].mxu1  ;;  %v4081_v59 = vadd.f32 %v3578_v32, %v391_v39 }
 0x137   :  { %6497 = vst [vmem:[#allocation81_spill] sm:$0xff] %v4066_v21  ;;  %6498 = vst [vmem:[#allocation82_spill] sm:$0xff] %v4068_v15  ;;  %v4084_v7 = vadd.f32 %v3578_v32, %v712_v22  ;;  %v4087_v9 = vadd.f32 %v3578_v32, %v407_v14  ;;  %v4090_v58 = vadd.f32 %v3578_v32, %v728_v1  ;;  %v2990_v12 = vpop.f32.mrb[34].mxu0  ;;  %v3042_v47 = vpop.f32.mrb[34].mxu1 }
 0x138   :  { %6499 = vst [vmem:[#allocation83_spill] sm:$0xff] %v4072_v13  ;;  %6500 = vst [vmem:[#allocation84_spill] sm:$0xff] %v4075_v41  ;;  %v1421_v61 = vmul.f32 %v4075_v41, %v4075_v41  ;;  %v4096_v13 = vadd.f32 %v4078_v55, %v4075_v41  ;;  %v1493_v39 = vmul.f32 %v4078_v55, %v4078_v55  ;;  %v410_v14 = vpop.f32.mrb[35].mxu0  ;;  %v731_v15 = vpop.f32.mrb[35].mxu1 }
 0x139   :  { %6501 = vst [vmem:[#allocation85_spill] sm:$0xff] %v4078_v55  ;;  %6502 = vst [vmem:[#allocation86_spill] sm:$0xff] %v4081_v59  ;;  %v4101_v22 = vadd.f32 %v2990_v12, %v3578_v32  ;;  %v1419_v1 = vmul.f32 %v4087_v9, %v4087_v9  ;;  %v4107_v18 = vadd.f32 %v4090_v58, %v4087_v9 }
 0x13a   :  { %6503 = vst [vmem:[#allocation87_spill] sm:$0xff] %v4084_v7  ;;  %6504 = vst [vmem:[#allocation88_spill] sm:$0xff] %v4087_v9  ;;  %v1491_v50 = vmul.f32 %v4090_v58, %v4090_v58  ;;  %v4112_v41 = vadd.f32 %v3042_v47, %v3578_v32  ;;  %v4119_v55 = vadd.f32 %v3578_v32, %v410_v14 }
 0x13b   :  { %6505 = vst [vmem:[#allocation89_spill] sm:$0xff] %v4090_v58  ;;  %6506 = vst [vmem:[#allocation90_spill] sm:$0xff] %v4096_v13  ;;  %v4114_v13 = vadd.f32 %v1493_v39, %v1421_v61  ;;  %v1422_v12 = vmul.f32 %v4101_v22, %v4101_v22  ;;  %v4122_v5 = vadd.f32 %v3578_v32, %v731_v15 }
 0x13c   :  { %6507 = vst [vmem:[#allocation91_spill] sm:$0xff] %v4101_v22  ;;  %6508 = vst [vmem:[#allocation92_spill] sm:$0xff] %v4107_v18  ;;  %v1484_v9 = vmul.f32 %v4066_v21, %v4066_v21  ;;  %v4126_v18 = vadd.f32 %v1491_v50, %v1419_v1  ;;  %v4130_v47 = vadd.f32 %v4112_v41, %v4101_v22 }
 0x13d   :  { %6509 = vst [vmem:[#allocation93_spill] sm:$0xff] %v4112_v41  ;;  %6510 = vst [vmem:[#allocation94_spill] sm:$0xff] %v4114_v13  ;;  %v1494_v61 = vmul.f32 %v4112_v41, %v4112_v41  ;;  %v4136_v39 = vadd.f32 %v4021_v11, %v4005_v19  ;;  %v1420_v15 = vmul.f32 %v4119_v55, %v4119_v55  ;;  %v3061_v22 = vpop.f32.mrb[36].mxu0  ;;  %v3113_v19 = vpop.f32.mrb[36].mxu1 }
 0x13e   :  { %6511 = vst [vmem:[#allocation95_spill] sm:$0xff] %v4119_v55  ;;  %6512 = vst [vmem:[#allocation96_spill] sm:$0xff] %v4122_v5  ;;  %v4142_v14 = vadd.f32 %v4122_v5, %v4119_v55  ;;  %v1492_v50 = vmul.f32 %v4122_v5, %v4122_v5  ;;  %v4146_v1 = vadd.f32 %v1486_v44, %v1414_v23  ;;  %v921_v44 = vpop.f32.mrb[37].mxu0 }
 0x13f   :  { %6513 = vst [vmem:[#allocation97_spill] sm:$0xff] %v4126_v18  ;;  %6514 = vst [vmem:[#allocation98_spill] sm:$0xff] %v4130_v47  ;;  %v4150_v58 = vadd.f32 %v4066_v21, %v4024_v42  ;;  %v1415_v41 = vmul.f32 %v4081_v59, %v4081_v59  ;;  %v4154_v11 = vadd.f32 %v1494_v61, %v1422_v12  ;;  %v1242_v21 = vpop.f32.mrb[37].mxu1 }
 0x140   :  { %6515 = vst [vmem:[#allocation99_spill] sm:$0xff] %v4142_v14  ;;  %v1487_v55 = vmul.f32 %v4084_v7, %v4084_v7  ;;  %v4158_v14 = vadd.f32 %v1492_v50, %v1420_v15  ;;  %v4161_v5 = vadd.f32 %v3061_v22, %v3578_v32  ;;  %v4164_v23 = vadd.f32 %v3113_v19, %v3578_v32  ;;  %v3062_v50 = vpop.f32.mrb[38].mxu0  ;;  %v3114_v22 = vpop.f32.mrb[38].mxu1 }
 0x141   :  { %6516 = vst [vmem:[#allocation100_spill] sm:$0xff] %v4154_v11  ;;  %v4166_v42 = vadd.f32 %v1484_v9, %v1412_v60  ;;  %v4170_v12 = vadd.f32 %v4084_v7, %v4081_v59  ;;  %v4173_v61 = vadd.f32 %v3578_v32, %v921_v44  ;;  %v4176_v15 = vadd.f32 %v3578_v32, %v1242_v21  ;;  %v924_v7 = vpop.f32.mrb[39].mxu0  ;;  %v1245_v44 = vpop.f32.mrb[39].mxu1 }
 0x142   :  { %6517 = vst [vmem:[#allocation101_spill] sm:$0xff] %v4158_v14  ;;  %6518 = vst [vmem:[#allocation102_spill] sm:$0xff] %v4161_v5  ;;  %v1533_v19 = vadd.f32 %v3604_v46, %v4161_v5  ;;  %v1569_v14 = vmul.f32 %v4161_v5, %v4161_v5  ;;  %v1677_v60 = vmul.f32 %v4164_v23, %v4164_v23 }
 0x143   :  { %6519 = vst [vmem:[#allocation103_spill] sm:$0xff] %v4164_v23  ;;  %6520 = vst [vmem:[#allocation104_spill] sm:$0xff] %v4170_v12  ;;  %v4185_v9 = vadd.f32 %v3062_v50, %v3578_v32  ;;  %v1531_v21 = vadd.f32 %v3646_v63, %v4173_v61  ;;  %v1567_v59 = vmul.f32 %v4173_v61, %v4173_v61 }
 0x144   :  { %6521 = vst [vmem:[#allocation105_spill] sm:$0xff] %v4173_v61  ;;  %6522 = vst [vmem:[#allocation106_spill] sm:$0xff] %v4176_v15  ;;  %v1675_v46 = vmul.f32 %v4176_v15, %v4176_v15  ;;  %v4194_v11 = vadd.f32 %v3114_v22, %v3578_v32  ;;  %v4196_v5 = vadd.f32 %v1487_v55, %v1415_v41 }
 0x145   :  { %6523 = vst [vmem:[#allocation107_spill] sm:$0xff] %v4185_v9  ;;  %v1605_v47 = vadd.f32 %v1569_v14, %v3642_v62  ;;  %v1534_v50 = vadd.f32 %v3674_v17, %v4185_v9  ;;  %v1570_v18 = vmul.f32 %v4185_v9, %v4185_v9  ;;  %v1641_v63 = vadd.f32 %v1533_v19, %v4164_v23  ;;  %v3117_v19 = vpop.f32.mrb[40].mxu1 }
 0x146   :  { %6524 = vst [vmem:[#allocation108_spill] sm:$0xff] %v4194_v11  ;;  %v1603_v61 = vadd.f32 %v1567_v59, %v3670_v16  ;;  %v1639_v13 = vadd.f32 %v1531_v21, %v4176_v15  ;;  %v4207_v12 = vadd.f32 %v3578_v32, %v924_v7  ;;  %v1678_v62 = vmul.f32 %v4194_v11, %v4194_v11  ;;  %v3065_v7 = vpop.f32.mrb[40].mxu0 }
 0x147   :  { %v1713_v22 = vadd.f32 %v1677_v60, %v1605_v47  ;;  %v1606_v41 = vadd.f32 %v1570_v18, %v3690_v24  ;;  %v4213_v17 = vadd.f32 %v3578_v32, %v1245_v44  ;;  %v1642_v14 = vadd.f32 %v1534_v50, %v4194_v11  ;;  %v1258_v44 = vpop.f32.mrb[41].mxu1 }
 0x148   :  { %6525 = vst [vmem:[#allocation109_spill] sm:$0xff] %v4207_v12  ;;  %v1711_v55 = vadd.f32 %v1675_v46, %v1603_v61  ;;  %v1532_v16 = vadd.f32 %v3694_v25, %v4207_v12  ;;  %v1568_v59 = vmul.f32 %v4207_v12, %v4207_v12  ;;  %v4223_v18 = vadd.f32 %v3065_v7, %v3578_v32  ;;  %v937_v61 = vpop.f32.mrb[41].mxu0 }
 0x149   :  { %6526 = vst [vmem:[#allocation110_spill] sm:$0xff] %v4213_v17  ;;  %v1714_v47 = vadd.f32 %v1678_v62, %v1606_v41  ;;  %v1676_v24 = vmul.f32 %v4213_v17, %v4213_v17  ;;  %v4226_v60 = vadd.f32 %v3117_v19, %v3578_v32  ;;  %v4231_v46 = vadd.f32 %v3578_v32, %v937_v61  ;;  %v3066_v41 = vpop.f32.mrb[42].mxu0  ;;  %v3118_v62 = vpop.f32.mrb[42].mxu1 }
 0x14a   :  { %6527 = vst [vmem:[#allocation111_spill] sm:$0xff] %v4223_v18  ;;  %v1604_v21 = vadd.f32 %v1568_v59, %v3696_v26  ;;  %v1640_v25 = vadd.f32 %v1532_v16, %v4213_v17  ;;  %v4234_v50 = vadd.f32 %v3578_v32, %v1258_v44  ;;  %v1537_v7 = vadd.f32 %v3700_v27, %v4223_v18  ;;  %v940_v16 = vpop.f32.mrb[43].mxu0  ;;  %v1261_v59 = vpop.f32.mrb[43].mxu1 }
 0x14b   :  { %6528 = vst [vmem:[#allocation112_spill] sm:$0xff] %v4226_v60  ;;  %v1573_v19 = vmul.f32 %v4223_v18, %v4223_v18  ;;  %v1681_v11 = vmul.f32 %v4226_v60, %v4226_v60  ;;  %v4243_v26 = vadd.f32 %v3066_v41, %v3578_v32  ;;  %v1535_v44 = vadd.f32 %v3706_v29, %v4231_v46 }
 0x14c   :  { %6529 = vst [vmem:[#allocation113_spill] sm:$0xff] %v4234_v50  ;;  %v1712_v61 = vadd.f32 %v1676_v24, %v1604_v21  ;;  %v1747_v23 = vadd.f32 %v1640_v25, %v1639_v13  ;;  %v1571_v17 = vmul.f32 %v4231_v46, %v4231_v46  ;;  %v1645_v15 = vadd.f32 %v1537_v7, %v4226_v60 }
 0x14d   :  { %v1609_v27 = vadd.f32 %v1573_v19, %v3702_v28  ;;  %v1679_v18 = vmul.f32 %v4234_v50, %v4234_v50  ;;  %v1538_v41 = vadd.f32 %v3712_v31, %v4243_v26  ;;  %v1643_v24 = vadd.f32 %v1535_v44, %v4234_v50  ;;  %v6556_v50 = vld [vmem:[#allocation58_spill] sm:$0xff] }
 0x14e   :  { %v1748_v9 = vadd.f32 %v1747_v23, %v1641_v63  ;;  %v1789_v12 = vadd.f32 %v1712_v61, %v1711_v55  ;;  %v1607_v13 = vadd.f32 %v1571_v17, %v3708_v30  ;;  %v1574_v21 = vmul.f32 %v4243_v26, %v4243_v26  ;;  %v3069_v23 = vpop.f32.mrb[44].mxu0  ;;  %v3121_v30 = vpop.f32.mrb[44].mxu1 }
 0x14f   :  { %v1717_v29 = vadd.f32 %v1681_v11, %v1609_v27  ;;  %v4260_v28 = vadd.f32 %v3118_v62, %v3578_v32  ;;  %v4263_v25 = vadd.f32 %v3578_v32, %v940_v16  ;;  %v4266_v31 = vadd.f32 %v3578_v32, %v1261_v59  ;;  %v953_v62 = vpop.f32.mrb[45].mxu0  ;;  %v1274_v16 = vpop.f32.mrb[45].mxu1 }
 0x150   :  { %v1790_v7 = vadd.f32 %v1789_v12, %v1713_v22  ;;  %v1715_v19 = vadd.f32 %v1679_v18, %v1607_v13  ;;  %v1749_v60 = vadd.f32 %v1748_v9, %v1642_v14  ;;  %v1610_v63 = vadd.f32 %v1574_v21, %v3714_v33  ;;  %v3070_v18 = vpop.f32.mrb[46].mxu0  ;;  %v3122_v33 = vpop.f32.mrb[46].mxu1 }
 0x151   :  { %6530 = vst [vmem:[#allocation114_spill] sm:$0xff] %v4260_v28  ;;  %6531 = vst [vmem:[#allocation115_spill] sm:$0xff] %v4266_v31  ;;  %v1646_v11 = vadd.f32 %v1538_v41, %v4260_v28  ;;  %v1682_v17 = vmul.f32 %v4260_v28, %v4260_v28  ;;  %v1536_v55 = vadd.f32 %v3718_v34, %v4263_v25  ;;  %v956_v27 = vpop.f32.mrb[47].mxu0 }
 0x152   :  { %v1750_v12 = vadd.f32 %v1749_v60, %v1643_v24  ;;  %v1791_v22 = vadd.f32 %v1790_v7, %v1714_v47  ;;  %v1572_v9 = vmul.f32 %v4263_v25, %v4263_v25  ;;  %v1680_v14 = vmul.f32 %v4266_v31, %v4266_v31  ;;  %v1277_v60 = vpop.f32.mrb[47].mxu1 }
 0x153   :  { %v1718_v59 = vadd.f32 %v1682_v17, %v1610_v63  ;;  %v1644_v61 = vadd.f32 %v1536_v55, %v4266_v31  ;;  %v4280_v44 = vadd.f32 %v3069_v23, %v3578_v32  ;;  %v4283_v34 = vadd.f32 %v3121_v30, %v3578_v32  ;;  %v6547_v31 = vld [vmem:[#allocation39_spill] sm:$0xff] }
 0x154   :  { %v1792_v47 = vadd.f32 %v1791_v22, %v1715_v19  ;;  %v1608_v41 = vadd.f32 %v1572_v9, %v3726_v4  ;;  %v4287_v13 = vadd.f32 %v3578_v32, %v953_v62  ;;  %v4290_v24 = vadd.f32 %v3578_v32, %v1274_v16 }
 0x155   :  { %6532 = vst [vmem:[#allocation116_spill] sm:$0xff] %v4283_v34  ;;  %v1751_v21 = vadd.f32 %v1750_v12, %v1644_v61  ;;  %v1541_v7 = vadd.f32 %v3732_v6, %v4280_v44  ;;  %v1577_v23 = vmul.f32 %v4280_v44, %v4280_v44  ;;  %v1685_v30 = vmul.f32 %v4283_v34, %v4283_v34  ;;  %v3125_v61 = vpop.f32.mrb[48].mxu1 }
 0x156   :  { %6533 = vst [vmem:[#allocation117_spill] sm:$0xff] %v4290_v24  ;;  %v1716_v63 = vadd.f32 %v1680_v14, %v1608_v41  ;;  %v1539_v4 = vadd.f32 %v3778_v2, %v4287_v13  ;;  %v1575_v19 = vmul.f32 %v4287_v13, %v4287_v13  ;;  %v1683_v17 = vmul.f32 %v4290_v24, %v4290_v24  ;;  %v3073_v14 = vpop.f32.mrb[48].mxu0 }
 0x157   :  { %v1752_v55 = vadd.f32 %v1751_v21, %v1645_v15  ;;  %v1613_v62 = vadd.f32 %v1577_v23, %v3774_v53  ;;  %v1649_v6 = vadd.f32 %v1541_v7, %v4283_v34  ;;  %v4307_v16 = vadd.f32 %v3070_v18, %v3578_v32  ;;  %v969_v18 = vpop.f32.mrb[49].mxu0  ;;  %v1290_v21 = vpop.f32.mrb[49].mxu1 }
 0x158   :  { %v1793_v12 = vadd.f32 %v1792_v47, %v1716_v63  ;;  %v1611_v22 = vadd.f32 %v1575_v19, %v3802_v49  ;;  %v1647_v9 = vadd.f32 %v1539_v4, %v4290_v24  ;;  %v4312_v2 = vadd.f32 %v3122_v33, %v3578_v32  ;;  %v3074_v23 = vpop.f32.mrb[50].mxu0  ;;  %v3126_v63 = vpop.f32.mrb[50].mxu1 }
 0x159   :  { %v1721_v41 = vadd.f32 %v1685_v30, %v1613_v62  ;;  %v1753_v28 = vadd.f32 %v1752_v55, %v1646_v11  ;;  %v1542_v53 = vadd.f32 %v3806_v36, %v4307_v16  ;;  %v1578_v15 = vmul.f32 %v4307_v16, %v4307_v16  ;;  %v972_v19 = vpop.f32.mrb[51].mxu0  ;;  %v1293_v55 = vpop.f32.mrb[51].mxu1 }
 0x15a   :  { %6534 = vst [vmem:[#allocation118_spill] sm:$0xff] %v4312_v2  ;;  %v1794_v47 = vadd.f32 %v1793_v12, %v1717_v29  ;;  %v1719_v7 = vadd.f32 %v1683_v17, %v1611_v22  ;;  %v1686_v49 = vmul.f32 %v4312_v2, %v4312_v2  ;;  %v4321_v33 = vadd.f32 %v3578_v32, %v956_v27 }
 0x15b   :  { %v1754_v30 = vadd.f32 %v1753_v28, %v1647_v9  ;;  %v1614_v11 = vadd.f32 %v1578_v15, %v3822_v0  ;;  %v1650_v36 = vadd.f32 %v1542_v53, %v4312_v2  ;;  %v4326_v4 = vadd.f32 %v3578_v32, %v1277_v60 }
 0x15c   :  { %v1795_v29 = vadd.f32 %v1794_v47, %v1718_v59  ;;  %v1540_v17 = vadd.f32 %v3826_v54, %v4321_v33  ;;  %v1576_v27 = vmul.f32 %v4321_v33, %v4321_v33  ;;  %v4333_v62 = vadd.f32 %v3073_v14, %v3578_v32 }
 0x15d   :  { %6535 = vst [vmem:[#allocation119_spill] sm:$0xff] %v4326_v4  ;;  %v1722_v28 = vadd.f32 %v1686_v49, %v1614_v11  ;;  %v1684_v0 = vmul.f32 %v4326_v4, %v4326_v4  ;;  %v4338_v12 = vadd.f32 %v3125_v61, %v3578_v32  ;;  %v4341_v60 = vadd.f32 %v3578_v32, %v969_v18  ;;  %v3129_v49 = vpop.f32.mrb[52].mxu1 }
 0x15e   :  { %6536 = vst [vmem:[#allocation120_spill] sm:$0xff] %v4333_v62  ;;  %v1796_v59 = vadd.f32 %v1795_v29, %v1719_v7  ;;  %v1612_v22 = vadd.f32 %v1576_v27, %v3828_v48  ;;  %v1648_v54 = vadd.f32 %v1540_v17, %v4326_v4  ;;  %v1545_v9 = vadd.f32 %v3832_v35, %v4333_v62  ;;  %v3077_v35 = vpop.f32.mrb[52].mxu0  ;;  %v6539_v29 = vld [vmem:[#allocation36_spill] sm:$0xff] }
 0x15f   :  { %6537 = vst [vmem:[#allocation121_spill] sm:$0xff] %v4338_v12  ;;  %v1581_v14 = vmul.f32 %v4333_v62, %v4333_v62  ;;  %v1689_v53 = vmul.f32 %v4338_v12, %v4338_v12  ;;  %v1543_v61 = vadd.f32 %v3838_v57, %v4341_v60  ;;  %v1579_v15 = vmul.f32 %v4341_v60, %v4341_v60  ;;  %v985_v2 = vpop.f32.mrb[53].mxu0 }
 0x160   :  { %v1720_v18 = vadd.f32 %v1684_v0, %v1612_v22  ;;  %v1755_v47 = vadd.f32 %v1754_v30, %v1648_v54  ;;  %v1653_v48 = vadd.f32 %v1545_v9, %v4338_v12  ;;  %v4357_v7 = vadd.f32 %v3578_v32, %v1290_v21  ;;  %v1306_v0 = vpop.f32.mrb[53].mxu1  ;;  %v3078_v9 = vpop.f32.mrb[54].mxu0 }
 0x161   :  { %v1617_v11 = vadd.f32 %v1581_v14, %v3834_v43  ;;  %v1615_v17 = vadd.f32 %v1579_v15, %v6539_v29  ;;  %v4362_v27 = vadd.f32 %v3074_v23, %v3578_v32  ;;  %v4365_v57 = vadd.f32 %v3126_v63, %v3578_v32  ;;  %v3130_v12 = vpop.f32.mrb[54].mxu1  ;;  %v6542_v14 = vld [vmem:[#allocation37_spill] sm:$0xff]  ;;  %v988_v29 = vpop.f32.mrb[55].mxu0 }
 0x162   :  { %6538 = vst [vmem:[#allocation122_spill] sm:$0xff] %v4357_v7  ;;  %v1756_v30 = vadd.f32 %v1755_v47, %v1649_v6  ;;  %v1797_v22 = vadd.f32 %v1796_v59, %v1720_v18  ;;  %v1651_v54 = vadd.f32 %v1543_v61, %v4357_v7  ;;  %v1687_v21 = vmul.f32 %v4357_v7, %v4357_v7  ;;  %v1309_v6 = vpop.f32.mrb[55].mxu1  ;;  %v6544_v7 = vld [vmem:[#allocation38_spill] sm:$0xff] }
 0x163   :  { %6540 = vst [vmem:[#allocation36_spill] sm:$0xff] %v4362_v27  ;;  %6541 = vst [vmem:[#allocation123_spill] sm:$0xff] %v4365_v57  ;;  %v1725_v43 = vadd.f32 %v1689_v53, %v1617_v11  ;;  %v1546_v15 = vadd.f32 %v6542_v14, %v4362_v27  ;;  %v1582_v23 = vmul.f32 %v4362_v27, %v4362_v27 }
 0x164   :  { %v1690_v63 = vmul.f32 %v4365_v57, %v4365_v57  ;;  %v1798_v59 = vadd.f32 %v1797_v22, %v1721_v41  ;;  %v1723_v18 = vadd.f32 %v1687_v21, %v1615_v17  ;;  %v1757_v61 = vadd.f32 %v1756_v30, %v1650_v36  ;;  %v6548_v17 = vld [vmem:[#allocation43_spill] sm:$0xff]  ;;  %v6549_v22 = vld [vmem:[#allocation42_spill] sm:$0xff] }
 0x165   :  { %v4377_v47 = vadd.f32 %v3578_v32, %v972_v19  ;;  %v1618_v34 = vadd.f32 %v1582_v23, %v6544_v7  ;;  %v1654_v53 = vadd.f32 %v1546_v15, %v4365_v57  ;;  %v4382_v11 = vadd.f32 %v3578_v32, %v1293_v55  ;;  %v3081_v21 = vpop.f32.mrb[56].mxu0  ;;  %v3133_v15 = vpop.f32.mrb[56].mxu1  ;;  %v6555_v57 = vld [vmem:[#allocation59_spill] sm:$0xff] }
 0x166   :  { %v4385_v14 = vadd.f32 %v3077_v35, %v3578_v32  ;;  %v1758_v4 = vadd.f32 %v1757_v61, %v1651_v54  ;;  %v1799_v24 = vadd.f32 %v1798_v59, %v1722_v28  ;;  %v4407_v59 = vadd.f32 %v3578_v32, %v1306_v0 }
 0x167   :  { %6543 = vst [vmem:[#allocation37_spill] sm:$0xff] %v4377_v47  ;;  %6545 = vst [vmem:[#allocation38_spill] sm:$0xff] %v4382_v11  ;;  %v1544_v41 = vadd.f32 %v6547_v31, %v4377_v47  ;;  %v1580_v36 = vmul.f32 %v4377_v47, %v4377_v47  ;;  %v1726_v19 = vadd.f32 %v1690_v63, %v1618_v34  ;;  %v6551_v34 = vld [vmem:[#allocation54_spill] sm:$0xff] }
 0x168   :  { %6546 = vst [vmem:[#allocation124_spill] sm:$0xff] %v4385_v14  ;;  %v1688_v7 = vmul.f32 %v4382_v11, %v4382_v11  ;;  %v1549_v30 = vadd.f32 %v6548_v17, %v4385_v14  ;;  %v1585_v55 = vmul.f32 %v4385_v14, %v4385_v14  ;;  %v1800_v35 = vadd.f32 %v1799_v24, %v1723_v18  ;;  %v1001_v24 = vpop.f32.mrb[57].mxu0  ;;  %v1322_v18 = vpop.f32.mrb[57].mxu1 }
 0x169   :  { %v1616_v54 = vadd.f32 %v1580_v36, %v6549_v22  ;;  %v1652_v28 = vadd.f32 %v1544_v41, %v4382_v11  ;;  %v4400_v31 = vadd.f32 %v3129_v49, %v3578_v32  ;;  %v4404_v63 = vadd.f32 %v3578_v32, %v985_v2  ;;  %6553 = vst [vmem:[#allocation42_spill] sm:$0xff] %v4407_v59  ;;  %v3082_v22 = vpop.f32.mrb[58].mxu0  ;;  %v6554_v2 = vld [vmem:[#allocation55_spill] sm:$0xff] }
 0x16a   :  { %v1621_v23 = vadd.f32 %v1585_v55, %v6551_v34  ;;  %v4410_v61 = vadd.f32 %v3078_v9, %v3578_v32  ;;  %v3134_v55 = vpop.f32.mrb[58].mxu1  ;;  %v1691_v9 = vmul.f32 %v4407_v59, %v4407_v59  ;;  %v4433_v27 = vadd.f32 %v3578_v32, %v988_v29 }
 0x16b   :  { %6550 = vst [vmem:[#allocation39_spill] sm:$0xff] %v4400_v31  ;;  %6552 = vst [vmem:[#allocation43_spill] sm:$0xff] %v4404_v63  ;;  %v1724_v36 = vadd.f32 %v1688_v7, %v1616_v54  ;;  %v1759_v41 = vadd.f32 %v1758_v4, %v1652_v28  ;;  %v1657_v49 = vadd.f32 %v1549_v30, %v4400_v31  ;;  %v1004_v4 = vpop.f32.mrb[59].mxu0  ;;  %v4423_v54 = vpop.f32.mrb[59].mxu1 }
 0x16c   :  { %v1693_v17 = vmul.f32 %v4400_v31, %v4400_v31  ;;  %v1547_v34 = vadd.f32 %v6554_v2, %v4404_v63  ;;  %v1583_v0 = vmul.f32 %v4404_v63, %v4404_v63  ;;  %v1550_v7 = vadd.f32 %v6555_v57, %v4410_v61 }
 0x16d   :  { %v1760_v30 = vadd.f32 %v1759_v41, %v1653_v48  ;;  %v1801_v28 = vadd.f32 %v1800_v35, %v1724_v36  ;;  %v1586_v11 = vmul.f32 %v4410_v61, %v4410_v61  ;;  %v4430_v63 = vadd.f32 %v3130_v12, %v3578_v32  ;;  %v3085_v29 = vpop.f32.mrb[60].mxu0 }
 0x16e   :  { %v1729_v31 = vadd.f32 %v1693_v17, %v1621_v23  ;;  %v1619_v2 = vadd.f32 %v1583_v0, %v6556_v50  ;;  %v1655_v14 = vadd.f32 %v1547_v34, %v4407_v59  ;;  %v4437_v48 = vadd.f32 %v3578_v32, %v1309_v6  ;;  %v3137_v32 = vpop.f32.mrb[60].mxu1  ;;  %v6637_v59 = vld [vmem:[#allocation68_spill] sm:$0xff] }
 0x16f   :  { %6557 = vst [vmem:[#allocation54_spill] sm:$0xff] %v4430_v63  ;;  %v1802_v57 = vadd.f32 %v1801_v28, %v1725_v43  ;;  %v1761_v62 = vadd.f32 %v1760_v30, %v1654_v53  ;;  %v1622_v47 = vadd.f32 %v1586_v11, %v3951_v10  ;;  %v1658_v23 = vadd.f32 %v1550_v7, %v4430_v63  ;;  %v4452_v11 = vld [vmem:[%s6189_s5] ss:$0 sm:$0xff] }
 0x170   :  { %6558 = vst [vmem:[#allocation55_spill] sm:$0xff] %v4437_v48  ;;  %v1727_v35 = vadd.f32 %v1691_v9, %v1619_v2  ;;  %v1694_v50 = vmul.f32 %v4430_v63, %v4430_v63  ;;  %v1548_v12 = vadd.f32 %v3942_v8, %v4433_v27  ;;  %v1584_v43 = vmul.f32 %v4433_v27, %v4433_v27 }
 0x171   :  { %v1762_v36 = vadd.f32 %v1761_v62, %v1655_v14  ;;  %v1803_v41 = vadd.f32 %v1802_v57, %v1726_v19  ;;  %v1692_v10 = vmul.f32 %v4437_v48, %v4437_v48  ;;  %v4455_v8 = vadd.f32 %v4452_v11, %v3081_v21  ;;  %v1017_v14 = vpop.f32.mrb[61].mxu0  ;;  %v4460_v19 = vpop.f32.mrb[61].mxu1 }
 0x172   :  { %v1730_v6 = vadd.f32 %v1694_v50, %v1622_v47  ;;  %v1656_v53 = vadd.f32 %v1548_v12, %v4437_v48  ;;  %v4458_v62 = vadd.f32 %v4452_v11, %v3133_v15  ;;  %v1620_v34 = vadd.f32 %v1584_v43, %v3953_v51  ;;  %v3086_v9 = vpop.f32.mrb[62].mxu0  ;;  %v3138_v7 = vpop.f32.mrb[62].mxu1  ;;  %v6636_v48 = vld [vmem:[#allocation60_spill] sm:$0xff] }
 0x173   :  { %6559 = vst [vmem:[#allocation59_spill] sm:$0xff] %v4455_v8  ;;  %v1804_v17 = vadd.f32 %v1803_v41, %v1727_v35  ;;  %v4464_v47 = vadd.f32 %v4452_v11, %v1001_v24  ;;  %v4467_v0 = vadd.f32 %v4452_v11, %v1322_v18  ;;  %v1553_v21 = vadd.f32 %v3963_v52, %v4455_v8  ;;  %v4475_v2 = vpop.f32.mrb[63].mxu0  ;;  %v4477_v51 = vpop.f32.mrb[63].mxu1 }
 0x174   :  { %6560 = vst [vmem:[#allocation58_spill] sm:$0xff] %v4458_v62  ;;  %v1763_v30 = vadd.f32 %v1762_v36, %v1656_v53  ;;  %v1589_v15 = vmul.f32 %v4455_v8, %v4455_v8  ;;  %v1697_v28 = vmul.f32 %v4458_v62, %v4458_v62  ;;  %v1728_v24 = vadd.f32 %v1692_v10, %v1620_v34 }
 0x175   :  { %6561 = vst [vmem:[#allocation125_spill] sm:$0xff] %v4464_v47  ;;  %6562 = vst [vmem:[#allocation126_spill] sm:$0xff] %v4467_v0  ;;  %v1551_v18 = vadd.f32 %v3969_v45, %v4464_v47  ;;  %v1587_v57 = vmul.f32 %v4464_v47, %v4464_v47  ;;  %v1695_v52 = vmul.f32 %v4467_v0, %v4467_v0 }
 0x176   :  { %v1764_v35 = vadd.f32 %v1763_v30, %v1657_v49  ;;  %v1625_v50 = vadd.f32 %v1589_v15, %v3965_v37  ;;  %v1661_v12 = vadd.f32 %v1553_v21, %v4458_v62  ;;  %v4488_v36 = vadd.f32 %v4452_v11, %v3082_v22  ;;  %v4504_v15 = vpop.f32.mrb[64].mxu1 }
 0x177   :  { %v1805_v41 = vadd.f32 %v1804_v17, %v1728_v24  ;;  %v1623_v43 = vadd.f32 %v1587_v57, %v3971_v3  ;;  %v1659_v10 = vadd.f32 %v1551_v18, %v4467_v0  ;;  %v4493_v45 = vadd.f32 %v4452_v11, %v3134_v55  ;;  %v3089_v17 = vpop.f32.mrb[64].mxu0  ;;  %v4514_v24 = vpop.f32.mrb[65].mxu1 }
 0x178   :  { %6563 = vst [vmem:[#allocation127_spill] sm:$0xff] %v4488_v36  ;;  %v1733_v53 = vadd.f32 %v1697_v28, %v1625_v50  ;;  %v1765_v34 = vadd.f32 %v1764_v35, %v1658_v23  ;;  %v1554_v49 = vadd.f32 %v3975_v56, %v4488_v36  ;;  %v1590_v37 = vmul.f32 %v4488_v36, %v4488_v36  ;;  %v4525_v35 = vpop.f32.mrb[66].mxu1 }
 0x179   :  { %6564 = vst [vmem:[#allocation128_spill] sm:$0xff] %v4493_v45  ;;  %v1806_v30 = vadd.f32 %v1805_v41, %v1729_v31  ;;  %v1731_v21 = vadd.f32 %v1695_v52, %v1623_v43  ;;  %v1698_v22 = vmul.f32 %v4493_v45, %v4493_v45  ;;  %v4502_v3 = vadd.f32 %v4452_v11, %v1004_v4  ;;  %v4512_v31 = vpop.f32.mrb[65].mxu0  ;;  %v4537_v43 = vpop.f32.mrb[67].mxu1 }
 0x17a   :  { %v1766_v55 = vadd.f32 %v1765_v34, %v1659_v10  ;;  %v1626_v23 = vadd.f32 %v1590_v37, %v3977_v40  ;;  %v1662_v28 = vadd.f32 %v1554_v49, %v4493_v45  ;;  %v4510_v56 = vadd.f32 %v4452_v11, %v4423_v54  ;;  %v4523_v40 = vpop.f32.mrb[66].mxu0  ;;  %v6570_v10 = vld [vmem:[#allocation64_spill] sm:$0xff]  ;;  %v6571_v37 = vld [vmem:[#allocation67_spill] sm:$0xff] }
 0x17b   :  { %6565 = vst [vmem:[#allocation129_spill] sm:$0xff] %v4502_v3  ;;  %v1807_v18 = vadd.f32 %v1806_v30, %v1730_v6  ;;  %v1552_v4 = vadd.f32 %v3981_v20, %v4502_v3  ;;  %v1588_v57 = vmul.f32 %v4502_v3, %v4502_v3  ;;  %v4521_v52 = vadd.f32 %v4452_v11, %v3085_v29  ;;  %v4535_v20 = vpop.f32.mrb[67].mxu0  ;;  %v6574_v45 = vld [vmem:[#allocation80_spill] sm:$0xff] }
 0x17c   :  { %6566 = vst [vmem:[#allocation130_spill] sm:$0xff] %v4510_v56  ;;  %v1734_v54 = vadd.f32 %v1698_v22, %v1626_v23  ;;  %v1696_v50 = vmul.f32 %v4510_v56, %v4510_v56  ;;  %v4530_v41 = vadd.f32 %v4452_v11, %v3137_v32  ;;  %v4533_v6 = vadd.f32 %v4452_v11, %v1017_v14 }
 0x17d   :  { %6567 = vst [vmem:[#allocation131_spill] sm:$0xff] %v4521_v52  ;;  %v1808_v29 = vadd.f32 %v1807_v18, %v1731_v21  ;;  %v1624_v34 = vadd.f32 %v1588_v57, %v6570_v10  ;;  %v1660_v49 = vadd.f32 %v1552_v4, %v4510_v56  ;;  %v1557_v30 = vadd.f32 %v6571_v37, %v4521_v52  ;;  %v6573_v10 = vld [vmem:[#allocation77_spill] sm:$0xff] }
 0x17e   :  { %6568 = vst [vmem:[#allocation132_spill] sm:$0xff] %v4530_v41  ;;  %6569 = vst [vmem:[#allocation133_spill] sm:$0xff] %v4533_v6  ;;  %v1593_v22 = vmul.f32 %v4521_v52, %v4521_v52  ;;  %v1701_v32 = vmul.f32 %v4530_v41, %v4530_v41  ;;  %v1555_v14 = vadd.f32 %v4043_v38, %v4533_v6  ;;  %v6647_v52 = vld [vmem:[#allocation9_spill] sm:$0xff] }
 0x17f   :  { %v1591_v23 = vmul.f32 %v4533_v6, %v4533_v6  ;;  %v1732_v21 = vadd.f32 %v1696_v50, %v1624_v34  ;;  %v1767_v18 = vadd.f32 %v1766_v55, %v1660_v49  ;;  %v1665_v57 = vadd.f32 %v1557_v30, %v4530_v41  ;;  %v4567_v34 = vpop.f32.mrb[68].mxu0  ;;  %v6633_v41 = vld [vmem:[#allocation52_spill] sm:$0xff]  ;;  %v6650_v6 = vld [vmem:[#allocation13_spill] sm:$0xff] }
 0x180   :  { %v4554_v4 = vadd.f32 %v4452_v11, %v4460_v19  ;;  %v1629_v37 = vadd.f32 %v1593_v22, %v6573_v10  ;;  %v4559_v56 = vadd.f32 %v4452_v11, %v3086_v9  ;;  %v4562_v38 = vadd.f32 %v4452_v11, %v3138_v7  ;;  %v4569_v19 = vpop.f32.mrb[68].mxu1 }
 0x181   :  { %v1627_v62 = vadd.f32 %v1591_v23, %v6574_v45  ;;  %v1768_v0 = vadd.f32 %v1767_v18, %v1661_v12  ;;  %v1809_v63 = vadd.f32 %v1808_v29, %v1732_v21  ;;  %v4577_v12 = vpop.f32.mrb[69].mxu0  ;;  %v4579_v29 = vpop.f32.mrb[69].mxu1  ;;  %v4583_v23 = vadd.f32 %v4452_v11, %v4475_v2 }
 0x182   :  { %6572 = vst [vmem:[#allocation64_spill] sm:$0xff] %v4554_v4  ;;  %6575 = vst [vmem:[#allocation67_spill] sm:$0xff] %v4559_v56  ;;  %v1663_v55 = vadd.f32 %v1555_v14, %v4554_v4  ;;  %v1699_v50 = vmul.f32 %v4554_v4, %v4554_v4  ;;  %v1737_v49 = vadd.f32 %v1701_v32, %v1629_v37  ;;  %v4585_v32 = vpop.f32.mrb[70].mxu0  ;;  %v6635_v4 = vld [vmem:[#allocation72_spill] sm:$0xff] }
 0x183   :  { %6576 = vst [vmem:[#allocation77_spill] sm:$0xff] %v4562_v38  ;;  %v1558_v45 = vadd.f32 %v4136_v39, %v4559_v56  ;;  %v1594_v9 = vmul.f32 %v4559_v56, %v4559_v56  ;;  %v1702_v7 = vmul.f32 %v4562_v38, %v4562_v38  ;;  %v1810_v30 = vadd.f32 %v1809_v63, %v1733_v53  ;;  %v4587_v39 = vpop.f32.mrb[70].mxu1 }
 0x184   :  { %v1735_v22 = vadd.f32 %v1699_v50, %v1627_v62  ;;  %v1769_v14 = vadd.f32 %v1768_v0, %v1662_v28  ;;  %6577 = vst [vmem:[#allocation80_spill] sm:$0xff] %v4583_v23  ;;  %v4593_v10 = vadd.f32 %v4452_v11, %v4477_v51  ;;  %v4596_v63 = vadd.f32 %v4452_v11, %v3089_v17  ;;  %v4598_v62 = vpop.f32.mrb[71].mxu0  ;;  %v4600_v0 = vpop.f32.mrb[71].mxu1  ;;  %v6580_v50 = vld [vmem:[#allocation69_spill] sm:$0xff] }
 0x185   :  { %v1630_v21 = vadd.f32 %v1594_v9, %v4146_v1  ;;  %v1666_v18 = vadd.f32 %v1558_v45, %v4562_v38  ;;  %v1811_v53 = vadd.f32 %v1810_v30, %v1734_v54  ;;  %v1556_v28 = vadd.f32 %v4150_v58, %v4583_v23  ;;  %v6582_v30 = vld [vmem:[#allocation74_spill] sm:$0xff] }
 0x186   :  { %6578 = vst [vmem:[#allocation134_spill] sm:$0xff] %v4593_v10  ;;  %6579 = vst [vmem:[#allocation135_spill] sm:$0xff] %v4596_v63  ;;  %v1770_v2 = vadd.f32 %v1769_v14, %v1663_v55  ;;  %v1592_v1 = vmul.f32 %v4583_v23, %v4583_v23  ;;  %v1700_v51 = vmul.f32 %v4593_v10, %v4593_v10 }
 0x187   :  { %v1738_v37 = vadd.f32 %v1702_v7, %v1630_v21  ;;  %v1561_v17 = vadd.f32 %v6580_v50, %v4596_v63  ;;  %v1597_v45 = vmul.f32 %v4596_v63, %v4596_v63  ;;  %v1812_v9 = vadd.f32 %v1811_v53, %v1735_v22  ;;  %v6643_v63 = vld [vmem:[#allocation95_spill] sm:$0xff] }
 0x188   :  { %v1628_v55 = vadd.f32 %v1592_v1, %v4166_v42  ;;  %v1664_v54 = vadd.f32 %v1556_v28, %v4593_v10  ;;  %v4616_v58 = vadd.f32 %v4452_v11, %v4504_v15  ;;  %v4621_v14 = vadd.f32 %v4452_v11, %v4512_v31  ;;  %v6586_v1 = vld [vmem:[#allocation104_spill] sm:$0xff]  ;;  %v6634_v10 = vld [vmem:[#allocation62_spill] sm:$0xff] }
 0x189   :  { %v1633_v7 = vadd.f32 %v1597_v45, %v6582_v30  ;;  %v4625_v21 = vadd.f32 %v4452_v11, %v4514_v24  ;;  %v4629_v22 = vadd.f32 %v4452_v11, %v4523_v40  ;;  %v6587_v45 = vld [vmem:[#allocation78_spill] sm:$0xff] }
 0x18a   :  { %6581 = vst [vmem:[#allocation69_spill] sm:$0xff] %v4616_v58  ;;  %6583 = vst [vmem:[#allocation74_spill] sm:$0xff] %v4621_v14  ;;  %v1736_v42 = vadd.f32 %v1700_v51, %v1628_v55  ;;  %v1771_v53 = vadd.f32 %v1770_v2, %v1664_v54  ;;  %v1669_v28 = vadd.f32 %v1561_v17, %v4616_v58 }
 0x18b   :  { %6584 = vst [vmem:[#allocation136_spill] sm:$0xff] %v4625_v21  ;;  %6585 = vst [vmem:[#allocation137_spill] sm:$0xff] %v4629_v22  ;;  %v1705_v15 = vmul.f32 %v4616_v58, %v4616_v58  ;;  %v1559_v50 = vadd.f32 %v6586_v1, %v4621_v14  ;;  %v1595_v31 = vmul.f32 %v4621_v14, %v4621_v14  ;;  %v6645_v14 = vld [vmem:[#allocation91_spill] sm:$0xff] }
 0x18c   :  { %v1703_v24 = vmul.f32 %v4625_v21, %v4625_v21  ;;  %v1562_v40 = vadd.f32 %v6587_v45, %v4629_v22  ;;  %v1772_v30 = vadd.f32 %v1771_v53, %v1665_v57  ;;  %v1813_v51 = vadd.f32 %v1812_v9, %v1736_v42  ;;  %v6590_v57 = vld [vmem:[#allocation82_spill] sm:$0xff] }
 0x18d   :  { %v1741_v2 = vadd.f32 %v1705_v15, %v1633_v7  ;;  %v1598_v17 = vmul.f32 %v4629_v22, %v4629_v22  ;;  %v1631_v55 = vadd.f32 %v1595_v31, %v4196_v5  ;;  %v1667_v54 = vadd.f32 %v1559_v50, %v4625_v21  ;;  %v6632_v21 = vld [vmem:[#allocation48_spill] sm:$0xff] }
 0x18e   :  { %v4648_v1 = vadd.f32 %v4452_v11, %v4525_v35  ;;  %v4652_v58 = vadd.f32 %v4452_v11, %v4535_v20  ;;  %v1814_v38 = vadd.f32 %v1813_v51, %v1737_v49  ;;  %v1773_v45 = vadd.f32 %v1772_v30, %v1666_v18  ;;  %v6592_v35 = vld [vmem:[#allocation79_spill] sm:$0xff]  ;;  %v6642_v22 = vld [vmem:[#allocation88_spill] sm:$0xff] }
 0x18f   :  { %v1634_v9 = vadd.f32 %v1598_v17, %v6590_v57  ;;  %v4657_v7 = vadd.f32 %v4452_v11, %v4537_v43  ;;  %v1739_v42 = vadd.f32 %v1703_v24, %v1631_v55  ;;  %v4671_v24 = vadd.f32 %v4452_v11, %v4567_v34  ;;  %v6595_v51 = vld [vmem:[#allocation83_spill] sm:$0xff] }
 0x190   :  { %6588 = vst [vmem:[#allocation104_spill] sm:$0xff] %v4648_v1  ;;  %6589 = vst [vmem:[#allocation78_spill] sm:$0xff] %v4652_v58  ;;  %v1670_v5 = vadd.f32 %v1562_v40, %v4648_v1  ;;  %v1706_v53 = vmul.f32 %v4648_v1, %v4648_v1  ;;  %v1560_v15 = vadd.f32 %v6592_v35, %v4652_v58  ;;  %v6600_v35 = vld [vmem:[#allocation94_spill] sm:$0xff] }
 0x191   :  { %6591 = vst [vmem:[#allocation82_spill] sm:$0xff] %v4657_v7  ;;  %v1774_v50 = vadd.f32 %v1773_v45, %v1667_v54  ;;  %v1815_v20 = vadd.f32 %v1814_v38, %v1738_v37  ;;  %v1596_v49 = vmul.f32 %v4652_v58, %v4652_v58  ;;  %v1704_v18 = vmul.f32 %v4657_v7, %v4657_v7  ;;  %v6598_v54 = vld [vmem:[#allocation90_spill] sm:$0xff]  ;;  %v6644_v58 = vld [vmem:[#allocation84_spill] sm:$0xff] }
 0x192   :  { %v1742_v31 = vadd.f32 %v1706_v53, %v1634_v9  ;;  %v1668_v43 = vadd.f32 %v1560_v15, %v4657_v7  ;;  %6593 = vst [vmem:[#allocation79_spill] sm:$0xff] %v4671_v24  ;;  %v4675_v40 = vadd.f32 %v4452_v11, %v4569_v19  ;;  %v4680_v37 = vadd.f32 %v4452_v11, %v4577_v12  ;;  %v6599_v9 = vld [vmem:[#allocation92_spill] sm:$0xff]  ;;  %v6630_v1 = vld [vmem:[#allocation50_spill] sm:$0xff] }
 0x193   :  { %v1816_v30 = vadd.f32 %v1815_v20, %v1739_v42  ;;  %v1632_v38 = vadd.f32 %v1596_v49, %v6595_v51  ;;  %v4684_v17 = vadd.f32 %v4452_v11, %v4579_v29  ;;  %v1565_v34 = vadd.f32 %v6598_v54, %v4671_v24  ;;  %v6631_v7 = vld [vmem:[#allocation56_spill] sm:$0xff] }
 0x194   :  { %6594 = vst [vmem:[#allocation138_spill] sm:$0xff] %v4675_v40  ;;  %6596 = vst [vmem:[#allocation83_spill] sm:$0xff] %v4680_v37  ;;  %v1775_v55 = vadd.f32 %v1774_v50, %v1668_v43  ;;  %v1601_v45 = vmul.f32 %v4671_v24, %v4671_v24  ;;  %v1709_v19 = vmul.f32 %v4675_v40, %v4675_v40  ;;  %v6639_v24 = vld [vmem:[#allocation75_spill] sm:$0xff] }
 0x195   :  { %6597 = vst [vmem:[#allocation139_spill] sm:$0xff] %v4684_v17  ;;  %v1740_v57 = vadd.f32 %v1704_v18, %v1632_v38  ;;  %v1563_v42 = vadd.f32 %v6599_v9, %v4680_v37  ;;  %v1599_v12 = vmul.f32 %v4680_v37, %v4680_v37  ;;  %v1707_v29 = vmul.f32 %v4684_v17, %v4684_v17  ;;  %v6602_v18 = vld [vmem:[#allocation97_spill] sm:$0xff]  ;;  %v6641_v37 = vld [vmem:[#allocation70_spill] sm:$0xff] }
 0x196   :  { %v1776_v53 = vadd.f32 %v1775_v55, %v1669_v28  ;;  %v1637_v15 = vadd.f32 %v1601_v45, %v6600_v35  ;;  %v1673_v50 = vadd.f32 %v1565_v34, %v4675_v40  ;;  %v4702_v20 = vadd.f32 %v4452_v11, %v4585_v32  ;;  %v6604_v28 = vld [vmem:[#allocation98_spill] sm:$0xff] }
 0x197   :  { %v1817_v49 = vadd.f32 %v1816_v30, %v1740_v57  ;;  %v1635_v43 = vadd.f32 %v1599_v12, %v6602_v18  ;;  %v1671_v51 = vadd.f32 %v1563_v42, %v4684_v17  ;;  %v4708_v38 = vadd.f32 %v4452_v11, %v4587_v39  ;;  %v6606_v39 = vld [vmem:[#allocation100_spill] sm:$0xff] }
 0x198   :  { %6601 = vst [vmem:[#allocation90_spill] sm:$0xff] %v4702_v20  ;;  %v1745_v54 = vadd.f32 %v1709_v19, %v1637_v15  ;;  %v1777_v9 = vadd.f32 %v1776_v53, %v1670_v5  ;;  %v1566_v55 = vadd.f32 %v6604_v28, %v4702_v20  ;;  %v1602_v34 = vmul.f32 %v4702_v20, %v4702_v20  ;;  %v6629_v17 = vld [vmem:[#allocation44_spill] sm:$0xff]  ;;  %v6638_v20 = vld [vmem:[#allocation86_spill] sm:$0xff] }
 0x199   :  { %6603 = vst [vmem:[#allocation92_spill] sm:$0xff] %v4708_v38  ;;  %v1818_v45 = vadd.f32 %v1817_v49, %v1741_v2  ;;  %v1743_v32 = vadd.f32 %v1707_v29, %v1635_v43  ;;  %v1710_v30 = vmul.f32 %v4708_v38, %v4708_v38  ;;  %v4718_v57 = vadd.f32 %v4452_v11, %v4598_v62  ;;  %v6608_v2 = vld [vmem:[#allocation99_spill] sm:$0xff]  ;;  %v6609_v62 = vld [vmem:[#allocation101_spill] sm:$0xff] }
 0x19a   :  { %v1778_v42 = vadd.f32 %v1777_v9, %v1671_v51  ;;  %v1638_v12 = vadd.f32 %v1602_v34, %v6606_v39  ;;  %v1674_v5 = vadd.f32 %v1566_v55, %v4708_v38  ;;  %v4724_v19 = vadd.f32 %v4452_v11, %v4600_v0 }
 0x19b   :  { %6605 = vst [vmem:[#allocation94_spill] sm:$0xff] %v4718_v57  ;;  %v1819_v53 = vadd.f32 %v1818_v45, %v1742_v31  ;;  %v1564_v29 = vadd.f32 %v6608_v2, %v4718_v57  ;;  %v1600_v35 = vmul.f32 %v4718_v57, %v4718_v57  ;;  %v6640_v57 = vld [vmem:[#allocation65_spill] sm:$0xff] }
 0x19c   :  { %6607 = vst [vmem:[#allocation97_spill] sm:$0xff] %v4724_v19  ;;  %v1746_v15 = vadd.f32 %v1710_v30, %v1638_v12  ;;  %v1708_v51 = vmul.f32 %v4724_v19, %v4724_v19 }
 0x19d   :  { %v1820_v49 = vadd.f32 %v1819_v53, %v1743_v32  ;;  %v1636_v18 = vadd.f32 %v1600_v35, %v6609_v62  ;;  %v1672_v43 = vadd.f32 %v1564_v29, %v4724_v19 }
 0x19f   :  { %v1744_v9 = vadd.f32 %v1708_v51, %v1636_v18  ;;  %v1779_v28 = vadd.f32 %v1778_v42, %v1672_v43  ;;  %v1385_v43 = vld [vmem:[%s6190_s6] sm:$0x1] }
 0x1a1   :  { %v1780_v11 = vadd.f32 %v1779_v28, %v1673_v50  ;;  %v1821_v0 = vadd.f32 %v1820_v49, %v1744_v9  ;;  %v1386_v28 = vld [vmem:[%s6191_s7] sm:$0x1] }
 0x1a3   :  { %v1781_v31 = vadd.f32 %v1780_v11, %v1674_v5  ;;  %v1822_v55 = vadd.f32 %v1821_v0, %v1745_v54  ;;  %v1840_v54 = vlaneseq }
 0x1a5   :  { %v1782_v34 = vrot.slane %v1781_v31, 4  ;;  %v1823_v45 = vadd.f32 %v1822_v55, %v1746_v15  ;;  %v1841_v15 = vshrl.u32 %v1840_v54, 7 }
 0x1a7   :  { %v1783_v39 = vadd.f32 %v1782_v34, %v1781_v31  ;;  %v1824_v2 = vrot.slane %v1823_v45, 4  ;;  %v6610_v31 = vld [vmem:[#allocation4_spill] sm:$0xff] }
 0x1a8   :  { %v6611_v34 = vld [vmem:[#allocation8_spill] sm:$0xff] }
 0x1a9   :  { %v1784_v38 = vrot.slane %v1783_v39, 2  ;;  %v1825_v30 = vadd.f32 %v1824_v2, %v1823_v45 }
 0x1ab   :  { %v1785_v32 = vadd.f32 %v1784_v38, %v1783_v39  ;;  %v1826_v12 = vrot.slane %v1825_v30, 2  ;;  %v1842_v38 = vsub.s32 0, %v1841_v15  ;;  %v6612_v39 = vld [vmem:[#allocation2_spill] sm:$0xff] }
 0x1ac   :  { %v6620_v15 = vld [vmem:[#allocation18_spill] sm:$0xff] }
 0x1ad   :  { %v1786_v53 = vrot.slane %v1785_v32, 1  ;;  %v1827_v35 = vadd.f32 %v1826_v12, %v1825_v30  ;;  %v6613_v30 = vld [vmem:[#allocation6_spill] sm:$0xff]  ;;  %v6614_v12 = vld [vmem:[#allocation12_spill] sm:$0xff] }
 0x1af   :  { %v1787_v29 = vadd.f32 %v1786_v53, %v1785_v32  ;;  %v1828_v62 = vrot.slane %v1827_v35, 1 }
 0x1b1   :  { %v1788_v40 = vmul.f32 0.00086805556, %v1787_v29  ;;  %v1829_v19 = vadd.f32 %v1828_v62, %v1827_v35  ;;  %v6615_v35 = vld [vmem:[#allocation16_spill] sm:$0xff]  ;;  %v6616_v29 = vld [vmem:[#allocation10_spill] sm:$0xff] }
 0x1b3   :  { %v1830_v18 = vmul.f32 0.00086805556, %v1829_v19  ;;  %v1831_v42 = vmul.f32 %v1788_v40, %v1788_v40 }
 0x1b5   :  { %v1832_v50 = vsub.f32 %v1830_v18, %v1831_v42  ;;  %v6617_v18 = vld [vmem:[#allocation14_spill] sm:$0xff] }
 0x1b7   :  { %v1833_v49 = vmax.f32 %v1832_v50, 0.0  ;;  %v6618_v50 = vld [vmem:[#allocation20_spill] sm:$0xff] }
 0x1b9   :  { %v1834_v5 = vadd.f32 1e-05, %v1833_v49 }
 0x1bb   :  { %3227 = vrsqrt.f32 %v1834_v5  ;;  %v6619_v5 = vld [vmem:[#allocation24_spill] sm:$0xff] }
 0x1c5   :  { %v3228_v51 = vpop.eup %3227 }
 0x1c6   :  { %v1836_v9 = vmul.f32 %v3228_v51, %v1385_v43  ;;  %v6621_v51 = vld [vmem:[#allocation22_spill] sm:$0xff] }
 0x1c8   :  { %v1837_v11 = vmul.f32 %v1836_v9, %v1788_v40  ;;  %v4740_v19 = vrot.slane %v1836_v9, %v1842_v38 }
 0x1ca   :  { %v1838_v0 = vsub.f32 %v1386_v28, %v1837_v11  ;;  %v1845_v55 = vmul.f32 %v4740_v19, %v6610_v31  ;;  %v1846_v45 = vmul.f32 %v4740_v19, %v6611_v34  ;;  %v1847_v2 = vmul.f32 %v4740_v19, %v6612_v39  ;;  %v6622_v28 = vld [vmem:[#allocation28_spill] sm:$0xff]  ;;  %v6624_v39 = vld [vmem:[#allocation26_spill] sm:$0xff] }
 0x1cb   :  { %v1848_v32 = vmul.f32 %v4740_v19, %v6613_v30  ;;  %v1849_v53 = vmul.f32 %v4740_v19, %v6614_v12  ;;  %v1850_v40 = vmul.f32 %v4740_v19, %v6615_v35  ;;  %v1851_v62 = vmul.f32 %v4740_v19, %v6616_v29  ;;  %v6623_v31 = vld [vmem:[#allocation32_spill] sm:$0xff]  ;;  %v6625_v12 = vld [vmem:[#allocation30_spill] sm:$0xff] }
 0x1cc   :  { %v1852_v42 = vmul.f32 %v4740_v19, %v6617_v18  ;;  %v1853_v49 = vmul.f32 %v4740_v19, %v6618_v50  ;;  %v1854_v54 = vmul.f32 %v4740_v19, %v6619_v5  ;;  %v1855_v43 = vmul.f32 %v4740_v19, %v6620_v15  ;;  %v6626_v29 = vld [vmem:[#allocation40_spill] sm:$0xff]  ;;  %v6627_v50 = vld [vmem:[#allocation46_spill] sm:$0xff] }
 0x1cd   :  { %v1856_v9 = vmul.f32 %v4740_v19, %v6621_v51  ;;  %v1857_v11 = vmul.f32 %v4740_v19, %v6622_v28  ;;  %v1858_v34 = vmul.f32 %v4740_v19, %v6623_v31  ;;  %v1859_v30 = vmul.f32 %v4740_v19, %v6624_v39  ;;  %v6628_v15 = vld [vmem:[#allocation34_spill] sm:$0xff] }
 0x1ce   :  { %v1860_v35 = vmul.f32 %v4740_v19, %v6625_v12  ;;  %v1861_v18 = vmul.f32 %v4740_v19, %v6626_v29  ;;  %v1862_v5 = vmul.f32 %v4740_v19, %v6627_v50  ;;  %v1863_v51 = vmul.f32 %v4740_v19, %v6628_v15 }
 0x1cf   :  { %v1864_v28 = vmul.f32 %v4740_v19, %v6629_v17  ;;  %v1865_v31 = vmul.f32 %v4740_v19, %v6630_v1  ;;  %v1866_v39 = vmul.f32 %v4740_v19, %v6631_v7  ;;  %v1867_v12 = vmul.f32 %v4740_v19, %v6632_v21 }
 0x1d0   :  { %v1868_v29 = vmul.f32 %v4740_v19, %v6633_v41  ;;  %v1869_v50 = vmul.f32 %v4740_v19, %v6634_v10  ;;  %v1870_v15 = vmul.f32 %v4740_v19, %v6635_v4  ;;  %v1871_v17 = vmul.f32 %v4740_v19, %v6636_v48 }
 0x1d1   :  { %v1872_v1 = vmul.f32 %v4740_v19, %v6637_v59  ;;  %v1873_v7 = vmul.f32 %v4740_v19, %v6638_v20  ;;  %v1874_v21 = vmul.f32 %v4740_v19, %v6639_v24  ;;  %v1875_v41 = vmul.f32 %v4740_v19, %v6640_v57  ;;  %v6646_v24 = vld [vmem:[#allocation5_spill] sm:$0xff] }
 0x1d2   :  { %v1876_v10 = vmul.f32 %v4740_v19, %v6641_v37  ;;  %v1877_v4 = vmul.f32 %v4740_v19, %v6642_v22  ;;  %v1878_v48 = vmul.f32 %v4740_v19, %v6643_v63  ;;  %v1879_v59 = vmul.f32 %v4740_v19, %v6644_v58  ;;  %v6648_v22 = vld [vmem:[#allocation3_spill] sm:$0xff] }
 0x1d3   :  { %v1880_v20 = vmul.f32 %v4740_v19, %v6645_v14  ;;  %v4814_v56 = vrot.slane %v1838_v0, %v1842_v38  ;;  %v4818_v57 = vmul.f32 %v4740_v19, %v6646_v24  ;;  %v4822_v37 = vmul.f32 %v4740_v19, %v6647_v52  ;;  %v6649_v63 = vld [vmem:[#allocation7_spill] sm:$0xff]  ;;  %v6651_v38 = vld [vmem:[#allocation17_spill] sm:$0xff] }
 0x1d4   :  { %v4826_v23 = vmul.f32 %v4740_v19, %v6648_v22  ;;  %v4830_v58 = vmul.f32 %v4740_v19, %v6649_v63  ;;  %v4834_v14 = vmul.f32 %v4740_v19, %v6650_v6  ;;  %v4838_v0 = vmul.f32 %v4740_v19, %v6651_v38 }
 0x1d5   :  { %v4841_v24 = vadd.f32 %v4814_v56, %v1845_v55  ;;  %v4844_v52 = vadd.f32 %v4814_v56, %v1846_v45  ;;  %v4847_v22 = vadd.f32 %v4814_v56, %v1847_v2  ;;  %v4850_v63 = vadd.f32 %v4814_v56, %v1848_v32 }
 0x1d6   :  { %v4853_v36 = vadd.f32 %v4814_v56, %v1849_v53  ;;  %v4856_v6 = vadd.f32 %v4814_v56, %v1850_v40  ;;  %v4859_v38 = vadd.f32 %v4814_v56, %v1851_v62  ;;  %v4862_v55 = vadd.f32 %v4814_v56, %v1852_v42 }
 0x1d7   :  { %v4865_v45 = vadd.f32 %v4814_v56, %v1853_v49  ;;  %v4868_v2 = vadd.f32 %v4814_v56, %v1854_v54  ;;  %v4871_v32 = vadd.f32 %v4814_v56, %v1855_v43  ;;  %v4874_v53 = vadd.f32 %v4814_v56, %v1856_v9 }
 0x1d8   :  { %6652 = vst [vmem:[#allocation98_spill] sm:$0xff] %v4859_v38  ;;  %6653 = vst [vmem:[#allocation100_spill] sm:$0xff] %v4862_v55  ;;  %v4877_v40 = vadd.f32 %v4814_v56, %v1857_v11  ;;  %v4880_v62 = vadd.f32 %v4814_v56, %v1858_v34  ;;  %v4883_v42 = vadd.f32 %v4814_v56, %v1859_v30 }
 0x1d9   :  { %6654 = vst [vmem:[#allocation99_spill] sm:$0xff] %v4865_v45  ;;  %6655 = vst [vmem:[#allocation101_spill] sm:$0xff] %v4868_v2  ;;  %v4886_v49 = vadd.f32 %v4814_v56, %v1860_v35  ;;  %v4889_v54 = vadd.f32 %v4814_v56, %v1861_v18  ;;  %v4892_v43 = vadd.f32 %v4814_v56, %v1862_v5  ;;  %v6711_v2 = vld [vmem:[#allocation93_spill] sm:$0xff] }
 0x1da   :  { %6656 = vst [vmem:[#allocation4_spill] sm:$0xff] %v4871_v32  ;;  %6657 = vst [vmem:[#allocation8_spill] sm:$0xff] %v4874_v53  ;;  %v4895_v9 = vadd.f32 %v4814_v56, %v1863_v51  ;;  %v4898_v11 = vadd.f32 %v4814_v56, %v1864_v28  ;;  %v4901_v34 = vadd.f32 %v4814_v56, %v1865_v31  ;;  %v6709_v53 = vld [vmem:[#allocation96_spill] sm:$0xff]  ;;  %v6710_v32 = vld [vmem:[#allocation85_spill] sm:$0xff] }
 0x1db   :  { %6658 = vst [vmem:[#allocation2_spill] sm:$0xff] %v4877_v40  ;;  %6659 = vst [vmem:[#allocation6_spill] sm:$0xff] %v4880_v62  ;;  %v4904_v30 = vadd.f32 %v4814_v56, %v1866_v39  ;;  %v4907_v35 = vadd.f32 %v4814_v56, %v1867_v12  ;;  %v4910_v18 = vadd.f32 %v4814_v56, %v1868_v29  ;;  %v6707_v62 = vld [vmem:[#allocation73_spill] sm:$0xff] }
 0x1dc   :  { %6660 = vst [vmem:[#allocation12_spill] sm:$0xff] %v4883_v42  ;;  %6661 = vst [vmem:[#allocation16_spill] sm:$0xff] %v4886_v49  ;;  %v4913_v5 = vadd.f32 %v4814_v56, %v1869_v50  ;;  %v4916_v51 = vadd.f32 %v4814_v56, %v1870_v15  ;;  %v4919_v28 = vadd.f32 %v4814_v56, %v1871_v17  ;;  %v6705_v49 = vld [vmem:[#allocation76_spill] sm:$0xff]  ;;  %v6706_v42 = vld [vmem:[#allocation66_spill] sm:$0xff] }
 0x1dd   :  { %6662 = vst [vmem:[#allocation10_spill] sm:$0xff] %v4889_v54  ;;  %6663 = vst [vmem:[#allocation14_spill] sm:$0xff] %v4892_v43  ;;  %v4922_v31 = vadd.f32 %v4814_v56, %v1872_v1  ;;  %v4925_v39 = vadd.f32 %v4814_v56, %v1873_v7  ;;  %v4928_v12 = vadd.f32 %v4814_v56, %v1874_v21  ;;  %v6685_v21 = vld [vmem:[#allocation25_spill] sm:$0xff]  ;;  %v6703_v43 = vld [vmem:[#allocation71_spill] sm:$0xff] }
 0x1de   :  { %6664 = vst [vmem:[#allocation20_spill] sm:$0xff] %v4895_v9  ;;  %6665 = vst [vmem:[#allocation24_spill] sm:$0xff] %v4898_v11  ;;  %v4931_v29 = vadd.f32 %v4814_v56, %v1875_v41  ;;  %v4934_v50 = vadd.f32 %v4814_v56, %v1876_v10  ;;  %v4937_v15 = vadd.f32 %v4814_v56, %v1877_v4  ;;  %v6687_v10 = vld [vmem:[#allocation23_spill] sm:$0xff]  ;;  %v6701_v11 = vld [vmem:[#allocation81_spill] sm:$0xff] }
 0x1df   :  { %6666 = vst [vmem:[#allocation18_spill] sm:$0xff] %v4901_v34  ;;  %6667 = vst [vmem:[#allocation22_spill] sm:$0xff] %v4904_v30  ;;  %v4940_v17 = vadd.f32 %v4814_v56, %v1878_v48  ;;  %v4943_v1 = vadd.f32 %v4814_v56, %v1879_v59  ;;  %v4946_v7 = vadd.f32 %v4814_v56, %v1880_v20  ;;  %v6683_v59 = vld [vmem:[#allocation15_spill] sm:$0xff]  ;;  %v6699_v30 = vld [vmem:[#allocation53_spill] sm:$0xff] }
 0x1e0   :  { %6668 = vst [vmem:[#allocation28_spill] sm:$0xff] %v4907_v35  ;;  %6669 = vst [vmem:[#allocation32_spill] sm:$0xff] %v4910_v18  ;;  %v1966_v47 = vmul.f32 %v4740_v19, %v6683_v59  ;;  %v1968_v41 = vmul.f32 %v4740_v19, %v6685_v21  ;;  %v1970_v4 = vmul.f32 %v4740_v19, %v6687_v10  ;;  %v6697_v18 = vld [vmem:[#allocation57_spill] sm:$0xff]  ;;  %v6700_v34 = vld [vmem:[#allocation63_spill] sm:$0xff] }
 0x1e1   :  { %6670 = vst [vmem:[#allocation26_spill] sm:$0xff] %v4913_v5  ;;  %6671 = vst [vmem:[#allocation30_spill] sm:$0xff] %v4916_v51  ;;  %v6682_v51 = vld [vmem:[#allocation11_spill] sm:$0xff]  ;;  %v6698_v35 = vld [vmem:[#allocation49_spill] sm:$0xff]  ;;  %v2071_v45 = vmul.f32 %v4740_v19, %v4231_v46  ;;  %v2078_v46 = vmul.f32 %v4740_v19, %v4307_v16 }
 0x1e2   :  { %6672 = vst [vmem:[#allocation40_spill] sm:$0xff] %v4919_v28  ;;  %6673 = vst [vmem:[#allocation46_spill] sm:$0xff] %v4922_v31  ;;  %v1965_v48 = vmul.f32 %v4740_v19, %v6682_v51  ;;  %v6694_v31 = vld [vmem:[#allocation35_spill] sm:$0xff]  ;;  %v6695_v28 = vld [vmem:[#allocation45_spill] sm:$0xff] }
 0x1e3   :  { %6674 = vst [vmem:[#allocation34_spill] sm:$0xff] %v4925_v39  ;;  %6675 = vst [vmem:[#allocation44_spill] sm:$0xff] %v4928_v12  ;;  %v6684_v39 = vld [vmem:[#allocation21_spill] sm:$0xff]  ;;  %v6693_v12 = vld [vmem:[#allocation47_spill] sm:$0xff]  ;;  %v1977_v10 = vmul.f32 %v4740_v19, %v6694_v31  ;;  %v1984_v31 = vmul.f32 %v4740_v19, %v6701_v11 }
 0x1e4   :  { %6676 = vst [vmem:[#allocation50_spill] sm:$0xff] %v4931_v29  ;;  %6677 = vst [vmem:[#allocation56_spill] sm:$0xff] %v4934_v50  ;;  %v1967_v20 = vmul.f32 %v4740_v19, %v6684_v39  ;;  %v6686_v50 = vld [vmem:[#allocation19_spill] sm:$0xff]  ;;  %v6692_v29 = vld [vmem:[#allocation41_spill] sm:$0xff] }
 0x1e5   :  { %6678 = vst [vmem:[#allocation48_spill] sm:$0xff] %v4937_v15  ;;  %6679 = vst [vmem:[#allocation52_spill] sm:$0xff] %v4940_v17  ;;  %v1969_v8 = vmul.f32 %v4740_v19, %v6686_v50  ;;  %v6690_v17 = vld [vmem:[#allocation27_spill] sm:$0xff]  ;;  %v1975_v21 = vmul.f32 %v4740_v19, %v6692_v29  ;;  %v1976_v50 = vmul.f32 %v4740_v19, %v6693_v12  ;;  %v6702_v9 = vld [vmem:[#allocation61_spill] sm:$0xff] }
 0x1e6   :  { %6680 = vst [vmem:[#allocation62_spill] sm:$0xff] %v4943_v1  ;;  %6681 = vst [vmem:[#allocation72_spill] sm:$0xff] %v4946_v7  ;;  %v6688_v1 = vld [vmem:[#allocation29_spill] sm:$0xff]  ;;  %v1973_v59 = vmul.f32 %v4740_v19, %v6690_v17  ;;  %v6691_v15 = vld [vmem:[#allocation31_spill] sm:$0xff]  ;;  %v1980_v17 = vmul.f32 %v4740_v19, %v6697_v18  ;;  %v1982_v29 = vmul.f32 %v4740_v19, %v6699_v30 }
 0x1e7   :  { %v1971_v3 = vmul.f32 %v4740_v19, %v6688_v1  ;;  %v6689_v7 = vld [vmem:[#allocation33_spill] sm:$0xff]  ;;  %v1974_v39 = vmul.f32 %v4740_v19, %v6691_v15  ;;  %v1978_v1 = vmul.f32 %v4740_v19, %v6695_v28  ;;  %v6696_v5 = vld [vmem:[#allocation51_spill] sm:$0xff]  ;;  %v1981_v15 = vmul.f32 %v4740_v19, %v6698_v35 }
 0x1e8   :  { %v1972_v51 = vmul.f32 %v4740_v19, %v6689_v7  ;;  %v1979_v7 = vmul.f32 %v4740_v19, %v6696_v5  ;;  %v1983_v12 = vmul.f32 %v4740_v19, %v6700_v34  ;;  %v1985_v28 = vmul.f32 %v4740_v19, %v6702_v9  ;;  %v6704_v54 = vld [vmem:[#allocation87_spill] sm:$0xff]  ;;  %v6708_v40 = vld [vmem:[#allocation89_spill] sm:$0xff] }
 0x1e9   :  { %v1986_v5 = vmul.f32 %v4740_v19, %v6703_v43  ;;  %v1987_v18 = vmul.f32 %v4740_v19, %v6704_v54  ;;  %v1988_v35 = vmul.f32 %v4740_v19, %v6705_v49  ;;  %v1989_v30 = vmul.f32 %v4740_v19, %v6706_v42 }
 0x1ea   :  { %v1990_v34 = vmul.f32 %v4740_v19, %v6707_v62  ;;  %v1991_v11 = vmul.f32 %v4740_v19, %v6708_v40  ;;  %v1992_v9 = vmul.f32 %v4740_v19, %v6709_v53  ;;  %v1993_v43 = vmul.f32 %v4740_v19, %v6710_v32 }
 0x1eb   :  { %v1994_v54 = vmul.f32 %v4740_v19, %v6711_v2  ;;  %v5046_v49 = vadd.f32 %v4818_v57, %v4814_v56  ;;  %v5050_v42 = vadd.f32 %v4822_v37, %v4814_v56  ;;  %v5054_v40 = vadd.f32 %v4826_v23, %v4814_v56 }
 0x1ec   :  { %v5058_v53 = vadd.f32 %v4830_v58, %v4814_v56  ;;  %v5062_v32 = vadd.f32 %v4834_v14, %v4814_v56  ;;  %v5066_v57 = vadd.f32 %v4838_v0, %v4814_v56  ;;  %v5069_v2 = vadd.f32 %v1965_v48, %v4814_v56 }
 0x1ed   :  { %v5072_v37 = vadd.f32 %v1966_v47, %v4814_v56  ;;  %v5075_v23 = vadd.f32 %v1967_v20, %v4814_v56  ;;  %v5078_v58 = vadd.f32 %v1968_v41, %v4814_v56  ;;  %v5081_v62 = vadd.f32 %v1969_v8, %v4814_v56 }
 0x1ee   :  { %v5084_v14 = vadd.f32 %v1970_v4, %v4814_v56  ;;  %v5087_v0 = vadd.f32 %v1971_v3, %v4814_v56  ;;  %v5090_v48 = vadd.f32 %v1972_v51, %v4814_v56  ;;  %v5093_v47 = vadd.f32 %v1973_v59, %v4814_v56 }
 0x1ef   :  { %6712 = vst [vmem:[#allocation60_spill] sm:$0xff] %v5081_v62  ;;  %v5096_v20 = vadd.f32 %v1974_v39, %v4814_v56  ;;  %v5099_v41 = vadd.f32 %v1975_v21, %v4814_v56  ;;  %v5102_v8 = vadd.f32 %v1976_v50, %v4814_v56  ;;  %v5105_v4 = vadd.f32 %v1977_v10, %v4814_v56 }
 0x1f0   :  { %6713 = vst [vmem:[#allocation68_spill] sm:$0xff] %v5084_v14  ;;  %6714 = vst [vmem:[#allocation86_spill] sm:$0xff] %v5087_v0  ;;  %v5108_v3 = vadd.f32 %v1978_v1, %v4814_v56  ;;  %v5111_v51 = vadd.f32 %v1979_v7, %v4814_v56  ;;  %v5114_v59 = vadd.f32 %v1980_v17, %v4814_v56 }
 0x1f1   :  { %6715 = vst [vmem:[#allocation75_spill] sm:$0xff] %v5090_v48  ;;  %6716 = vst [vmem:[#allocation65_spill] sm:$0xff] %v5093_v47  ;;  %v5117_v39 = vadd.f32 %v1981_v15, %v4814_v56  ;;  %v5120_v21 = vadd.f32 %v1982_v29, %v4814_v56  ;;  %v5123_v50 = vadd.f32 %v1983_v12, %v4814_v56  ;;  %v6762_v47 = vld [vmem:[#allocation79_spill] sm:$0xff]  ;;  %v6763_v48 = vld [vmem:[#allocation90_spill] sm:$0xff] }
 0x1f2   :  { %6717 = vst [vmem:[#allocation70_spill] sm:$0xff] %v5096_v20  ;;  %6718 = vst [vmem:[#allocation88_spill] sm:$0xff] %v5099_v41  ;;  %v5126_v10 = vadd.f32 %v1984_v31, %v4814_v56  ;;  %v5129_v1 = vadd.f32 %v1985_v28, %v4814_v56  ;;  %v5132_v7 = vadd.f32 %v1986_v5, %v4814_v56  ;;  %v6760_v41 = vld [vmem:[#allocation83_spill] sm:$0xff]  ;;  %v6761_v20 = vld [vmem:[#allocation94_spill] sm:$0xff] }
 0x1f3   :  { %6719 = vst [vmem:[#allocation95_spill] sm:$0xff] %v5102_v8  ;;  %6720 = vst [vmem:[#allocation84_spill] sm:$0xff] %v5105_v4  ;;  %v5135_v17 = vadd.f32 %v1987_v18, %v4814_v56  ;;  %v5138_v15 = vadd.f32 %v1988_v35, %v4814_v56  ;;  %v5141_v29 = vadd.f32 %v1989_v30, %v4814_v56  ;;  %v6741_v35 = vld [vmem:[#allocation107_spill] sm:$0xff]  ;;  %v6759_v8 = vld [vmem:[#allocation137_spill] sm:$0xff] }
 0x1f4   :  { %6721 = vst [vmem:[#allocation91_spill] sm:$0xff] %v5108_v3  ;;  %6722 = vst [vmem:[#allocation5_spill] sm:$0xff] %v5111_v51  ;;  %v5144_v12 = vadd.f32 %v1990_v34, %v4814_v56  ;;  %v5147_v31 = vadd.f32 %v1991_v11, %v4814_v56  ;;  %v5150_v28 = vadd.f32 %v1992_v9, %v4814_v56  ;;  %v6742_v34 = vld [vmem:[#allocation111_spill] sm:$0xff]  ;;  %v6756_v51 = vld [vmem:[#allocation74_spill] sm:$0xff] }
 0x1f5   :  { %6723 = vst [vmem:[#allocation9_spill] sm:$0xff] %v5114_v59  ;;  %6724 = vst [vmem:[#allocation3_spill] sm:$0xff] %v5117_v39  ;;  %v5153_v5 = vadd.f32 %v1993_v43, %v4814_v56  ;;  %v5156_v18 = vadd.f32 %v1994_v54, %v4814_v56  ;;  %v6739_v43 = vld [vmem:[#allocation109_spill] sm:$0xff]  ;;  %v2070_v30 = vmul.f32 %v4740_v19, %v6741_v35  ;;  %v6754_v39 = vld [vmem:[#allocation131_spill] sm:$0xff] }
 0x1f6   :  { %6725 = vst [vmem:[#allocation7_spill] sm:$0xff] %v5120_v21  ;;  %6726 = vst [vmem:[#allocation13_spill] sm:$0xff] %v5123_v50  ;;  %v2068_v38 = vmul.f32 %v4740_v19, %v6739_v43  ;;  %v2072_v11 = vmul.f32 %v4740_v19, %v4263_v25  ;;  %v2073_v55 = vmul.f32 %v4740_v19, %v6742_v34  ;;  %v6752_v50 = vld [vmem:[#allocation133_spill] sm:$0xff]  ;;  %v6753_v21 = vld [vmem:[#allocation80_spill] sm:$0xff] }
 0x1f7   :  { %6727 = vst [vmem:[#allocation17_spill] sm:$0xff] %v5126_v10  ;;  %6728 = vst [vmem:[#allocation11_spill] sm:$0xff] %v5129_v1  ;;  %v6738_v10 = vld [vmem:[#allocation105_spill] sm:$0xff]  ;;  %v2075_v43 = vmul.f32 %v4740_v19, %v4287_v13  ;;  %v2077_v35 = vmul.f32 %v4740_v19, %v4280_v44  ;;  %v2079_v25 = vmul.f32 %v4740_v19, %v4341_v60  ;;  %v6751_v1 = vld [vmem:[#allocation127_spill] sm:$0xff] }
 0x1f8   :  { %6729 = vst [vmem:[#allocation15_spill] sm:$0xff] %v5132_v7  ;;  %6730 = vst [vmem:[#allocation21_spill] sm:$0xff] %v5135_v17  ;;  %v2067_v9 = vmul.f32 %v4740_v19, %v6738_v10  ;;  %v6740_v17 = vld [vmem:[#allocation102_spill] sm:$0xff]  ;;  %v2074_v10 = vmul.f32 %v4740_v19, %v4243_v26  ;;  %v2084_v44 = vmul.f32 %v4740_v19, %v4433_v27  ;;  %v6750_v7 = vld [vmem:[#allocation59_spill] sm:$0xff] }
 0x1f9   :  { %6731 = vst [vmem:[#allocation25_spill] sm:$0xff] %v5138_v15  ;;  %6732 = vst [vmem:[#allocation19_spill] sm:$0xff] %v5141_v29  ;;  %v2069_v54 = vmul.f32 %v4740_v19, %v6740_v17  ;;  %v2076_v17 = vmul.f32 %v4740_v19, %v4321_v33  ;;  %v2086_v60 = vmul.f32 %v4740_v19, %v4410_v61  ;;  %v6748_v29 = vld [vmem:[#allocation125_spill] sm:$0xff]  ;;  %v6755_v59 = vld [vmem:[#allocation67_spill] sm:$0xff] }
 0x1fa   :  { %6733 = vst [vmem:[#allocation23_spill] sm:$0xff] %v5144_v12  ;;  %6734 = vst [vmem:[#allocation29_spill] sm:$0xff] %v5147_v31  ;;  %v6746_v31 = vld [vmem:[#allocation43_spill] sm:$0xff]  ;;  %v6747_v12 = vld [vmem:[#allocation124_spill] sm:$0xff]  ;;  %v2091_v27 = vmul.f32 %v4740_v19, %v6752_v50  ;;  %v2093_v61 = vmul.f32 %v4740_v19, %v6754_v39  ;;  %v2098_v50 = vmul.f32 %v4740_v19, %v6759_v8 }
 0x1fb   :  { %6735 = vst [vmem:[#allocation33_spill] sm:$0xff] %v5150_v28  ;;  %6736 = vst [vmem:[#allocation27_spill] sm:$0xff] %v5153_v5  ;;  %v6744_v5 = vld [vmem:[#allocation120_spill] sm:$0xff]  ;;  %v2083_v33 = vmul.f32 %v4740_v19, %v6746_v31  ;;  %v2085_v16 = vmul.f32 %v4740_v19, %v6747_v12  ;;  %v6749_v15 = vld [vmem:[#allocation129_spill] sm:$0xff]  ;;  %v2090_v31 = vmul.f32 %v4740_v19, %v6751_v1 }
 0x1fc   :  { %6737 = vst [vmem:[#allocation31_spill] sm:$0xff] %v5156_v18  ;;  %v6743_v18 = vld [vmem:[#allocation37_spill] sm:$0xff]  ;;  %v2081_v26 = vmul.f32 %v4740_v19, %v6744_v5  ;;  %v6745_v28 = vld [vmem:[#allocation36_spill] sm:$0xff]  ;;  %v2088_v5 = vmul.f32 %v4740_v19, %v6749_v15  ;;  %v2092_v12 = vmul.f32 %v4740_v19, %v6753_v21  ;;  %v2095_v15 = vmul.f32 %v4740_v19, %v6756_v51  ;;  %v6757_v3 = vld [vmem:[#allocation78_spill] sm:$0xff] }
 0x1fd   :  { %v2080_v34 = vmul.f32 %v4740_v19, %v6743_v18  ;;  %v2082_v13 = vmul.f32 %v4740_v19, %v6745_v28  ;;  %v2087_v18 = vmul.f32 %v4740_v19, %v6748_v29  ;;  %v2089_v28 = vmul.f32 %v4740_v19, %v6750_v7  ;;  %v6758_v4 = vld [vmem:[#allocation135_spill] sm:$0xff] }
 0x1fe   :  { %v2094_v29 = vmul.f32 %v4740_v19, %v6755_v59  ;;  %v2096_v7 = vmul.f32 %v4740_v19, %v6757_v3  ;;  %v2097_v1 = vmul.f32 %v4740_v19, %v6758_v4  ;;  %v2099_v21 = vmul.f32 %v4740_v19, %v6760_v41 }
 0x1ff   :  { %v2100_v39 = vmul.f32 %v4740_v19, %v6761_v20  ;;  %v2101_v59 = vmul.f32 %v4740_v19, %v6762_v47  ;;  %v2102_v51 = vmul.f32 %v4740_v19, %v6763_v48  ;;  %v5267_v3 = vadd.f32 %v2067_v9, %v4814_v56 }
 0x200   :  { %v5270_v4 = vadd.f32 %v2068_v38, %v4814_v56  ;;  %v5273_v8 = vadd.f32 %v2069_v54, %v4814_v56  ;;  %v5276_v41 = vadd.f32 %v2070_v30, %v4814_v56  ;;  %v5279_v20 = vadd.f32 %v2071_v45, %v4814_v56 }
 0x201   :  { %v5282_v47 = vadd.f32 %v2072_v11, %v4814_v56  ;;  %v5285_v48 = vadd.f32 %v2073_v55, %v4814_v56  ;;  %v5288_v9 = vadd.f32 %v2074_v10, %v4814_v56  ;;  %v5291_v38 = vadd.f32 %v2075_v43, %v4814_v56 }
 0x202   :  { %6764 = vst [vmem:[#allocation41_spill] sm:$0xff] %v5270_v4  ;;  %6765 = vst [vmem:[#allocation47_spill] sm:$0xff] %v5273_v8  ;;  %v5294_v54 = vadd.f32 %v2076_v17, %v4814_v56  ;;  %v5297_v30 = vadd.f32 %v2077_v35, %v4814_v56  ;;  %v5300_v45 = vadd.f32 %v2078_v46, %v4814_v56  ;;  %v6841_v8 = vmax.f32 %v5058_v53, 0.0 }
 0x203   :  { %6766 = vst [vmem:[#allocation35_spill] sm:$0xff] %v5276_v41  ;;  %6767 = vst [vmem:[#allocation45_spill] sm:$0xff] %v5279_v20  ;;  %v5303_v11 = vadd.f32 %v2079_v25, %v4814_v56  ;;  %v5306_v55 = vadd.f32 %v2080_v34, %v4814_v56  ;;  %v5309_v10 = vadd.f32 %v2081_v26, %v4814_v56  ;;  %v6833_v20 = vld [vmem:[#allocation138_spill] sm:$0xff]  ;;  %v6834_v41 = vld [vmem:[#allocation92_spill] sm:$0xff] }
 0x204   :  { %6768 = vst [vmem:[#allocation51_spill] sm:$0xff] %v5282_v47  ;;  %6769 = vst [vmem:[#allocation57_spill] sm:$0xff] %v5285_v48  ;;  %v5312_v43 = vadd.f32 %v2082_v13, %v4814_v56  ;;  %v5315_v17 = vadd.f32 %v2083_v33, %v4814_v56  ;;  %v5318_v35 = vadd.f32 %v2084_v44, %v4814_v56  ;;  %v6831_v48 = vld [vmem:[#allocation139_spill] sm:$0xff]  ;;  %v6832_v47 = vld [vmem:[#allocation97_spill] sm:$0xff] }
 0x205   :  { %6770 = vst [vmem:[#allocation49_spill] sm:$0xff] %v5288_v9  ;;  %6771 = vst [vmem:[#allocation53_spill] sm:$0xff] %v5291_v38  ;;  %v5321_v46 = vadd.f32 %v2085_v16, %v4814_v56  ;;  %v5324_v25 = vadd.f32 %v2086_v60, %v4814_v56  ;;  %v5327_v34 = vadd.f32 %v2087_v18, %v4814_v56  ;;  %v6829_v38 = vld [vmem:[#allocation69_spill] sm:$0xff]  ;;  %v6830_v9 = vld [vmem:[#allocation104_spill] sm:$0xff] }
 0x206   :  { %6772 = vst [vmem:[#allocation63_spill] sm:$0xff] %v5294_v54  ;;  %6773 = vst [vmem:[#allocation81_spill] sm:$0xff] %v5297_v30  ;;  %v5330_v26 = vadd.f32 %v2088_v5, %v4814_v56  ;;  %v5333_v13 = vadd.f32 %v2089_v28, %v4814_v56  ;;  %v5336_v33 = vadd.f32 %v2090_v31, %v4814_v56  ;;  %v6827_v30 = vld [vmem:[#allocation136_spill] sm:$0xff]  ;;  %v6828_v54 = vld [vmem:[#allocation82_spill] sm:$0xff] }
 0x207   :  { %6774 = vst [vmem:[#allocation61_spill] sm:$0xff] %v5300_v45  ;;  %6775 = vst [vmem:[#allocation71_spill] sm:$0xff] %v5303_v11  ;;  %v5339_v44 = vadd.f32 %v2091_v27, %v4814_v56  ;;  %v5342_v16 = vadd.f32 %v2092_v12, %v4814_v56  ;;  %v5345_v60 = vadd.f32 %v2093_v61, %v4814_v56  ;;  %v6825_v11 = vld [vmem:[#allocation132_spill] sm:$0xff]  ;;  %v6826_v45 = vld [vmem:[#allocation77_spill] sm:$0xff] }
 0x208   :  { %6776 = vst [vmem:[#allocation87_spill] sm:$0xff] %v5306_v55  ;;  %6777 = vst [vmem:[#allocation76_spill] sm:$0xff] %v5309_v10  ;;  %v5348_v18 = vadd.f32 %v2094_v29, %v4814_v56  ;;  %v5351_v5 = vadd.f32 %v2095_v15, %v4814_v56  ;;  %v5354_v28 = vadd.f32 %v2096_v7, %v4814_v56  ;;  %v6802_v7 = vld [vmem:[#allocation108_spill] sm:$0xff]  ;;  %v6824_v55 = vld [vmem:[#allocation134_spill] sm:$0xff] }
 0x209   :  { %6778 = vst [vmem:[#allocation66_spill] sm:$0xff] %v5312_v43  ;;  %6779 = vst [vmem:[#allocation73_spill] sm:$0xff] %v5315_v17  ;;  %v5357_v31 = vadd.f32 %v2097_v1, %v4814_v56  ;;  %v5360_v27 = vadd.f32 %v2098_v50, %v4814_v56  ;;  %v5363_v12 = vadd.f32 %v2099_v21, %v4814_v56  ;;  %v6804_v50 = vld [vmem:[#allocation115_spill] sm:$0xff]  ;;  %v6821_v17 = vld [vmem:[#allocation58_spill] sm:$0xff] }
 0x20a   :  { %6780 = vst [vmem:[#allocation89_spill] sm:$0xff] %v5318_v35  ;;  %6781 = vst [vmem:[#allocation96_spill] sm:$0xff] %v5321_v46  ;;  %v5366_v61 = vadd.f32 %v2100_v39, %v4814_v56  ;;  %v5369_v29 = vadd.f32 %v2101_v59, %v4814_v56  ;;  %v5372_v15 = vadd.f32 %v2102_v51, %v4814_v56  ;;  %v6800_v59 = vld [vmem:[#allocation110_spill] sm:$0xff]  ;;  %v6822_v43 = vld [vmem:[#allocation128_spill] sm:$0xff] }
 0x20b   :  { %6782 = vst [vmem:[#allocation85_spill] sm:$0xff] %v5324_v25  ;;  %6783 = vst [vmem:[#allocation93_spill] sm:$0xff] %v5327_v34  ;;  %v2176_v62 = vmul.f32 %v4740_v19, %v6800_v59  ;;  %v2178_v1 = vmul.f32 %v4740_v19, %v6802_v7  ;;  %v2180_v21 = vmul.f32 %v4740_v19, %v6804_v50  ;;  %v6817_v34 = vld [vmem:[#allocation39_spill] sm:$0xff]  ;;  %v6818_v25 = vld [vmem:[#allocation54_spill] sm:$0xff] }
 0x20c   :  { %6784 = vst [vmem:[#allocation105_spill] sm:$0xff] %v5330_v26  ;;  %6785 = vst [vmem:[#allocation109_spill] sm:$0xff] %v5333_v13  ;;  %v6815_v13 = vld [vmem:[#allocation42_spill] sm:$0xff]  ;;  %v6816_v26 = vld [vmem:[#allocation55_spill] sm:$0xff] }
 0x20d   :  { %6786 = vst [vmem:[#allocation102_spill] sm:$0xff] %v5336_v33  ;;  %6787 = vst [vmem:[#allocation107_spill] sm:$0xff] %v5339_v44  ;;  %v6813_v44 = vld [vmem:[#allocation121_spill] sm:$0xff]  ;;  %v6814_v33 = vld [vmem:[#allocation123_spill] sm:$0xff] }
 0x20e   :  { %6788 = vst [vmem:[#allocation111_spill] sm:$0xff] %v5342_v16  ;;  %6789 = vst [vmem:[#allocation37_spill] sm:$0xff] %v5345_v60  ;;  %v6799_v16 = vld [vmem:[#allocation106_spill] sm:$0xff]  ;;  %v6823_v10 = vld [vmem:[#allocation64_spill] sm:$0xff] }
 0x20f   :  { %6790 = vst [vmem:[#allocation120_spill] sm:$0xff] %v5348_v18  ;;  %6791 = vst [vmem:[#allocation36_spill] sm:$0xff] %v5351_v5  ;;  %v2175_v39 = vmul.f32 %v4740_v19, %v6799_v16  ;;  %v6801_v5 = vld [vmem:[#allocation103_spill] sm:$0xff]  ;;  %v6811_v18 = vld [vmem:[#allocation122_spill] sm:$0xff] }
 0x210   :  { %6792 = vst [vmem:[#allocation43_spill] sm:$0xff] %v5354_v28  ;;  %6793 = vst [vmem:[#allocation124_spill] sm:$0xff] %v5357_v31  ;;  %v2177_v51 = vmul.f32 %v4740_v19, %v6801_v5  ;;  %v6809_v31 = vld [vmem:[#allocation116_spill] sm:$0xff]  ;;  %v6810_v28 = vld [vmem:[#allocation118_spill] sm:$0xff]  ;;  %v2187_v50 = vmul.f32 %v4740_v19, %v6811_v18  ;;  %v2194_v18 = vmul.f32 %v4740_v19, %v6818_v25 }
 0x211   :  { %6794 = vst [vmem:[#allocation125_spill] sm:$0xff] %v5360_v27  ;;  %6795 = vst [vmem:[#allocation129_spill] sm:$0xff] %v5363_v12  ;;  %v6803_v27 = vld [vmem:[#allocation113_spill] sm:$0xff]  ;;  %v6808_v12 = vld [vmem:[#allocation119_spill] sm:$0xff]  ;;  %v2185_v7 = vmul.f32 %v4740_v19, %v6809_v31  ;;  %v2192_v31 = vmul.f32 %v4740_v19, %v6816_v26  ;;  %v2199_v26 = vmul.f32 %v4740_v19, %v6823_v10 }
 0x212   :  { %6796 = vst [vmem:[#allocation59_spill] sm:$0xff] %v5366_v61  ;;  %6797 = vst [vmem:[#allocation127_spill] sm:$0xff] %v5369_v29  ;;  %v2179_v0 = vmul.f32 %v4740_v19, %v6803_v27  ;;  %v6805_v29 = vld [vmem:[#allocation112_spill] sm:$0xff]  ;;  %v6807_v61 = vld [vmem:[#allocation117_spill] sm:$0xff]  ;;  %v2184_v5 = vmul.f32 %v4740_v19, %v6808_v12  ;;  %v2186_v27 = vmul.f32 %v4740_v19, %v6810_v28 }
 0x213   :  { %6798 = vst [vmem:[#allocation133_spill] sm:$0xff] %v5372_v15  ;;  %v2181_v14 = vmul.f32 %v4740_v19, %v6805_v29  ;;  %v6806_v15 = vld [vmem:[#allocation114_spill] sm:$0xff]  ;;  %v2183_v59 = vmul.f32 %v4740_v19, %v6807_v61  ;;  %v2190_v61 = vmul.f32 %v4740_v19, %v6814_v33  ;;  %v2191_v12 = vmul.f32 %v4740_v19, %v6815_v13 }
 0x214   :  { %v2182_v16 = vmul.f32 %v4740_v19, %v6806_v15  ;;  %v6812_v60 = vld [vmem:[#allocation38_spill] sm:$0xff]  ;;  %v2189_v15 = vmul.f32 %v4740_v19, %v6813_v44  ;;  %v2193_v28 = vmul.f32 %v4740_v19, %v6817_v34  ;;  %v2197_v33 = vmul.f32 %v4740_v19, %v6821_v17 }
 0x215   :  { %v2188_v29 = vmul.f32 %v4740_v19, %v6812_v60  ;;  %v6819_v46 = vld [vmem:[#allocation126_spill] sm:$0xff]  ;;  %v2198_v13 = vmul.f32 %v4740_v19, %v6822_v43  ;;  %v2200_v34 = vmul.f32 %v4740_v19, %v6824_v55  ;;  %v2201_v25 = vmul.f32 %v4740_v19, %v6825_v11 }
 0x216   :  { %v2195_v60 = vmul.f32 %v4740_v19, %v6819_v46  ;;  %v6820_v35 = vld [vmem:[#allocation130_spill] sm:$0xff]  ;;  %v2202_v46 = vmul.f32 %v4740_v19, %v6826_v45  ;;  %v2204_v17 = vmul.f32 %v4740_v19, %v6828_v54  ;;  %v2205_v43 = vmul.f32 %v4740_v19, %v6829_v38 }
 0x217   :  { %v2196_v44 = vmul.f32 %v4740_v19, %v6820_v35  ;;  %v2203_v35 = vmul.f32 %v4740_v19, %v6827_v30  ;;  %v2206_v10 = vmul.f32 %v4740_v19, %v6830_v9  ;;  %v2207_v55 = vmul.f32 %v4740_v19, %v6831_v48 }
 0x218   :  { %v2208_v11 = vmul.f32 %v4740_v19, %v6832_v47  ;;  %v2209_v45 = vmul.f32 %v4740_v19, %v6833_v20  ;;  %v2210_v30 = vmul.f32 %v4740_v19, %v6834_v41  ;;  %v5483_v54 = vadd.f32 %v2175_v39, %v4814_v56 }
 0x219   :  { %v5486_v38 = vadd.f32 %v2176_v62, %v4814_v56  ;;  %v5489_v9 = vadd.f32 %v2177_v51, %v4814_v56  ;;  %v5492_v48 = vadd.f32 %v2178_v1, %v4814_v56  ;;  %v5495_v47 = vadd.f32 %v2179_v0, %v4814_v56 }
 0x21a   :  { %v5498_v20 = vadd.f32 %v2180_v21, %v4814_v56  ;;  %v5501_v19 = vadd.f32 %v2181_v14, %v4814_v56  ;;  %v5504_v41 = vadd.f32 %v2182_v16, %v4814_v56  ;;  %v5507_v62 = vadd.f32 %v2183_v59, %v4814_v56 }
 0x21b   :  { %v5510_v39 = vadd.f32 %v2184_v5, %v4814_v56  ;;  %v5513_v1 = vadd.f32 %v2185_v7, %v4814_v56  ;;  %v5516_v0 = vadd.f32 %v2186_v27, %v4814_v56  ;;  %v5519_v21 = vadd.f32 %v2187_v50, %v4814_v56 }
 0x21c   :  { %v5522_v14 = vadd.f32 %v2188_v29, %v4814_v56  ;;  %v5525_v51 = vadd.f32 %v2189_v15, %v4814_v56  ;;  %v5528_v16 = vadd.f32 %v2190_v61, %v4814_v56  ;;  %v5531_v59 = vadd.f32 %v2191_v12, %v4814_v56 }
 0x21d   :  { %v5534_v5 = vadd.f32 %v2192_v31, %v4814_v56  ;;  %v5537_v7 = vadd.f32 %v2193_v28, %v4814_v56  ;;  %v5540_v27 = vadd.f32 %v2194_v18, %v4814_v56  ;;  %v5543_v50 = vadd.f32 %v2195_v60, %v4814_v56 }
 0x21e   :  { %v5546_v29 = vadd.f32 %v2196_v44, %v4814_v56  ;;  %v5549_v15 = vadd.f32 %v2197_v33, %v4814_v56  ;;  %v5552_v61 = vadd.f32 %v2198_v13, %v4814_v56  ;;  %v5555_v12 = vadd.f32 %v2199_v26, %v4814_v56 }
 0x21f   :  { %v5558_v31 = vadd.f32 %v2200_v34, %v4814_v56  ;;  %v5561_v28 = vadd.f32 %v2201_v25, %v4814_v56  ;;  %v5564_v18 = vadd.f32 %v2202_v46, %v4814_v56  ;;  %v5567_v60 = vadd.f32 %v2203_v35, %v4814_v56 }
 0x220   :  { %v5570_v44 = vadd.f32 %v2204_v17, %v4814_v56  ;;  %v5573_v33 = vadd.f32 %v2205_v43, %v4814_v56  ;;  %v5576_v13 = vadd.f32 %v2206_v10, %v4814_v56  ;;  %v5579_v26 = vadd.f32 %v2207_v55, %v4814_v56 }
 0x221   :  { %v5582_v34 = vadd.f32 %v2208_v11, %v4814_v56  ;;  %v5585_v25 = vadd.f32 %v2209_v45, %v4814_v56  ;;  %v5588_v46 = vadd.f32 %v2210_v30, %v4814_v56  ;;  %v6835_v11 = vmax.f32 %v5046_v49, 0.0 }
 0x222   :  { %v6836_v45 = vmax.f32 %v4841_v24, 0.0  ;;  %v6837_v56 = vmax.f32 %v5050_v42, 0.0  ;;  %v6838_v30 = vmax.f32 %v4844_v52, 0.0  ;;  %v6839_v43 = vmax.f32 %v5054_v40, 0.0 }
 0x223   :  { %v6840_v10 = vmax.f32 %v4847_v22, 0.0  ;;  %v6842_v49 = vmax.f32 %v4850_v63, 0.0  ;;  %v6843_v24 = vmax.f32 %v5062_v32, 0.0  ;;  %v6844_v42 = vmax.f32 %v4853_v36, 0.0 }
 0x224   :  { %v5630_v35 = vmax.f32 %v6836_v45, %v6835_v11  ;;  %v5636_v4 = vmax.f32 %v6838_v30, %v6837_v56  ;;  %v6845_v52 = vmax.f32 %v5066_v57, 0.0  ;;  %v6846_v40 = vmax.f32 %v4856_v6, 0.0  ;;  %v6854_v30 = vld [vmem:[#allocation99_spill] sm:$0xff] }
 0x225   :  { %v5642_v17 = vmax.f32 %v6840_v10, %v6839_v43  ;;  %v5648_v55 = vmax.f32 %v6842_v49, %v6841_v8  ;;  %v5654_v11 = vmax.f32 %v6844_v42, %v6843_v24  ;;  %v6847_v22 = vmax.f32 %v5069_v2, 0.0  ;;  %v6848_v43 = vld [vmem:[#allocation98_spill] sm:$0xff]  ;;  %v6851_v8 = vld [vmem:[#allocation100_spill] sm:$0xff]  ;;  %v6858_v24 = vld [vmem:[#allocation101_spill] sm:$0xff] }
 0x226   :  { %v5660_v45 = vmax.f32 %v6846_v40, %v6845_v52  ;;  %v6849_v53 = vmax.f32 %v6848_v43, 0.0  ;;  %v6850_v63 = vmax.f32 %v5072_v37, 0.0  ;;  %v6852_v32 = vmax.f32 %v6851_v8, 0.0  ;;  %v6861_v52 = vld [vmem:[#allocation60_spill] sm:$0xff] }
 0x227   :  { %v6853_v36 = vmax.f32 %v5075_v23, 0.0  ;;  %v6855_v57 = vmax.f32 %v6854_v30, 0.0  ;;  %v6857_v6 = vmax.f32 %v5078_v58, 0.0  ;;  %v6859_v2 = vmax.f32 %v6858_v24, 0.0  ;;  %v6868_v8 = vld [vmem:[#allocation8_spill] sm:$0xff] }
 0x228   :  { %v5666_v10 = vmax.f32 %v6849_v53, %v6847_v22  ;;  %v5672_v56 = vmax.f32 %v6852_v32, %v6850_v63  ;;  %v6862_v40 = vmax.f32 %v6861_v52, 0.0  ;;  %v6863_v22 = vld [vmem:[#allocation4_spill] sm:$0xff]  ;;  %v6869_v23 = vmax.f32 %v6868_v8, 0.0 }
 0x229   :  { %v5678_v49 = vmax.f32 %v6855_v57, %v6853_v36  ;;  %v5684_v42 = vmax.f32 %v6859_v2, %v6857_v6  ;;  %v6864_v37 = vmax.f32 %v6863_v22, 0.0  ;;  %v6866_v53 = vld [vmem:[#allocation68_spill] sm:$0xff]  ;;  %v6871_v36 = vld [vmem:[#allocation86_spill] sm:$0xff]  ;;  %v6876_v6 = vld [vmem:[#allocation75_spill] sm:$0xff] }
 0x22a   :  { %v6867_v63 = vmax.f32 %v6866_v53, 0.0  ;;  %v6872_v30 = vmax.f32 %v6871_v36, 0.0  ;;  %v6873_v57 = vld [vmem:[#allocation2_spill] sm:$0xff]  ;;  %v6877_v24 = vmax.f32 %v6876_v6, 0.0 }
 0x22b   :  { %6856 = vst [vmem:[#allocation80_spill] sm:$0xff] %v5678_v49  ;;  %6860 = vst [vmem:[#allocation131_spill] sm:$0xff] %v5684_v42  ;;  %v5690_v43 = vmax.f32 %v6864_v37, %v6862_v40  ;;  %v6874_v58 = vmax.f32 %v6873_v57, 0.0  ;;  %v6878_v2 = vld [vmem:[#allocation6_spill] sm:$0xff]  ;;  %v6881_v40 = vld [vmem:[#allocation65_spill] sm:$0xff] }
 0x22c   :  { %v5696_v32 = vmax.f32 %v6869_v23, %v6867_v63  ;;  %v6879_v52 = vmax.f32 %v6878_v2, 0.0  ;;  %v6882_v22 = vmax.f32 %v6881_v40, 0.0  ;;  %v6883_v37 = vld [vmem:[#allocation12_spill] sm:$0xff]  ;;  %v6886_v63 = vld [vmem:[#allocation70_spill] sm:$0xff] }
 0x22d   :  { %6865 = vst [vmem:[#allocation67_spill] sm:$0xff] %v5690_v43  ;;  %v5702_v49 = vmax.f32 %v6874_v58, %v6872_v30  ;;  %v6884_v53 = vmax.f32 %v6883_v37, 0.0  ;;  %v6887_v8 = vmax.f32 %v6886_v63, 0.0  ;;  %v6888_v23 = vld [vmem:[#allocation16_spill] sm:$0xff]  ;;  %v6893_v58 = vld [vmem:[#allocation10_spill] sm:$0xff] }
 0x22e   :  { %6870 = vst [vmem:[#allocation74_spill] sm:$0xff] %v5696_v32  ;;  %v5708_v42 = vmax.f32 %v6879_v52, %v6877_v24  ;;  %v6889_v36 = vmax.f32 %v6888_v23, 0.0  ;;  %v6891_v30 = vld [vmem:[#allocation88_spill] sm:$0xff]  ;;  %v6894_v6 = vmax.f32 %v6893_v58, 0.0  ;;  %v6896_v24 = vld [vmem:[#allocation95_spill] sm:$0xff]  ;;  %v6898_v52 = vld [vmem:[#allocation14_spill] sm:$0xff] }
 0x22f   :  { %6875 = vst [vmem:[#allocation78_spill] sm:$0xff] %v5702_v49  ;;  %v5714_v43 = vmax.f32 %v6884_v53, %v6882_v22  ;;  %v6892_v57 = vmax.f32 %v6891_v30, 0.0  ;;  %v6897_v2 = vmax.f32 %v6896_v24, 0.0  ;;  %v6899_v40 = vmax.f32 %v6898_v52, 0.0  ;;  %v6901_v22 = vld [vmem:[#allocation84_spill] sm:$0xff] }
 0x230   :  { %6880 = vst [vmem:[#allocation135_spill] sm:$0xff] %v5708_v42  ;;  %v5720_v32 = vmax.f32 %v6889_v36, %v6887_v8  ;;  %v6902_v37 = vmax.f32 %v6901_v22, 0.0  ;;  %v6903_v53 = vld [vmem:[#allocation20_spill] sm:$0xff]  ;;  %v6906_v8 = vld [vmem:[#allocation91_spill] sm:$0xff] }
 0x231   :  { %6885 = vst [vmem:[#allocation137_spill] sm:$0xff] %v5714_v43  ;;  %v5726_v49 = vmax.f32 %v6894_v6, %v6892_v57  ;;  %v5732_v42 = vmax.f32 %v6899_v40, %v6897_v2  ;;  %v6904_v63 = vmax.f32 %v6903_v53, 0.0  ;;  %v6907_v23 = vmax.f32 %v6906_v8, 0.0  ;;  %v6908_v36 = vld [vmem:[#allocation24_spill] sm:$0xff]  ;;  %v6911_v57 = vld [vmem:[#allocation5_spill] sm:$0xff]  ;;  %v6913_v6 = vld [vmem:[#allocation18_spill] sm:$0xff] }
 0x232   :  { %6890 = vst [vmem:[#allocation83_spill] sm:$0xff] %v5720_v32  ;;  %v6909_v30 = vmax.f32 %v6908_v36, 0.0  ;;  %v6912_v58 = vmax.f32 %v6911_v57, 0.0  ;;  %v6914_v24 = vmax.f32 %v6913_v6, 0.0  ;;  %v6916_v2 = vld [vmem:[#allocation9_spill] sm:$0xff]  ;;  %v6918_v40 = vld [vmem:[#allocation22_spill] sm:$0xff] }
 0x233   :  { %6895 = vst [vmem:[#allocation94_spill] sm:$0xff] %v5726_v49  ;;  %6900 = vst [vmem:[#allocation79_spill] sm:$0xff] %v5732_v42  ;;  %v5738_v43 = vmax.f32 %v6904_v63, %v6902_v37  ;;  %v6917_v52 = vmax.f32 %v6916_v2, 0.0  ;;  %v6919_v22 = vmax.f32 %v6918_v40, 0.0  ;;  %v6921_v37 = vld [vmem:[#allocation3_spill] sm:$0xff]  ;;  %v6923_v63 = vld [vmem:[#allocation28_spill] sm:$0xff] }
 0x234   :  { %v5744_v32 = vmax.f32 %v6909_v30, %v6907_v23  ;;  %v5750_v49 = vmax.f32 %v6914_v24, %v6912_v58  ;;  %v6922_v53 = vmax.f32 %v6921_v37, 0.0  ;;  %v6924_v8 = vmax.f32 %v6923_v63, 0.0  ;;  %v6926_v23 = vld [vmem:[#allocation7_spill] sm:$0xff]  ;;  %v6928_v30 = vld [vmem:[#allocation32_spill] sm:$0xff]  ;;  %v6931_v58 = vld [vmem:[#allocation13_spill] sm:$0xff] }
 0x235   :  { %6905 = vst [vmem:[#allocation90_spill] sm:$0xff] %v5738_v43  ;;  %v5756_v42 = vmax.f32 %v6919_v22, %v6917_v52  ;;  %v6927_v36 = vmax.f32 %v6926_v23, 0.0  ;;  %v6929_v57 = vmax.f32 %v6928_v30, 0.0  ;;  %v6932_v6 = vmax.f32 %v6931_v58, 0.0  ;;  %v6933_v24 = vld [vmem:[#allocation26_spill] sm:$0xff]  ;;  %v6936_v52 = vld [vmem:[#allocation17_spill] sm:$0xff] }
 0x236   :  { %6910 = vst [vmem:[#allocation106_spill] sm:$0xff] %v5744_v32  ;;  %6915 = vst [vmem:[#allocation110_spill] sm:$0xff] %v5750_v49  ;;  %v5762_v43 = vmax.f32 %v6924_v8, %v6922_v53  ;;  %v6934_v2 = vmax.f32 %v6933_v24, 0.0  ;;  %v6937_v40 = vmax.f32 %v6936_v52, 0.0  ;;  %v6938_v22 = vld [vmem:[#allocation30_spill] sm:$0xff]  ;;  %v6941_v53 = vld [vmem:[#allocation11_spill] sm:$0xff] }
 0x237   :  { %6920 = vst [vmem:[#allocation103_spill] sm:$0xff] %v5756_v42  ;;  %v5768_v32 = vmax.f32 %v6929_v57, %v6927_v36  ;;  %v6939_v37 = vmax.f32 %v6938_v22, 0.0  ;;  %v6942_v63 = vmax.f32 %v6941_v53, 0.0  ;;  %v6943_v8 = vld [vmem:[#allocation40_spill] sm:$0xff]  ;;  %v6946_v36 = vld [vmem:[#allocation15_spill] sm:$0xff]  ;;  %v6948_v57 = vld [vmem:[#allocation46_spill] sm:$0xff] }
 0x238   :  { %6925 = vst [vmem:[#allocation108_spill] sm:$0xff] %v5762_v43  ;;  %v5774_v49 = vmax.f32 %v6934_v2, %v6932_v6  ;;  %v6944_v23 = vmax.f32 %v6943_v8, 0.0  ;;  %v6947_v30 = vmax.f32 %v6946_v36, 0.0  ;;  %v6949_v58 = vmax.f32 %v6948_v57, 0.0  ;;  %v6951_v6 = vld [vmem:[#allocation21_spill] sm:$0xff]  ;;  %v6953_v2 = vld [vmem:[#allocation34_spill] sm:$0xff] }
 0x239   :  { %6930 = vst [vmem:[#allocation113_spill] sm:$0xff] %v5768_v32  ;;  %v5780_v42 = vmax.f32 %v6939_v37, %v6937_v40  ;;  %v6952_v24 = vmax.f32 %v6951_v6, 0.0  ;;  %v6954_v52 = vmax.f32 %v6953_v2, 0.0  ;;  %v6956_v40 = vld [vmem:[#allocation25_spill] sm:$0xff]  ;;  %v6958_v37 = vld [vmem:[#allocation44_spill] sm:$0xff] }
 0x23a   :  { %6935 = vst [vmem:[#allocation115_spill] sm:$0xff] %v5774_v49  ;;  %v5786_v43 = vmax.f32 %v6944_v23, %v6942_v63  ;;  %v5792_v32 = vmax.f32 %v6949_v58, %v6947_v30  ;;  %v6957_v22 = vmax.f32 %v6956_v40, 0.0  ;;  %v6959_v53 = vmax.f32 %v6958_v37, 0.0  ;;  %v6961_v63 = vld [vmem:[#allocation19_spill] sm:$0xff]  ;;  %v6963_v23 = vld [vmem:[#allocation50_spill] sm:$0xff]  ;;  %v6968_v58 = vld [vmem:[#allocation56_spill] sm:$0xff] }
 0x23b   :  { %6940 = vst [vmem:[#allocation112_spill] sm:$0xff] %v5780_v42  ;;  %v5798_v49 = vmax.f32 %v6954_v52, %v6952_v24  ;;  %v6962_v8 = vmax.f32 %v6961_v63, 0.0  ;;  %v6964_v36 = vmax.f32 %v6963_v23, 0.0  ;;  %v6966_v30 = vld [vmem:[#allocation23_spill] sm:$0xff]  ;;  %v6969_v6 = vmax.f32 %v6968_v58, 0.0  ;;  %v6971_v24 = vld [vmem:[#allocation29_spill] sm:$0xff] }
 0x23c   :  { %6945 = vst [vmem:[#allocation114_spill] sm:$0xff] %v5786_v43  ;;  %6950 = vst [vmem:[#allocation117_spill] sm:$0xff] %v5792_v32  ;;  %v5804_v42 = vmax.f32 %v6959_v53, %v6957_v22  ;;  %v6967_v57 = vmax.f32 %v6966_v30, 0.0  ;;  %v6972_v2 = vmax.f32 %v6971_v24, 0.0  ;;  %v6973_v52 = vld [vmem:[#allocation48_spill] sm:$0xff]  ;;  %v6975_v22 = vld [vmem:[#allocation33_spill] sm:$0xff] }
 0x23d   :  { %6955 = vst [vmem:[#allocation119_spill] sm:$0xff] %v5798_v49  ;;  %v5810_v43 = vmax.f32 %v6964_v36, %v6962_v8  ;;  %v6974_v40 = vmax.f32 %v6973_v52, 0.0  ;;  %v6976_v37 = vmax.f32 %v6975_v22, 0.0  ;;  %v6977_v53 = vld [vmem:[#allocation52_spill] sm:$0xff]  ;;  %v6979_v8 = vld [vmem:[#allocation27_spill] sm:$0xff]  ;;  %v6981_v36 = vld [vmem:[#allocation62_spill] sm:$0xff] }
 0x23e   :  { %6960 = vst [vmem:[#allocation116_spill] sm:$0xff] %v5804_v42  ;;  %v5816_v32 = vmax.f32 %v6969_v6, %v6967_v57  ;;  %v6978_v63 = vmax.f32 %v6977_v53, 0.0  ;;  %v6980_v23 = vmax.f32 %v6979_v8, 0.0  ;;  %v6982_v30 = vmax.f32 %v6981_v36, 0.0  ;;  %v6983_v57 = vld [vmem:[#allocation31_spill] sm:$0xff]  ;;  %v6985_v6 = vld [vmem:[#allocation72_spill] sm:$0xff] }
 0x23f   :  { %6965 = vst [vmem:[#allocation118_spill] sm:$0xff] %v5810_v43  ;;  %v5822_v49 = vmax.f32 %v6974_v40, %v6972_v2  ;;  %v6984_v58 = vmax.f32 %v6983_v57, 0.0  ;;  %v6986_v24 = vmax.f32 %v6985_v6, 0.0  ;;  %v6987_v2 = vmax.f32 %v5483_v54, 0.0 }
 0x240   :  { %6970 = vst [vmem:[#allocation122_spill] sm:$0xff] %v5816_v32  ;;  %v5828_v42 = vmax.f32 %v6978_v63, %v6976_v37  ;;  %v5834_v43 = vmax.f32 %v6982_v30, %v6980_v23  ;;  %v6988_v52 = vmax.f32 %v5267_v3, 0.0  ;;  %v6989_v22 = vmax.f32 %v5486_v38, 0.0  ;;  %v6990_v37 = vld [vmem:[#allocation41_spill] sm:$0xff]  ;;  %v6993_v23 = vld [vmem:[#allocation47_spill] sm:$0xff] }
 0x241   :  { %v5840_v32 = vmax.f32 %v6986_v24, %v6984_v58  ;;  %v6991_v53 = vmax.f32 %v6990_v37, 0.0  ;;  %v6992_v8 = vmax.f32 %v5489_v9, 0.0  ;;  %v6994_v36 = vmax.f32 %v6993_v23, 0.0  ;;  %v6996_v58 = vld [vmem:[#allocation35_spill] sm:$0xff]  ;;  %v6999_v24 = vld [vmem:[#allocation45_spill] sm:$0xff] }
 0x242   :  { %v5846_v40 = vmax.f32 %v6988_v52, %v6987_v2  ;;  %v6995_v57 = vmax.f32 %v5492_v48, 0.0  ;;  %v6997_v54 = vmax.f32 %v6996_v58, 0.0  ;;  %v6998_v3 = vmax.f32 %v5495_v47, 0.0 }
 0x243   :  { %v5852_v63 = vmax.f32 %v6991_v53, %v6989_v22  ;;  %v5858_v30 = vmax.f32 %v6994_v36, %v6992_v8  ;;  %v7000_v38 = vmax.f32 %v6999_v24, 0.0  ;;  %v7001_v52 = vmax.f32 %v5498_v20, 0.0  ;;  %v7002_v22 = vld [vmem:[#allocation51_spill] sm:$0xff]  ;;  %v7005_v8 = vld [vmem:[#allocation57_spill] sm:$0xff] }
 0x244   :  { %v5864_v6 = vmax.f32 %v6997_v54, %v6995_v57  ;;  %v7003_v9 = vmax.f32 %v7002_v22, 0.0  ;;  %v7004_v53 = vmax.f32 %v5501_v19, 0.0  ;;  %v7006_v48 = vmax.f32 %v7005_v8, 0.0  ;;  %v7008_v57 = vld [vmem:[#allocation49_spill] sm:$0xff] }
 0x245   :  { %v5870_v2 = vmax.f32 %v7000_v38, %v6998_v3  ;;  %v7007_v36 = vmax.f32 %v5504_v41, 0.0  ;;  %v7009_v47 = vmax.f32 %v7008_v57, 0.0  ;;  %v7010_v54 = vmax.f32 %v5507_v62, 0.0  ;;  %v7011_v3 = vld [vmem:[#allocation53_spill] sm:$0xff] }
 0x246   :  { %v5876_v37 = vmax.f32 %v7003_v9, %v7001_v52  ;;  %v5882_v23 = vmax.f32 %v7006_v48, %v7004_v53  ;;  %v7012_v20 = vmax.f32 %v7011_v3, 0.0  ;;  %v7013_v38 = vmax.f32 %v5510_v39, 0.0  ;;  %v7014_v52 = vld [vmem:[#allocation63_spill] sm:$0xff]  ;;  %v7017_v53 = vld [vmem:[#allocation81_spill] sm:$0xff] }
 0x247   :  { %v5888_v58 = vmax.f32 %v7009_v47, %v7007_v36  ;;  %v7015_v19 = vmax.f32 %v7014_v52, 0.0  ;;  %v7016_v9 = vmax.f32 %v5513_v1, 0.0  ;;  %v7018_v41 = vmax.f32 %v7017_v53, 0.0  ;;  %v7020_v36 = vld [vmem:[#allocation61_spill] sm:$0xff] }
 0x248   :  { %v5894_v24 = vmax.f32 %v7012_v20, %v7010_v54  ;;  %v7019_v48 = vmax.f32 %v5516_v0, 0.0  ;;  %v7021_v62 = vmax.f32 %v7020_v36, 0.0  ;;  %v7022_v47 = vmax.f32 %v5519_v21, 0.0  ;;  %v7023_v54 = vld [vmem:[#allocation71_spill] sm:$0xff] }
 0x249   :  { %v5900_v22 = vmax.f32 %v7015_v19, %v7013_v38  ;;  %v5906_v8 = vmax.f32 %v7018_v41, %v7016_v9  ;;  %v7024_v39 = vmax.f32 %v7023_v54, 0.0  ;;  %v7025_v20 = vmax.f32 %v5522_v14, 0.0  ;;  %v7026_v38 = vld [vmem:[#allocation87_spill] sm:$0xff]  ;;  %v7029_v9 = vld [vmem:[#allocation76_spill] sm:$0xff] }
 0x24a   :  { %v5912_v57 = vmax.f32 %v7021_v62, %v7019_v48  ;;  %v7027_v1 = vmax.f32 %v7026_v38, 0.0  ;;  %v7028_v19 = vmax.f32 %v5525_v51, 0.0  ;;  %v7030_v0 = vmax.f32 %v7029_v9, 0.0  ;;  %v7032_v48 = vld [vmem:[#allocation66_spill] sm:$0xff] }
 0x24b   :  { %v5918_v3 = vmax.f32 %v7024_v39, %v7022_v47  ;;  %v7031_v41 = vmax.f32 %v5528_v16, 0.0  ;;  %v7033_v21 = vmax.f32 %v7032_v48, 0.0  ;;  %v7034_v62 = vmax.f32 %v5531_v59, 0.0  ;;  %v7035_v47 = vld [vmem:[#allocation73_spill] sm:$0xff] }
 0x24c   :  { %v5924_v52 = vmax.f32 %v7027_v1, %v7025_v20  ;;  %v5930_v53 = vmax.f32 %v7030_v0, %v7028_v19  ;;  %v7036_v14 = vmax.f32 %v7035_v47, 0.0  ;;  %v7037_v39 = vmax.f32 %v5534_v5, 0.0  ;;  %v7038_v20 = vld [vmem:[#allocation89_spill] sm:$0xff]  ;;  %v7041_v19 = vld [vmem:[#allocation96_spill] sm:$0xff] }
 0x24d   :  { %v5936_v36 = vmax.f32 %v7033_v21, %v7031_v41  ;;  %v7039_v51 = vmax.f32 %v7038_v20, 0.0  ;;  %v7040_v1 = vmax.f32 %v5537_v7, 0.0  ;;  %v7042_v16 = vmax.f32 %v7041_v19, 0.0  ;;  %v7044_v41 = vld [vmem:[#allocation85_spill] sm:$0xff] }
 0x24e   :  { %v5942_v54 = vmax.f32 %v7036_v14, %v7034_v62  ;;  %v7043_v0 = vmax.f32 %v5540_v27, 0.0  ;;  %v7045_v59 = vmax.f32 %v7044_v41, 0.0  ;;  %v7046_v21 = vmax.f32 %v5543_v50, 0.0  ;;  %v7047_v62 = vld [vmem:[#allocation93_spill] sm:$0xff] }
 0x24f   :  { %v5948_v38 = vmax.f32 %v7039_v51, %v7037_v39  ;;  %v5954_v9 = vmax.f32 %v7042_v16, %v7040_v1  ;;  %v7048_v5 = vmax.f32 %v7047_v62, 0.0  ;;  %v7049_v14 = vmax.f32 %v5546_v29, 0.0  ;;  %v7050_v39 = vld [vmem:[#allocation105_spill] sm:$0xff] }
 0x250   :  { %v5960_v48 = vmax.f32 %v7045_v59, %v7043_v0  ;;  %v7051_v7 = vmax.f32 %v7050_v39, 0.0  ;;  %v7052_v51 = vmax.f32 %v5549_v15, 0.0  ;;  %v7053_v1 = vld [vmem:[#allocation109_spill] sm:$0xff]  ;;  %v7055_v16 = vmax.f32 %v5552_v61, 0.0  ;;  %v7056_v0 = vld [vmem:[#allocation102_spill] sm:$0xff] }
 0x251   :  { %v5966_v47 = vmax.f32 %v7048_v5, %v7046_v21  ;;  %v7054_v27 = vmax.f32 %v7053_v1, 0.0  ;;  %v7057_v50 = vmax.f32 %v7056_v0, 0.0  ;;  %v7058_v59 = vmax.f32 %v5555_v12, 0.0  ;;  %v7059_v21 = vld [vmem:[#allocation107_spill] sm:$0xff] }
 0x252   :  { %v5972_v20 = vmax.f32 %v7051_v7, %v7049_v14  ;;  %v7060_v29 = vmax.f32 %v7059_v21, 0.0  ;;  %v7061_v5 = vmax.f32 %v5558_v31, 0.0  ;;  %v7062_v14 = vld [vmem:[#allocation111_spill] sm:$0xff]  ;;  %v7064_v7 = vmax.f32 %v5561_v28, 0.0 }
 0x253   :  { %v5978_v19 = vmax.f32 %v7054_v27, %v7052_v51  ;;  %v5984_v41 = vmax.f32 %v7057_v50, %v7055_v16  ;;  %v7063_v15 = vmax.f32 %v7062_v14, 0.0  ;;  %v7065_v51 = vld [vmem:[#allocation37_spill] sm:$0xff]  ;;  %v7067_v27 = vmax.f32 %v5564_v18, 0.0  ;;  %v7068_v16 = vld [vmem:[#allocation120_spill] sm:$0xff] }
 0x254   :  { %v5990_v62 = vmax.f32 %v7060_v29, %v7058_v59  ;;  %v7066_v61 = vmax.f32 %v7065_v51, 0.0  ;;  %v7069_v12 = vmax.f32 %v7068_v16, 0.0  ;;  %v7070_v50 = vmax.f32 %v5567_v60, 0.0  ;;  %v7071_v59 = vld [vmem:[#allocation36_spill] sm:$0xff] }
 0x255   :  { %v5996_v39 = vmax.f32 %v7063_v15, %v7061_v5  ;;  %v7072_v31 = vmax.f32 %v7071_v59, 0.0  ;;  %v7073_v29 = vmax.f32 %v5570_v44, 0.0  ;;  %v7074_v5 = vld [vmem:[#allocation43_spill] sm:$0xff]  ;;  %v7076_v15 = vmax.f32 %v5573_v33, 0.0 }
 0x256   :  { %v6002_v1 = vmax.f32 %v7066_v61, %v7064_v7  ;;  %v6008_v0 = vmax.f32 %v7069_v12, %v7067_v27  ;;  %v7075_v28 = vmax.f32 %v7074_v5, 0.0  ;;  %v7077_v7 = vld [vmem:[#allocation124_spill] sm:$0xff]  ;;  %v7079_v61 = vmax.f32 %v5576_v13, 0.0  ;;  %v7080_v27 = vld [vmem:[#allocation125_spill] sm:$0xff] }
 0x257   :  { %v6014_v21 = vmax.f32 %v7072_v31, %v7070_v50  ;;  %v7078_v18 = vmax.f32 %v7077_v7, 0.0  ;;  %v7081_v60 = vmax.f32 %v7080_v27, 0.0  ;;  %v7082_v12 = vmax.f32 %v5579_v26, 0.0  ;;  %v7083_v50 = vld [vmem:[#allocation129_spill] sm:$0xff] }
 0x258   :  { %v6020_v14 = vmax.f32 %v7075_v28, %v7073_v29  ;;  %v7084_v44 = vmax.f32 %v7083_v50, 0.0  ;;  %v7085_v31 = vmax.f32 %v5582_v34, 0.0  ;;  %v7086_v29 = vld [vmem:[#allocation59_spill] sm:$0xff]  ;;  %v7088_v28 = vmax.f32 %v5585_v25, 0.0 }
 0x259   :  { %v6026_v51 = vmax.f32 %v7078_v18, %v7076_v15  ;;  %v6032_v16 = vmax.f32 %v7081_v60, %v7079_v61  ;;  %v7087_v33 = vmax.f32 %v7086_v29, 0.0  ;;  %v7089_v15 = vld [vmem:[#allocation127_spill] sm:$0xff]  ;;  %v7091_v18 = vmax.f32 %v5588_v46, 0.0  ;;  %v7092_v61 = vld [vmem:[#allocation133_spill] sm:$0xff] }
 0x25a   :  { %v6038_v59 = vmax.f32 %v7084_v44, %v7082_v12  ;;  %v7090_v13 = vmax.f32 %v7089_v15, 0.0  ;;  %v7093_v26 = vmax.f32 %v7092_v61, 0.0  ;;  %v2355_v60 = vmax.f32 %v5630_v35, %v5846_v40 }
 0x25b   :  { %v6044_v5 = vmax.f32 %v7087_v33, %v7085_v31  ;;  %v2356_v34 = vmax.f32 %v5636_v4, %v5852_v63  ;;  %v2357_v12 = vmax.f32 %v5642_v17, %v5858_v30  ;;  %v2358_v25 = vmax.f32 %v5648_v55, %v5864_v6  ;;  %v7094_v4 = vld [vmem:[#allocation80_spill] sm:$0xff]  ;;  %v7095_v17 = vld [vmem:[#allocation131_spill] sm:$0xff] }
 0x25c   :  { %v6050_v7 = vmax.f32 %v7090_v13, %v7088_v28  ;;  %v6056_v27 = vmax.f32 %v7093_v26, %v7091_v18  ;;  %v2359_v50 = vmax.f32 %v5654_v11, %v5870_v2  ;;  %v2360_v46 = vmax.f32 %v5660_v45, %v5876_v37  ;;  %v7096_v55 = vld [vmem:[#allocation67_spill] sm:$0xff]  ;;  %v7097_v11 = vld [vmem:[#allocation74_spill] sm:$0xff] }
 0x25d   :  { %v2361_v44 = vmax.f32 %v5666_v10, %v5882_v23  ;;  %v2362_v35 = vmax.f32 %v5672_v56, %v5888_v58  ;;  %v2363_v40 = vmax.f32 %v7094_v4, %v5894_v24  ;;  %v2364_v63 = vmax.f32 %v7095_v17, %v5900_v22  ;;  %v7098_v45 = vld [vmem:[#allocation78_spill] sm:$0xff]  ;;  %v7099_v10 = vld [vmem:[#allocation135_spill] sm:$0xff]  ;;  %v7100_v56 = vld [vmem:[#allocation137_spill] sm:$0xff] }
 0x25e   :  { %v2365_v30 = vmax.f32 %v7096_v55, %v5906_v8  ;;  %v2366_v6 = vmax.f32 %v7097_v11, %v5912_v57  ;;  %v2367_v2 = vmax.f32 %v7098_v45, %v5918_v3  ;;  %v2368_v37 = vmax.f32 %v7099_v10, %v5924_v52  ;;  %v7101_v58 = vld [vmem:[#allocation83_spill] sm:$0xff]  ;;  %v7102_v22 = vld [vmem:[#allocation94_spill] sm:$0xff] }
 0x25f   :  { %v2369_v23 = vmax.f32 %v7100_v56, %v5930_v53  ;;  %v2370_v24 = vmax.f32 %v7101_v58, %v5936_v36  ;;  %v2371_v31 = vmax.f32 %v7102_v22, %v5942_v54  ;;  %v7103_v8 = vld [vmem:[#allocation79_spill] sm:$0xff]  ;;  %v7104_v57 = vld [vmem:[#allocation90_spill] sm:$0xff]  ;;  %v7108_v36 = vld [vmem:[#allocation108_spill] sm:$0xff]  ;;  %v2731_v58 = vpack.c.bf16 %v2356_v34, %v2355_v60 }
 0x260   :  { %v2372_v29 = vmax.f32 %v7103_v8, %v5948_v38  ;;  %v2373_v33 = vmax.f32 %v7104_v57, %v5954_v9  ;;  %v7105_v3 = vld [vmem:[#allocation106_spill] sm:$0xff]  ;;  %v7107_v53 = vld [vmem:[#allocation103_spill] sm:$0xff]  ;;  %v2377_v18 = vmax.f32 %v7108_v36, %v5978_v19  ;;  %v7109_v54 = vld [vmem:[#allocation113_spill] sm:$0xff]  ;;  %v2741_v22 = vpack.c.bf16 %v2360_v46, %v2359_v50 }
 0x261   :  { %v2374_v28 = vmax.f32 %v7105_v3, %v5960_v48  ;;  %v7106_v52 = vld [vmem:[#allocation110_spill] sm:$0xff]  ;;  %v2376_v13 = vmax.f32 %v7107_v53, %v5972_v20  ;;  %v2378_v61 = vmax.f32 %v7109_v54, %v5984_v41  ;;  %v7110_v38 = vld [vmem:[#allocation115_spill] sm:$0xff]  ;;  %v7111_v9 = vld [vmem:[#allocation112_spill] sm:$0xff]  ;;  %v2746_v8 = vpack.c.bf16 %v2362_v35, %v2361_v44  ;;  %2732 = vst [vmem:[%s6192_s8] sm:$0xff] %v2731_v58  }
 0x262   :  { %v2375_v15 = vmax.f32 %v7106_v52, %v5966_v47  ;;  %v2379_v26 = vmax.f32 %v7110_v38, %v5990_v62  ;;  %v2380_v4 = vmax.f32 %v7111_v9, %v5996_v39  ;;  %v7112_v48 = vld [vmem:[#allocation114_spill] sm:$0xff]  ;;  %v7113_v47 = vld [vmem:[#allocation117_spill] sm:$0xff]  ;;  %v7114_v20 = vld [vmem:[#allocation119_spill] sm:$0xff]  ;;  %v2387_v39 = vmax.f32 %v5822_v49, %v6038_v59  ;;  %2819 = vst [vmem:[%s6192_s8 + $0x10] sm:$0xff] %v2741_v22  }
 0x263   :  { %v2381_v17 = vmax.f32 %v7112_v48, %v6002_v1  ;;  %v2382_v55 = vmax.f32 %v7113_v47, %v6008_v0  ;;  %v2383_v11 = vmax.f32 %v7114_v20, %v6014_v21  ;;  %v7115_v19 = vld [vmem:[#allocation116_spill] sm:$0xff]  ;;  %v7116_v41 = vld [vmem:[#allocation118_spill] sm:$0xff]  ;;  %v2388_v1 = vmax.f32 %v5828_v42, %v6044_v5  ;;  %2820 = vst [vmem:[%s6192_s8 + $0x18] sm:$0xff] %v2746_v8  }
 0x264   :  { %v2384_v45 = vmax.f32 %v7115_v19, %v6020_v14  ;;  %v2385_v10 = vmax.f32 %v7116_v41, %v6026_v51  ;;  %v7117_v62 = vld [vmem:[#allocation122_spill] sm:$0xff]  ;;  %v2389_v0 = vmax.f32 %v5834_v43, %v6050_v7  ;;  %v2390_v21 = vmax.f32 %v5840_v32, %v6056_v27 }
 0x265   :  { %v2386_v56 = vmax.f32 %v7117_v62, %v6032_v16  ;;  %v2736_v14 = vpack.c.bf16 %v2358_v25, %v2357_v12  ;;  %v2751_v51 = vpack.c.bf16 %v2364_v63, %v2363_v40  ;;  %v2756_v57 = vpack.c.bf16 %v2366_v6, %v2365_v30 }
 0x266   :  { %v2761_v49 = vpack.c.bf16 %v2368_v37, %v2367_v2  ;;  %v2766_v42 = vpack.c.bf16 %v2370_v24, %v2369_v23  ;;  %v2771_v43 = vpack.c.bf16 %v2372_v29, %v2371_v31  ;;  %v2776_v16 = vpack.c.bf16 %v2374_v28, %v2373_v33 }
 0x267   :  { %2818 = vst [vmem:[%s6192_s8 + $0x8] sm:$0xff] %v2736_v14   ;;  %2821 = vst [vmem:[%s6192_s8 + $0x20] sm:$0xff] %v2751_v51   ;;  %v2781_v32 = vpack.c.bf16 %v2376_v13, %v2375_v15  ;;  %v2786_v59 = vpack.c.bf16 %v2378_v61, %v2377_v18  ;;  %v2791_v5 = vpack.c.bf16 %v2380_v4, %v2379_v26 }
 0x268   :  { %2822 = vst [vmem:[%s6192_s8 + $0x28] sm:$0xff] %v2756_v57   ;;  %v2796_v7 = vpack.c.bf16 %v2382_v55, %v2381_v17  ;;  %2823 = vst [vmem:[%s6192_s8 + $0x30] sm:$0xff] %v2761_v49   ;;  %v2801_v27 = vpack.c.bf16 %v2384_v45, %v2383_v11  ;;  %v2806_v60 = vpack.c.bf16 %v2386_v56, %v2385_v10 }
 0x269   :  { %2824 = vst [vmem:[%s6192_s8 + $0x38] sm:$0xff] %v2766_v42   ;;  %2825 = vst [vmem:[%s6192_s8 + $0x40] sm:$0xff] %v2771_v43   ;;  %v2811_v34 = vpack.c.bf16 %v2388_v1, %v2387_v39  ;;  %v2816_v12 = vpack.c.bf16 %v2390_v21, %v2389_v0 }
 0x26a   :  { %2826 = vst [vmem:[%s6192_s8 + $0x48] sm:$0xff] %v2776_v16   ;;  %2827 = vst [vmem:[%s6192_s8 + $0x50] sm:$0xff] %v2781_v32  }
 0x26b   :  { %2828 = vst [vmem:[%s6192_s8 + $0x58] sm:$0xff] %v2786_v59   ;;  %2829 = vst [vmem:[%s6192_s8 + $0x60] sm:$0xff] %v2791_v5  }
 0x26c   :  { %2830 = vst [vmem:[%s6192_s8 + $0x68] sm:$0xff] %v2796_v7   ;;  %2831 = vst [vmem:[%s6192_s8 + $0x70] sm:$0xff] %v2801_v27  }
 0x26d   :  { %2832 = vst [vmem:[%s6192_s8 + $0x78] sm:$0xff] %v2806_v60   ;;  %2833 = vst [vmem:[%s6192_s8 + $0x80] sm:$0xff] %v2811_v34  }
 0x26e   :  { %2834 = vst [vmem:[%s6192_s8 + $0x88] sm:$0xff] %v2816_v12  }

// kernel: lenet5_forward.5
= control target key start
LH: loop header
LB: loop body
LE: loop exit
PB: predicated region body
PF: predicated region fallthrough
CT: control target
= control target key end

     0   :  { %s4195_s0 = inlined_call_operand.vmem [shape: bf16[2,1152], index: 0, kind: input, shape index: {}]   ;;  %s4196_s1 = inlined_call_operand.vmem [shape: bf16[2,1152], index: 1, kind: input, shape index: {}]   ;;  %s4197_s2 = inlined_call_operand.vmem [shape: bf16[2,1152], index: 2, kind: input, shape index: {}]   ;;  %s4198_s3 = inlined_call_operand.vmem [shape: bf16[2,1152], index: 3, kind: input, shape index: {}]   ;;  %s4199_s4 = inlined_call_operand.vmem [shape: bf16[1152,128], index: 4, kind: input, shape index: {}]   ;;  %s4200_s5 = inlined_call_operand.vmem [shape: f32[1,128], index: 5, kind: input, shape index: {}]   ;;  %s4201_s6 = inlined_call_operand.vmem [shape: f32[1,128], index: 6, kind: input, shape index: {}]   ;;  %s4202_s7 = inlined_call_operand.vmem [shape: f32[1,128], index: 7, kind: input, shape index: {}]   ;;  %s4203_s8 = inlined_call_operand.vmem [shape: bf16[128,128], index: 8, kind: input, shape index: {}]   ;;  %s4204_s9 = inlined_call_operand.vmem [shape: f32[1,128], index: 9, kind: input, shape index: {}]   ;;  %s4205_s10 = inlined_call_operand.vmem [shape: f32[1,128], index: 10, kind: input, shape index: {}]   ;;  %s4206_s11 = inlined_call_operand.vmem [shape: f32[1,128], index: 11, kind: input, shape index: {}]   ;;  %s4207_s12 = inlined_call_operand.vmem [shape: bf16[128,128], index: 12, kind: input, shape index: {}]   ;;  %s4208_s13 = inlined_call_operand.vmem [shape: f32[1,128], index: 13, kind: input, shape index: {}]   ;;  %s4209_s14 = inlined_call_operand.vmem [shape: f32[1,128], index: 14, kind: input, shape index: {}]   ;;  %s4210_s15 = inlined_call_operand.vmem [shape: f32[1,128], index: 15, kind: input, shape index: {}]   ;;  %s4211_s16 = inlined_call_operand.vmem [shape: bf16[128,128], index: 16, kind: input, shape index: {}]   ;;  %s4212_s17 = inlined_call_operand.vmem [shape: f32[1,128], index: 17, kind: input, shape index: {}]   ;;  %s4213_s18 = inlined_call_operand.hbm [shape: f32[2,128], index: 18, kind: output, shape index: {}]  }
   0x1   :  { %4266 = sst [smem:[#allocation34_spill]] %s4195_s0 }
   0x2   :  { %4267 = sst [smem:[#allocation35_spill]] %s4196_s1 }
   0x3   :  { %4268 = sst [smem:[#allocation36_spill]] %s4197_s2 }
   0x4   :  { %v3173_v0 = vld [vmem:[%s4199_s4 + $0x40] sm:$0xff]   ;;  %v3196_v4 = vld [vmem:[%s4199_s4 + $0x48] sm:$0xff]   ;;  %v3220_v8 = vld [vmem:[%s4199_s4 + $0x50] sm:$0xff]   ;;  %v220_v27 = vlaneseq  ;;  %s4278_s0 = sld [smem:[#allocation34_spill]]  ;;  %v3071_v35 = vmov 1966171168  }
   0x5   :  { %v3178_v1 = vld [vmem:[%s4199_s4] sm:$0xff]   ;;  %2351 = vmatprep.subr.bf16.mxu0 %v3173_v0  ;;  %v3202_v5 = vld [vmem:[%s4199_s4 + $0x8] sm:$0xff]   ;;  %v3226_v9 = vld [vmem:[%s4199_s4 + $0x10] sm:$0xff]   ;;  %v218_v36 = vunpack.c.l.s4 %v3071_v35  ;;  %s4293_s29 = sld [smem:[#allocation35_spill]]  ;;  %vm3073_vm0 = vmmov 0  }
   0x6   :  { %v3184_v2 = vld [vmem:[%s4199_s4 + $0xc0] sm:$0xff]   ;;  %2352 = vmatpush3.bf16.msra.mxu0 %v3178_v1  ;;  %v3208_v6 = vld [vmem:[%s4199_s4 + $0xc8] sm:$0xff]   ;;  %4269 = vst [vmem:[#allocation5_spill] sm:$0xff] %v3226_v9  ;;  %v3232_v10 = vld [vmem:[%s4199_s4 + $0xd0] sm:$0xff]   ;;  %v3354_v32 = vshrl.u32 %v220_v27, 7 }
   0x7   :  { %v3190_v3 = vld [vmem:[%s4199_s4 + $0x80] sm:$0xff]   ;;  %2373 = vmatprep.subr.bf16.mxu1 %v3184_v2  ;;  %2353 = vmatprep.subr.bf16.mxu0 %v3196_v4  ;;  %v3214_v7 = vld [vmem:[%s4199_s4 + $0x88] sm:$0xff]   ;;  %v3238_v11 = vld [vmem:[%s4199_s4 + $0x90] sm:$0xff]   ;;  %v219_v39 = vunpack.c.0.s8 %v218_v36 }
   0x8   :  { %2374 = vmatpush3.bf16.msra.mxu1 %v3190_v3  ;;  %v3244_v12 = vld [vmem:[%s4199_s4 + $0x58] sm:$0xff]   ;;  %v3268_v16 = vld [vmem:[%s4199_s4 + $0x60] sm:$0xff]   ;;  %v3292_v20 = vld [vmem:[%s4199_s4 + $0x68] sm:$0xff]   ;;  %4277 = vst [vmem:[#allocation13_spill] sm:$0xff] %v3354_v32 }
   0x9   :  { %2375 = vmatprep.subr.bf16.mxu1 %v3208_v6  ;;  %4270 = vst [vmem:[#allocation6_spill] sm:$0xff] %v3244_v12  ;;  %v3250_v13 = vld [vmem:[%s4199_s4 + $0x18] sm:$0xff]   ;;  %4272 = vst [vmem:[#allocation8_spill] sm:$0xff] %v3268_v16  ;;  %v3274_v17 = vld [vmem:[%s4199_s4 + $0x20] sm:$0xff]   ;;  %v3379_v41 = vsub.s32 %v219_v39, %v3354_v32 }
   0xa   :  { %2354 = vmatpush3.bf16.msra.mxu0 %v3202_v5  ;;  %4271 = vst [vmem:[#allocation7_spill] sm:$0xff] %v3250_v13  ;;  %v3256_v14 = vld [vmem:[%s4199_s4 + $0xd8] sm:$0xff]   ;;  %4273 = vst [vmem:[#allocation9_spill] sm:$0xff] %v3274_v17  ;;  %v3280_v18 = vld [vmem:[%s4199_s4 + $0xe0] sm:$0xff]  }
   0xb   :  { %2355 = vmatprep.subr.bf16.mxu0 %v3220_v8  ;;  %v3262_v15 = vld [vmem:[%s4199_s4 + $0x98] sm:$0xff]   ;;  %v3286_v19 = vld [vmem:[%s4199_s4 + $0xa0] sm:$0xff]   ;;  %4274 = vst [vmem:[#allocation10_spill] sm:$0xff] %v3292_v20  ;;  %v3298_v21 = vld [vmem:[%s4199_s4 + $0x28] sm:$0xff]  }
   0xc   :  { %2376 = vmatpush3.bf16.msra.mxu1 %v3214_v7  ;;  %4275 = vst [vmem:[#allocation11_spill] sm:$0xff] %v3298_v21  ;;  %v3304_v22 = vld [vmem:[%s4199_s4 + $0xe8] sm:$0xff]   ;;  %v3316_v24 = vld [vmem:[%s4199_s4 + $0x70] sm:$0xff]   ;;  %v3340_v29 = vld [vmem:[%s4199_s4 + $0x78] sm:$0xff]  }
   0xd   :  { %2377 = vmatprep.subr.bf16.mxu1 %v3232_v10  ;;  %v3310_v23 = vld [vmem:[%s4199_s4 + $0xa8] sm:$0xff]   ;;  %4276 = vst [vmem:[#allocation12_spill] sm:$0xff] %v3316_v24  ;;  %v3322_v25 = vld [vmem:[%s4199_s4 + $0x30] sm:$0xff]   ;;  %v3346_v30 = vld [vmem:[%s4199_s4 + $0x38] sm:$0xff]  }
   0xe   :  { %2356 = vmatpush3.bf16.msra.mxu0 %v3226_v9  ;;  %v3328_v26 = vld [vmem:[%s4199_s4 + $0xf0] sm:$0xff]   ;;  %v3352_v31 = vld [vmem:[%s4199_s4 + $0xf8] sm:$0xff]   ;;  %v206_v33 = vld [vmem:[%s4278_s0] sm:$0xff] }
   0xf   :  { %2357 = vmatprep.subr.bf16.mxu0 %v3244_v12  ;;  %v3334_v28 = vld [vmem:[%s4199_s4 + $0xb0] sm:$0xff]   ;;  %v3363_v34 = vld [vmem:[%s4199_s4 + $0xb8] sm:$0xff]   ;;  %v3370_v37 = vld [vmem:[%s4199_s4 + $0x140] sm:$0xff]   ;;  %v216_v38 = vcombine.high %v206_v33, %v206_v33  ;;  %v223_v42 = vrot.slane %v206_v33, %v3379_v41 }
  0x10   :  { %2378 = vmatpush3.bf16.msra.mxu1 %v3238_v11  ;;  %v3376_v40 = vld [vmem:[%s4199_s4 + $0x1c0] sm:$0xff]   ;;  %v3399_v51 = vld [vmem:[%s4199_s4 + $0x148] sm:$0xff]   ;;  %v3421_v57 = vld [vmem:[%s4199_s4 + $0x150] sm:$0xff]  }
  0x11   :  { %2379 = vmatprep.subr.bf16.mxu1 %v3256_v14  ;;  %v3384_v43 = vrot.slane %v216_v38, %v3379_v41  ;;  %v231_v44 = vcombine.high %v223_v42, %v223_v42  ;;  %v239_v45 = vrot.slane %v223_v42, %v3379_v41  ;;  %v3393_v48 = vld [vmem:[%s4199_s4 + $0x100] sm:$0xff]   ;;  %v3409_v54 = vld [vmem:[%s4199_s4 + $0x1c8] sm:$0xff]   ;;  %v3433_v59 = vld [vmem:[%s4199_s4 + $0x1d0] sm:$0xff]  }
  0x12   :  { %2358 = vmatpush3.bf16.msra.mxu0 %v3250_v13  ;;  %v3404_v53 = vld [vmem:[%s4199_s4 + $0x180] sm:$0xff]   ;;  %v3415_v56 = vld [vmem:[%s4199_s4 + $0x108] sm:$0xff]   ;;  %v3439_v60 = vld [vmem:[%s4199_s4 + $0x110] sm:$0xff]  }
  0x13   :  { %2359 = vmatprep.subr.bf16.mxu0 %v3268_v16  ;;  %v232_v46 = vcombine.high %v3384_v43, %v3384_v43  ;;  %v253_v47 = vrot.slane %v231_v44, %v3379_v41  ;;  %v261_v50 = vcombine.high %v239_v45, %v239_v45  ;;  %v3427_v58 = vld [vmem:[%s4199_s4 + $0x188] sm:$0xff]   ;;  %v3445_v61 = vld [vmem:[%s4199_s4 + $0x158] sm:$0xff]   ;;  %v3451_v62 = vld [vmem:[%s4199_s4 + $0x190] sm:$0xff]  }
  0x14   :  { %2380 = vmatpush3.bf16.msra.mxu1 %v3262_v15  ;;  %4279 = vst [vmem:[#allocation14_spill] sm:$0xff] %v3451_v62  ;;  %v3457_v63 = vld [vmem:[%s4199_s4 + $0x1d8] sm:$0xff]   ;;  %v3469_v33 = vld [vmem:[%s4199_s4 + $0x160] sm:$0xff]   ;;  %v3493_v39 = vld [vmem:[%s4199_s4 + $0x168] sm:$0xff]  }
  0x15   :  { %2381 = vmatprep.subr.bf16.mxu1 %v3280_v18  ;;  %v260_v49 = vrot.slane %v232_v46, %v3379_v41  ;;  %752 = vmatprep.mubr.bf16.mxu0 %v253_v47  ;;  %v263_v52 = vcombine.high %v253_v47, %v253_v47  ;;  %4280 = vst [vmem:[#allocation15_spill] sm:$0xff] %v3457_v63  ;;  %v3463_v27 = vld [vmem:[%s4199_s4 + $0x118] sm:$0xff]   ;;  %v3481_v36 = vld [vmem:[%s4199_s4 + $0x1e0] sm:$0xff]   ;;  %v3505_v44 = vld [vmem:[%s4199_s4 + $0x1e8] sm:$0xff]  }
  0x16   :  { %2360 = vmatpush3.bf16.msra.mxu0 %v3274_v17  ;;  %v3475_v35 = vld [vmem:[%s4199_s4 + $0x198] sm:$0xff]   ;;  %4282 = vst [vmem:[#allocation17_spill] sm:$0xff] %v3481_v36  ;;  %v3487_v38 = vld [vmem:[%s4199_s4 + $0x120] sm:$0xff]   ;;  %4284 = vst [vmem:[#allocation19_spill] sm:$0xff] %v3505_v44 }
  0x17   :  { %2361 = vmatprep.subr.bf16.mxu0 %v3292_v20  ;;  %v264_v55 = vcombine.high %v260_v49, %v260_v49  ;;  %792 = vmatprep.mubr.bf16.mxu1 %v263_v52  ;;  %4281 = vst [vmem:[#allocation16_spill] sm:$0xff] %v3475_v35  ;;  %v3499_v42 = vld [vmem:[%s4199_s4 + $0x1a0] sm:$0xff]   ;;  %v3517_v46 = vld [vmem:[%s4199_s4 + $0x170] sm:$0xff]   ;;  %v3523_v47 = vld [vmem:[%s4199_s4 + $0x1a8] sm:$0xff]  }
  0x18   :  { %2382 = vmatpush3.bf16.msra.mxu1 %v3286_v19  ;;  %4283 = vst [vmem:[#allocation18_spill] sm:$0xff] %v3499_v42  ;;  %4285 = vst [vmem:[#allocation20_spill] sm:$0xff] %v3523_v47  ;;  %v3541_v52 = vld [vmem:[%s4199_s4 + $0x178] sm:$0xff]  }
  0x19   :  { %2383 = vmatprep.subr.bf16.mxu1 %v3304_v22  ;;  %4288 = vst [vmem:[#allocation23_spill] sm:$0xff] %v3541_v52  ;;  %v3553_v32 = vld [vmem:[%s4199_s4 + $0x1f8] sm:$0xff]  }
  0x1a   :  { %2362 = vmatpush3.bf16.msra.mxu0 %v3298_v21  ;;  %4290 = vst [vmem:[#allocation25_spill] sm:$0xff] %v3553_v32 }
  0x1b   :  { %2363 = vmatprep.subr.bf16.mxu0 %v3316_v24 }
  0x1c   :  { %2384 = vmatpush3.bf16.msra.mxu1 %v3310_v23 }
  0x1d   :  { %2385 = vmatprep.subr.bf16.mxu1 %v3328_v26 }
  0x1e   :  { %2364 = vmatpush3.bf16.msra.mxu0 %v3322_v25 }
  0x1f   :  { %2365 = vmatprep.subr.bf16.mxu0 %v3340_v29 }
  0x20   :  { %2386 = vmatpush3.bf16.msra.mxu1 %v3334_v28 }
  0x21   :  { %2387 = vmatprep.subr.bf16.mxu1 %v3352_v31 }
  0x22   :  { %2366 = vmatpush3.bf16.msra.mxu0 %v3346_v30 }
  0x23   :  { %2395 = vmatprep.subr.bf16.mxu0 %v3370_v37 }
  0x24   :  { %2388 = vmatpush3.bf16.msra.mxu1 %v3363_v34 }
  0x25   :  { %2417 = vmatprep.subr.bf16.mxu1 %v3376_v40  ;;  %753 = vmatmul.mubr.bf16.vlgmr.msra.gmra.mrb[0].mxu0 %v239_v45  ;;  %v3511_v45 = vld [vmem:[%s4199_s4 + $0x128] sm:$0xff]  }
  0x26   :  { %2396 = vmatpush3.bf16.msra.mxu0 %v3393_v48  ;;  %832 = vmatprep.mubr.bf16.mxu0 %v260_v49  ;;  %v3529_v49 = vld [vmem:[%s4199_s4 + $0x1f0] sm:$0xff]  }
  0x27   :  { %793 = vmatmul.mubr.bf16.vlgmr.msra.gmra.mrb[0].mxu1 %v261_v50  ;;  %2397 = vmatprep.subr.bf16.mxu0 %v3399_v51  ;;  %4286 = vst [vmem:[#allocation21_spill] sm:$0xff] %v3529_v49  ;;  %v3535_v50 = vld [vmem:[%s4199_s4 + $0x130] sm:$0xff]  }
  0x28   :  { %2418 = vmatpush3.bf16.msra.mxu1 %v3404_v53  ;;  %872 = vmatprep.mubr.bf16.mxu1 %v264_v55  ;;  %4287 = vst [vmem:[#allocation22_spill] sm:$0xff] %v3535_v50  ;;  %v3547_v55 = vld [vmem:[%s4199_s4 + $0x1b0] sm:$0xff]  }
  0x29   :  { %2419 = vmatprep.subr.bf16.mxu1 %v3409_v54  ;;  %4289 = vst [vmem:[#allocation24_spill] sm:$0xff] %v3547_v55 }
  0x2a   :  { %2398 = vmatpush3.bf16.msra.mxu0 %v3415_v56 }
  0x2b   :  { %2399 = vmatprep.subr.bf16.mxu0 %v3421_v57 }
  0x2c   :  { %2420 = vmatpush3.bf16.msra.mxu1 %v3427_v58 }
  0x2d   :  { %2421 = vmatprep.subr.bf16.mxu1 %v3433_v59 }
  0x2e   :  { %2400 = vmatpush3.bf16.msra.mxu0 %v3439_v60 }
  0x2f   :  { %2401 = vmatprep.subr.bf16.mxu0 %v3445_v61 }
  0x30   :  { %2422 = vmatpush3.bf16.msra.mxu1 %v3451_v62 }
  0x31   :  { %2423 = vmatprep.subr.bf16.mxu1 %v3457_v63 }
  0x32   :  { %2402 = vmatpush3.bf16.msra.mxu0 %v3463_v27 }
  0x33   :  { %2403 = vmatprep.subr.bf16.mxu0 %v3469_v33 }
  0x34   :  { %2424 = vmatpush3.bf16.msra.mxu1 %v3475_v35 }
  0x35   :  { %2425 = vmatprep.subr.bf16.mxu1 %v3481_v36  ;;  %v3577_v36 = vld [vmem:[%s4199_s4 + $0x200] sm:$0xff]  }
  0x36   :  { %2404 = vmatpush3.bf16.msra.mxu0 %v3487_v38  ;;  %4294 = vst [vmem:[#allocation28_spill] sm:$0xff] %v3577_v36 }
  0x37   :  { %2405 = vmatprep.subr.bf16.mxu0 %v3493_v39 }
  0x38   :  { %2426 = vmatpush3.bf16.msra.mxu1 %v3499_v42  ;;  %v920_v42 = vld [vmem:[%s4293_s29] sm:$0xff] }
  0x39   :  { %2427 = vmatprep.subr.bf16.mxu1 %v3505_v44  ;;  %v3559_v44 = vld [vmem:[%s4199_s4 + $0x138] sm:$0xff]  }
  0x3a   :  { %2406 = vmatpush3.bf16.msra.mxu0 %v3511_v45  ;;  %4291 = vst [vmem:[#allocation26_spill] sm:$0xff] %v3559_v44 }
  0x3b   :  { %2407 = vmatprep.subr.bf16.mxu0 %v3517_v46 }
  0x3c   :  { %2428 = vmatpush3.bf16.msra.mxu1 %v3523_v47  ;;  %v246_v47 = vrot.slane %v3384_v43, %v3379_v41  ;;  %v931_v43 = vrot.slane %v920_v42, %v3379_v41 }
  0x3d   :  { %2429 = vmatprep.subr.bf16.mxu1 %v3529_v49  ;;  %v3568_v49 = vld [vmem:[%s4199_s4 + $0x1b8] sm:$0xff]  }
  0x3e   :  { %2408 = vmatpush3.bf16.msra.mxu0 %v3535_v50  ;;  %4292 = vst [vmem:[#allocation27_spill] sm:$0xff] %v3568_v49  ;;  %v262_v35 = vcombine.high %v246_v47, %v246_v47  ;;  %v939_v63 = vcombine.high %v931_v43, %v931_v43 }
  0x3f   :  { %2409 = vmatprep.subr.bf16.mxu0 %v3541_v52 }
  0x40   :  { %2430 = vmatpush3.bf16.msra.mxu1 %v3547_v55  ;;  %v3072_v55 = vmov 0.0   ;;  %v961_v62 = vrot.slane %v939_v63, %v3379_v41  ;;  %v3607_v63 = vld [vmem:[%s4199_s4 + $0x218] sm:$0xff]  }
  0x41   :  { %2431 = vmatprep.subr.bf16.mxu1 %v3553_v32  ;;  %v3586_v32 = vld [vmem:[%s4199_s4 + $0x208] sm:$0xff]   ;;  %4297 = vst [vmem:[#allocation31_spill] sm:$0xff] %v3607_v63 }
  0x42   :  { %2410 = vmatpush3.bf16.msra.mxu0 %v3559_v44  ;;  %4295 = vst [vmem:[#allocation29_spill] sm:$0xff] %v3586_v32 }
  0x43   :  { %2766 = vmatprep.subr.bf16.mxu0 %v3072_v55 }
  0x44   :  { %2432 = vmatpush3.bf16.msra.mxu1 %v3568_v49  ;;  %v3598_v49 = vld [vmem:[%s4199_s4 + $0x210] sm:$0xff]  }
  0x45   :  { %833 = vmatmul.mubr.bf16.vlgmr.msra.gmra.mrb[4].mxu0 %v246_v47  ;;  %2448 = vmatprep.subr.bf16.mxu1 %v3173_v0  ;;  %4296 = vst [vmem:[#allocation30_spill] sm:$0xff] %v3598_v49 }
  0x46   :  { %2767 = vmatpush3.bf16.msra.mxu0 %v3577_v36  ;;  %2782 = vmatprep.mubr.msk.bf16.mxu0 %vm3073_vm0, %v3072_v55 }
  0x47   :  { %873 = vmatmul.mubr.bf16.vlgmr.msra.gmra.mrb[4].mxu1 %v262_v35  ;;  %2768 = vmatprep.subr.bf16.mxu0 %v3072_v55  ;;  %v3618_v35 = vld [vmem:[%s4199_s4 + $0x220] sm:$0xff]  }
  0x48   :  { %2449 = vmatpush3.bf16.msra.mxu1 %v3178_v1  ;;  %1028 = vmatprep.mubr.bf16.mxu1 %v961_v62  ;;  %4298 = vst [vmem:[#allocation32_spill] sm:$0xff] %v3618_v35 }
  0x49   :  { %2450 = vmatprep.subr.bf16.mxu1 %v3196_v4 }
  0x4a   :  { %2769 = vmatpush3.bf16.msra.mxu0 %v3586_v32 }
  0x4b   :  { %2770 = vmatprep.subr.bf16.mxu0 %v3072_v55 }
  0x4c   :  { %2451 = vmatpush3.bf16.msra.mxu1 %v3202_v5 }
  0x4d   :  { %2452 = vmatprep.subr.bf16.mxu1 %v3220_v8 }
  0x4e   :  { %2771 = vmatpush3.bf16.msra.mxu0 %v3598_v49 }
  0x4f   :  { %2772 = vmatprep.subr.bf16.mxu0 %v3072_v55 }
  0x50   :  { %2453 = vmatpush3.bf16.msra.mxu1 %v3226_v9 }
  0x51   :  { %2454 = vmatprep.subr.bf16.mxu1 %v3244_v12 }
  0x52   :  { %2773 = vmatpush3.bf16.msra.mxu0 %v3607_v63 }
  0x53   :  { %23 = vsyncpa [#allocation3], 0  ;;  %2774 = vmatprep.subr.bf16.mxu0 %v3072_v55  ;;  %v3627_v47 = vld [vmem:[%s4199_s4 + $0x228] sm:$0xff]   ;;  %v924_v12 = vcombine.high %v920_v42, %v920_v42  ;;  %v3646_v42 = vld [vmem:[%s4199_s4 + $0x238] sm:$0xff]   ;;  %s4304_s2 = sld [smem:[#allocation36_spill]]  ;;  %vm1760_vm1 = vcmask 1041408  }
  0x54   :  { %2455 = vmatpush3.bf16.msra.mxu1 %v3250_v13  ;;  %4299 = vst [vmem:[#allocation33_spill] sm:$0xff] %v3627_v47 }
  0x55   :  { %2456 = vmatprep.subr.bf16.mxu1 %v3268_v16  ;;  %v3636_v16 = vld [vmem:[%s4199_s4 + $0x230] sm:$0xff]   ;;  %v938_v13 = vrot.slane %v924_v12, %v3379_v41 }
  0x56   :  { %2775 = vmatpush3.bf16.msra.mxu0 %v3618_v35 }
  0x57   :  { %2776 = vmatprep.subr.bf16.mxu0 %v3072_v55 }
  0x58   :  { %2457 = vmatpush3.bf16.msra.mxu1 %v3274_v17  ;;  %v947_v17 = vrot.slane %v931_v43, %v3379_v41 }
  0x59   :  { %2458 = vmatprep.subr.bf16.mxu1 %v3292_v20  ;;  %v2248_v20 = vld.sshfl [vmem:[%s4278_s0 + $0x8] sm:$0x1 pattern:$0x75316420]  ;;  %v1196_v43 = vld [vmem:[%s4304_s2] sm:$0xff] }
  0x5a   :  { %2777 = vmatpush3.bf16.msra.mxu0 %v3627_v47  ;;  %v278_v12 = vrot.slane %v2248_v20, %v3379_v41  ;;  %v969_v20 = vcombine.high %v947_v17, %v947_v17 }
  0x5b   :  { %2778 = vmatprep.subr.bf16.mxu0 %v3072_v55 }
  0x5c   :  { %2459 = vmatpush3.bf16.msra.mxu1 %v3298_v21  ;;  %v940_v21 = vcombine.high %v938_v13, %v938_v13 }
  0x5d   :  { %2460 = vmatprep.subr.bf16.mxu1 %v3316_v24  ;;  %v971_v24 = vcombine.high %v961_v62, %v961_v62  ;;  %v4303_v62 = vld [vmem:[#allocation17_spill] sm:$0xff] }
  0x5e   :  { %2779 = vmatpush3.bf16.msra.mxu0 %v3636_v16  ;;  %v968_v9 = vrot.slane %v940_v21, %v3379_v41 }
  0x5f   :  { %2780 = vmatprep.subr.bf16.mxu0 %v3072_v55 }
  0x60   :  { %2461 = vmatpush3.bf16.msra.mxu1 %v3322_v25  ;;  %v972_v21 = vcombine.high %v968_v9, %v968_v9 }
  0x61   :  { %2462 = vmatprep.subr.bf16.mxu1 %v3340_v29 }
  0x62   :  { %2781 = vmatpush3.bf16.msra.mxu0 %v3646_v42 }
  0x63   :  { %2470 = vmatprep.subr.bf16.mxu0 %v3184_v2 }
  0x64   :  { %2463 = vmatpush3.bf16.msra.mxu1 %v3346_v30 }
  0x65   :  { %2783 = vmatmul.mubr.bf16.vlgmr.msra.gmra.mrb[8].mxu0 %v278_v12  ;;  %2492 = vmatprep.subr.bf16.mxu1 %v3370_v37  ;;  %v4305_v12 = vld [vmem:[#allocation18_spill] sm:$0xff] }
  0x66   :  { %2471 = vmatpush3.bf16.msra.mxu0 %v3190_v3  ;;  %1068 = vmatprep.mubr.bf16.mxu0 %v971_v24  ;;  %v954_v24 = vrot.slane %v938_v13, %v3379_v41  ;;  %v4301_v13 = vld [vmem:[#allocation15_spill] sm:$0xff] }
  0x67   :  { %1029 = vmatmul.mubr.bf16.vlgmr.msra.gmra.mrb[8].mxu1 %v947_v17  ;;  %2472 = vmatprep.subr.bf16.mxu0 %v3208_v6  ;;  %v4302_v17 = vld [vmem:[#allocation16_spill] sm:$0xff] }
  0x68   :  { %2493 = vmatpush3.bf16.msra.mxu1 %v3393_v48  ;;  %1108 = vmatprep.mubr.bf16.mxu1 %v968_v9  ;;  %v4300_v9 = vld [vmem:[#allocation14_spill] sm:$0xff] }
  0x69   :  { %2494 = vmatprep.subr.bf16.mxu1 %v3399_v51 }
  0x6a   :  { %2473 = vmatpush3.bf16.msra.mxu0 %v3214_v7 }
  0x6b   :  { %2474 = vmatprep.subr.bf16.mxu0 %v3232_v10 }
  0x6c   :  { %2495 = vmatpush3.bf16.msra.mxu1 %v3415_v56 }
  0x6d   :  { %2496 = vmatprep.subr.bf16.mxu1 %v3421_v57 }
  0x6e   :  { %2475 = vmatpush3.bf16.msra.mxu0 %v3238_v11 }
  0x6f   :  { %2476 = vmatprep.subr.bf16.mxu0 %v3256_v14 }
  0x70   :  { %2497 = vmatpush3.bf16.msra.mxu1 %v3439_v60 }
  0x71   :  { %2498 = vmatprep.subr.bf16.mxu1 %v3445_v61 }
  0x72   :  { %2477 = vmatpush3.bf16.msra.mxu0 %v3262_v15 }
  0x73   :  { %2478 = vmatprep.subr.bf16.mxu0 %v3280_v18 }
  0x74   :  { %2499 = vmatpush3.bf16.msra.mxu1 %v3463_v27 }
  0x75   :  { %2500 = vmatprep.subr.bf16.mxu1 %v3469_v33 }
  0x76   :  { %2479 = vmatpush3.bf16.msra.mxu0 %v3286_v19 }
  0x77   :  { %2480 = vmatprep.subr.bf16.mxu0 %v3304_v22 }
  0x78   :  { %2501 = vmatpush3.bf16.msra.mxu1 %v3487_v38 }
  0x79   :  { %2502 = vmatprep.subr.bf16.mxu1 %v3493_v39 }
  0x7a   :  { %2481 = vmatpush3.bf16.msra.mxu0 %v3310_v23 }
  0x7b   :  { %2482 = vmatprep.subr.bf16.mxu0 %v3328_v26 }
  0x7c   :  { %2503 = vmatpush3.bf16.msra.mxu1 %v3511_v45 }
  0x7d   :  { %2504 = vmatprep.subr.bf16.mxu1 %v3517_v46 }
  0x7e   :  { %2483 = vmatpush3.bf16.msra.mxu0 %v3334_v28 }
  0x7f   :  { %2484 = vmatprep.subr.bf16.mxu0 %v3352_v31 }
  0x80   :  { %2505 = vmatpush3.bf16.msra.mxu1 %v3535_v50  ;;  %v970_v50 = vcombine.high %v954_v24, %v954_v24 }
  0x81   :  { %2506 = vmatprep.subr.bf16.mxu1 %v3541_v52 }
  0x82   :  { %2485 = vmatpush3.bf16.msra.mxu0 %v3363_v34 }
  0x83   :  { %2514 = vmatprep.subr.bf16.mxu0 %v3376_v40 }
  0x84   :  { %2507 = vmatpush3.bf16.msra.mxu1 %v3559_v44  ;;  %v4310_v44 = vld [vmem:[#allocation25_spill] sm:$0xff] }
  0x85   :  { %1069 = vmatmul.mubr.bf16.vlgmr.msra.gmra.mrb[12].mxu0 %v969_v20  ;;  %2786 = vmatprep.subr.bf16.mxu1 %v3072_v55  ;;  %v4306_v20 = vld [vmem:[#allocation19_spill] sm:$0xff] }
  0x86   :  { %2515 = vmatpush3.bf16.msra.mxu0 %v3404_v53  ;;  %1148 = vmatprep.mubr.bf16.mxu0 %v972_v21  ;;  %v1207_v21 = vrot.slane %v1196_v43, %v3379_v41 }
  0x87   :  { %1109 = vmatmul.mubr.bf16.vlgmr.msra.gmra.mrb[12].mxu1 %v954_v24  ;;  %2516 = vmatprep.subr.bf16.mxu0 %v3409_v54  ;;  %v3018_v24 = vld [vmem:[%s4199_s4 + $0x48] sm:$0xff]  }
  0x88   :  { %2787 = vmatpush3.bf16.msra.mxu1 %v3577_v36  ;;  %2802 = vmatprep.mubr.msk.bf16.mxu1 %vm3073_vm0, %v3072_v55  ;;  %v4309_v36 = vld [vmem:[#allocation24_spill] sm:$0xff] }
  0x89   :  { %2788 = vmatprep.subr.bf16.mxu1 %v3072_v55 }
  0x8a   :  { %2517 = vmatpush3.bf16.msra.mxu0 %v3427_v58 }
  0x8b   :  { %2518 = vmatprep.subr.bf16.mxu0 %v3433_v59 }
  0x8c   :  { %2789 = vmatpush3.bf16.msra.mxu1 %v3586_v32  ;;  %v4308_v32 = vld [vmem:[#allocation21_spill] sm:$0xff] }
  0x8d   :  { %2790 = vmatprep.subr.bf16.mxu1 %v3072_v55 }
  0x8e   :  { %2519 = vmatpush3.bf16.msra.mxu0 %v4300_v9 }
  0x8f   :  { %2520 = vmatprep.subr.bf16.mxu0 %v4301_v13 }
  0x90   :  { %2791 = vmatpush3.bf16.msra.mxu1 %v3598_v49  ;;  %v4307_v49 = vld [vmem:[#allocation20_spill] sm:$0xff] }
  0x91   :  { %2792 = vmatprep.subr.bf16.mxu1 %v3072_v55 }
  0x92   :  { %2521 = vmatpush3.bf16.msra.mxu0 %v4302_v17 }
  0x93   :  { %2522 = vmatprep.subr.bf16.mxu0 %v4303_v62 }
  0x94   :  { %2793 = vmatpush3.bf16.msra.mxu1 %v3607_v63  ;;  %v1215_v63 = vcombine.high %v1207_v21, %v1207_v21 }
  0x95   :  { %2794 = vmatprep.subr.bf16.mxu1 %v3072_v55 }
  0x96   :  { %2523 = vmatpush3.bf16.msra.mxu0 %v4305_v12  ;;  %v1237_v52 = vrot.slane %v1215_v63, %v3379_v41  ;;  %v3016_v63 = vld [vmem:[%s4199_s4 + $0x40] sm:$0xff]  }
  0x97   :  { %2524 = vmatprep.subr.bf16.mxu0 %v4306_v20 }
  0x98   :  { %2795 = vmatpush3.bf16.msra.mxu1 %v3618_v35  ;;  %v2321_v35 = vld.sshfl [vmem:[%s4293_s29 + $0x8] sm:$0x1 pattern:$0x75316420] }
  0x99   :  { %2796 = vmatprep.subr.bf16.mxu1 %v3072_v55 }
  0x9a   :  { %2525 = vmatpush3.bf16.msra.mxu0 %v4307_v49 }
  0x9b   :  { %2526 = vmatprep.subr.bf16.mxu0 %v4308_v32  ;;  %v4311_v32 = vld [vmem:[#allocation27_spill] sm:$0xff] }
  0x9c   :  { %2797 = vmatpush3.bf16.msra.mxu1 %v3627_v47  ;;  %v986_v47 = vrot.slane %v2321_v35, %v3379_v41  ;;  %v4325_v35 = vld [vmem:[#allocation28_spill] sm:$0xff] }
  0x9d   :  { %2798 = vmatprep.subr.bf16.mxu1 %v3072_v55 }
  0x9e   :  { %2527 = vmatpush3.bf16.msra.mxu0 %v4309_v36 }
  0x9f   :  { %2528 = vmatprep.subr.bf16.mxu0 %v4310_v44  ;;  %v1247_v44 = vcombine.high %v1237_v52, %v1237_v52 }
  0xa0   :  { %2799 = vmatpush3.bf16.msra.mxu1 %v3636_v16 }
  0xa1   :  { %2800 = vmatprep.subr.bf16.mxu1 %v3072_v55 }
  0xa2   :  { %2529 = vmatpush3.bf16.msra.mxu0 %v4311_v32 }
  0xa3   :  { %2545 = vmatprep.subr.bf16.mxu0 %v3173_v0  ;;  %v4312_v0 = vld [vmem:[#allocation5_spill] sm:$0xff] }
  0xa4   :  { %2801 = vmatpush3.bf16.msra.mxu1 %v3646_v42 }
  0xa5   :  { %1149 = vmatmul.mubr.bf16.vlgmr.msra.gmra.mrb[16].mxu0 %v970_v50  ;;  %2567 = vmatprep.subr.bf16.mxu1 %v3184_v2  ;;  %v4314_v2 = vld [vmem:[#allocation7_spill] sm:$0xff] }
  0xa6   :  { %2546 = vmatpush3.bf16.msra.mxu0 %v3178_v1  ;;  %1304 = vmatprep.mubr.bf16.mxu0 %v1237_v52  ;;  %v4313_v1 = vld [vmem:[#allocation6_spill] sm:$0xff] }
  0xa7   :  { %2803 = vmatmul.mubr.bf16.vlgmr.msra.gmra.mrb[16].mxu1 %v986_v47  ;;  %2547 = vmatprep.subr.bf16.mxu0 %v3196_v4  ;;  %v1200_v4 = vcombine.high %v1196_v43, %v1196_v43  ;;  %v3017_v47 = vld [vmem:[%s4199_s4] sm:$0xff]  }
  0xa8   :  { %2568 = vmatpush3.bf16.msra.mxu1 %v3190_v3  ;;  %1344 = vmatprep.mubr.bf16.mxu1 %v1247_v44  ;;  %v4315_v3 = vld [vmem:[#allocation8_spill] sm:$0xff]  ;;  %v4324_v44 = vld [vmem:[#allocation26_spill] sm:$0xff]  ;;  %v4326_v43 = vld [vmem:[#allocation29_spill] sm:$0xff] }
  0xa9   :  { %2569 = vmatprep.subr.bf16.mxu1 %v3208_v6  ;;  %v4317_v6 = vld [vmem:[#allocation10_spill] sm:$0xff] }
  0xaa   :  { %2548 = vmatpush3.bf16.msra.mxu0 %v3202_v5  ;;  %v4316_v5 = vld [vmem:[#allocation9_spill] sm:$0xff] }
  0xab   :  { %2549 = vmatprep.subr.bf16.mxu0 %v3220_v8  ;;  %v4318_v8 = vld [vmem:[#allocation11_spill] sm:$0xff] }
  0xac   :  { %2570 = vmatpush3.bf16.msra.mxu1 %v3214_v7  ;;  %v1214_v7 = vrot.slane %v1200_v4, %v3379_v41  ;;  %v4328_v4 = vld [vmem:[#allocation31_spill] sm:$0xff] }
  0xad   :  { %2571 = vmatprep.subr.bf16.mxu1 %v3232_v10  ;;  %v4319_v10 = vld [vmem:[#allocation12_spill] sm:$0xff] }
  0xae   :  { %2550 = vmatpush3.bf16.msra.mxu0 %v4312_v0  ;;  %v3020_v0 = vld [vmem:[%s4199_s4 + $0x50] sm:$0xff]  }
  0xaf   :  { %2551 = vmatprep.subr.bf16.mxu0 %v4313_v1  ;;  %v4327_v1 = vld [vmem:[#allocation30_spill] sm:$0xff] }
  0xb0   :  { %2572 = vmatpush3.bf16.msra.mxu1 %v3238_v11  ;;  %v1216_v11 = vcombine.high %v1214_v7, %v1214_v7 }
  0xb1   :  { %2573 = vmatprep.subr.bf16.mxu1 %v3256_v14  ;;  %v1223_v14 = vrot.slane %v1207_v21, %v3379_v41  ;;  %v3019_v21 = vld [vmem:[%s4199_s4 + $0x8] sm:$0xff]  }
  0xb2   :  { %2552 = vmatpush3.bf16.msra.mxu0 %v4314_v2  ;;  %v3021_v2 = vld [vmem:[%s4199_s4 + $0x10] sm:$0xff]  }
  0xb3   :  { %2553 = vmatprep.subr.bf16.mxu0 %v4315_v3  ;;  %v3022_v3 = vld [vmem:[%s4199_s4 + $0x58] sm:$0xff]  }
  0xb4   :  { %2574 = vmatpush3.bf16.msra.mxu1 %v3262_v15  ;;  %v1244_v15 = vrot.slane %v1216_v11, %v3379_v41 }
  0xb5   :  { %2575 = vmatprep.subr.bf16.mxu1 %v3280_v18  ;;  %v1245_v18 = vcombine.high %v1223_v14, %v1223_v14 }
  0xb6   :  { %2554 = vmatpush3.bf16.msra.mxu0 %v4316_v5  ;;  %v3023_v5 = vld [vmem:[%s4199_s4 + $0x18] sm:$0xff]  }
  0xb7   :  { %2555 = vmatprep.subr.bf16.mxu0 %v4317_v6  ;;  %v3024_v6 = vld [vmem:[%s4199_s4 + $0x60] sm:$0xff]  }
  0xb8   :  { %2576 = vmatpush3.bf16.msra.mxu1 %v3286_v19  ;;  %v1248_v19 = vcombine.high %v1244_v15, %v1244_v15 }
  0xb9   :  { %2577 = vmatprep.subr.bf16.mxu1 %v3304_v22  ;;  %v3795_v22 = vld [vmem:[%s4198_s3] sm:$0xff] }
  0xba   :  { %2556 = vmatpush3.bf16.msra.mxu0 %v4318_v8  ;;  %v1476_v11 = vcombine.high %v3795_v22, %v3795_v22 }
  0xbb   :  { %2557 = vmatprep.subr.bf16.mxu0 %v4319_v10  ;;  %v3025_v10 = vld [vmem:[%s4199_s4 + $0x20] sm:$0xff]  }
  0xbc   :  { %2578 = vmatpush3.bf16.msra.mxu1 %v3310_v23  ;;  %v3802_v23 = vrot.slane %v3795_v22, %v3379_v41 }
  0xbd   :  { %2579 = vmatprep.subr.bf16.mxu1 %v3328_v26  ;;  %v4321_v26 = vld [vmem:[#allocation22_spill] sm:$0xff] }
  0xbe   :  { %2558 = vmatpush3.bf16.msra.mxu0 %v3322_v25  ;;  %v4320_v25 = vld [vmem:[#allocation21_spill] sm:$0xff] }
  0xbf   :  { %2559 = vmatprep.subr.bf16.mxu0 %v3340_v29 }
  0xc0   :  { %2580 = vmatpush3.bf16.msra.mxu1 %v3334_v28  ;;  %v4322_v28 = vld [vmem:[#allocation23_spill] sm:$0xff] }
  0xc1   :  { %2581 = vmatprep.subr.bf16.mxu1 %v3352_v31  ;;  %v1230_v31 = vrot.slane %v1214_v7, %v3379_v41  ;;  %v4329_v7 = vld [vmem:[#allocation32_spill] sm:$0xff] }
  0xc2   :  { %2560 = vmatpush3.bf16.msra.mxu0 %v3346_v30 }
  0xc3   :  { %2589 = vmatprep.subr.bf16.mxu0 %v3370_v37  ;;  %v1246_v50 = vcombine.high %v1230_v31, %v1230_v31 }
  0xc4   :  { %2582 = vmatpush3.bf16.msra.mxu1 %v3363_v34  ;;  %v1491_v34 = vcombine.high %v3802_v23, %v3802_v23 }
  0xc5   :  { %1305 = vmatmul.mubr.bf16.vlgmr.msra.gmra.mrb[20].mxu0 %v1223_v14  ;;  %2611 = vmatprep.subr.bf16.mxu1 %v3376_v40  ;;  %v4323_v40 = vld [vmem:[#allocation25_spill] sm:$0xff]  ;;  %v3866_v14 = vld [vmem:[%s4200_s5] ss:$0 sm:$0xff] }
  0xc6   :  { %2590 = vmatpush3.bf16.msra.mxu0 %v3393_v48  ;;  %1384 = vmatprep.mubr.bf16.mxu0 %v1244_v15  ;;  %v3816_v52 = vrot.slane %v1491_v34, %v3379_v41 }
  0xc7   :  { %1345 = vmatmul.mubr.bf16.vlgmr.msra.gmra.mrb[20].mxu1 %v1245_v18  ;;  %2591 = vmatprep.subr.bf16.mxu0 %v3399_v51  ;;  %v3026_v18 = vld [vmem:[%s4199_s4 + $0x68] sm:$0xff]  }
  0xc8   :  { %2612 = vmatpush3.bf16.msra.mxu1 %v3404_v53  ;;  %1424 = vmatprep.mubr.bf16.mxu1 %v1248_v19 }
  0xc9   :  { %2613 = vmatprep.subr.bf16.mxu1 %v3409_v54 }
  0xca   :  { %2592 = vmatpush3.bf16.msra.mxu0 %v3415_v56 }
  0xcb   :  { %2593 = vmatprep.subr.bf16.mxu0 %v3421_v57 }
  0xcc   :  { %2614 = vmatpush3.bf16.msra.mxu1 %v3427_v58 }
  0xcd   :  { %2615 = vmatprep.subr.bf16.mxu1 %v3433_v59 }
  0xce   :  { %2594 = vmatpush3.bf16.msra.mxu0 %v3439_v60 }
  0xcf   :  { %2595 = vmatprep.subr.bf16.mxu0 %v3445_v61 }
  0xd0   :  { %2616 = vmatpush3.bf16.msra.mxu1 %v4300_v9 }
  0xd1   :  { %2617 = vmatprep.subr.bf16.mxu1 %v4301_v13 }
  0xd2   :  { %2596 = vmatpush3.bf16.msra.mxu0 %v3463_v27 }
  0xd3   :  { %2597 = vmatprep.subr.bf16.mxu0 %v3469_v33 }
  0xd4   :  { %2618 = vmatpush3.bf16.msra.mxu1 %v4302_v17 }
  0xd5   :  { %2619 = vmatprep.subr.bf16.mxu1 %v4303_v62 }
  0xd6   :  { %2598 = vmatpush3.bf16.msra.mxu0 %v3487_v38 }
  0xd7   :  { %2599 = vmatprep.subr.bf16.mxu0 %v3493_v39 }
  0xd8   :  { %2620 = vmatpush3.bf16.msra.mxu1 %v4305_v12 }
  0xd9   :  { %2621 = vmatprep.subr.bf16.mxu1 %v4306_v20 }
  0xda   :  { %2600 = vmatpush3.bf16.msra.mxu0 %v3511_v45 }
  0xdb   :  { %2601 = vmatprep.subr.bf16.mxu0 %v3517_v46 }
  0xdc   :  { %2622 = vmatpush3.bf16.msra.mxu1 %v4307_v49 }
  0xdd   :  { %2623 = vmatprep.subr.bf16.mxu1 %v4320_v25 }
  0xde   :  { %2602 = vmatpush3.bf16.msra.mxu0 %v4321_v26 }
  0xdf   :  { %2603 = vmatprep.subr.bf16.mxu0 %v4322_v28 }
  0xe0   :  { %2624 = vmatpush3.bf16.msra.mxu1 %v4309_v36 }
  0xe1   :  { %2625 = vmatprep.subr.bf16.mxu1 %v4323_v40 }
  0xe2   :  { %2604 = vmatpush3.bf16.msra.mxu0 %v4324_v44 }
  0xe3   :  { %2806 = vmatprep.subr.bf16.mxu0 %v3072_v55 }
  0xe4   :  { %2626 = vmatpush3.bf16.msra.mxu1 %v4311_v32 }
  0xe5   :  { %1385 = vmatmul.mubr.bf16.vlgmr.msra.gmra.mrb[24].mxu0 %v1230_v31  ;;  %2642 = vmatprep.subr.bf16.mxu1 %v3016_v63 }
  0xe6   :  { %2807 = vmatpush3.bf16.msra.mxu0 %v4325_v35  ;;  %2822 = vmatprep.mubr.msk.bf16.mxu0 %vm3073_vm0, %v3072_v55 }
  0xe7   :  { %1425 = vmatmul.mubr.bf16.vlgmr.msra.gmra.mrb[24].mxu1 %v1246_v50  ;;  %2808 = vmatprep.subr.bf16.mxu0 %v3072_v55  ;;  %v4330_v50 = vld [vmem:[#allocation33_spill] sm:$0xff] }
  0xe8   :  { %2643 = vmatpush3.bf16.msra.mxu1 %v3017_v47  ;;  %1580 = vmatprep.mubr.bf16.mxu1 %v3816_v52 }
  0xe9   :  { %2644 = vmatprep.subr.bf16.mxu1 %v3018_v24 }
  0xea   :  { %2809 = vmatpush3.bf16.msra.mxu0 %v4326_v43 }
  0xeb   :  { %2810 = vmatprep.subr.bf16.mxu0 %v3072_v55 }
  0xec   :  { %2645 = vmatpush3.bf16.msra.mxu1 %v3019_v21  ;;  %v3027_v21 = vld [vmem:[%s4199_s4 + $0x28] sm:$0xff]  }
  0xed   :  { %2646 = vmatprep.subr.bf16.mxu1 %v3020_v0 }
  0xee   :  { %2811 = vmatpush3.bf16.msra.mxu0 %v4327_v1 }
  0xef   :  { %2812 = vmatprep.subr.bf16.mxu0 %v3072_v55 }
  0xf0   :  { %2647 = vmatpush3.bf16.msra.mxu1 %v3021_v2  ;;  %v3878_v2 = vrot.slane %v1476_v11, %v3379_v41 }
  0xf1   :  { %2648 = vmatprep.subr.bf16.mxu1 %v3022_v3 }
  0xf2   :  { %2813 = vmatpush3.bf16.msra.mxu0 %v4328_v4  ;;  %v1492_v11 = vcombine.high %v3878_v2, %v3878_v2 }
  0xf3   :  { %2814 = vmatprep.subr.bf16.mxu0 %v3072_v55 }
  0xf4   :  { %2649 = vmatpush3.bf16.msra.mxu1 %v3023_v5  ;;  %v3028_v5 = vld [vmem:[%s4199_s4 + $0x70] sm:$0xff]  }
  0xf5   :  { %2650 = vmatprep.subr.bf16.mxu1 %v3024_v6 }
  0xf6   :  { %2815 = vmatpush3.bf16.msra.mxu0 %v4329_v7 }
  0xf7   :  { %2816 = vmatprep.subr.bf16.mxu0 %v3072_v55 }
  0xf8   :  { %v2367_v8 = vpop.f32.mrb[0].mxu0  ;;  %2651 = vmatpush3.bf16.msra.mxu1 %v3025_v10  ;;  %v3029_v10 = vld [vmem:[%s4199_s4 + $0x30] sm:$0xff]  }
  0xf9   :  { %v2368_v15 = vpop.f32.mrb[1].mxu0  ;;  %2652 = vmatprep.subr.bf16.mxu1 %v3026_v18  ;;  %v1523_v18 = vcombine.high %v3816_v52, %v3816_v52  ;;  %v3031_v52 = vld [vmem:[%s4199_s4 + $0x80] sm:$0xff]  }
  0xfa   :  { %v2369_v19 = vadd.f32 %v2368_v15, %v2367_v8  ;;  %v2370_v31 = vpop.f32.mrb[2].mxu0  ;;  %v2389_v34 = vpop.f32.mrb[0].mxu1  ;;  %2817 = vmatpush3.bf16.msra.mxu0 %v4330_v50  ;;  %v2322_v8 = vld.sshfl [vmem:[%s4304_s2 + $0x8] sm:$0x1 pattern:$0x75316420] }
  0xfb   :  { %v2371_v63 = vpop.f32.mrb[3].mxu0  ;;  %v2390_v47 = vpop.f32.mrb[1].mxu1  ;;  %2818 = vmatprep.subr.bf16.mxu0 %v3072_v55  ;;  %v1262_v15 = vrot.slane %v2322_v8, %v3379_v41  ;;  %v3903_v31 = vrot.slane %v3802_v23, %v3379_v41  ;;  %v3032_v23 = vld [vmem:[%s4199_s4 + $0xc8] sm:$0xff]   ;;  %v3043_v8 = vld [vmem:[%s4199_s4 + $0xb0] sm:$0xff]  }
  0xfc   :  { %v755_v22 = vadd.f32 %v2369_v19, %v3866_v14  ;;  %v2391_v24 = vadd.f32 %v2390_v47, %v2389_v34  ;;  %2653 = vmatpush3.bf16.msra.mxu1 %v3027_v21  ;;  %v2392_v0 = vpop.f32.mrb[2].mxu1  ;;  %v3030_v19 = vld [vmem:[%s4199_s4 + $0xc0] sm:$0xff]  }
  0xfd   :  { %v2393_v3 = vpop.f32.mrb[3].mxu1  ;;  %2654 = vmatprep.subr.bf16.mxu1 %v3028_v5  ;;  %v3042_v0 = vld [vmem:[%s4199_s4 + $0xf0] sm:$0xff]  }
  0xfe   :  { %v795_v6 = vadd.f32 %v2391_v24, %v755_v22  ;;  %2819 = vmatpush3.bf16.msra.mxu0 %v3636_v16 }
  0xff   :  { %2820 = vmatprep.subr.bf16.mxu0 %v3072_v55 }
 0x100   :  { %2655 = vmatpush3.bf16.msra.mxu1 %v3029_v10 }
 0x101   :  { %2656 = vmatprep.subr.bf16.mxu1 %v3340_v29  ;;  %v3907_v29 = vrot.slane %v1492_v11, %v3379_v41  ;;  %v3044_v11 = vld [vmem:[%s4199_s4 + $0xf8] sm:$0xff]  }
 0x102   :  { %2821 = vmatpush3.bf16.msra.mxu0 %v3646_v42 }
 0x103   :  { %2664 = vmatprep.subr.bf16.mxu0 %v3030_v19 }
 0x104   :  { %2657 = vmatpush3.bf16.msra.mxu1 %v3346_v30  ;;  %v3033_v30 = vld [vmem:[%s4199_s4 + $0x88] sm:$0xff]  }
 0x105   :  { %2823 = vmatmul.mubr.bf16.vlgmr.msra.gmra.mrb[28].mxu0 %v1262_v15  ;;  %2686 = vmatprep.subr.bf16.mxu1 %v3370_v37  ;;  %v3034_v37 = vld [vmem:[%s4199_s4 + $0xd0] sm:$0xff]   ;;  %v3046_v15 = vld [vmem:[%s4199_s4 + $0x1c0] sm:$0xff]  }
 0x106   :  { %2665 = vmatpush3.bf16.msra.mxu0 %v3031_v52  ;;  %1620 = vmatprep.mubr.bf16.mxu0 %v1523_v18 }
 0x107   :  { %1581 = vmatmul.mubr.bf16.vlgmr.msra.gmra.mrb[28].mxu1 %v3903_v31  ;;  %2666 = vmatprep.subr.bf16.mxu0 %v3032_v23 }
 0x108   :  { %2687 = vmatpush3.bf16.msra.mxu1 %v3393_v48  ;;  %1660 = vmatprep.mubr.bf16.mxu1 %v3907_v29  ;;  %v3035_v48 = vld [vmem:[%s4199_s4 + $0x90] sm:$0xff]  }
 0x109   :  { %2688 = vmatprep.subr.bf16.mxu1 %v3399_v51  ;;  %v3036_v51 = vld [vmem:[%s4199_s4 + $0xd8] sm:$0xff]  }
 0x10a   :  { %2667 = vmatpush3.bf16.msra.mxu0 %v3033_v30 }
 0x10b   :  { %2668 = vmatprep.subr.bf16.mxu0 %v3034_v37 }
 0x10c   :  { %2689 = vmatpush3.bf16.msra.mxu1 %v3415_v56  ;;  %v3037_v56 = vld [vmem:[%s4199_s4 + $0x98] sm:$0xff]  }
 0x10d   :  { %2690 = vmatprep.subr.bf16.mxu1 %v3421_v57  ;;  %v3038_v57 = vld [vmem:[%s4199_s4 + $0xe0] sm:$0xff]  }
 0x10e   :  { %2669 = vmatpush3.bf16.msra.mxu0 %v3035_v48 }
 0x10f   :  { %2670 = vmatprep.subr.bf16.mxu0 %v3036_v51 }
 0x110   :  { %2691 = vmatpush3.bf16.msra.mxu1 %v3439_v60  ;;  %v3039_v60 = vld [vmem:[%s4199_s4 + $0xa0] sm:$0xff]  }
 0x111   :  { %2692 = vmatprep.subr.bf16.mxu1 %v3445_v61  ;;  %v3040_v61 = vld [vmem:[%s4199_s4 + $0xe8] sm:$0xff]  }
 0x112   :  { %2671 = vmatpush3.bf16.msra.mxu0 %v3037_v56 }
 0x113   :  { %2672 = vmatprep.subr.bf16.mxu0 %v3038_v57 }
 0x114   :  { %2693 = vmatpush3.bf16.msra.mxu1 %v3463_v27 }
 0x115   :  { %2694 = vmatprep.subr.bf16.mxu1 %v3469_v33  ;;  %v3041_v33 = vld [vmem:[%s4199_s4 + $0xa8] sm:$0xff]  }
 0x116   :  { %2673 = vmatpush3.bf16.msra.mxu0 %v3039_v60 }
 0x117   :  { %2674 = vmatprep.subr.bf16.mxu0 %v3040_v61 }
 0x118   :  { %v2411_v34 = vpop.f32.mrb[4].mxu0  ;;  %2695 = vmatpush3.bf16.msra.mxu1 %v3487_v38 }
 0x119   :  { %v2412_v63 = vpop.f32.mrb[5].mxu0  ;;  %2696 = vmatprep.subr.bf16.mxu1 %v3493_v39 }
 0x11a   :  { %v2413_v47 = vadd.f32 %v2412_v63, %v2411_v34  ;;  %v2414_v27 = vpop.f32.mrb[6].mxu0  ;;  %v2433_v22 = vpop.f32.mrb[4].mxu1  ;;  %2675 = vmatpush3.bf16.msra.mxu0 %v3041_v33 }
 0x11b   :  { %v2415_v24 = vpop.f32.mrb[7].mxu0  ;;  %v2434_v21 = vpop.f32.mrb[5].mxu1  ;;  %2676 = vmatprep.subr.bf16.mxu0 %v3042_v0 }
 0x11c   :  { %v835_v3 = vadd.f32 %v2413_v47, %v795_v6  ;;  %v2435_v38 = vadd.f32 %v2434_v21, %v2433_v22  ;;  %2697 = vmatpush3.bf16.msra.mxu1 %v3511_v45  ;;  %v2436_v39 = vpop.f32.mrb[6].mxu1  ;;  %v1521_v45 = vcombine.high %v3903_v31, %v3903_v31  ;;  %v1524_v6 = vcombine.high %v3907_v29, %v3907_v29 }
 0x11d   :  { %v2437_v5 = vpop.f32.mrb[7].mxu1  ;;  %2698 = vmatprep.subr.bf16.mxu1 %v3517_v46  ;;  %v3045_v46 = vld [vmem:[%s4199_s4 + $0xb8] sm:$0xff]  }
 0x11e   :  { %2677 = vmatpush3.bf16.msra.mxu0 %v3043_v8  ;;  %v875_v10 = vadd.f32 %v2435_v38, %v835_v3  ;;  %v2986_v5 = vld [vmem:[%s4203_s8] sm:$0xff]  }
 0x11f   :  { %2678 = vmatprep.subr.bf16.mxu0 %v3044_v11  ;;  %v2987_v11 = vld [vmem:[%s4203_s8 + $0x8] sm:$0xff]  }
 0x120   :  { %2699 = vmatpush3.bf16.msra.mxu1 %v4321_v26  ;;  %v1506_v26 = vrot.slane %v3878_v2, %v3379_v41 }
 0x121   :  { %2700 = vmatprep.subr.bf16.mxu1 %v4322_v28 }
 0x122   :  { %2679 = vmatpush3.bf16.msra.mxu0 %v3045_v46 }
 0x123   :  { %2708 = vmatprep.subr.bf16.mxu0 %v3046_v15 }
 0x124   :  { %2701 = vmatpush3.bf16.msra.mxu1 %v4324_v44 }
 0x125   :  { %1621 = vmatmul.mubr.bf16.vlgmr.msra.gmra.mrb[32].mxu0 %v1521_v45  ;;  %2826 = vmatprep.subr.bf16.mxu1 %v3072_v55 }
 0x126   :  { %2709 = vmatpush3.bf16.msra.mxu0 %v3404_v53  ;;  %1700 = vmatprep.mubr.bf16.mxu0 %v1524_v6 }
 0x127   :  { %1661 = vmatmul.mubr.bf16.vlgmr.msra.gmra.mrb[32].mxu1 %v1506_v26  ;;  %2710 = vmatprep.subr.bf16.mxu0 %v3409_v54 }
 0x128   :  { %2827 = vmatpush3.bf16.msra.mxu1 %v4325_v35  ;;  %2842 = vmatprep.mubr.msk.bf16.mxu1 %vm3073_vm0, %v3072_v55 }
 0x129   :  { %2828 = vmatprep.subr.bf16.mxu1 %v3072_v55 }
 0x12a   :  { %2711 = vmatpush3.bf16.msra.mxu0 %v3427_v58 }
 0x12b   :  { %2712 = vmatprep.subr.bf16.mxu0 %v3433_v59 }
 0x12c   :  { %2829 = vmatpush3.bf16.msra.mxu1 %v4326_v43 }
 0x12d   :  { %2830 = vmatprep.subr.bf16.mxu1 %v3072_v55 }
 0x12e   :  { %2713 = vmatpush3.bf16.msra.mxu0 %v4300_v9 }
 0x12f   :  { %2714 = vmatprep.subr.bf16.mxu0 %v4301_v13 }
 0x130   :  { %2831 = vmatpush3.bf16.msra.mxu1 %v4327_v1 }
 0x131   :  { %2832 = vmatprep.subr.bf16.mxu1 %v3072_v55 }
 0x132   :  { %2715 = vmatpush3.bf16.msra.mxu0 %v4302_v17 }
 0x133   :  { %2716 = vmatprep.subr.bf16.mxu0 %v4303_v62 }
 0x134   :  { %2833 = vmatpush3.bf16.msra.mxu1 %v4328_v4 }
 0x135   :  { %2834 = vmatprep.subr.bf16.mxu1 %v3072_v55 }
 0x136   :  { %2717 = vmatpush3.bf16.msra.mxu0 %v4305_v12 }
 0x137   :  { %2718 = vmatprep.subr.bf16.mxu0 %v4306_v20 }
 0x138   :  { %v914_v53 = vpop.f32.mrb[8].mxu0  ;;  %2835 = vmatpush3.bf16.msra.mxu1 %v4329_v7 }
 0x139   :  { %v4003_v54 = vadd.f32 %v914_v53, %v875_v10  ;;  %v2784_v58 = vpop.f32.mrb[9].mxu0  ;;  %2836 = vmatprep.subr.bf16.mxu1 %v3072_v55 }
 0x13a   :  { %v917_v59 = vpop.f32.mrb[10].mxu0  ;;  %2719 = vmatpush3.bf16.msra.mxu0 %v4307_v49  ;;  %v2464_v9 = vpop.f32.mrb[8].mxu1  ;;  %v2323_v49 = vld.sshfl [vmem:[%s4198_s3 + $0x8] sm:$0x1 pattern:$0x75316420] }
 0x13b   :  { %v2785_v13 = vpop.f32.mrb[11].mxu0  ;;  %v2465_v17 = vpop.f32.mrb[9].mxu1  ;;  %2720 = vmatprep.subr.bf16.mxu0 %v4320_v25  ;;  %v1522_v25 = vcombine.high %v1506_v26, %v1506_v26  ;;  %v1538_v28 = vrot.slane %v2323_v49, %v3379_v41  ;;  %v1750_v56 = vmul.f32 %v4003_v54, %v4003_v54  ;;  %v2992_v49 = vld [vmem:[%s4203_s8 + $0x30] sm:$0xff]  }
 0x13c   :  { %v2466_v62 = vadd.f32 %v2465_v17, %v2464_v9  ;;  %2837 = vmatpush3.bf16.msra.mxu1 %v4330_v50  ;;  %v2467_v12 = vpop.f32.mrb[10].mxu1  ;;  %v2988_v13 = vld [vmem:[%s4203_s8 + $0x10] sm:$0xff]  }
 0x13d   :  { %v2468_v20 = vpop.f32.mrb[11].mxu1  ;;  %2838 = vmatprep.subr.bf16.mxu1 %v3072_v55  ;;  %v2990_v12 = vld [vmem:[%s4203_s8 + $0x20] sm:$0xff]  }
 0x13e   :  { %2721 = vmatpush3.bf16.msra.mxu0 %v4309_v36  ;;  %v2991_v20 = vld [vmem:[%s4203_s8 + $0x28] sm:$0xff]  }
 0x13f   :  { %2722 = vmatprep.subr.bf16.mxu0 %v4323_v40 }
 0x140   :  { %2839 = vmatpush3.bf16.msra.mxu1 %v3636_v16 }
 0x141   :  { %2840 = vmatprep.subr.bf16.mxu1 %v3072_v55 }
 0x142   :  { %2723 = vmatpush3.bf16.msra.mxu0 %v4311_v32  ;;  %v1031_v32 = vadd.f32 %v2466_v62, %v3866_v14  ;;  %v2989_v62 = vld [vmem:[%s4203_s8 + $0x18] sm:$0xff]  }
 0x143   :  { %2846 = vmatprep.subr.bf16.mxu0 %v3072_v55 }
 0x144   :  { %2841 = vmatpush3.bf16.msra.mxu1 %v3646_v42 }
 0x145   :  { %1701 = vmatmul.mubr.bf16.vlgmr.msra.gmra.mrb[36].mxu0 %v1522_v25  ;;  %2866 = vmatprep.subr.bf16.mxu1 %v3072_v55  ;;  %v2993_v25 = vld [vmem:[%s4203_s8 + $0x38] sm:$0xff]  }
 0x146   :  { %2862 = vmatprep.mubr.msk.bf16.mxu0 %vm3073_vm0, %v3072_v55  ;;  %2847 = vmatpush3.bf16.msra.mxu0 %v2986_v5 }
 0x147   :  { %2843 = vmatmul.mubr.bf16.vlgmr.msra.gmra.mrb[36].mxu1 %v1538_v28  ;;  %2848 = vmatprep.subr.bf16.mxu0 %v3072_v55 }
 0x148   :  { %2882 = vmatprep.mubr.msk.bf16.mxu1 %vm3073_vm0, %v3072_v55 }
 0x14a   :  { %2849 = vmatpush3.bf16.msra.mxu0 %v2987_v11 }
 0x14b   :  { %2850 = vmatprep.subr.bf16.mxu0 %v3072_v55 }
 0x14e   :  { %2851 = vmatpush3.bf16.msra.mxu0 %v2988_v13 }
 0x14f   :  { %2852 = vmatprep.subr.bf16.mxu0 %v3072_v55 }
 0x152   :  { %2853 = vmatpush3.bf16.msra.mxu0 %v2989_v62 }
 0x153   :  { %2854 = vmatprep.subr.bf16.mxu0 %v3072_v55 }
 0x156   :  { %2855 = vmatpush3.bf16.msra.mxu0 %v2990_v12 }
 0x157   :  { %2856 = vmatprep.subr.bf16.mxu0 %v3072_v55 }
 0x158   :  { %v2486_v16 = vpop.f32.mrb[12].mxu0 }
 0x159   :  { %v2487_v36 = vpop.f32.mrb[13].mxu0 }
 0x15a   :  { %v2488_v40 = vadd.f32 %v2487_v36, %v2486_v16  ;;  %v2489_v41 = vpop.f32.mrb[14].mxu0  ;;  %v2508_v44 = vpop.f32.mrb[12].mxu1  ;;  %2857 = vmatpush3.bf16.msra.mxu0 %v2991_v20 }
 0x15b   :  { %v2490_v35 = vpop.f32.mrb[15].mxu0  ;;  %v2509_v43 = vpop.f32.mrb[13].mxu1  ;;  %2858 = vmatprep.subr.bf16.mxu0 %v3072_v55 }
 0x15c   :  { %v1071_v42 = vadd.f32 %v2488_v40, %v1031_v32  ;;  %v2510_v1 = vadd.f32 %v2509_v43, %v2508_v44  ;;  %v2511_v4 = vpop.f32.mrb[14].mxu1 }
 0x15d   :  { %v2512_v7 = vpop.f32.mrb[15].mxu1 }
 0x15e   :  { %v1111_v50 = vadd.f32 %v2510_v1, %v1071_v42  ;;  %2859 = vmatpush3.bf16.msra.mxu0 %v2992_v49 }
 0x15f   :  { %2860 = vmatprep.subr.bf16.mxu0 %v3072_v55 }
 0x162   :  { %2861 = vmatpush3.bf16.msra.mxu0 %v2993_v25  ;;  %v1748_v25 = vld [vmem:[%s4201_s6] sm:$0x1] }
 0x163   :  { %2886 = vmatprep.subr.bf16.mxu0 %v3072_v55 }
 0x178   :  { %v2530_v2 = vpop.f32.mrb[16].mxu0 }
 0x179   :  { %v2531_v18 = vpop.f32.mrb[17].mxu0 }
 0x17a   :  { %v2532_v19 = vadd.f32 %v2531_v18, %v2530_v2  ;;  %v2533_v31 = vpop.f32.mrb[18].mxu0  ;;  %v1190_v29 = vpop.f32.mrb[16].mxu1 }
 0x17b   :  { %v2534_v52 = vpop.f32.mrb[19].mxu0  ;;  %v2804_v23 = vpop.f32.mrb[17].mxu1 }
 0x17c   :  { %v1151_v30 = vadd.f32 %v2532_v19, %v1111_v50  ;;  %v1193_v37 = vpop.f32.mrb[18].mxu1 }
 0x17d   :  { %v2805_v48 = vpop.f32.mrb[19].mxu1 }
 0x17e   :  { %v4027_v51 = vadd.f32 %v1190_v29, %v1151_v30 }
 0x180   :  { %v1751_v57 = vadd.f32 %v4027_v51, %v4003_v54  ;;  %v1752_v60 = vmul.f32 %v4027_v51, %v4027_v51 }
 0x182   :  { %v1753_v61 = vadd.f32 %v1752_v60, %v1750_v56 }
 0x198   :  { %v2561_v34 = vpop.f32.mrb[20].mxu0 }
 0x199   :  { %v2562_v63 = vpop.f32.mrb[21].mxu0 }
 0x19a   :  { %v2563_v47 = vadd.f32 %v2562_v63, %v2561_v34  ;;  %v2564_v27 = vpop.f32.mrb[22].mxu0  ;;  %v2583_v22 = vpop.f32.mrb[20].mxu1 }
 0x19b   :  { %v2565_v33 = vpop.f32.mrb[23].mxu0  ;;  %v2584_v24 = vpop.f32.mrb[21].mxu1 }
 0x19c   :  { %v1307_v21 = vadd.f32 %v2563_v47, %v3866_v14  ;;  %v2585_v0 = vadd.f32 %v2584_v24, %v2583_v22  ;;  %v2586_v3 = vpop.f32.mrb[22].mxu1 }
 0x19d   :  { %v2587_v38 = vpop.f32.mrb[23].mxu1 }
 0x19e   :  { %v1347_v39 = vadd.f32 %v2585_v0, %v1307_v21 }
 0x1b8   :  { %v2605_v8 = vpop.f32.mrb[24].mxu0 }
 0x1b9   :  { %v2606_v10 = vpop.f32.mrb[25].mxu0 }
 0x1ba   :  { %v2607_v45 = vadd.f32 %v2606_v10, %v2605_v8  ;;  %v2608_v46 = vpop.f32.mrb[26].mxu0  ;;  %v2627_v6 = vpop.f32.mrb[24].mxu1 }
 0x1bb   :  { %v2609_v15 = vpop.f32.mrb[27].mxu0  ;;  %v2628_v26 = vpop.f32.mrb[25].mxu1 }
 0x1bc   :  { %v1387_v53 = vadd.f32 %v2607_v45, %v1347_v39  ;;  %v2629_v58 = vadd.f32 %v2628_v26, %v2627_v6  ;;  %v2630_v59 = vpop.f32.mrb[26].mxu1 }
 0x1bd   :  { %v2631_v9 = vpop.f32.mrb[27].mxu1 }
 0x1be   :  { %v1427_v17 = vadd.f32 %v2629_v58, %v1387_v53 }
 0x1d8   :  { %v1466_v28 = vpop.f32.mrb[28].mxu0 }
 0x1d9   :  { %v4068_v16 = vadd.f32 %v1466_v28, %v1427_v17  ;;  %v2824_v36 = vpop.f32.mrb[29].mxu0  ;;  %v4331_v28 = vld [vmem:[#allocation13_spill] sm:$0xff] }
 0x1da   :  { %v1469_v32 = vpop.f32.mrb[30].mxu0  ;;  %v2658_v40 = vpop.f32.mrb[28].mxu1  ;;  %v4080_v36 = vsub.s32 0, %v4331_v28  ;;  %v1925_v28 = vld [vmem:[%s4206_s11] sm:$0x1] }
 0x1db   :  { %v1754_v41 = vadd.f32 %v1751_v57, %v4068_v16  ;;  %v1755_v44 = vmul.f32 %v4068_v16, %v4068_v16  ;;  %v2825_v35 = vpop.f32.mrb[31].mxu0  ;;  %v2659_v43 = vpop.f32.mrb[29].mxu1 }
 0x1dc   :  { %v2660_v42 = vadd.f32 %v2659_v43, %v2658_v40  ;;  %v2661_v1 = vpop.f32.mrb[30].mxu1 }
 0x1dd   :  { %v1756_v4 = vadd.f32 %v1755_v44, %v1753_v61  ;;  %v2662_v7 = vpop.f32.mrb[31].mxu1 }
 0x1de   :  { %v1583_v18 = vadd.f32 %v2660_v42, %v3866_v14 }
 0x1f8   :  { %v2680_v50 = vpop.f32.mrb[32].mxu0 }
 0x1f9   :  { %v2681_v2 = vpop.f32.mrb[33].mxu0 }
 0x1fa   :  { %v2682_v19 = vadd.f32 %v2681_v2, %v2680_v50  ;;  %v2683_v31 = vpop.f32.mrb[34].mxu0  ;;  %v2702_v29 = vpop.f32.mrb[32].mxu1 }
 0x1fb   :  { %v2684_v52 = vpop.f32.mrb[35].mxu0  ;;  %v2703_v23 = vpop.f32.mrb[33].mxu1 }
 0x1fc   :  { %v1623_v30 = vadd.f32 %v2682_v19, %v1583_v18  ;;  %v2704_v37 = vadd.f32 %v2703_v23, %v2702_v29  ;;  %v2705_v48 = vpop.f32.mrb[34].mxu1 }
 0x1fd   :  { %v2706_v56 = vpop.f32.mrb[35].mxu1 }
 0x1fe   :  { %v1663_v57 = vadd.f32 %v2704_v37, %v1623_v30 }
 0x218   :  { %v2724_v60 = vpop.f32.mrb[36].mxu0 }
 0x219   :  { %v2725_v34 = vpop.f32.mrb[37].mxu0 }
 0x21a   :  { %v2726_v63 = vadd.f32 %v2725_v34, %v2724_v60  ;;  %v2727_v47 = vpop.f32.mrb[38].mxu0  ;;  %v1742_v61 = vpop.f32.mrb[36].mxu1  ;;  %v2997_v60 = vld [vmem:[%s4207_s12 + $0x18] sm:$0xff]   ;;  %v2998_v34 = vld [vmem:[%s4207_s12 + $0x20] sm:$0xff]  }
 0x21b   :  { %v2728_v27 = vpop.f32.mrb[39].mxu0  ;;  %v2844_v22 = vpop.f32.mrb[37].mxu1  ;;  %v3000_v47 = vld [vmem:[%s4207_s12 + $0x30] sm:$0xff]  }
 0x21c   :  { %v1703_v33 = vadd.f32 %v2726_v63, %v1663_v57  ;;  %v1745_v24 = vpop.f32.mrb[38].mxu1  ;;  %v2999_v63 = vld [vmem:[%s4207_s12 + $0x28] sm:$0xff]   ;;  %v2324_v27 = vld [vmem:[%s4204_s9] ss:$0 sm:$0xff] }
 0x21d   :  { %v2845_v14 = vpop.f32.mrb[39].mxu1 }
 0x21e   :  { %v1743_v21 = vadd.f32 %v1742_v61, %v1703_v33  ;;  %v3001_v61 = vld [vmem:[%s4207_s12 + $0x38] sm:$0xff]  }
 0x220   :  { %v1757_v0 = vadd.f32 %v1754_v41, %v1743_v21  ;;  %v1758_v3 = vmul.f32 %v1743_v21, %v1743_v21  ;;  %v1749_v41 = vld [vmem:[%s4202_s7] sm:$0x1] }
 0x222   :  { %v1759_v38 = vadd.f32 %v1758_v3, %v1756_v4  ;;  %v1761_v39 = vsel %vm1760_vm1, %v1757_v0, 0.0 }
 0x223   :  { %v1762_v5 = vrot.slane %v1761_v39, 4 }
 0x224   :  { %v1769_v8 = vsel %vm1760_vm1, %v1759_v38, 0.0 }
 0x225   :  { %v1763_v10 = vadd.f32 %v1762_v5, %v1761_v39  ;;  %v1770_v11 = vrot.slane %v1769_v8, 4 }
 0x227   :  { %v1764_v45 = vrot.slane %v1763_v10, 2  ;;  %v1771_v46 = vadd.f32 %v1770_v11, %v1769_v8 }
 0x229   :  { %v1765_v6 = vadd.f32 %v1764_v45, %v1763_v10  ;;  %v1772_v15 = vrot.slane %v1771_v46, 2 }
 0x22b   :  { %v1766_v26 = vrot.slane %v1765_v6, 1  ;;  %v1773_v53 = vadd.f32 %v1772_v15, %v1771_v46 }
 0x22d   :  { %v1767_v58 = vadd.f32 %v1766_v26, %v1765_v6  ;;  %v1774_v59 = vrot.slane %v1773_v53, 1 }
 0x22f   :  { %v1768_v9 = vmul.f32 0.125, %v1767_v58  ;;  %v1775_v13 = vadd.f32 %v1774_v59, %v1773_v53 }
 0x231   :  { %v1776_v17 = vmul.f32 0.125, %v1775_v13  ;;  %v1777_v62 = vmul.f32 %v1768_v9, %v1768_v9 }
 0x233   :  { %v1778_v12 = vsub.f32 %v1776_v17, %v1777_v62 }
 0x235   :  { %v1779_v20 = vmax.f32 %v1778_v12, 0.0 }
 0x237   :  { %v1780_v49 = vadd.f32 1e-05, %v1779_v20  ;;  %v1924_v20 = vld [vmem:[%s4205_s10] sm:$0x1] }
 0x239   :  { %3010 = vrsqrt.f32 %v1780_v49 }
 0x243   :  { %v3011_v32 = vpop.eup %3010 }
 0x244   :  { %v1782_v40 = vmul.f32 %v3011_v32, %v1748_v25 }
 0x246   :  { %v1783_v44 = vmul.f32 %v1782_v40, %v1768_v9  ;;  %v1789_v35 = vrot.slane %v1782_v40, %v4080_v36 }
 0x248   :  { %v1784_v43 = vsub.f32 %v1749_v41, %v1783_v44  ;;  %v1803_v42 = vmul.f32 %v1789_v35, %v4068_v16  ;;  %v1806_v1 = vmul.f32 %v1789_v35, %v1743_v21  ;;  %v1791_v4 = vmul.f32 %v1789_v35, %v4003_v54  ;;  %v2994_v54 = vld [vmem:[%s4207_s12] sm:$0xff]   ;;  %v2996_v16 = vld [vmem:[%s4207_s12 + $0x10] sm:$0xff]  }
 0x249   :  { %v1800_v7 = vmul.f32 %v1789_v35, %v4027_v51  ;;  %2867 = vmatpush3.bf16.msra.mxu1 %v2994_v54  ;;  %v2995_v51 = vld [vmem:[%s4207_s12 + $0x8] sm:$0xff]  }
 0x24a   :  { %v1796_v50 = vrot.slane %v1784_v43, %v4080_v36  ;;  %2868 = vmatprep.subr.bf16.mxu1 %v3072_v55 }
 0x24c   :  { %v1804_v2 = vadd.f32 %v1803_v42, %v1796_v50  ;;  %v1807_v18 = vadd.f32 %v1806_v1, %v1796_v50  ;;  %v1798_v19 = vadd.f32 %v1796_v50, %v1791_v4  ;;  %v1801_v31 = vadd.f32 %v1800_v7, %v1796_v50  ;;  %v3002_v4 = vld [vmem:[%s4211_s16] sm:$0xff]   ;;  %v3003_v7 = vld [vmem:[%s4211_s16 + $0x8] sm:$0xff]   ;;  %v3004_v50 = vld [vmem:[%s4211_s16 + $0x10] sm:$0xff]  }
 0x24d   :  { %2869 = vmatpush3.bf16.msra.mxu1 %v2995_v51 }
 0x24e   :  { %v1805_v29 = vmax.f32 %v1804_v2, 0.0  ;;  %v1808_v52 = vmax.f32 %v1807_v18, 0.0  ;;  %v1799_v23 = vmax.f32 %v1798_v19, 0.0  ;;  %v1802_v30 = vmax.f32 %v1801_v31, 0.0  ;;  %2870 = vmatprep.subr.bf16.mxu1 %v3072_v55  ;;  %v3005_v2 = vld [vmem:[%s4211_s16 + $0x18] sm:$0xff]   ;;  %v3006_v18 = vld [vmem:[%s4211_s16 + $0x20] sm:$0xff]  }
 0x24f   :  { %v3007_v19 = vld [vmem:[%s4211_s16 + $0x28] sm:$0xff]   ;;  %v3008_v31 = vld [vmem:[%s4211_s16 + $0x30] sm:$0xff]  }
 0x250   :  { %v1810_v37 = vmax.f32 %v1805_v29, %v1808_v52  ;;  %v1809_v48 = vmax.f32 %v1799_v23, %v1802_v30  ;;  %v3009_v29 = vld [vmem:[%s4211_s16 + $0x38] sm:$0xff]   ;;  %v2333_v52 = vld [vmem:[%s4208_s13] ss:$0 sm:$0xff] }
 0x251   :  { %2871 = vmatpush3.bf16.msra.mxu1 %v2996_v16 }
 0x252   :  { %v1811_v56 = vmax.f32 %v1809_v48, %v1810_v37  ;;  %2872 = vmatprep.subr.bf16.mxu1 %v3072_v55 }
 0x254   :  { %v1812_v57 = vpack.c.bf16 %v1811_v56, %v1811_v56 }
 0x255   :  { %2873 = vmatpush3.bf16.msra.mxu1 %v2997_v60 }
 0x256   :  { %2863 = vmatmul.mubr.bf16.vlgmr.msra.gmra.mrb[40].mxu0 %v1812_v57  ;;  %2874 = vmatprep.subr.bf16.mxu1 %v3072_v55 }
 0x257   :  { %2902 = vmatprep.mubr.msk.bf16.mxu0 %vm3073_vm0, %v3072_v55  ;;  %2887 = vmatpush3.bf16.msra.mxu0 %v3002_v4 }
 0x258   :  { %2888 = vmatprep.subr.bf16.mxu0 %v3072_v55 }
 0x259   :  { %2875 = vmatpush3.bf16.msra.mxu1 %v2998_v34 }
 0x25a   :  { %2876 = vmatprep.subr.bf16.mxu1 %v3072_v55 }
 0x25b   :  { %2889 = vmatpush3.bf16.msra.mxu0 %v3003_v7 }
 0x25c   :  { %2890 = vmatprep.subr.bf16.mxu0 %v3072_v55 }
 0x25d   :  { %2877 = vmatpush3.bf16.msra.mxu1 %v2999_v63 }
 0x25e   :  { %2878 = vmatprep.subr.bf16.mxu1 %v3072_v55 }
 0x25f   :  { %2891 = vmatpush3.bf16.msra.mxu0 %v3004_v50 }
 0x260   :  { %2892 = vmatprep.subr.bf16.mxu0 %v3072_v55 }
 0x261   :  { %2879 = vmatpush3.bf16.msra.mxu1 %v3000_v47 }
 0x262   :  { %2880 = vmatprep.subr.bf16.mxu1 %v3072_v55 }
 0x263   :  { %2893 = vmatpush3.bf16.msra.mxu0 %v3005_v2 }
 0x264   :  { %2894 = vmatprep.subr.bf16.mxu0 %v3072_v55 }
 0x265   :  { %2881 = vmatpush3.bf16.msra.mxu1 %v3001_v61 }
 0x267   :  { %2895 = vmatpush3.bf16.msra.mxu0 %v3006_v18 }
 0x268   :  { %2896 = vmatprep.subr.bf16.mxu0 %v3072_v55 }
 0x26b   :  { %2897 = vmatpush3.bf16.msra.mxu0 %v3007_v19 }
 0x26c   :  { %2898 = vmatprep.subr.bf16.mxu0 %v3072_v55 }
 0x26f   :  { %2899 = vmatpush3.bf16.msra.mxu0 %v3008_v31 }
 0x270   :  { %2900 = vmatprep.subr.bf16.mxu0 %v3072_v55 }
 0x273   :  { %2901 = vmatpush3.bf16.msra.mxu0 %v3009_v29 }
 0x329   :  { %v1918_v22 = vpop.f32.mrb[40].mxu0 }
 0x32a   :  { %v1919_v33 = vadd.f32 %v2324_v27, %v1918_v22  ;;  %v2864_v24 = vpop.f32.mrb[41].mxu0 }
 0x32b   :  { %v1921_v14 = vpop.f32.mrb[42].mxu0 }
 0x32c   :  { %v1926_v21 = vmul.f32 %v1919_v33, %v1919_v33  ;;  %v1927_v0 = vsel %vm1760_vm1, %v1919_v33, 0.0  ;;  %v2865_v3 = vpop.f32.mrb[43].mxu0 }
 0x32d   :  { %v1928_v38 = vrot.slane %v1927_v0, 4 }
 0x32e   :  { %v1935_v39 = vsel %vm1760_vm1, %v1926_v21, 0.0 }
 0x32f   :  { %v1929_v5 = vadd.f32 %v1928_v38, %v1927_v0  ;;  %v1936_v8 = vrot.slane %v1935_v39, 4 }
 0x331   :  { %v1930_v10 = vrot.slane %v1929_v5, 2  ;;  %v1937_v11 = vadd.f32 %v1936_v8, %v1935_v39  ;;  %v2078_v8 = vld [vmem:[%s4209_s14] sm:$0x1]  ;;  %s3074_s14 = smov [#allocation2]  }
 0x332   :  { %s2239_s12 = sshll.u32 %s3074_s14, 4  ;;  %s2240_s12 = int_to_ptr.vmem [resolvable:$true] %s2239_s12 }
 0x333   :  { %v1931_v45 = vadd.f32 %v1930_v10, %v1929_v5  ;;  %v1938_v46 = vrot.slane %v1937_v11, 2  ;;  %p3052_p1 = scmp.lt.s32.totalorder %s2240_s12, %s2240_s12 }
 0x335   :  { %v1932_v6 = vrot.slane %v1931_v45, 1  ;;  %v1939_v15 = vadd.f32 %v1938_v46, %v1937_v11 }
 0x337   :  { %v1933_v26 = vadd.f32 %v1932_v6, %v1931_v45  ;;  %v1940_v53 = vrot.slane %v1939_v15, 1  ;;  %v2079_v45 = vld [vmem:[%s4210_s15] sm:$0x1]  ;;  %s3047_s15 = scalar_lea.vmem %s2240_s12, 32 }
 0x338   :  { %p3048_p0 = scmp.ne.s32.totalorder %s2240_s12, %s3047_s15  ;;  %p3053_p2 = scmp.lt.s32.totalorder %s3047_s15, %s3047_s15 }
 0x339   :  { %v1934_v58 = vmul.f32 0.5, %v1933_v26  ;;  %v1941_v59 = vadd.f32 %v1940_v53, %v1939_v15 }
 0x33a   :  { %p3054_p3 = por %p3053_p2, %p3052_p1 }
 0x33b   :  { %v1942_v9 = vmul.f32 0.5, %v1941_v59  ;;  %v1943_v13 = vmul.f32 %v1934_v58, %v1934_v58 }
 0x33c   :  { %p3055_p4 = pnand %p3054_p3, %p3048_p0 }
 0x33d   :  { %v1944_v17 = vsub.f32 %v1942_v9, %v1943_v13  ;;  %v2342_v13 = vld [vmem:[%s4212_s17] ss:$0 sm:$0xff] }
 0x33f   :  { %v1945_v62 = vmax.f32 %v1944_v17, 0.0 }
 0x341   :  { %v1946_v12 = vadd.f32 1e-05, %v1945_v62 }
 0x343   :  { %3012 = vrsqrt.f32 %v1946_v12 }
 0x34d   :  { %v3013_v49 = vpop.eup %3012 }
 0x34e   :  { %v1948_v25 = vmul.f32 %v3013_v49, %v1924_v20 }
 0x350   :  { %v1949_v32 = vmul.f32 %v1948_v25, %v1934_v58  ;;  %v1955_v40 = vrot.slane %v1948_v25, %v4080_v36 }
 0x352   :  { %v1950_v41 = vsub.f32 %v1925_v28, %v1949_v32  ;;  %v1957_v44 = vmul.f32 %v1955_v40, %v1919_v33 }
 0x354   :  { %v1962_v35 = vrot.slane %v1950_v41, %v4080_v36 }
 0x356   :  { %v1964_v43 = vadd.f32 %v1962_v35, %v1957_v44 }
 0x358   :  { %v1965_v42 = vmax.f32 %v1964_v43, 0.0 }
 0x35a   :  { %v1966_v1 = vpack.c.bf16 %v1965_v42, %v1965_v42 }
 0x35c   :  { %2883 = vmatmul.mubr.bf16.vlgmr.msra.gmra.mrb[40].mxu1 %v1966_v1 }
 0x42f   :  { %v2072_v23 = vpop.f32.mrb[40].mxu1 }
 0x430   :  { %v2073_v30 = vadd.f32 %v2333_v52, %v2072_v23  ;;  %v2884_v37 = vpop.f32.mrb[41].mxu1 }
 0x431   :  { %v2075_v48 = vpop.f32.mrb[42].mxu1 }
 0x432   :  { %v2080_v56 = vmul.f32 %v2073_v30, %v2073_v30  ;;  %v2081_v57 = vsel %vm1760_vm1, %v2073_v30, 0.0  ;;  %v2885_v54 = vpop.f32.mrb[43].mxu1 }
 0x433   :  { %v2082_v51 = vrot.slane %v2081_v57, 4 }
 0x434   :  { %v2089_v55 = vsel %vm1760_vm1, %v2080_v56, 0.0 }
 0x435   :  { %v2083_v16 = vadd.f32 %v2082_v51, %v2081_v57  ;;  %v2090_v60 = vrot.slane %v2089_v55, 4 }
 0x437   :  { %v2084_v34 = vrot.slane %v2083_v16, 2  ;;  %v2091_v63 = vadd.f32 %v2090_v60, %v2089_v55 }
 0x439   :  { %v2085_v47 = vadd.f32 %v2084_v34, %v2083_v16  ;;  %v2092_v61 = vrot.slane %v2091_v63, 2 }
 0x43b   :  { %v2086_v27 = vrot.slane %v2085_v47, 1  ;;  %v2093_v22 = vadd.f32 %v2092_v61, %v2091_v63 }
 0x43d   :  { %v2087_v33 = vadd.f32 %v2086_v27, %v2085_v47  ;;  %v2094_v24 = vrot.slane %v2093_v22, 1 }
 0x43f   :  { %v2088_v14 = vmul.f32 0.5, %v2087_v33  ;;  %v2095_v21 = vadd.f32 %v2094_v24, %v2093_v22 }
 0x441   :  { %v2096_v0 = vmul.f32 0.5, %v2095_v21  ;;  %v2097_v3 = vmul.f32 %v2088_v14, %v2088_v14 }
 0x443   :  { %v2098_v38 = vsub.f32 %v2096_v0, %v2097_v3 }
 0x445   :  { %v2099_v39 = vmax.f32 %v2098_v38, 0.0 }
 0x447   :  { %v2100_v5 = vadd.f32 1e-05, %v2099_v39 }
 0x449   :  { %3014 = vrsqrt.f32 %v2100_v5 }
 0x453   :  { %v3015_v10 = vpop.eup %3014 }
 0x454   :  { %v2102_v11 = vmul.f32 %v3015_v10, %v2078_v8 }
 0x456   :  { %v2103_v46 = vmul.f32 %v2102_v11, %v2088_v14  ;;  %v2109_v6 = vrot.slane %v2102_v11, %v4080_v36 }
 0x458   :  { %v2104_v15 = vsub.f32 %v2079_v45, %v2103_v46  ;;  %v2111_v26 = vmul.f32 %v2109_v6, %v2073_v30 }
 0x45a   :  { %v2116_v53 = vrot.slane %v2104_v15, %v4080_v36 }
 0x45c   :  { %v2118_v58 = vadd.f32 %v2116_v53, %v2111_v26 }
 0x45e   :  { %v2119_v59 = vmax.f32 %v2118_v58, 0.0 }
 0x460   :  { %v2120_v9 = vpack.c.bf16 %v2119_v59, %v2119_v59 }
 0x462   :  { %2903 = vmatmul.mubr.bf16.vlgmr.msra.gmra.mrb[44].mxu0 %v2120_v9 }
 0x535   :  { %v2226_v17 = vpop.f32.mrb[44].mxu0 }
 0x536   :  { %v2227_v62 = vadd.f32 %v2342_v13, %v2226_v17  ;;  %v2904_v12 = vpop.f32.mrb[45].mxu0 }
 0x537   :  { %v2229_v20 = vpop.f32.mrb[46].mxu0 }
 0x538   :  { %2232 = vst [vmem:[#allocation2] sm:$0x3] %v2227_v62  ;;  %v2905_v49 = vpop.f32.mrb[47].mxu0 }
 0x539   :  { %3058 = shalt.err (!%p3055_p4)
}
 0x53a   :  { %s3059_s17 = scalar_lea.hbm %s4213_s18, 32 }
 0x53b   :  { %p3060_p5 = scmp.ne.s32.totalorder %s4213_s18, %s3059_s17  ;;  %p3063_p6 = scmp.lt.u32.totalorder %s3059_s17, %s4213_s18 }
 0x53d   :  { %p3065_p7 = pnand %p3063_p6, %p3060_p5 }
 0x53f   :  { %3068 = shalt.err (!%p3065_p7)
}
 0x540   :  { %2242 = dma.vmem_to_hbm [thread:$0]  %s2240_s12, 32, %s4213_s18, [#allocation3]  }
 0x541   :  { %3069 = dma.done.wait [#allocation3], 32  }
 0x542   :  { %3070 = vsyncadd [#allocation3], 4294967264 }
 0x543   :  { %2246 = vsyncpa [#allocation3], 1 }

// kernel: lenet5_forward.4
= control target key start
LH: loop header
LB: loop body
LE: loop exit
PB: predicated region body
PF: predicated region fallthrough
CT: control target
= control target key end

     0   :  { %s11991_s4 = inlined_call_operand.vmem [shape: bf16[3200,128], index: 4, kind: input, shape index: {}]   ;;  %s11992_s0 = inlined_call_operand.vmem [shape: bf16[32,3200], index: 0, kind: input, shape index: {}]   ;;  %s11993_s1 = inlined_call_operand.vmem [shape: bf16[32,3200], index: 1, kind: input, shape index: {}]   ;;  %s11994_s5 = inlined_call_operand.vmem [shape: f32[1,128], index: 5, kind: input, shape index: {}]   ;;  %s11995_s2 = inlined_call_operand.vmem [shape: bf16[32,3200], index: 2, kind: input, shape index: {}]   ;;  %s11996_s3 = inlined_call_operand.vmem [shape: bf16[32,3200], index: 3, kind: input, shape index: {}]   ;;  %s11997_s6 = inlined_call_operand.vmem [shape: f32[1,128], index: 6, kind: input, shape index: {}]   ;;  %s11998_s7 = inlined_call_operand.vmem [shape: f32[1,128], index: 7, kind: input, shape index: {}]   ;;  %s11999_s8 = inlined_call_operand.vmem [shape: bf16[32,128], index: 8, kind: output, shape index: {}]  }
   0x1   :  { %v7451_v0 = vld [vmem:[%s11991_s4 + $0x40] sm:$0xff]   ;;  %v7455_v4 = vld [vmem:[%s11991_s4 + $0x48] sm:$0xff]   ;;  %v7459_v8 = vld [vmem:[%s11991_s4 + $0x50] sm:$0xff]  }
   0x2   :  { %v7452_v1 = vld [vmem:[%s11991_s4] sm:$0xff]   ;;  %5987 = vmatprep.subr.bf16.mxu0 %v7451_v0  ;;  %v7456_v5 = vld [vmem:[%s11991_s4 + $0x8] sm:$0xff]   ;;  %v7460_v9 = vld [vmem:[%s11991_s4 + $0x10] sm:$0xff]  }
   0x3   :  { %v7453_v2 = vld [vmem:[%s11991_s4 + $0xc0] sm:$0xff]   ;;  %5988 = vmatpush3.bf16.msra.mxu0 %v7452_v1  ;;  %v7457_v6 = vld [vmem:[%s11991_s4 + $0xc8] sm:$0xff]   ;;  %v7461_v10 = vld [vmem:[%s11991_s4 + $0xd0] sm:$0xff]  }
   0x4   :  { %v7454_v3 = vld [vmem:[%s11991_s4 + $0x80] sm:$0xff]   ;;  %6015 = vmatprep.subr.bf16.mxu1 %v7453_v2  ;;  %5989 = vmatprep.subr.bf16.mxu0 %v7455_v4  ;;  %v7458_v7 = vld [vmem:[%s11991_s4 + $0x88] sm:$0xff]   ;;  %v7462_v11 = vld [vmem:[%s11991_s4 + $0x90] sm:$0xff]  }
   0x5   :  { %6016 = vmatpush3.bf16.msra.mxu1 %v7454_v3  ;;  %v7463_v12 = vld [vmem:[%s11991_s4 + $0x58] sm:$0xff]   ;;  %v7467_v16 = vld [vmem:[%s11991_s4 + $0x60] sm:$0xff]   ;;  %v7471_v20 = vld [vmem:[%s11991_s4 + $0x68] sm:$0xff]  }
   0x6   :  { %6017 = vmatprep.subr.bf16.mxu1 %v7457_v6  ;;  %v7464_v13 = vld [vmem:[%s11991_s4 + $0x18] sm:$0xff]   ;;  %v7468_v17 = vld [vmem:[%s11991_s4 + $0x20] sm:$0xff]   ;;  %v7472_v21 = vld [vmem:[%s11991_s4 + $0x28] sm:$0xff]  }
   0x7   :  { %5990 = vmatpush3.bf16.msra.mxu0 %v7456_v5  ;;  %v7465_v14 = vld [vmem:[%s11991_s4 + $0xd8] sm:$0xff]   ;;  %v7469_v18 = vld [vmem:[%s11991_s4 + $0xe0] sm:$0xff]   ;;  %v7473_v22 = vld [vmem:[%s11991_s4 + $0xe8] sm:$0xff]  }
   0x8   :  { %5991 = vmatprep.subr.bf16.mxu0 %v7459_v8  ;;  %v7466_v15 = vld [vmem:[%s11991_s4 + $0x98] sm:$0xff]   ;;  %v7470_v19 = vld [vmem:[%s11991_s4 + $0xa0] sm:$0xff]   ;;  %v7474_v23 = vld [vmem:[%s11991_s4 + $0xa8] sm:$0xff]  }
   0x9   :  { %6018 = vmatpush3.bf16.msra.mxu1 %v7458_v7  ;;  %v7475_v24 = vld [vmem:[%s11991_s4 + $0x70] sm:$0xff]   ;;  %v7479_v28 = vld [vmem:[%s11991_s4 + $0x78] sm:$0xff]   ;;  %v7482_v31 = vld [vmem:[%s11992_s0] ss:$100 sps:$4 sm:$0xff]  }
   0xa   :  { %6019 = vmatprep.subr.bf16.mxu1 %v7461_v10  ;;  %v7476_v25 = vld [vmem:[%s11991_s4 + $0x30] sm:$0xff]   ;;  %v7480_v29 = vld [vmem:[%s11991_s4 + $0x38] sm:$0xff]   ;;  %v7484_v32 = vld [vmem:[%s11992_s0 + $0x4] ss:$100 sps:$4 sm:$0xff]  }
   0xb   :  { %5992 = vmatpush3.bf16.msra.mxu0 %v7460_v9  ;;  %v7477_v26 = vld [vmem:[%s11991_s4 + $0xf0] sm:$0xff]   ;;  %v7481_v30 = vld [vmem:[%s11991_s4 + $0xf8] sm:$0xff]   ;;  %1973 = vmatprep.mubr.bf16.mxu0 %v7484_v32  ;;  %v7486_v34 = vld [vmem:[%s11991_s4 + $0x140] sm:$0xff]  }
   0xc   :  { %5993 = vmatprep.subr.bf16.mxu0 %v7463_v12  ;;  %v7478_v27 = vld [vmem:[%s11991_s4 + $0xb0] sm:$0xff]   ;;  %v7485_v33 = vld [vmem:[%s11991_s4 + $0xb8] sm:$0xff]   ;;  %v7487_v35 = vld [vmem:[%s11992_s0 + $0x8] ss:$100 sps:$4 sm:$0xff]  }
   0xd   :  { %6020 = vmatpush3.bf16.msra.mxu1 %v7462_v11  ;;  %v7489_v36 = vld [vmem:[%s11992_s0 + $0xc] ss:$100 sps:$4 sm:$0xff]   ;;  %v7490_v37 = vld [vmem:[%s11991_s4 + $0x100] sm:$0xff]   ;;  %v7501_v48 = vld [vmem:[%s11991_s4 + $0x158] sm:$0xff]  }
   0xe   :  { %6021 = vmatprep.subr.bf16.mxu1 %v7465_v14  ;;  %2022 = vmatprep.mubr.bf16.mxu1 %v7489_v36  ;;  %v7491_v38 = vld [vmem:[%s11991_s4 + $0x1c0] sm:$0xff]   ;;  %v7493_v40 = vld [vmem:[%s11991_s4 + $0x148] sm:$0xff]   ;;  %v7497_v44 = vld [vmem:[%s11991_s4 + $0x150] sm:$0xff]  }
   0xf   :  { %5994 = vmatpush3.bf16.msra.mxu0 %v7464_v13  ;;  %v7492_v39 = vld [vmem:[%s11991_s4 + $0x180] sm:$0xff]   ;;  %v7494_v41 = vld [vmem:[%s11991_s4 + $0x108] sm:$0xff]   ;;  %v7498_v45 = vld [vmem:[%s11991_s4 + $0x110] sm:$0xff]  }
  0x10   :  { %5995 = vmatprep.subr.bf16.mxu0 %v7467_v16  ;;  %v7495_v42 = vld [vmem:[%s11991_s4 + $0x1c8] sm:$0xff]   ;;  %v7499_v46 = vld [vmem:[%s11991_s4 + $0x1d0] sm:$0xff]   ;;  %v7502_v49 = vld [vmem:[%s11991_s4 + $0x118] sm:$0xff]  }
  0x11   :  { %6022 = vmatpush3.bf16.msra.mxu1 %v7466_v15  ;;  %v7496_v43 = vld [vmem:[%s11991_s4 + $0x188] sm:$0xff]   ;;  %v7500_v47 = vld [vmem:[%s11991_s4 + $0x190] sm:$0xff]   ;;  %v7503_v50 = vld [vmem:[%s11991_s4 + $0x1d8] sm:$0xff]  }
  0x12   :  { %6023 = vmatprep.subr.bf16.mxu1 %v7469_v18  ;;  %v7504_v51 = vld [vmem:[%s11991_s4 + $0x198] sm:$0xff]   ;;  %v7505_v52 = vld [vmem:[%s11991_s4 + $0x160] sm:$0xff]   ;;  %v7509_v56 = vld [vmem:[%s11991_s4 + $0x168] sm:$0xff]  }
  0x13   :  { %5996 = vmatpush3.bf16.msra.mxu0 %v7468_v17  ;;  %v7506_v53 = vld [vmem:[%s11991_s4 + $0x120] sm:$0xff]   ;;  %v7510_v57 = vld [vmem:[%s11992_s0 + $0xcc] ss:$100 sps:$4 sm:$0xff]   ;;  %v7515_v61 = vld [vmem:[%s11992_s0 + $0xd4] ss:$100 sps:$4 sm:$0xff]  }
  0x14   :  { %5997 = vmatprep.subr.bf16.mxu0 %v7471_v20  ;;  %v7507_v54 = vld [vmem:[%s11991_s4 + $0x1e0] sm:$0xff]   ;;  %v7512_v58 = vld [vmem:[%s11991_s4 + $0x128] sm:$0xff]   ;;  %v7518_v63 = vld [vmem:[%s11992_s0 + $0xd0] ss:$100 sps:$4 sm:$0xff]  }
  0x15   :  { %6024 = vmatpush3.bf16.msra.mxu1 %v7470_v19  ;;  %v7508_v55 = vld [vmem:[%s11991_s4 + $0x1a0] sm:$0xff]   ;;  %v7513_v59 = vld [vmem:[%s11992_s0 + $0xc8] ss:$100 sps:$4 sm:$0xff]   ;;  %v7519_v0 = vld [vmem:[%s11991_s4 + $0x170] sm:$0xff]  }
  0x16   :  { %6025 = vmatprep.subr.bf16.mxu1 %v7473_v22  ;;  %v7514_v60 = vld [vmem:[%s11991_s4 + $0x1e8] sm:$0xff]   ;;  %v7520_v1 = vld [vmem:[%s11991_s4 + $0x130] sm:$0xff]   ;;  %v7523_v4 = vld [vmem:[%s11991_s4 + $0x178] sm:$0xff]  }
  0x17   :  { %5998 = vmatpush3.bf16.msra.mxu0 %v7472_v21  ;;  %v7517_v62 = vld [vmem:[%s11991_s4 + $0x1a8] sm:$0xff]   ;;  %v7521_v2 = vld [vmem:[%s11991_s4 + $0x1f0] sm:$0xff]   ;;  %v7524_v5 = vld [vmem:[%s11991_s4 + $0x138] sm:$0xff]  }
  0x18   :  { %5999 = vmatprep.subr.bf16.mxu0 %v7475_v24  ;;  %v7522_v3 = vld [vmem:[%s11991_s4 + $0x1b0] sm:$0xff]   ;;  %v7525_v6 = vld [vmem:[%s11991_s4 + $0x1f8] sm:$0xff]   ;;  %v7530_v10 = vld [vmem:[%s11991_s4 + $0x240] sm:$0xff]  }
  0x19   :  { %6026 = vmatpush3.bf16.msra.mxu1 %v7474_v23  ;;  %v7526_v7 = vld [vmem:[%s11992_s0 + $0x10] ss:$100 sps:$4 sm:$0xff]   ;;  %v7529_v9 = vld [vmem:[%s11991_s4 + $0x1b8] sm:$0xff]   ;;  %v7534_v13 = vld [vmem:[%s11991_s4 + $0x200] sm:$0xff]  }
  0x1a   :  { %6027 = vmatprep.subr.bf16.mxu1 %v7477_v26  ;;  %v7528_v8 = vld [vmem:[%s11992_s0 + $0x14] ss:$100 sps:$4 sm:$0xff]   ;;  %v7533_v12 = vld [vmem:[%s11992_s0 + $0x1c] ss:$100 sps:$4 sm:$0xff]   ;;  %v7537_v16 = vld [vmem:[%s11991_s4 + $0x248] sm:$0xff]  }
  0x1b   :  { %6000 = vmatpush3.bf16.msra.mxu0 %v7476_v25  ;;  %v7531_v11 = vld [vmem:[%s11992_s0 + $0x18] ss:$100 sps:$4 sm:$0xff]   ;;  %v7535_v14 = vld [vmem:[%s11991_s4 + $0x2c0] sm:$0xff]   ;;  %v7538_v17 = vld [vmem:[%s11991_s4 + $0x208] sm:$0xff]  }
  0x1c   :  { %6001 = vmatprep.subr.bf16.mxu0 %v7479_v28  ;;  %v7536_v15 = vld [vmem:[%s11991_s4 + $0x280] sm:$0xff]   ;;  %v7539_v18 = vld [vmem:[%s11991_s4 + $0x2c8] sm:$0xff]   ;;  %v7543_v21 = vld [vmem:[%s11992_s0 + $0xd8] ss:$100 sps:$4 sm:$0xff]  }
  0x1d   :  { %6028 = vmatpush3.bf16.msra.mxu1 %v7478_v27  ;;  %v7540_v19 = vld [vmem:[%s11992_s0 + $0xdc] ss:$100 sps:$4 sm:$0xff]   ;;  %v7542_v20 = vld [vmem:[%s11991_s4 + $0x288] sm:$0xff]   ;;  %v7544_v22 = vld [vmem:[%s11991_s4 + $0x250] sm:$0xff]  }
  0x1e   :  { %6029 = vmatprep.subr.bf16.mxu1 %v7481_v30  ;;  %v7545_v23 = vld [vmem:[%s11992_s0 + $0xe4] ss:$100 sps:$4 sm:$0xff]   ;;  %v7547_v24 = vld [vmem:[%s11991_s4 + $0x210] sm:$0xff]   ;;  %v7551_v28 = vld [vmem:[%s11991_s4 + $0x258] sm:$0xff]  }
  0x1f   :  { %6002 = vmatpush3.bf16.msra.mxu0 %v7480_v29  ;;  %v7548_v25 = vld [vmem:[%s11992_s0 + $0xe0] ss:$100 sps:$4 sm:$0xff]   ;;  %v7549_v26 = vld [vmem:[%s11991_s4 + $0x2d0] sm:$0xff]   ;;  %v7552_v29 = vld [vmem:[%s11991_s4 + $0x218] sm:$0xff]  }
  0x20   :  { %6043 = vmatprep.subr.bf16.mxu0 %v7486_v34  ;;  %v7550_v27 = vld [vmem:[%s11991_s4 + $0x290] sm:$0xff]   ;;  %v7553_v30 = vld [vmem:[%s11991_s4 + $0x2d8] sm:$0xff]   ;;  %v7555_v32 = vld [vmem:[%s11991_s4 + $0x260] sm:$0xff]  }
  0x21   :  { %6030 = vmatpush3.bf16.msra.mxu1 %v7485_v33  ;;  %v7556_v33 = vld [vmem:[%s11991_s4 + $0x220] sm:$0xff]   ;;  %v7559_v36 = vld [vmem:[%s11991_s4 + $0x268] sm:$0xff]  }
  0x22   :  { %1974 = vmatmul.mubr.bf16.vlgmr.msra.gmra.mrb[0].mxu0 %v7482_v31  ;;  %6071 = vmatprep.subr.bf16.mxu1 %v7491_v38  ;;  %v7554_v31 = vld [vmem:[%s11991_s4 + $0x298] sm:$0xff]   ;;  %v7557_v34 = vld [vmem:[%s11991_s4 + $0x2e0] sm:$0xff]   ;;  %v7561_v38 = vld [vmem:[%s11991_s4 + $0x2e8] sm:$0xff]  }
  0x23   :  { %6044 = vmatpush3.bf16.msra.mxu0 %v7490_v37  ;;  %1981 = vmatprep.mubr.bf16.mxu0 %v7510_v57  ;;  %v7560_v37 = vld [vmem:[%s11991_s4 + $0x228] sm:$0xff]  }
  0x24   :  { %2023 = vmatmul.mubr.bf16.vlgmr.msra.gmra.mrb[0].mxu1 %v7487_v35  ;;  %6045 = vmatprep.subr.bf16.mxu0 %v7493_v40  ;;  %v7558_v35 = vld [vmem:[%s11991_s4 + $0x2a0] sm:$0xff]   ;;  %v7563_v40 = vld [vmem:[%s11991_s4 + $0x270] sm:$0xff]   ;;  %v7582_v57 = vld [vmem:[%s11991_s4 + $0x308] sm:$0xff]  }
  0x25   :  { %6072 = vmatpush3.bf16.msra.mxu1 %v7492_v39  ;;  %2030 = vmatprep.mubr.bf16.mxu1 %v7515_v61  ;;  %v7562_v39 = vld [vmem:[%s11991_s4 + $0x2a8] sm:$0xff]  }
  0x26   :  { %6073 = vmatprep.subr.bf16.mxu1 %v7495_v42  ;;  %v7565_v42 = vld [vmem:[%s11991_s4 + $0x2f0] sm:$0xff]   ;;  %v7587_v61 = vld [vmem:[%s11992_s0 + $0xe8] ss:$100 sps:$4 sm:$0xff]  }
  0x27   :  { %6046 = vmatpush3.bf16.msra.mxu0 %v7494_v41  ;;  %v7564_v41 = vld [vmem:[%s11991_s4 + $0x230] sm:$0xff]  }
  0x28   :  { %6047 = vmatprep.subr.bf16.mxu0 %v7497_v44  ;;  %v7567_v44 = vld [vmem:[%s11991_s4 + $0x278] sm:$0xff]  }
  0x29   :  { %6074 = vmatpush3.bf16.msra.mxu1 %v7496_v43  ;;  %v7566_v43 = vld [vmem:[%s11991_s4 + $0x2b0] sm:$0xff]  }
  0x2a   :  { %6075 = vmatprep.subr.bf16.mxu1 %v7499_v46  ;;  %1982 = vmatmul.mubr.bf16.gmra.mrb[4].mxu0 %v7513_v59  ;;  %v7569_v46 = vld [vmem:[%s11991_s4 + $0x2f8] sm:$0xff]   ;;  %v7584_v59 = vld [vmem:[%s11992_s0 + $0xec] ss:$100 sps:$4 sm:$0xff]  }
  0x2b   :  { %6048 = vmatpush3.bf16.msra.mxu0 %v7498_v45  ;;  %2071 = vmatprep.mubr.bf16.mxu0 %v7528_v8  ;;  %v7568_v45 = vld [vmem:[%s11991_s4 + $0x238] sm:$0xff]   ;;  %v7599_v8 = vld [vmem:[%s11991_s4 + $0x360] sm:$0xff]  }
  0x2c   :  { %6049 = vmatprep.subr.bf16.mxu0 %v7501_v48  ;;  %2031 = vmatmul.mubr.bf16.gmra.mrb[4].mxu1 %v7518_v63  ;;  %v7572_v48 = vld [vmem:[%s11992_s0 + $0x24] ss:$100 sps:$4 sm:$0xff]   ;;  %v7589_v63 = vld [vmem:[%s11992_s0 + $0xf4] ss:$100 sps:$4 sm:$0xff]  }
  0x2d   :  { %6076 = vmatpush3.bf16.msra.mxu1 %v7500_v47  ;;  %2120 = vmatprep.mubr.bf16.mxu1 %v7533_v12  ;;  %v7570_v47 = vld [vmem:[%s11992_s0 + $0x20] ss:$100 sps:$4 sm:$0xff]   ;;  %v7603_v12 = vld [vmem:[%s11991_s4 + $0x368] sm:$0xff]  }
  0x2e   :  { %6077 = vmatprep.subr.bf16.mxu1 %v7503_v50  ;;  %v7574_v50 = vld [vmem:[%s11991_s4 + $0x340] sm:$0xff]  }
  0x2f   :  { %6050 = vmatpush3.bf16.msra.mxu0 %v7502_v49  ;;  %v7573_v49 = vld [vmem:[%s11991_s4 + $0x2b8] sm:$0xff]  }
  0x30   :  { %6051 = vmatprep.subr.bf16.mxu0 %v7505_v52  ;;  %v7577_v52 = vld [vmem:[%s11992_s0 + $0x2c] ss:$100 sps:$4 sm:$0xff]  }
  0x31   :  { %6078 = vmatpush3.bf16.msra.mxu1 %v7504_v51  ;;  %v7575_v51 = vld [vmem:[%s11992_s0 + $0x28] ss:$100 sps:$4 sm:$0xff]  }
  0x32   :  { %6079 = vmatprep.subr.bf16.mxu1 %v7507_v54  ;;  %v7579_v54 = vld [vmem:[%s11991_s4 + $0x3c0] sm:$0xff]  }
  0x33   :  { %6052 = vmatpush3.bf16.msra.mxu0 %v7506_v53  ;;  %v7578_v53 = vld [vmem:[%s11991_s4 + $0x300] sm:$0xff]  }
  0x34   :  { %6053 = vmatprep.subr.bf16.mxu0 %v7509_v56  ;;  %v7581_v56 = vld [vmem:[%s11991_s4 + $0x348] sm:$0xff]  }
  0x35   :  { %6080 = vmatpush3.bf16.msra.mxu1 %v7508_v55  ;;  %v7580_v55 = vld [vmem:[%s11991_s4 + $0x380] sm:$0xff]  }
  0x36   :  { %6081 = vmatprep.subr.bf16.mxu1 %v7514_v60  ;;  %v7586_v60 = vld [vmem:[%s11991_s4 + $0x388] sm:$0xff]  }
  0x37   :  { %6054 = vmatpush3.bf16.msra.mxu0 %v7512_v58  ;;  %v7583_v58 = vld [vmem:[%s11991_s4 + $0x3c8] sm:$0xff]  }
  0x38   :  { %6055 = vmatprep.subr.bf16.mxu0 %v7519_v0  ;;  %v7591_v0 = vld [vmem:[%s11991_s4 + $0x310] sm:$0xff]  }
  0x39   :  { %6082 = vmatpush3.bf16.msra.mxu1 %v7517_v62  ;;  %v7588_v62 = vld [vmem:[%s11991_s4 + $0x350] sm:$0xff]  }
  0x3a   :  { %6083 = vmatprep.subr.bf16.mxu1 %v7521_v2  ;;  %v7593_v2 = vld [vmem:[%s11991_s4 + $0x3d0] sm:$0xff]  }
  0x3b   :  { %6056 = vmatpush3.bf16.msra.mxu0 %v7520_v1  ;;  %v7592_v1 = vld [vmem:[%s11992_s0 + $0xf0] ss:$100 sps:$4 sm:$0xff]  }
  0x3c   :  { %6057 = vmatprep.subr.bf16.mxu0 %v7523_v4  ;;  %v7595_v4 = vld [vmem:[%s11991_s4 + $0x358] sm:$0xff]  }
  0x3d   :  { %6084 = vmatpush3.bf16.msra.mxu1 %v7522_v3  ;;  %v7594_v3 = vld [vmem:[%s11991_s4 + $0x390] sm:$0xff]  }
  0x3e   :  { %6085 = vmatprep.subr.bf16.mxu1 %v7525_v6  ;;  %v7597_v6 = vld [vmem:[%s11991_s4 + $0x3d8] sm:$0xff]  }
  0x3f   :  { %6058 = vmatpush3.bf16.msra.mxu0 %v7524_v5  ;;  %v7596_v5 = vld [vmem:[%s11991_s4 + $0x318] sm:$0xff]  }
  0x40   :  { %6099 = vmatprep.subr.bf16.mxu0 %v7530_v10  ;;  %v7601_v10 = vld [vmem:[%s11991_s4 + $0x3e0] sm:$0xff]  }
  0x41   :  { %6086 = vmatpush3.bf16.msra.mxu1 %v7529_v9  ;;  %v7600_v9 = vld [vmem:[%s11991_s4 + $0x320] sm:$0xff]  }
  0x42   :  { %2072 = vmatmul.mubr.bf16.vlgmr.msra.gmra.mrb[8].mxu0 %v7526_v7  ;;  %6127 = vmatprep.subr.bf16.mxu1 %v7535_v14  ;;  %v7598_v7 = vld [vmem:[%s11991_s4 + $0x398] sm:$0xff]   ;;  %v7605_v14 = vld [vmem:[%s11991_s4 + $0x3e8] sm:$0xff]  }
  0x43   :  { %6100 = vmatpush3.bf16.msra.mxu0 %v7534_v13  ;;  %2079 = vmatprep.mubr.bf16.mxu0 %v7540_v19  ;;  %v7604_v13 = vld [vmem:[%s11991_s4 + $0x328] sm:$0xff]   ;;  %v7610_v19 = vld [vmem:[%s11991_s4 + $0x3b0] sm:$0xff]  }
  0x44   :  { %2121 = vmatmul.mubr.bf16.vlgmr.msra.gmra.mrb[8].mxu1 %v7531_v11  ;;  %6101 = vmatprep.subr.bf16.mxu0 %v7537_v16  ;;  %v7602_v11 = vld [vmem:[%s11991_s4 + $0x3a0] sm:$0xff]   ;;  %v7607_v16 = vld [vmem:[%s11991_s4 + $0x370] sm:$0xff]  }
  0x45   :  { %6128 = vmatpush3.bf16.msra.mxu1 %v7536_v15  ;;  %2128 = vmatprep.mubr.bf16.mxu1 %v7545_v23  ;;  %v7606_v15 = vld [vmem:[%s11991_s4 + $0x3a8] sm:$0xff]   ;;  %v7614_v23 = vld [vmem:[%s11992_s0 + $0x30] ss:$100 sps:$4 sm:$0xff]  }
  0x46   :  { %6129 = vmatprep.subr.bf16.mxu1 %v7539_v18  ;;  %v7609_v18 = vld [vmem:[%s11991_s4 + $0x3f0] sm:$0xff]  }
  0x47   :  { %6102 = vmatpush3.bf16.msra.mxu0 %v7538_v17  ;;  %v7608_v17 = vld [vmem:[%s11991_s4 + $0x330] sm:$0xff]  }
  0x48   :  { %6103 = vmatprep.subr.bf16.mxu0 %v7544_v22  ;;  %v7613_v22 = vld [vmem:[%s11991_s4 + $0x3f8] sm:$0xff]  }
  0x49   :  { %6130 = vmatpush3.bf16.msra.mxu1 %v7542_v20  ;;  %v7611_v20 = vld [vmem:[%s11991_s4 + $0x378] sm:$0xff]  }
  0x4a   :  { %2080 = vmatmul.mubr.bf16.gmra.mrb[12].mxu0 %v7543_v21  ;;  %6131 = vmatprep.subr.bf16.mxu1 %v7549_v26  ;;  %v7612_v21 = vld [vmem:[%s11991_s4 + $0x338] sm:$0xff]   ;;  %v7618_v26 = vld [vmem:[%s11991_s4 + $0x440] sm:$0xff]  }
  0x4b   :  { %6104 = vmatpush3.bf16.msra.mxu0 %v7547_v24  ;;  %2169 = vmatprep.mubr.bf16.mxu0 %v7572_v48  ;;  %v7616_v24 = vld [vmem:[%s11992_s0 + $0x34] ss:$100 sps:$4 sm:$0xff]   ;;  %v7643_v48 = vld [vmem:[%s11991_s4 + $0x460] sm:$0xff]  }
  0x4c   :  { %2129 = vmatmul.mubr.bf16.gmra.mrb[12].mxu1 %v7548_v25  ;;  %6105 = vmatprep.subr.bf16.mxu0 %v7551_v28  ;;  %v7617_v25 = vld [vmem:[%s11991_s4 + $0x3b8] sm:$0xff]  }
  0x4d   :  { %6132 = vmatpush3.bf16.msra.mxu1 %v7550_v27  ;;  %2218 = vmatprep.mubr.bf16.mxu1 %v7577_v52  ;;  %v7619_v27 = vld [vmem:[%s11992_s0 + $0x38] ss:$100 sps:$4 sm:$0xff]   ;;  %v7647_v52 = vld [vmem:[%s11991_s4 + $0x468] sm:$0xff]  }
  0x4e   :  { %6133 = vmatprep.subr.bf16.mxu1 %v7553_v30  ;;  %v7621_v28 = vld [vmem:[%s11992_s0 + $0x3c] ss:$100 sps:$4 sm:$0xff]  }
  0x4f   :  { %6106 = vmatpush3.bf16.msra.mxu0 %v7552_v29  ;;  %v7622_v29 = vld [vmem:[%s11991_s4 + $0x400] sm:$0xff]  }
  0x50   :  { %6107 = vmatprep.subr.bf16.mxu0 %v7555_v32  ;;  %v7623_v30 = vld [vmem:[%s11991_s4 + $0x4c0] sm:$0xff]   ;;  %v7625_v32 = vld [vmem:[%s11991_s4 + $0x448] sm:$0xff]  }
  0x51   :  { %6134 = vmatpush3.bf16.msra.mxu1 %v7554_v31  ;;  %v7624_v31 = vld [vmem:[%s11991_s4 + $0x480] sm:$0xff]  }
  0x52   :  { %6135 = vmatprep.subr.bf16.mxu1 %v7557_v34  ;;  %v7627_v34 = vld [vmem:[%s11991_s4 + $0x4c8] sm:$0xff]  }
  0x53   :  { %6108 = vmatpush3.bf16.msra.mxu0 %v7556_v33  ;;  %v7626_v33 = vld [vmem:[%s11991_s4 + $0x408] sm:$0xff]  }
  0x54   :  { %6109 = vmatprep.subr.bf16.mxu0 %v7559_v36  ;;  %v7630_v36 = vld [vmem:[%s11991_s4 + $0x488] sm:$0xff]  }
  0x55   :  { %6136 = vmatpush3.bf16.msra.mxu1 %v7558_v35  ;;  %v7628_v35 = vld [vmem:[%s11992_s0 + $0xfc] ss:$100 sps:$4 sm:$0xff]  }
  0x56   :  { %6137 = vmatprep.subr.bf16.mxu1 %v7561_v38  ;;  %v7632_v38 = vld [vmem:[%s11991_s4 + $0x450] sm:$0xff]  }
  0x57   :  { %6110 = vmatpush3.bf16.msra.mxu0 %v7560_v37  ;;  %v7631_v37 = vld [vmem:[%s11992_s0 + $0xf8] ss:$100 sps:$4 sm:$0xff]  }
  0x58   :  { %6111 = vmatprep.subr.bf16.mxu0 %v7563_v40  ;;  %v7635_v40 = vld [vmem:[%s11991_s4 + $0x410] sm:$0xff]  }
  0x59   :  { %6138 = vmatpush3.bf16.msra.mxu1 %v7562_v39  ;;  %v7633_v39 = vld [vmem:[%s11992_s0 + $0x104] ss:$100 sps:$4 sm:$0xff]  }
  0x5a   :  { %6139 = vmatprep.subr.bf16.mxu1 %v7565_v42  ;;  %v7637_v42 = vld [vmem:[%s11991_s4 + $0x4d0] sm:$0xff]  }
  0x5b   :  { %6112 = vmatpush3.bf16.msra.mxu0 %v7564_v41  ;;  %v7636_v41 = vld [vmem:[%s11992_s0 + $0x100] ss:$100 sps:$4 sm:$0xff]  }
  0x5c   :  { %6113 = vmatprep.subr.bf16.mxu0 %v7567_v44  ;;  %v7639_v44 = vld [vmem:[%s11991_s4 + $0x458] sm:$0xff]  }
  0x5d   :  { %6140 = vmatpush3.bf16.msra.mxu1 %v7566_v43  ;;  %v7638_v43 = vld [vmem:[%s11991_s4 + $0x490] sm:$0xff]  }
  0x5e   :  { %6141 = vmatprep.subr.bf16.mxu1 %v7569_v46  ;;  %v7641_v46 = vld [vmem:[%s11991_s4 + $0x4d8] sm:$0xff]  }
  0x5f   :  { %6114 = vmatpush3.bf16.msra.mxu0 %v7568_v45  ;;  %v7640_v45 = vld [vmem:[%s11991_s4 + $0x418] sm:$0xff]  }
  0x60   :  { %6155 = vmatprep.subr.bf16.mxu0 %v7574_v50  ;;  %v7645_v50 = vld [vmem:[%s11991_s4 + $0x4e0] sm:$0xff]  }
  0x61   :  { %6142 = vmatpush3.bf16.msra.mxu1 %v7573_v49  ;;  %v7644_v49 = vld [vmem:[%s11991_s4 + $0x420] sm:$0xff]  }
  0x62   :  { %2170 = vmatmul.mubr.bf16.vlgmr.msra.gmra.mrb[16].mxu0 %v7570_v47  ;;  %6183 = vmatprep.subr.bf16.mxu1 %v7579_v54  ;;  %v7642_v47 = vld [vmem:[%s11991_s4 + $0x498] sm:$0xff]   ;;  %v7649_v54 = vld [vmem:[%s11991_s4 + $0x4e8] sm:$0xff]  }
  0x63   :  { %6156 = vmatpush3.bf16.msra.mxu0 %v7578_v53  ;;  %2177 = vmatprep.mubr.bf16.mxu0 %v7584_v59  ;;  %v7648_v53 = vld [vmem:[%s11991_s4 + $0x428] sm:$0xff]   ;;  %v7654_v59 = vld [vmem:[%s11991_s4 + $0x4b0] sm:$0xff]  }
  0x64   :  { %2219 = vmatmul.mubr.bf16.vlgmr.msra.gmra.mrb[16].mxu1 %v7575_v51  ;;  %6157 = vmatprep.subr.bf16.mxu0 %v7581_v56  ;;  %v7646_v51 = vld [vmem:[%s11991_s4 + $0x4a0] sm:$0xff]   ;;  %v7651_v56 = vld [vmem:[%s11991_s4 + $0x470] sm:$0xff]  }
  0x65   :  { %6184 = vmatpush3.bf16.msra.mxu1 %v7580_v55  ;;  %2226 = vmatprep.mubr.bf16.mxu1 %v7589_v63  ;;  %v7650_v55 = vld [vmem:[%s11991_s4 + $0x4a8] sm:$0xff]   ;;  %v7658_v63 = vld [vmem:[%s11992_s0 + $0x40] ss:$100 sps:$4 sm:$0xff]  }
  0x66   :  { %6185 = vmatprep.subr.bf16.mxu1 %v7583_v58  ;;  %v7653_v58 = vld [vmem:[%s11991_s4 + $0x4f0] sm:$0xff]  }
  0x67   :  { %6158 = vmatpush3.bf16.msra.mxu0 %v7582_v57  ;;  %v7652_v57 = vld [vmem:[%s11991_s4 + $0x430] sm:$0xff]  }
  0x68   :  { %6159 = vmatprep.subr.bf16.mxu0 %v7588_v62  ;;  %v7657_v62 = vld [vmem:[%s11991_s4 + $0x4f8] sm:$0xff]  }
  0x69   :  { %6186 = vmatpush3.bf16.msra.mxu1 %v7586_v60  ;;  %v7655_v60 = vld [vmem:[%s11991_s4 + $0x478] sm:$0xff]  }
  0x6a   :  { %2178 = vmatmul.mubr.bf16.gmra.mrb[20].mxu0 %v7587_v61  ;;  %6187 = vmatprep.subr.bf16.mxu1 %v7593_v2  ;;  %v7656_v61 = vld [vmem:[%s11991_s4 + $0x438] sm:$0xff]   ;;  %v7662_v2 = vld [vmem:[%s11991_s4 + $0x540] sm:$0xff]  }
  0x6b   :  { %6160 = vmatpush3.bf16.msra.mxu0 %v7591_v0  ;;  %2267 = vmatprep.mubr.bf16.mxu0 %v7616_v24  ;;  %v7660_v0 = vld [vmem:[%s11992_s0 + $0x44] ss:$100 sps:$4 sm:$0xff]  }
  0x6c   :  { %2227 = vmatmul.mubr.bf16.gmra.mrb[20].mxu1 %v7592_v1  ;;  %6161 = vmatprep.subr.bf16.mxu0 %v7595_v4  ;;  %v7661_v1 = vld [vmem:[%s11991_s4 + $0x4b8] sm:$0xff]   ;;  %v7665_v4 = vld [vmem:[%s11992_s0 + $0x4c] ss:$100 sps:$4 sm:$0xff]   ;;  %v7687_v24 = vld [vmem:[%s11991_s4 + $0x560] sm:$0xff]  }
  0x6d   :  { %6188 = vmatpush3.bf16.msra.mxu1 %v7594_v3  ;;  %2316 = vmatprep.mubr.bf16.mxu1 %v7621_v28  ;;  %v7663_v3 = vld [vmem:[%s11992_s0 + $0x48] ss:$100 sps:$4 sm:$0xff]  }
  0x6e   :  { %6189 = vmatprep.subr.bf16.mxu1 %v7597_v6  ;;  %v7667_v6 = vld [vmem:[%s11991_s4 + $0x5c0] sm:$0xff]   ;;  %v7691_v28 = vld [vmem:[%s11991_s4 + $0x568] sm:$0xff]  }
  0x6f   :  { %6162 = vmatpush3.bf16.msra.mxu0 %v7596_v5  ;;  %v7666_v5 = vld [vmem:[%s11991_s4 + $0x500] sm:$0xff]  }
  0x70   :  { %6163 = vmatprep.subr.bf16.mxu0 %v7599_v8  ;;  %v7669_v8 = vld [vmem:[%s11991_s4 + $0x548] sm:$0xff]  }
  0x71   :  { %6190 = vmatpush3.bf16.msra.mxu1 %v7598_v7  ;;  %v7668_v7 = vld [vmem:[%s11991_s4 + $0x580] sm:$0xff]  }
  0x72   :  { %6191 = vmatprep.subr.bf16.mxu1 %v7601_v10  ;;  %v7671_v10 = vld [vmem:[%s11991_s4 + $0x5c8] sm:$0xff]  }
  0x73   :  { %6164 = vmatpush3.bf16.msra.mxu0 %v7600_v9  ;;  %v7670_v9 = vld [vmem:[%s11991_s4 + $0x508] sm:$0xff]  }
  0x74   :  { %6165 = vmatprep.subr.bf16.mxu0 %v7603_v12  ;;  %v7674_v12 = vld [vmem:[%s11991_s4 + $0x588] sm:$0xff]  }
  0x75   :  { %6192 = vmatpush3.bf16.msra.mxu1 %v7602_v11  ;;  %v7672_v11 = vld [vmem:[%s11992_s0 + $0x10c] ss:$100 sps:$4 sm:$0xff]  }
  0x76   :  { %6193 = vmatprep.subr.bf16.mxu1 %v7605_v14  ;;  %v7676_v14 = vld [vmem:[%s11991_s4 + $0x550] sm:$0xff]  }
  0x77   :  { %6166 = vmatpush3.bf16.msra.mxu0 %v7604_v13  ;;  %v7675_v13 = vld [vmem:[%s11992_s0 + $0x108] ss:$100 sps:$4 sm:$0xff]  }
  0x78   :  { %6167 = vmatprep.subr.bf16.mxu0 %v7607_v16  ;;  %v7679_v16 = vld [vmem:[%s11991_s4 + $0x510] sm:$0xff]  }
  0x79   :  { %6194 = vmatpush3.bf16.msra.mxu1 %v7606_v15  ;;  %v7677_v15 = vld [vmem:[%s11992_s0 + $0x114] ss:$100 sps:$4 sm:$0xff]  }
  0x7a   :  { %6195 = vmatprep.subr.bf16.mxu1 %v7609_v18  ;;  %v7681_v18 = vld [vmem:[%s11991_s4 + $0x5d0] sm:$0xff]  }
  0x7b   :  { %6168 = vmatpush3.bf16.msra.mxu0 %v7608_v17  ;;  %v7680_v17 = vld [vmem:[%s11992_s0 + $0x110] ss:$100 sps:$4 sm:$0xff]  }
  0x7c   :  { %6169 = vmatprep.subr.bf16.mxu0 %v7611_v20  ;;  %v7683_v20 = vld [vmem:[%s11991_s4 + $0x558] sm:$0xff]  }
  0x7d   :  { %6196 = vmatpush3.bf16.msra.mxu1 %v7610_v19  ;;  %v7682_v19 = vld [vmem:[%s11991_s4 + $0x590] sm:$0xff]  }
  0x7e   :  { %6197 = vmatprep.subr.bf16.mxu1 %v7613_v22  ;;  %v7685_v22 = vld [vmem:[%s11991_s4 + $0x5d8] sm:$0xff]  }
  0x7f   :  { %6170 = vmatpush3.bf16.msra.mxu0 %v7612_v21  ;;  %v7684_v21 = vld [vmem:[%s11991_s4 + $0x518] sm:$0xff]  }
  0x80   :  { %6211 = vmatprep.subr.bf16.mxu0 %v7618_v26  ;;  %v7689_v26 = vld [vmem:[%s11991_s4 + $0x5e0] sm:$0xff]  }
  0x81   :  { %6198 = vmatpush3.bf16.msra.mxu1 %v7617_v25  ;;  %v7688_v25 = vld [vmem:[%s11991_s4 + $0x520] sm:$0xff]  }
  0x82   :  { %2268 = vmatmul.mubr.bf16.vlgmr.msra.gmra.mrb[24].mxu0 %v7614_v23  ;;  %6239 = vmatprep.subr.bf16.mxu1 %v7623_v30  ;;  %v7686_v23 = vld [vmem:[%s11991_s4 + $0x598] sm:$0xff]   ;;  %v7693_v30 = vld [vmem:[%s11991_s4 + $0x5e8] sm:$0xff]  }
  0x83   :  { %6212 = vmatpush3.bf16.msra.mxu0 %v7622_v29  ;;  %2275 = vmatprep.mubr.bf16.mxu0 %v7628_v35  ;;  %v7692_v29 = vld [vmem:[%s11991_s4 + $0x528] sm:$0xff]   ;;  %v7698_v35 = vld [vmem:[%s11991_s4 + $0x5b0] sm:$0xff]  }
  0x84   :  { %2317 = vmatmul.mubr.bf16.vlgmr.msra.gmra.mrb[24].mxu1 %v7619_v27  ;;  %6213 = vmatprep.subr.bf16.mxu0 %v7625_v32  ;;  %v7690_v27 = vld [vmem:[%s11991_s4 + $0x5a0] sm:$0xff]   ;;  %v7695_v32 = vld [vmem:[%s11991_s4 + $0x570] sm:$0xff]  }
  0x85   :  { %6240 = vmatpush3.bf16.msra.mxu1 %v7624_v31  ;;  %2324 = vmatprep.mubr.bf16.mxu1 %v7633_v39  ;;  %v7694_v31 = vld [vmem:[%s11991_s4 + $0x5a8] sm:$0xff]   ;;  %v7702_v39 = vld [vmem:[%s11992_s0 + $0x50] ss:$100 sps:$4 sm:$0xff]  }
  0x86   :  { %6241 = vmatprep.subr.bf16.mxu1 %v7627_v34  ;;  %v7697_v34 = vld [vmem:[%s11991_s4 + $0x5f0] sm:$0xff]  }
  0x87   :  { %6214 = vmatpush3.bf16.msra.mxu0 %v7626_v33  ;;  %v7696_v33 = vld [vmem:[%s11991_s4 + $0x530] sm:$0xff]  }
  0x88   :  { %6215 = vmatprep.subr.bf16.mxu0 %v7632_v38  ;;  %v7701_v38 = vld [vmem:[%s11991_s4 + $0x5f8] sm:$0xff]  }
  0x89   :  { %6242 = vmatpush3.bf16.msra.mxu1 %v7630_v36  ;;  %v7699_v36 = vld [vmem:[%s11991_s4 + $0x578] sm:$0xff]  }
  0x8a   :  { %2276 = vmatmul.mubr.bf16.gmra.mrb[28].mxu0 %v7631_v37  ;;  %6243 = vmatprep.subr.bf16.mxu1 %v7637_v42  ;;  %v7700_v37 = vld [vmem:[%s11991_s4 + $0x538] sm:$0xff]   ;;  %v7706_v42 = vld [vmem:[%s11991_s4 + $0x600] sm:$0xff]  }
  0x8b   :  { %6216 = vmatpush3.bf16.msra.mxu0 %v7635_v40  ;;  %2365 = vmatprep.mubr.bf16.mxu0 %v7660_v0  ;;  %v7704_v40 = vld [vmem:[%s11992_s0 + $0x54] ss:$100 sps:$4 sm:$0xff]   ;;  %v7957_v0 = vld [vmem:[%s11991_s4 + $0x60] sm:$0xff]  }
  0x8c   :  { %2325 = vmatmul.mubr.bf16.gmra.mrb[28].mxu1 %v7636_v41  ;;  %6217 = vmatprep.subr.bf16.mxu0 %v7639_v44  ;;  %v7705_v41 = vld [vmem:[%s11991_s4 + $0x5b8] sm:$0xff]  }
  0x8d   :  { %6244 = vmatpush3.bf16.msra.mxu1 %v7638_v43  ;;  %2414 = vmatprep.mubr.bf16.mxu1 %v7665_v4  ;;  %v7707_v43 = vld [vmem:[%s11992_s0 + $0x58] ss:$100 sps:$4 sm:$0xff]  }
  0x8e   :  { %6245 = vmatprep.subr.bf16.mxu1 %v7641_v46  ;;  %v7709_v44 = vld [vmem:[%s11992_s0 + $0x5c] ss:$100 sps:$4 sm:$0xff]   ;;  %v7710_v46 = vld [vmem:[%s11991_s4 + $0x608] sm:$0xff]  }
  0x8f   :  { %6218 = vmatpush3.bf16.msra.mxu0 %v7640_v45  ;;  %v7949_v45 = vld [vmem:[%s11991_s4 + $0x40] sm:$0xff]   ;;  %v7722_v4 = vld [vmem:[%s11991_s4 + $0x638] sm:$0xff]  }
  0x90   :  { %6219 = vmatprep.subr.bf16.mxu0 %v7643_v48  ;;  %v7713_v48 = vld [vmem:[%s11992_s0 + $0x118] ss:$100 sps:$4 sm:$0xff]  }
  0x91   :  { %6246 = vmatpush3.bf16.msra.mxu1 %v7642_v47  ;;  %v7711_v47 = vld [vmem:[%s11992_s0 + $0x11c] ss:$100 sps:$4 sm:$0xff]  }
  0x92   :  { %6247 = vmatprep.subr.bf16.mxu1 %v7645_v50  ;;  %v7950_v50 = vld [vmem:[%s11991_s4] sm:$0xff]  }
  0x93   :  { %6220 = vmatpush3.bf16.msra.mxu0 %v7644_v49  ;;  %v7714_v49 = vld [vmem:[%s11991_s4 + $0x610] sm:$0xff]  }
  0x94   :  { %6221 = vmatprep.subr.bf16.mxu0 %v7647_v52  ;;  %v7951_v52 = vld [vmem:[%s11991_s4 + $0x48] sm:$0xff]  }
  0x95   :  { %6248 = vmatpush3.bf16.msra.mxu1 %v7646_v51  ;;  %v7715_v51 = vld [vmem:[%s11992_s0 + $0x124] ss:$100 sps:$4 sm:$0xff]  }
  0x96   :  { %6249 = vmatprep.subr.bf16.mxu1 %v7649_v54  ;;  %v7717_v54 = vld [vmem:[%s11992_s0 + $0x120] ss:$100 sps:$4 sm:$0xff]  }
  0x97   :  { %6222 = vmatpush3.bf16.msra.mxu0 %v7648_v53  ;;  %v7718_v53 = vld [vmem:[%s11991_s4 + $0x618] sm:$0xff]  }
  0x98   :  { %6223 = vmatprep.subr.bf16.mxu0 %v7651_v56  ;;  %v7953_v56 = vld [vmem:[%s11991_s4 + $0x50] sm:$0xff]  }
  0x99   :  { %6250 = vmatpush3.bf16.msra.mxu1 %v7650_v55  ;;  %v7952_v55 = vld [vmem:[%s11991_s4 + $0x8] sm:$0xff]  }
  0x9a   :  { %6251 = vmatprep.subr.bf16.mxu1 %v7653_v58  ;;  %v7723_v58 = vld [vmem:[%s11992_s0 + $0x60] ss:$100 sps:$4 sm:$0xff]  }
  0x9b   :  { %6224 = vmatpush3.bf16.msra.mxu0 %v7652_v57  ;;  %v7719_v57 = vld [vmem:[%s11991_s4 + $0x620] sm:$0xff]  }
  0x9c   :  { %6225 = vmatprep.subr.bf16.mxu0 %v7655_v60  ;;  %v7955_v60 = vld [vmem:[%s11991_s4 + $0x58] sm:$0xff]  }
  0x9d   :  { %6252 = vmatpush3.bf16.msra.mxu1 %v7654_v59  ;;  %v7954_v59 = vld [vmem:[%s11991_s4 + $0x10] sm:$0xff]  }
  0x9e   :  { %6253 = vmatprep.subr.bf16.mxu1 %v7657_v62  ;;  %v7720_v62 = vld [vmem:[%s11991_s4 + $0x628] sm:$0xff]  }
  0x9f   :  { %6226 = vmatpush3.bf16.msra.mxu0 %v7656_v61  ;;  %v7727_v61 = vld [vmem:[%s11993_s1 + $0x4] ss:$100 sps:$4 sm:$0xff]  }
  0xa0   :  { %6267 = vmatprep.subr.bf16.mxu0 %v7662_v2  ;;  %v7958_v2 = vld [vmem:[%s11991_s4 + $0x20] sm:$0xff]  }
  0xa1   :  { %6254 = vmatpush3.bf16.msra.mxu1 %v7661_v1  ;;  %v7721_v1 = vld [vmem:[%s11991_s4 + $0x630] sm:$0xff]  }
  0xa2   :  { %2366 = vmatmul.mubr.bf16.vlgmr.msra.gmra.mrb[32].mxu0 %v7658_v63  ;;  %6295 = vmatprep.subr.bf16.mxu1 %v7667_v6  ;;  %v7956_v63 = vld [vmem:[%s11991_s4 + $0x18] sm:$0xff]  }
  0xa3   :  { %6268 = vmatpush3.bf16.msra.mxu0 %v7666_v5  ;;  %2373 = vmatprep.mubr.bf16.mxu0 %v7672_v11  ;;  %v7960_v5 = vld [vmem:[%s11991_s4 + $0x28] sm:$0xff]  }
  0xa4   :  { %2415 = vmatmul.mubr.bf16.vlgmr.msra.gmra.mrb[32].mxu1 %v7663_v3  ;;  %6269 = vmatprep.subr.bf16.mxu0 %v7669_v8  ;;  %v7959_v3 = vld [vmem:[%s11991_s4 + $0x68] sm:$0xff]   ;;  %v9320_v8 = vld [vmem:[%s11994_s5] ss:$0 sm:$0xff] }
  0xa5   :  { %6296 = vmatpush3.bf16.msra.mxu1 %v7668_v7  ;;  %2422 = vmatprep.mubr.bf16.mxu1 %v7677_v15  ;;  %v7961_v7 = vld [vmem:[%s11991_s4 + $0x70] sm:$0xff]   ;;  %v7724_v15 = vld [vmem:[%s11992_s0 + $0x128] ss:$100 sps:$4 sm:$0xff]  }
  0xa6   :  { %6297 = vmatprep.subr.bf16.mxu1 %v7671_v10 }
  0xa7   :  { %6270 = vmatpush3.bf16.msra.mxu0 %v7670_v9 }
  0xa8   :  { %6271 = vmatprep.subr.bf16.mxu0 %v7676_v14  ;;  %v7962_v14 = vld [vmem:[%s11991_s4 + $0x30] sm:$0xff]  }
  0xa9   :  { %6298 = vmatpush3.bf16.msra.mxu1 %v7674_v12 }
  0xaa   :  { %2374 = vmatmul.mubr.bf16.gmra.mrb[36].mxu0 %v7675_v13  ;;  %6299 = vmatprep.subr.bf16.mxu1 %v7681_v18 }
  0xab   :  { %6272 = vmatpush3.bf16.msra.mxu0 %v7679_v16  ;;  %2463 = vmatprep.mubr.bf16.mxu0 %v7704_v40  ;;  %v7973_v40 = vld [vmem:[%s11991_s4 + $0x108] sm:$0xff]  }
  0xac   :  { %2423 = vmatmul.mubr.bf16.gmra.mrb[36].mxu1 %v7680_v17  ;;  %6273 = vmatprep.subr.bf16.mxu0 %v7683_v20 }
  0xad   :  { %6300 = vmatpush3.bf16.msra.mxu1 %v7682_v19  ;;  %2512 = vmatprep.mubr.bf16.mxu1 %v7709_v44  ;;  %v7963_v19 = vld [vmem:[%s11991_s4 + $0x78] sm:$0xff]  }
  0xae   :  { %6301 = vmatprep.subr.bf16.mxu1 %v7685_v22  ;;  %v7964_v22 = vld [vmem:[%s11991_s4 + $0xc0] sm:$0xff]   ;;  %v7976_v44 = vld [vmem:[%s11991_s4 + $0xd8] sm:$0xff]  }
  0xaf   :  { %6274 = vmatpush3.bf16.msra.mxu0 %v7684_v21 }
  0xb0   :  { %6275 = vmatprep.subr.bf16.mxu0 %v7687_v24 }
  0xb1   :  { %6302 = vmatpush3.bf16.msra.mxu1 %v7686_v23 }
  0xb2   :  { %6303 = vmatprep.subr.bf16.mxu1 %v7689_v26  ;;  %v7725_v26 = vld [vmem:[%s11993_s1] ss:$100 sps:$4 sm:$0xff]  }
  0xb3   :  { %6276 = vmatpush3.bf16.msra.mxu0 %v7688_v25  ;;  %v7733_v25 = vld [vmem:[%s11993_s1 + $0xc] ss:$100 sps:$4 sm:$0xff]  }
  0xb4   :  { %6277 = vmatprep.subr.bf16.mxu0 %v7691_v28 }
  0xb5   :  { %6304 = vmatpush3.bf16.msra.mxu1 %v7690_v27 }
  0xb6   :  { %6305 = vmatprep.subr.bf16.mxu1 %v7693_v30  ;;  %v7728_v30 = vld [vmem:[%s11993_s1 + $0xcc] ss:$100 sps:$4 sm:$0xff]  }
  0xb7   :  { %6278 = vmatpush3.bf16.msra.mxu0 %v7692_v29  ;;  %v7965_v29 = vld [vmem:[%s11991_s4 + $0x38] sm:$0xff]  }
  0xb8   :  { %6279 = vmatprep.subr.bf16.mxu0 %v7695_v32  ;;  %v7967_v32 = vld [vmem:[%s11991_s4 + $0x140] sm:$0xff]  }
  0xb9   :  { %6306 = vmatpush3.bf16.msra.mxu1 %v7694_v31  ;;  %v7966_v31 = vld [vmem:[%s11991_s4 + $0x80] sm:$0xff]  }
  0xba   :  { %6307 = vmatprep.subr.bf16.mxu1 %v7697_v34  ;;  %v7968_v34 = vld [vmem:[%s11991_s4 + $0xc8] sm:$0xff]  }
  0xbb   :  { %6280 = vmatpush3.bf16.msra.mxu0 %v7696_v33 }
  0xbc   :  { %6281 = vmatprep.subr.bf16.mxu0 %v7699_v36  ;;  %v7970_v36 = vld [vmem:[%s11991_s4 + $0x88] sm:$0xff]  }
  0xbd   :  { %6308 = vmatpush3.bf16.msra.mxu1 %v7698_v35  ;;  %v7969_v35 = vld [vmem:[%s11991_s4 + $0x100] sm:$0xff]  }
  0xbe   :  { %6309 = vmatprep.subr.bf16.mxu1 %v7701_v38  ;;  %v7972_v38 = vld [vmem:[%s11991_s4 + $0xd0] sm:$0xff]  }
  0xbf   :  { %6282 = vmatpush3.bf16.msra.mxu0 %v7700_v37  ;;  %v7971_v37 = vld [vmem:[%s11991_s4 + $0x148] sm:$0xff]  }
  0xc0   :  { %7371 = vmatprep.subr.bf16.mxu0 %v7706_v42 }
  0xc1   :  { %6310 = vmatpush3.bf16.msra.mxu1 %v7705_v41  ;;  %v7736_v41 = vld [vmem:[%s11993_s1 + $0x14] ss:$100 sps:$4 sm:$0xff]  }
  0xc2   :  { %2464 = vmatmul.mubr.bf16.vlgmr.msra.gmra.mrb[40].mxu0 %v7702_v39  ;;  %6333 = vmatprep.subr.bf16.mxu1 %v7949_v45  ;;  %v7730_v39 = vld [vmem:[%s11993_s1 + $0xc8] ss:$100 sps:$4 sm:$0xff]   ;;  %v7977_v45 = vld [vmem:[%s11991_s4 + $0x110] sm:$0xff]  }
  0xc3   :  { %7372 = vmatpush3.bf16.msra.mxu0 %v7706_v42  ;;  %2471 = vmatprep.mubr.bf16.mxu0 %v7711_v47  ;;  %v7974_v42 = vld [vmem:[%s11991_s4 + $0x90] sm:$0xff]   ;;  %v7979_v47 = vld [vmem:[%s11991_s4 + $0x158] sm:$0xff]  }
  0xc4   :  { %2513 = vmatmul.mubr.bf16.vlgmr.msra.gmra.mrb[40].mxu1 %v7707_v43  ;;  %7373 = vmatprep.subr.bf16.mxu0 %v7710_v46  ;;  %v7975_v43 = vld [vmem:[%s11991_s4 + $0x150] sm:$0xff]  }
  0xc5   :  { %6334 = vmatpush3.bf16.msra.mxu1 %v7950_v50  ;;  %2520 = vmatprep.mubr.bf16.mxu1 %v7715_v51  ;;  %v7982_v50 = vld [vmem:[%s11991_s4 + $0xa0] sm:$0xff]  }
  0xc6   :  { %6335 = vmatprep.subr.bf16.mxu1 %v7951_v52  ;;  %v7983_v51 = vld [vmem:[%s11991_s4 + $0x160] sm:$0xff]  }
  0xc7   :  { %7374 = vmatpush3.bf16.msra.mxu0 %v7710_v46  ;;  %v7978_v46 = vld [vmem:[%s11991_s4 + $0x98] sm:$0xff]  }
  0xc8   :  { %7375 = vmatprep.subr.bf16.mxu0 %v7714_v49 }
  0xc9   :  { %6336 = vmatpush3.bf16.msra.mxu1 %v7952_v55 }
  0xca   :  { %2472 = vmatmul.mubr.bf16.gmra.mrb[44].mxu0 %v7713_v48  ;;  %6337 = vmatprep.subr.bf16.mxu1 %v7953_v56  ;;  %v7980_v48 = vld [vmem:[%s11991_s4 + $0xe0] sm:$0xff]  }
  0xcb   :  { %7376 = vmatpush3.bf16.msra.mxu0 %v7714_v49  ;;  %7387 = vmatprep.mubr.bf16.mxu0 %v7723_v58  ;;  %v7981_v49 = vld [vmem:[%s11991_s4 + $0x118] sm:$0xff]  }
  0xcc   :  { %7377 = vmatprep.subr.bf16.mxu0 %v7718_v53  ;;  %2521 = vmatmul.mubr.bf16.gmra.mrb[44].mxu1 %v7717_v54 }
  0xcd   :  { %6338 = vmatpush3.bf16.msra.mxu1 %v7954_v59  ;;  %2914 = vmatprep.mubr.bf16.mxu1 %v7727_v61  ;;  %v7987_v61 = vld [vmem:[%s11991_s4 + $0x168] sm:$0xff]  }
  0xce   :  { %6339 = vmatprep.subr.bf16.mxu1 %v7955_v60  ;;  %v7986_v60 = vld [vmem:[%s11991_s4 + $0xa8] sm:$0xff]  }
  0xcf   :  { %7378 = vmatpush3.bf16.msra.mxu0 %v7718_v53  ;;  %v7984_v53 = vld [vmem:[%s11991_s4 + $0xe8] sm:$0xff]  }
  0xd0   :  { %7379 = vmatprep.subr.bf16.mxu0 %v7719_v57 }
  0xd1   :  { %6340 = vmatpush3.bf16.msra.mxu1 %v7956_v63 }
  0xd2   :  { %6341 = vmatprep.subr.bf16.mxu1 %v7957_v0 }
  0xd3   :  { %7380 = vmatpush3.bf16.msra.mxu0 %v7719_v57  ;;  %v7985_v57 = vld [vmem:[%s11991_s4 + $0x120] sm:$0xff]  }
  0xd4   :  { %7381 = vmatprep.subr.bf16.mxu0 %v7720_v62 }
  0xd5   :  { %6342 = vmatpush3.bf16.msra.mxu1 %v7958_v2 }
  0xd6   :  { %6343 = vmatprep.subr.bf16.mxu1 %v7959_v3 }
  0xd7   :  { %7382 = vmatpush3.bf16.msra.mxu0 %v7720_v62 }
  0xd8   :  { %7383 = vmatprep.subr.bf16.mxu0 %v7721_v1 }
  0xd9   :  { %6344 = vmatpush3.bf16.msra.mxu1 %v7960_v5 }
  0xda   :  { %6345 = vmatprep.subr.bf16.mxu1 %v7961_v7 }
  0xdb   :  { %7384 = vmatpush3.bf16.msra.mxu0 %v7721_v1  ;;  %v7988_v1 = vld [vmem:[%s11991_s4 + $0xf0] sm:$0xff]  }
  0xdc   :  { %7385 = vmatprep.subr.bf16.mxu0 %v7722_v4 }
  0xdd   :  { %6346 = vmatpush3.bf16.msra.mxu1 %v7962_v14  ;;  %v7731_v14 = vld [vmem:[%s11993_s1 + $0x8] ss:$100 sps:$4 sm:$0xff]  }
  0xde   :  { %6347 = vmatprep.subr.bf16.mxu1 %v7963_v19  ;;  %v7737_v19 = vld [vmem:[%s11993_s1 + $0xd4] ss:$100 sps:$4 sm:$0xff]  }
  0xdf   :  { %7386 = vmatpush3.bf16.msra.mxu0 %v7722_v4 }
  0xe0   :  { %6361 = vmatprep.subr.bf16.mxu0 %v7964_v22 }
  0xe1   :  { %6348 = vmatpush3.bf16.msra.mxu1 %v7965_v29  ;;  %v7998_v29 = vld [vmem:[%s11991_s4 + $0x180] sm:$0xff]  }
  0xe2   :  { %7388 = vmatmul.mubr.bf16.vlgmr.msra.gmra.mrb[48].mxu0 %v7724_v15  ;;  %6389 = vmatprep.subr.bf16.mxu1 %v7967_v32  ;;  %v7994_v15 = vld [vmem:[%s11991_s4 + $0xb8] sm:$0xff]  }
  0xe3   :  { %6362 = vmatpush3.bf16.msra.mxu0 %v7966_v31  ;;  %2963 = vmatprep.mubr.bf16.mxu0 %v7733_v25  ;;  %v7740_v25 = vld [vmem:[%s11993_s1 + $0xdc] ss:$100 sps:$4 sm:$0xff]  }
  0xe4   :  { %6363 = vmatprep.subr.bf16.mxu0 %v7968_v34  ;;  %2915 = vmatmul.mubr.bf16.vlgmr.msra.gmra.mrb[48].mxu1 %v7725_v26 }
  0xe5   :  { %6390 = vmatpush3.bf16.msra.mxu1 %v7969_v35  ;;  %2922 = vmatprep.mubr.bf16.mxu1 %v7728_v30  ;;  %v7999_v30 = vld [vmem:[%s11991_s4 + $0x240] sm:$0xff]   ;;  %v8000_v35 = vld [vmem:[%s11991_s4 + $0x1c8] sm:$0xff]  }
  0xe6   :  { %6391 = vmatprep.subr.bf16.mxu1 %v7971_v37 }
  0xe7   :  { %6364 = vmatpush3.bf16.msra.mxu0 %v7970_v36 }
  0xe8   :  { %6365 = vmatprep.subr.bf16.mxu0 %v7972_v38 }
  0xe9   :  { %6392 = vmatpush3.bf16.msra.mxu1 %v7973_v40  ;;  %v8001_v40 = vld [vmem:[%s11991_s4 + $0x200] sm:$0xff]  }
  0xea   :  { %6393 = vmatprep.subr.bf16.mxu1 %v7975_v43  ;;  %v9494_v43 = vld [vmem:[%s11991_s4 + $0x188] sm:$0xff]  }
  0xeb   :  { %6366 = vmatpush3.bf16.msra.mxu0 %v7974_v42 }
  0xec   :  { %6367 = vmatprep.subr.bf16.mxu0 %v7976_v44  ;;  %2923 = vmatmul.mubr.bf16.gmra.mrb[52].mxu1 %v7730_v39  ;;  %v9503_v44 = vld [vmem:[%s11991_s4 + $0x1d0] sm:$0xff]  }
  0xed   :  { %6394 = vmatpush3.bf16.msra.mxu1 %v7977_v45  ;;  %3012 = vmatprep.mubr.bf16.mxu1 %v7736_v41 }
  0xee   :  { %6395 = vmatprep.subr.bf16.mxu1 %v7979_v47  ;;  %v7742_v47 = vld [vmem:[%s11993_s1 + $0xd8] ss:$100 sps:$4 sm:$0xff]  }
  0xef   :  { %6368 = vmatpush3.bf16.msra.mxu0 %v7978_v46  ;;  %v7745_v46 = vld [vmem:[%s11993_s1 + $0x1c] ss:$100 sps:$4 sm:$0xff]  }
  0xf0   :  { %6369 = vmatprep.subr.bf16.mxu0 %v7980_v48  ;;  %v8005_v48 = vld [vmem:[%s11991_s4 + $0x208] sm:$0xff]  }
  0xf1   :  { %6396 = vmatpush3.bf16.msra.mxu1 %v7981_v49 }
  0xf2   :  { %6397 = vmatprep.subr.bf16.mxu1 %v7983_v51  ;;  %v9523_v51 = vld [vmem:[%s11991_s4 + $0x190] sm:$0xff]  }
  0xf3   :  { %6370 = vmatpush3.bf16.msra.mxu0 %v7982_v50  ;;  %v7748_v50 = vld [vmem:[%s11993_s1 + $0x24] ss:$100 sps:$4 sm:$0xff]  }
  0xf4   :  { %6371 = vmatprep.subr.bf16.mxu0 %v7984_v53 }
  0xf5   :  { %v6003_v6 = vpop.f32.mrb[0].mxu0  ;;  %6398 = vmatpush3.bf16.msra.mxu1 %v7985_v57 }
  0xf6   :  { %v6004_v9 = vpop.f32.mrb[1].mxu0  ;;  %6399 = vmatprep.subr.bf16.mxu1 %v7987_v61 }
  0xf7   :  { %v6005_v10 = vadd.f32 %v6004_v9, %v6003_v6  ;;  %v6006_v11 = vpop.f32.mrb[2].mxu0  ;;  %v6031_v12 = vpop.f32.mrb[0].mxu1  ;;  %6372 = vmatpush3.bf16.msra.mxu0 %v7986_v60  ;;  %v7989_v6 = vld [vmem:[%s11991_s4 + $0x128] sm:$0xff]  }
  0xf8   :  { %v6007_v13 = vpop.f32.mrb[3].mxu0  ;;  %v6032_v18 = vpop.f32.mrb[1].mxu1  ;;  %6373 = vmatprep.subr.bf16.mxu0 %v7988_v1 }
  0xf9   :  { %v1976_v16 = vadd.f32 %v6005_v10, %v9320_v8  ;;  %v6008_v17 = vadd.f32 %v6007_v13, %v6006_v11  ;;  %v6033_v20 = vadd.f32 %v6032_v18, %v6031_v12  ;;  %v6034_v21 = vpop.f32.mrb[2].mxu1  ;;  %6400 = vmatpush3.bf16.msra.mxu1 %v7989_v6  ;;  %v7990_v10 = vld [vmem:[%s11991_s4 + $0xb0] sm:$0xff]   ;;  %v7996_v18 = vld [vmem:[%s11991_s4 + $0x1c0] sm:$0xff]  }
  0xfa   :  { %v6035_v24 = vpop.f32.mrb[3].mxu1  ;;  %v7991_v11 = vld [vmem:[%s11991_s4 + $0x170] sm:$0xff]  }
  0xfb   :  { %v1979_v23 = vadd.f32 %v6008_v17, %v9320_v8  ;;  %v9342_v27 = vadd.f32 %v6033_v20, %v1976_v16  ;;  %v6036_v28 = vadd.f32 %v6035_v24, %v6034_v21  ;;  %6374 = vmatpush3.bf16.msra.mxu0 %v7990_v10  ;;  %6401 = vmatprep.subr.bf16.mxu1 %v7991_v11  ;;  %v7993_v13 = vld [vmem:[%s11991_s4 + $0x130] sm:$0xff]   ;;  %v7995_v16 = vld [vmem:[%s11991_s4 + $0x178] sm:$0xff]   ;;  %v9563_v10 = vld [vmem:[%s11991_s4 + $0x1a0] sm:$0xff]  }
  0xfc   :  { %v7734_v21 = vld [vmem:[%s11993_s1 + $0x10] ss:$100 sps:$4 sm:$0xff]   ;;  %v7997_v24 = vld [vmem:[%s11991_s4 + $0x138] sm:$0xff]   ;;  %v8015_v11 = vld [vmem:[%s11991_s4 + $0x260] sm:$0xff]  }
  0xfd   :  { %v9356_v33 = vadd.f32 %v6036_v28, %v1979_v23  ;;  %v6009_v52 = vpop.f32.mrb[4].mxu0  ;;  %6402 = vmatpush3.bf16.msra.mxu1 %v7993_v13  ;;  %v8017_v13 = vld [vmem:[%s11991_s4 + $0x220] sm:$0xff]  }
  0xfe   :  { %v6010_v54 = vpop.f32.mrb[5].mxu0  ;;  %6403 = vmatprep.subr.bf16.mxu1 %v7995_v16  ;;  %v9592_v16 = vld [vmem:[%s11991_s4 + $0x1f0] sm:$0xff]  }
  0xff   :  { %v6011_v55 = vadd.f32 %v6010_v54, %v6009_v52  ;;  %v6012_v56 = vpop.f32.mrb[6].mxu0  ;;  %v6037_v58 = vpop.f32.mrb[4].mxu1  ;;  %v8007_v52 = vld [vmem:[%s11991_s4 + $0x250] sm:$0xff]   ;;  %v9532_v54 = vld [vmem:[%s11991_s4 + $0x1d8] sm:$0xff]  }
 0x100   :  { %v6013_v59 = vpop.f32.mrb[7].mxu0  ;;  %v6038_v0 = vpop.f32.mrb[5].mxu1 }
 0x101   :  { %v1984_v62 = vadd.f32 %v6011_v55, %v9320_v8  ;;  %v6014_v63 = vadd.f32 %v6013_v59, %v6012_v56  ;;  %v6039_v2 = vadd.f32 %v6038_v0, %v6037_v58  ;;  %v6040_v3 = vpop.f32.mrb[6].mxu1  ;;  %6404 = vmatpush3.bf16.msra.mxu1 %v7997_v24  ;;  %v8009_v59 = vld [vmem:[%s11991_s4 + $0x210] sm:$0xff]   ;;  %v8011_v0 = vld [vmem:[%s11991_s4 + $0x258] sm:$0xff]  }
 0x102   :  { %v6041_v5 = vpop.f32.mrb[7].mxu1  ;;  %6445 = vmatprep.subr.bf16.mxu1 %v7999_v30  ;;  %v8027_v24 = vld [vmem:[%s11991_s4 + $0x278] sm:$0xff]   ;;  %v7752_v30 = vld [vmem:[%s11993_s1 + $0xec] ss:$100 sps:$4 sm:$0xff]  }
 0x103   :  { %v1987_v4 = vadd.f32 %v6014_v63, %v9320_v8  ;;  %v9432_v7 = vadd.f32 %v6039_v2, %v1984_v62  ;;  %v6042_v9 = vadd.f32 %v6041_v5, %v6040_v3  ;;  %v7992_v8 = vld [vmem:[%s11991_s4 + $0xf8] sm:$0xff]   ;;  %v9551_v3 = vld [vmem:[%s11991_s4 + $0x1e0] sm:$0xff]  }
 0x104   :  { %6375 = vmatprep.subr.bf16.mxu0 %v7992_v8  ;;  %3013 = vmatmul.mubr.bf16.vlgmr.msra.gmra.mrb[56].mxu1 %v7734_v21  ;;  %v9542_v63 = vld [vmem:[%s11991_s4 + $0x198] sm:$0xff]   ;;  %v8025_v21 = vld [vmem:[%s11991_s4 + $0x230] sm:$0xff]  }
 0x105   :  { %v9443_v12 = vadd.f32 %v6042_v9, %v1987_v4  ;;  %6376 = vmatpush3.bf16.msra.mxu0 %v7994_v15  ;;  %6446 = vmatpush3.bf16.msra.mxu1 %v8001_v40  ;;  %v8013_v9 = vld [vmem:[%s11991_s4 + $0x218] sm:$0xff]   ;;  %v8019_v15 = vld [vmem:[%s11991_s4 + $0x268] sm:$0xff]  }
 0x106   :  { %6417 = vmatprep.subr.bf16.mxu0 %v7996_v18  ;;  %3020 = vmatprep.mubr.bf16.mxu1 %v7740_v25  ;;  %v9601_v18 = vld [vmem:[%s11991_s4 + $0x1b0] sm:$0xff]   ;;  %v8028_v25 = vld [vmem:[%s11991_s4 + $0x2c0] sm:$0xff]  }
 0x108   :  { %2964 = vmatmul.mubr.bf16.vlgmr.msra.gmra.mrb[52].mxu0 %v7731_v14  ;;  %v9583_v14 = vld [vmem:[%s11991_s4 + $0x1a8] sm:$0xff]  }
 0x109   :  { %6418 = vmatpush3.bf16.msra.mxu0 %v7998_v29  ;;  %2971 = vmatprep.mubr.bf16.mxu0 %v7737_v19  ;;  %v8023_v19 = vld [vmem:[%s11991_s4 + $0x270] sm:$0xff]   ;;  %v8029_v29 = vld [vmem:[%s11991_s4 + $0x238] sm:$0xff]  }
 0x10a   :  { %6419 = vmatprep.subr.bf16.mxu0 %v8000_v35 }
 0x10c   :  { %3021 = vmatmul.mubr.bf16.gmra.mrb[60].mxu1 %v7742_v47 }
 0x10d   :  { %6420 = vmatpush3.bf16.msra.mxu0 %v9494_v43  ;;  %3110 = vmatprep.mubr.bf16.mxu1 %v7748_v50  ;;  %v7757_v50 = vld [vmem:[%s11993_s1 + $0x2c] ss:$100 sps:$4 sm:$0xff]  }
 0x10e   :  { %6421 = vmatprep.subr.bf16.mxu0 %v9503_v44 }
 0x111   :  { %6422 = vmatpush3.bf16.msra.mxu0 %v9523_v51 }
 0x112   :  { %6423 = vmatprep.subr.bf16.mxu0 %v9532_v54 }
 0x115   :  { %v6059_v17 = vpop.f32.mrb[8].mxu0  ;;  %6424 = vmatpush3.bf16.msra.mxu0 %v9542_v63 }
 0x116   :  { %v6060_v20 = vpop.f32.mrb[9].mxu0  ;;  %6425 = vmatprep.subr.bf16.mxu0 %v9551_v3 }
 0x117   :  { %v6061_v22 = vadd.f32 %v6060_v20, %v6059_v17  ;;  %v6062_v23 = vpop.f32.mrb[10].mxu0  ;;  %v6087_v26 = vpop.f32.mrb[8].mxu1  ;;  %v8021_v17 = vld [vmem:[%s11991_s4 + $0x228] sm:$0xff]   ;;  %v8024_v20 = vld [vmem:[%s11991_s4 + $0x1f8] sm:$0xff]  }
 0x118   :  { %v6063_v28 = vpop.f32.mrb[11].mxu0  ;;  %v6088_v34 = vpop.f32.mrb[9].mxu1 }
 0x119   :  { %v2074_v31 = vadd.f32 %v6061_v22, %v9342_v27  ;;  %v6064_v32 = vadd.f32 %v6063_v28, %v6062_v23  ;;  %v6089_v36 = vadd.f32 %v6088_v34, %v6087_v26  ;;  %v6090_v37 = vpop.f32.mrb[10].mxu1  ;;  %v7739_v27 = vld [vmem:[%s11993_s1 + $0xd0] ss:$100 sps:$4 sm:$0xff]   ;;  %6426 = vmatpush3.bf16.msra.mxu0 %v9563_v10  ;;  %v7743_v22 = vld [vmem:[%s11993_s1 + $0x18] ss:$100 sps:$4 sm:$0xff]   ;;  %v8032_v34 = vld [vmem:[%s11991_s4 + $0x2c8] sm:$0xff]  }
 0x11a   :  { %v6091_v39 = vpop.f32.mrb[11].mxu1  ;;  %2972 = vmatmul.mubr.bf16.gmra.mrb[56].mxu0 %v7739_v27  ;;  %v8026_v23 = vld [vmem:[%s11991_s4 + $0x1b8] sm:$0xff]   ;;  %v7749_v26 = vld [vmem:[%s11993_s1 + $0xe4] ss:$100 sps:$4 sm:$0xff]  }
 0x11b   :  { %v2077_v38 = vadd.f32 %v6064_v32, %v9356_v33  ;;  %v9489_v41 = vadd.f32 %v6089_v36, %v2074_v31  ;;  %v6092_v42 = vadd.f32 %v6091_v39, %v6090_v37  ;;  %v8003_v33 = vld [vmem:[%s11991_s4 + $0x248] sm:$0xff]   ;;  %3061 = vmatprep.mubr.bf16.mxu0 %v7745_v46  ;;  %v7746_v28 = vld [vmem:[%s11993_s1 + $0x20] ss:$100 sps:$4 sm:$0xff]   ;;  %v8036_v46 = vld [vmem:[%s11991_s4 + $0x2d0] sm:$0xff]  }
 0x11c   :  { %6447 = vmatprep.subr.bf16.mxu1 %v8003_v33  ;;  %v8030_v31 = vld [vmem:[%s11991_s4 + $0x280] sm:$0xff]   ;;  %v8034_v27 = vld [vmem:[%s11991_s4 + $0x288] sm:$0xff]  }
 0x11d   :  { %v9506_v45 = vadd.f32 %v6092_v42, %v2077_v38  ;;  %6448 = vmatpush3.bf16.msra.mxu1 %v8005_v48  ;;  %v6065_v49 = vpop.f32.mrb[12].mxu0  ;;  %v8031_v32 = vld [vmem:[%s11991_s4 + $0x340] sm:$0xff]   ;;  %v8035_v42 = vld [vmem:[%s11991_s4 + $0x348] sm:$0xff]  }
 0x11e   :  { %6449 = vmatprep.subr.bf16.mxu1 %v8007_v52  ;;  %v6066_v53 = vpop.f32.mrb[13].mxu0  ;;  %v8033_v37 = vld [vmem:[%s11991_s4 + $0x300] sm:$0xff]   ;;  %v7754_v52 = vld [vmem:[%s11993_s1 + $0xe8] ss:$100 sps:$4 sm:$0xff]  }
 0x11f   :  { %v6067_v55 = vadd.f32 %v6066_v53, %v6065_v49  ;;  %v6068_v56 = vpop.f32.mrb[14].mxu0  ;;  %v6093_v57 = vpop.f32.mrb[12].mxu1  ;;  %v7751_v38 = vld [vmem:[%s11993_s1 + $0xe0] ss:$100 sps:$4 sm:$0xff]  }
 0x120   :  { %v6069_v58 = vpop.f32.mrb[15].mxu0  ;;  %v6094_v62 = vpop.f32.mrb[13].mxu1 }
 0x121   :  { %6450 = vmatpush3.bf16.msra.mxu1 %v8009_v59  ;;  %v2082_v60 = vadd.f32 %v6067_v55, %v9432_v7  ;;  %v6070_v61 = vadd.f32 %v6069_v58, %v6068_v56  ;;  %v6095_v1 = vadd.f32 %v6094_v62, %v6093_v57  ;;  %v6096_v2 = vpop.f32.mrb[14].mxu1  ;;  %v8037_v55 = vld [vmem:[%s11991_s4 + $0x308] sm:$0xff]   ;;  %v7760_v58 = vld [vmem:[%s11993_s1 + $0x34] ss:$100 sps:$4 sm:$0xff]  }
 0x122   :  { %6451 = vmatprep.subr.bf16.mxu1 %v8011_v0  ;;  %v6097_v5 = vpop.f32.mrb[15].mxu1  ;;  %v8038_v59 = vld [vmem:[%s11991_s4 + $0x290] sm:$0xff]  }
 0x123   :  { %v2085_v4 = vadd.f32 %v6070_v61, %v9443_v12  ;;  %v9555_v6 = vadd.f32 %v6095_v1, %v2082_v60  ;;  %v6098_v7 = vadd.f32 %v6097_v5, %v6096_v2  ;;  %v9574_v12 = vld [vmem:[%s11991_s4 + $0x1e8] sm:$0xff]   ;;  %v8039_v60 = vld [vmem:[%s11991_s4 + $0x350] sm:$0xff]   ;;  %v8043_v5 = vld [vmem:[%s11991_s4 + $0x358] sm:$0xff]  }
 0x124   :  { %6427 = vmatprep.subr.bf16.mxu0 %v9574_v12  ;;  %v8041_v1 = vld [vmem:[%s11991_s4 + $0x310] sm:$0xff]  }
 0x125   :  { %6452 = vmatpush3.bf16.msra.mxu1 %v8013_v9  ;;  %v9569_v8 = vadd.f32 %v6098_v7, %v2085_v4  ;;  %6428 = vmatpush3.bf16.msra.mxu0 %v9583_v14  ;;  %v9694_v4 = vld [vmem:[%s11991_s4 + $0x298] sm:$0xff]   ;;  %v9703_v9 = vld [vmem:[%s11991_s4 + $0x2e0] sm:$0xff]  }
 0x126   :  { %6453 = vmatprep.subr.bf16.mxu1 %v8015_v11  ;;  %6429 = vmatprep.subr.bf16.mxu0 %v9592_v16 }
 0x129   :  { %6454 = vmatpush3.bf16.msra.mxu1 %v8017_v13  ;;  %6430 = vmatpush3.bf16.msra.mxu0 %v9601_v18 }
 0x12a   :  { %6455 = vmatprep.subr.bf16.mxu1 %v8019_v15  ;;  %6431 = vmatprep.subr.bf16.mxu0 %v8024_v20 }
 0x12d   :  { %6456 = vmatpush3.bf16.msra.mxu1 %v8021_v17  ;;  %6432 = vmatpush3.bf16.msra.mxu0 %v8026_v23  ;;  %v8045_v17 = vld [vmem:[%s11991_s4 + $0x318] sm:$0xff]  }
 0x12e   :  { %6457 = vmatprep.subr.bf16.mxu1 %v8023_v19  ;;  %6473 = vmatprep.subr.bf16.mxu0 %v8028_v25 }
 0x130   :  { %3062 = vmatmul.mubr.bf16.vlgmr.msra.gmra.mrb[60].mxu0 %v7743_v22  ;;  %v8047_v22 = vld [vmem:[%s11991_s4 + $0x360] sm:$0xff]  }
 0x131   :  { %6458 = vmatpush3.bf16.msra.mxu1 %v8025_v21  ;;  %6474 = vmatpush3.bf16.msra.mxu0 %v8030_v31  ;;  %v9712_v21 = vld [vmem:[%s11991_s4 + $0x2a0] sm:$0xff]  }
 0x132   :  { %6459 = vmatprep.subr.bf16.mxu1 %v8027_v24  ;;  %6475 = vmatprep.subr.bf16.mxu0 %v8032_v34 }
 0x133   :  { %3069 = vmatprep.mubr.bf16.mxu0 %v7749_v26  ;;  %v9722_v26 = vld [vmem:[%s11991_s4 + $0x2e8] sm:$0xff]  }
 0x135   :  { %6460 = vmatpush3.bf16.msra.mxu1 %v8029_v29  ;;  %v6115_v35 = vpop.f32.mrb[16].mxu0  ;;  %6476 = vmatpush3.bf16.msra.mxu0 %v8034_v27  ;;  %v8056_v27 = vld [vmem:[%s11991_s4 + $0x2f8] sm:$0xff]  }
 0x136   :  { %6501 = vmatprep.subr.bf16.mxu1 %v8031_v32  ;;  %v6116_v36 = vpop.f32.mrb[17].mxu0  ;;  %6477 = vmatprep.subr.bf16.mxu0 %v8036_v46  ;;  %v8049_v32 = vld [vmem:[%s11991_s4 + $0x320] sm:$0xff]   ;;  %v8058_v46 = vld [vmem:[%s11991_s4 + $0x2b8] sm:$0xff]  }
 0x137   :  { %v6117_v39 = vadd.f32 %v6116_v36, %v6115_v35  ;;  %v6118_v40 = vpop.f32.mrb[18].mxu0  ;;  %v6143_v48 = vpop.f32.mrb[16].mxu1  ;;  %v9734_v35 = vld [vmem:[%s11991_s4 + $0x2a8] sm:$0xff]   ;;  %v9743_v36 = vld [vmem:[%s11991_s4 + $0x2f0] sm:$0xff]  }
 0x138   :  { %3111 = vmatmul.mubr.bf16.vlgmr.msra.gmra.mrb[64].mxu1 %v7746_v28  ;;  %v6119_v33 = vpop.f32.mrb[19].mxu0  ;;  %v6144_v53 = vpop.f32.mrb[17].mxu1  ;;  %3070 = vmatmul.mubr.bf16.gmra.mrb[64].mxu0 %v7751_v38  ;;  %v8053_v38 = vld [vmem:[%s11991_s4 + $0x328] sm:$0xff]  }
 0x139   :  { %6502 = vmatpush3.bf16.msra.mxu1 %v8033_v37  ;;  %3118 = vmatprep.mubr.bf16.mxu1 %v7752_v30  ;;  %v2172_v47 = vadd.f32 %v6117_v39, %v9489_v41  ;;  %v6120_v49 = vadd.f32 %v6119_v33, %v6118_v40  ;;  %v6145_v41 = vadd.f32 %v6144_v53, %v6143_v48  ;;  %v6146_v57 = vpop.f32.mrb[18].mxu1  ;;  %v9754_v39 = vld [vmem:[%s11991_s4 + $0x2b0] sm:$0xff]   ;;  %v7755_v33 = vld [vmem:[%s11993_s1 + $0x28] ss:$100 sps:$4 sm:$0xff]   ;;  %v8060_v48 = vld [vmem:[%s11991_s4 + $0x3c0] sm:$0xff]  }
 0x13a   :  { %6503 = vmatprep.subr.bf16.mxu1 %v8035_v42  ;;  %6478 = vmatpush3.bf16.msra.mxu0 %v8038_v59  ;;  %v6147_v61 = vpop.f32.mrb[19].mxu1  ;;  %v8055_v40 = vld [vmem:[%s11991_s4 + $0x370] sm:$0xff]   ;;  %v7764_v53 = vld [vmem:[%s11993_s1 + $0xfc] ss:$100 sps:$4 sm:$0xff]  }
 0x13b   :  { %v2175_v56 = vadd.f32 %v6120_v49, %v9506_v45  ;;  %v8040_v45 = vld [vmem:[%s11991_s4 + $0x2d8] sm:$0xff]   ;;  %v9684_v62 = vadd.f32 %v6145_v41, %v2172_v47  ;;  %v6148_v0 = vadd.f32 %v6147_v61, %v6146_v57  ;;  %3159 = vmatprep.mubr.bf16.mxu0 %v7757_v50  ;;  %v8057_v42 = vld [vmem:[%s11991_s4 + $0x330] sm:$0xff]   ;;  %v8064_v41 = vld [vmem:[%s11991_s4 + $0x3c8] sm:$0xff]  }
 0x13c   :  { %6479 = vmatprep.subr.bf16.mxu0 %v8040_v45  ;;  %v8059_v47 = vld [vmem:[%s11991_s4 + $0x378] sm:$0xff]   ;;  %v7758_v50 = vld [vmem:[%s11993_s1 + $0x30] ss:$100 sps:$4 sm:$0xff]   ;;  %v8067_v61 = vld [vmem:[%s11991_s4 + $0x448] sm:$0xff]  }
 0x13d   :  { %6504 = vmatpush3.bf16.msra.mxu1 %v8037_v55  ;;  %v9689_v2 = vadd.f32 %v6148_v0, %v2175_v56  ;;  %v6121_v7 = vpop.f32.mrb[20].mxu0  ;;  %v7761_v49 = vld [vmem:[%s11993_s1 + $0xf4] ss:$100 sps:$4 sm:$0xff]   ;;  %v8062_v55 = vld [vmem:[%s11991_s4 + $0x380] sm:$0xff]  }
 0x13e   :  { %6505 = vmatprep.subr.bf16.mxu1 %v8039_v60  ;;  %6480 = vmatpush3.bf16.msra.mxu0 %v9694_v4  ;;  %v6122_v11 = vpop.f32.mrb[21].mxu0  ;;  %v8063_v56 = vld [vmem:[%s11991_s4 + $0x440] sm:$0xff]   ;;  %v7763_v57 = vld [vmem:[%s11993_s1 + $0xf0] ss:$100 sps:$4 sm:$0xff]   ;;  %v8066_v60 = vld [vmem:[%s11991_s4 + $0x388] sm:$0xff]  }
 0x13f   :  { %6481 = vmatprep.subr.bf16.mxu0 %v9703_v9  ;;  %v6123_v13 = vadd.f32 %v6122_v11, %v6121_v7  ;;  %v6124_v15 = vpop.f32.mrb[22].mxu0  ;;  %v6149_v19 = vpop.f32.mrb[20].mxu1  ;;  %v7769_v59 = vld [vmem:[%s11993_s1 + $0x3c] ss:$100 sps:$4 sm:$0xff]   ;;  %v8068_v0 = vld [vmem:[%s11991_s4 + $0x3d0] sm:$0xff]  }
 0x140   :  { %3119 = vmatmul.mubr.bf16.gmra.mrb[68].mxu1 %v7754_v52  ;;  %v6125_v20 = vpop.f32.mrb[23].mxu0  ;;  %v6150_v25 = vpop.f32.mrb[21].mxu1  ;;  %v8061_v52 = vld [vmem:[%s11991_s4 + $0x338] sm:$0xff]   ;;  %v8070_v11 = vld [vmem:[%s11991_s4 + $0x390] sm:$0xff]  }
 0x141   :  { %6506 = vmatpush3.bf16.msra.mxu1 %v8041_v1  ;;  %3208 = vmatprep.mubr.bf16.mxu1 %v7760_v58  ;;  %v2180_v23 = vadd.f32 %v6123_v13, %v9555_v6  ;;  %v6126_v24 = vadd.f32 %v6125_v20, %v6124_v15  ;;  %v6151_v28 = vadd.f32 %v6150_v25, %v6149_v19  ;;  %v6152_v29 = vpop.f32.mrb[22].mxu1  ;;  %v8065_v58 = vld [vmem:[%s11991_s4 + $0x400] sm:$0xff]   ;;  %v7766_v45 = vld [vmem:[%s11993_s1 + $0xf8] ss:$100 sps:$4 sm:$0xff]   ;;  %v8071_v13 = vld [vmem:[%s11991_s4 + $0x450] sm:$0xff]  }
 0x142   :  { %6507 = vmatprep.subr.bf16.mxu1 %v8043_v5  ;;  %6482 = vmatpush3.bf16.msra.mxu0 %v9712_v21  ;;  %v6153_v31 = vpop.f32.mrb[23].mxu1  ;;  %v7772_v1 = vld [vmem:[%s11993_s1 + $0x44] ss:$100 sps:$4 sm:$0xff]  }
 0x143   :  { %6483 = vmatprep.subr.bf16.mxu0 %v9722_v26  ;;  %v2183_v30 = vadd.f32 %v6126_v24, %v9569_v8  ;;  %v9729_v6 = vadd.f32 %v6151_v28, %v2180_v23  ;;  %v6154_v34 = vadd.f32 %v6153_v31, %v6152_v29  ;;  %v8051_v8 = vld [vmem:[%s11991_s4 + $0x368] sm:$0xff]   ;;  %v8073_v24 = vld [vmem:[%s11991_s4 + $0x410] sm:$0xff]   ;;  %v8075_v31 = vld [vmem:[%s11991_s4 + $0x458] sm:$0xff]  }
 0x144   :  { %v8069_v5 = vld [vmem:[%s11991_s4 + $0x408] sm:$0xff]  }
 0x145   :  { %6508 = vmatpush3.bf16.msra.mxu1 %v8045_v17  ;;  %v9746_v37 = vadd.f32 %v6154_v34, %v2183_v30  ;;  %v8072_v17 = vld [vmem:[%s11991_s4 + $0x3d8] sm:$0xff]  }
 0x146   :  { %6509 = vmatprep.subr.bf16.mxu1 %v8047_v22  ;;  %6484 = vmatpush3.bf16.msra.mxu0 %v9734_v35  ;;  %v8074_v30 = vld [vmem:[%s11991_s4 + $0x398] sm:$0xff]  }
 0x147   :  { %6485 = vmatprep.subr.bf16.mxu0 %v9743_v36 }
 0x149   :  { %6510 = vmatpush3.bf16.msra.mxu1 %v8049_v32 }
 0x14a   :  { %6511 = vmatprep.subr.bf16.mxu1 %v8051_v8  ;;  %6486 = vmatpush3.bf16.msra.mxu0 %v9754_v39  ;;  %v8076_v8 = vld [vmem:[%s11991_s4 + $0x3e0] sm:$0xff]  }
 0x14b   :  { %6487 = vmatprep.subr.bf16.mxu0 %v8056_v27 }
 0x14d   :  { %6512 = vmatpush3.bf16.msra.mxu1 %v8053_v38 }
 0x14e   :  { %6513 = vmatprep.subr.bf16.mxu1 %v8055_v40  ;;  %6488 = vmatpush3.bf16.msra.mxu0 %v8058_v46 }
 0x14f   :  { %6529 = vmatprep.subr.bf16.mxu0 %v8060_v48 }
 0x151   :  { %6514 = vmatpush3.bf16.msra.mxu1 %v8057_v42  ;;  %3160 = vmatmul.mubr.bf16.vlgmr.msra.gmra.mrb[68].mxu0 %v7755_v33  ;;  %v8077_v42 = vld [vmem:[%s11991_s4 + $0x418] sm:$0xff]   ;;  %v9857_v33 = vld [vmem:[%s11991_s4 + $0x3a0] sm:$0xff]  }
 0x152   :  { %6515 = vmatprep.subr.bf16.mxu1 %v8059_v47  ;;  %6530 = vmatpush3.bf16.msra.mxu0 %v8062_v55  ;;  %v8080_v47 = vld [vmem:[%s11991_s4 + $0x3e8] sm:$0xff]  }
 0x153   :  { %6531 = vmatprep.subr.bf16.mxu0 %v8064_v41  ;;  %3167 = vmatprep.mubr.bf16.mxu0 %v7761_v49  ;;  %v8082_v55 = vld [vmem:[%s11991_s4 + $0x3a8] sm:$0xff]  }
 0x155   :  { %6516 = vmatpush3.bf16.msra.mxu1 %v8061_v52  ;;  %v6171_v7 = vpop.f32.mrb[24].mxu0 }
 0x156   :  { %6557 = vmatprep.subr.bf16.mxu1 %v8063_v56  ;;  %6532 = vmatpush3.bf16.msra.mxu0 %v8066_v60  ;;  %v6172_v15 = vpop.f32.mrb[25].mxu0  ;;  %v8083_v56 = vld [vmem:[%s11991_s4 + $0x468] sm:$0xff]  }
 0x157   :  { %6533 = vmatprep.subr.bf16.mxu0 %v8068_v0  ;;  %v6173_v19 = vadd.f32 %v6172_v15, %v6171_v7  ;;  %v6174_v20 = vpop.f32.mrb[26].mxu0  ;;  %v6199_v22 = vpop.f32.mrb[24].mxu1  ;;  %v8086_v7 = vld [vmem:[%s11991_s4 + $0x3b0] sm:$0xff]  }
 0x158   :  { %3209 = vmatmul.mubr.bf16.vlgmr.msra.gmra.mrb[72].mxu1 %v7758_v50  ;;  %v6175_v23 = vpop.f32.mrb[27].mxu0  ;;  %v6200_v29 = vpop.f32.mrb[25].mxu1  ;;  %v8081_v50 = vld [vmem:[%s11991_s4 + $0x420] sm:$0xff]  }
 0x159   :  { %6558 = vmatpush3.bf16.msra.mxu1 %v8065_v58  ;;  %3216 = vmatprep.mubr.bf16.mxu1 %v7764_v53  ;;  %v2270_v25 = vadd.f32 %v6173_v19, %v9684_v62  ;;  %v6176_v28 = vadd.f32 %v6175_v23, %v6174_v20  ;;  %v6201_v32 = vadd.f32 %v6200_v29, %v6199_v22  ;;  %v6202_v34 = vpop.f32.mrb[26].mxu1  ;;  %v7767_v19 = vld [vmem:[%s11993_s1 + $0x38] ss:$100 sps:$4 sm:$0xff]  }
 0x15a   :  { %6559 = vmatprep.subr.bf16.mxu1 %v8067_v61  ;;  %3168 = vmatmul.mubr.bf16.gmra.mrb[72].mxu0 %v7763_v57  ;;  %v6203_v38 = vpop.f32.mrb[27].mxu1  ;;  %v8084_v57 = vld [vmem:[%s11991_s4 + $0x3f0] sm:$0xff]   ;;  %v8090_v22 = vld [vmem:[%s11991_s4 + $0x3b8] sm:$0xff]  }
 0x15b   :  { %6534 = vmatpush3.bf16.msra.mxu0 %v8070_v11  ;;  %3257 = vmatprep.mubr.bf16.mxu0 %v7769_v59  ;;  %v2273_v62 = vadd.f32 %v6176_v28, %v9689_v2  ;;  %v9849_v40 = vadd.f32 %v6201_v32, %v2270_v25  ;;  %v6204_v27 = vadd.f32 %v6203_v38, %v6202_v34  ;;  %v8079_v2 = vld [vmem:[%s11991_s4 + $0x460] sm:$0xff]   ;;  %v8091_v23 = vld [vmem:[%s11991_s4 + $0x478] sm:$0xff]   ;;  %v8096_v34 = vld [vmem:[%s11991_s4 + $0x4c8] sm:$0xff]  }
 0x15c   :  { %6535 = vmatprep.subr.bf16.mxu0 %v8072_v17  ;;  %v8089_v17 = vld [vmem:[%s11991_s4 + $0x430] sm:$0xff]   ;;  %v7773_v25 = vld [vmem:[%s11993_s1 + $0x104] ss:$100 sps:$4 sm:$0xff]   ;;  %v8093_v29 = vld [vmem:[%s11991_s4 + $0x438] sm:$0xff]  }
 0x15d   :  { %6560 = vmatpush3.bf16.msra.mxu1 %v8069_v5  ;;  %v9863_v46 = vadd.f32 %v6204_v27, %v2273_v62  ;;  %v6177_v48 = vpop.f32.mrb[28].mxu0  ;;  %v7770_v28 = vld [vmem:[%s11993_s1 + $0x40] ss:$100 sps:$4 sm:$0xff]   ;;  %v8098_v38 = vld [vmem:[%s11991_s4 + $0x488] sm:$0xff]  }
 0x15e   :  { %6561 = vmatprep.subr.bf16.mxu1 %v8071_v13  ;;  %v6178_v49 = vpop.f32.mrb[29].mxu0  ;;  %v8088_v13 = vld [vmem:[%s11991_s4 + $0x3f8] sm:$0xff]   ;;  %v8095_v32 = vld [vmem:[%s11991_s4 + $0x540] sm:$0xff]   ;;  %v8099_v27 = vld [vmem:[%s11991_s4 + $0x548] sm:$0xff]  }
 0x15f   :  { %6536 = vmatpush3.bf16.msra.mxu0 %v8074_v30  ;;  %v6179_v52 = vadd.f32 %v6178_v49, %v6177_v48  ;;  %v6180_v53 = vpop.f32.mrb[30].mxu0  ;;  %v6205_v59 = vpop.f32.mrb[28].mxu1  ;;  %v7776_v30 = vld [vmem:[%s11993_s1 + $0x10c] ss:$100 sps:$4 sm:$0xff]   ;;  %v7775_v62 = vld [vmem:[%s11993_s1 + $0x100] ss:$100 sps:$4 sm:$0xff]  }
 0x160   :  { %3217 = vmatmul.mubr.bf16.gmra.mrb[76].mxu1 %v7766_v45  ;;  %6537 = vmatprep.subr.bf16.mxu0 %v8076_v8  ;;  %v6181_v41 = vpop.f32.mrb[31].mxu0  ;;  %v6206_v61 = vpop.f32.mrb[29].mxu1  ;;  %v8085_v45 = vld [vmem:[%s11991_s4 + $0x428] sm:$0xff]   ;;  %v8097_v8 = vld [vmem:[%s11991_s4 + $0x500] sm:$0xff]   ;;  %v7784_v49 = vld [vmem:[%s11993_s1 + $0x54] ss:$100 sps:$4 sm:$0xff]  }
 0x161   :  { %6562 = vmatpush3.bf16.msra.mxu1 %v8073_v24  ;;  %3306 = vmatprep.mubr.bf16.mxu1 %v7772_v1  ;;  %v2278_v58 = vadd.f32 %v6179_v52, %v9729_v6  ;;  %v6182_v60 = vadd.f32 %v6181_v41, %v6180_v53  ;;  %v6207_v1 = vadd.f32 %v6206_v61, %v6205_v59  ;;  %v6208_v5 = vpop.f32.mrb[30].mxu1  ;;  %v8087_v6 = vld [vmem:[%s11991_s4 + $0x470] sm:$0xff]   ;;  %v8092_v24 = vld [vmem:[%s11991_s4 + $0x4c0] sm:$0xff]   ;;  %v8101_v48 = vld [vmem:[%s11991_s4 + $0x508] sm:$0xff]  }
 0x162   :  { %6563 = vmatprep.subr.bf16.mxu1 %v8075_v31  ;;  %v6209_v11 = vpop.f32.mrb[31].mxu1  ;;  %v8094_v31 = vld [vmem:[%s11991_s4 + $0x480] sm:$0xff]   ;;  %v8103_v52 = vld [vmem:[%s11991_s4 + $0x550] sm:$0xff]   ;;  %v8104_v53 = vld [vmem:[%s11991_s4 + $0x4d8] sm:$0xff]  }
 0x163   :  { %6538 = vmatpush3.bf16.msra.mxu0 %v9857_v33  ;;  %v2281_v0 = vadd.f32 %v6182_v60, %v9746_v37  ;;  %v9894_v15 = vadd.f32 %v6207_v1, %v2278_v58  ;;  %v6210_v37 = vadd.f32 %v6209_v11, %v6208_v5  ;;  %v8107_v41 = vld [vmem:[%s11991_s4 + $0x558] sm:$0xff]   ;;  %v8108_v58 = vld [vmem:[%s11991_s4 + $0x4e0] sm:$0xff]  }
 0x164   :  { %6539 = vmatprep.subr.bf16.mxu0 %v8080_v47  ;;  %v7778_v47 = vld [vmem:[%s11993_s1 + $0x108] ss:$100 sps:$4 sm:$0xff]   ;;  %v8110_v5 = vld [vmem:[%s11991_s4 + $0x4a0] sm:$0xff]  }
 0x165   :  { %6564 = vmatpush3.bf16.msra.mxu1 %v8077_v42  ;;  %v9902_v20 = vadd.f32 %v6210_v37, %v2281_v0  ;;  %v8100_v42 = vld [vmem:[%s11991_s4 + $0x4d0] sm:$0xff]   ;;  %v8112_v37 = vld [vmem:[%s11991_s4 + $0x4e8] sm:$0xff]  }
 0x166   :  { %6565 = vmatprep.subr.bf16.mxu1 %v8079_v2  ;;  %v7781_v2 = vld [vmem:[%s11993_s1 + $0x4c] ss:$100 sps:$4 sm:$0xff]  }
 0x167   :  { %6540 = vmatpush3.bf16.msra.mxu0 %v8082_v55  ;;  %v8105_v55 = vld [vmem:[%s11991_s4 + $0x510] sm:$0xff]  }
 0x168   :  { %6541 = vmatprep.subr.bf16.mxu0 %v8084_v57 }
 0x169   :  { %6566 = vmatpush3.bf16.msra.mxu1 %v8081_v50  ;;  %v8102_v50 = vld [vmem:[%s11991_s4 + $0x490] sm:$0xff]  }
 0x16a   :  { %6567 = vmatprep.subr.bf16.mxu1 %v8083_v56  ;;  %v8106_v56 = vld [vmem:[%s11991_s4 + $0x498] sm:$0xff]  }
 0x16b   :  { %6542 = vmatpush3.bf16.msra.mxu0 %v8086_v7  ;;  %v8111_v7 = vld [vmem:[%s11991_s4 + $0x560] sm:$0xff]  }
 0x16c   :  { %6543 = vmatprep.subr.bf16.mxu0 %v8088_v13 }
 0x16d   :  { %6568 = vmatpush3.bf16.msra.mxu1 %v8085_v45  ;;  %v8109_v45 = vld [vmem:[%s11991_s4 + $0x518] sm:$0xff]  }
 0x16e   :  { %6569 = vmatprep.subr.bf16.mxu1 %v8087_v6 }
 0x16f   :  { %6544 = vmatpush3.bf16.msra.mxu0 %v8090_v22 }
 0x170   :  { %6585 = vmatprep.subr.bf16.mxu0 %v8092_v24  ;;  %v8113_v24 = vld [vmem:[%s11991_s4 + $0x520] sm:$0xff]  }
 0x171   :  { %6570 = vmatpush3.bf16.msra.mxu1 %v8089_v17 }
 0x172   :  { %6571 = vmatprep.subr.bf16.mxu1 %v8091_v23  ;;  %3258 = vmatmul.mubr.bf16.vlgmr.msra.gmra.mrb[76].mxu0 %v7767_v19 }
 0x173   :  { %6586 = vmatpush3.bf16.msra.mxu0 %v8094_v31  ;;  %3265 = vmatprep.mubr.bf16.mxu0 %v7773_v25  ;;  %v8117_v31 = vld [vmem:[%s11991_s4 + $0x528] sm:$0xff]  }
 0x174   :  { %6587 = vmatprep.subr.bf16.mxu0 %v8096_v34  ;;  %v8118_v34 = vld [vmem:[%s11991_s4 + $0x4b0] sm:$0xff]  }
 0x175   :  { %6572 = vmatpush3.bf16.msra.mxu1 %v8093_v29  ;;  %v6227_v57 = vpop.f32.mrb[32].mxu0  ;;  %v8115_v29 = vld [vmem:[%s11991_s4 + $0x568] sm:$0xff]  }
 0x176   :  { %6613 = vmatprep.subr.bf16.mxu1 %v8095_v32  ;;  %v6228_v59 = vpop.f32.mrb[33].mxu0 }
 0x177   :  { %6588 = vmatpush3.bf16.msra.mxu0 %v8098_v38  ;;  %v6229_v60 = vadd.f32 %v6228_v59, %v6227_v57  ;;  %v6230_v61 = vpop.f32.mrb[34].mxu0  ;;  %v6255_v0 = vpop.f32.mrb[32].mxu1  ;;  %v8124_v59 = vld [vmem:[%s11991_s4 + $0x5c0] sm:$0xff]  }
 0x178   :  { %3307 = vmatmul.mubr.bf16.vlgmr.msra.gmra.mrb[80].mxu1 %v7770_v28  ;;  %6589 = vmatprep.subr.bf16.mxu0 %v8100_v42  ;;  %v6231_v1 = vpop.f32.mrb[35].mxu0  ;;  %v6256_v13 = vpop.f32.mrb[33].mxu1  ;;  %v8114_v28 = vld [vmem:[%s11991_s4 + $0x4a8] sm:$0xff]  }
 0x179   :  { %6614 = vmatpush3.bf16.msra.mxu1 %v8097_v8  ;;  %3314 = vmatprep.mubr.bf16.mxu1 %v7776_v30  ;;  %v2368_v6 = vadd.f32 %v6229_v60, %v9849_v40  ;;  %v6232_v11 = vadd.f32 %v6231_v1, %v6230_v61  ;;  %v6257_v17 = vadd.f32 %v6256_v13, %v6255_v0  ;;  %v6258_v19 = vpop.f32.mrb[34].mxu1  ;;  %v8116_v30 = vld [vmem:[%s11991_s4 + $0x4f0] sm:$0xff]   ;;  %v7788_v1 = vld [vmem:[%s11993_s1 + $0x11c] ss:$100 sps:$4 sm:$0xff]  }
 0x17a   :  { %6615 = vmatprep.subr.bf16.mxu1 %v8099_v27  ;;  %3266 = vmatmul.mubr.bf16.gmra.mrb[80].mxu0 %v7775_v62  ;;  %v6259_v23 = vpop.f32.mrb[35].mxu1  ;;  %v8119_v8 = vld [vmem:[%s11991_s4 + $0x570] sm:$0xff]   ;;  %v8120_v27 = vld [vmem:[%s11991_s4 + $0x4f8] sm:$0xff]  }
 0x17b   :  { %6590 = vmatpush3.bf16.msra.mxu0 %v8102_v50  ;;  %3355 = vmatprep.mubr.bf16.mxu0 %v7781_v2  ;;  %v2371_v22 = vadd.f32 %v6232_v11, %v9863_v46  ;;  %v9999_v25 = vadd.f32 %v6257_v17, %v2368_v6  ;;  %v6260_v40 = vadd.f32 %v6259_v23, %v6258_v19  ;;  %v7785_v60 = vld [vmem:[%s11993_s1 + $0x114] ss:$100 sps:$4 sm:$0xff]   ;;  %v8127_v6 = vld [vmem:[%s11991_s4 + $0x600] sm:$0xff]   ;;  %v8128_v11 = vld [vmem:[%s11991_s4 + $0x5c8] sm:$0xff]  }
 0x17c   :  { %6591 = vmatprep.subr.bf16.mxu0 %v8104_v53  ;;  %v7779_v53 = vld [vmem:[%s11993_s1 + $0x48] ss:$100 sps:$4 sm:$0xff]   ;;  %v7782_v0 = vld [vmem:[%s11993_s1 + $0x50] ss:$100 sps:$4 sm:$0xff]   ;;  %v7790_v23 = vld [vmem:[%s11993_s1 + $0x118] ss:$100 sps:$4 sm:$0xff]  }
 0x17d   :  { %6616 = vmatpush3.bf16.msra.mxu1 %v8101_v48  ;;  %v10007_v46 = vadd.f32 %v6260_v40, %v2371_v22  ;;  %v6233_v32 = vpop.f32.mrb[36].mxu0  ;;  %v8121_v48 = vld [vmem:[%s11991_s4 + $0x530] sm:$0xff]   ;;  %v8130_v17 = vld [vmem:[%s11991_s4 + $0x608] sm:$0xff]   ;;  %v7793_v22 = vld [vmem:[%s11993_s1 + $0x5c] ss:$100 sps:$4 sm:$0xff]  }
 0x17e   :  { %6617 = vmatprep.subr.bf16.mxu1 %v8103_v52  ;;  %v6234_v62 = vpop.f32.mrb[37].mxu0  ;;  %v7787_v13 = vld [vmem:[%s11993_s1 + $0x110] ss:$100 sps:$4 sm:$0xff]  }
 0x17f   :  { %6592 = vmatpush3.bf16.msra.mxu0 %v8106_v56  ;;  %v6235_v38 = vadd.f32 %v6234_v62, %v6233_v32  ;;  %v6236_v42 = vpop.f32.mrb[38].mxu0  ;;  %v6261_v2 = vpop.f32.mrb[36].mxu1  ;;  %v8131_v19 = vld [vmem:[%s11991_s4 + $0x5d0] sm:$0xff]   ;;  %v8137_v32 = vld [vmem:[%s11991_s4 + $0x5e0] sm:$0xff]  }
 0x180   :  { %3315 = vmatmul.mubr.bf16.gmra.mrb[84].mxu1 %v7778_v47  ;;  %6593 = vmatprep.subr.bf16.mxu0 %v8108_v58  ;;  %v6237_v47 = vpop.f32.mrb[39].mxu0  ;;  %v6262_v52 = vpop.f32.mrb[37].mxu1  ;;  %v8132_v40 = vld [vmem:[%s11991_s4 + $0x590] sm:$0xff]  }
 0x181   :  { %6618 = vmatpush3.bf16.msra.mxu1 %v8105_v55  ;;  %3404 = vmatprep.mubr.bf16.mxu1 %v7784_v49  ;;  %v2376_v49 = vadd.f32 %v6235_v38, %v9894_v15  ;;  %v6238_v50 = vadd.f32 %v6237_v47, %v6236_v42  ;;  %v8122_v55 = vld [vmem:[%s11991_s4 + $0x4b8] sm:$0xff]   ;;  %v6263_v56 = vadd.f32 %v6262_v52, %v6261_v2  ;;  %v6264_v57 = vpop.f32.mrb[38].mxu1  ;;  %v8140_v38 = vld [vmem:[%s11991_s4 + $0x5e8] sm:$0xff]  }
 0x182   :  { %6619 = vmatprep.subr.bf16.mxu1 %v8107_v41  ;;  %v8123_v41 = vld [vmem:[%s11991_s4 + $0x578] sm:$0xff]   ;;  %v6265_v58 = vpop.f32.mrb[39].mxu1  ;;  %v8141_v47 = vld [vmem:[%s11991_s4 + $0x5a8] sm:$0xff]  }
 0x183   :  { %6594 = vmatpush3.bf16.msra.mxu0 %v8110_v5  ;;  %v2379_v15 = vadd.f32 %v6238_v50, %v9902_v20  ;;  %v10044_v61 = vadd.f32 %v6263_v56, %v2376_v49  ;;  %v8125_v20 = vld [vmem:[%s11991_s4 + $0x538] sm:$0xff]   ;;  %v8142_v49 = vld [vmem:[%s11991_s4 + $0x628] sm:$0xff]  }
 0x184   :  { %6595 = vmatprep.subr.bf16.mxu0 %v8112_v37  ;;  %v8129_v37 = vld [vmem:[%s11991_s4 + $0x588] sm:$0xff]  }
 0x185   :  { %6620 = vmatpush3.bf16.msra.mxu1 %v8109_v45  ;;  %v6266_v45 = vadd.f32 %v6265_v58, %v6264_v57 }
 0x186   :  { %6621 = vmatprep.subr.bf16.mxu1 %v8111_v7  ;;  %v8126_v7 = vld [vmem:[%s11991_s4 + $0x580] sm:$0xff]  }
 0x187   :  { %6596 = vmatpush3.bf16.msra.mxu0 %v8114_v28  ;;  %v10055_v5 = vadd.f32 %v6266_v45, %v2379_v15  ;;  %v8133_v28 = vld [vmem:[%s11991_s4 + $0x610] sm:$0xff]  }
 0x188   :  { %6597 = vmatprep.subr.bf16.mxu0 %v8116_v30  ;;  %v8135_v30 = vld [vmem:[%s11991_s4 + $0x598] sm:$0xff]  }
 0x189   :  { %6622 = vmatpush3.bf16.msra.mxu1 %v8113_v24  ;;  %v7794_v24 = vld [vmem:[%s11993_s1 + $0x60] ss:$100 sps:$4 sm:$0xff]  }
 0x18a   :  { %6623 = vmatprep.subr.bf16.mxu1 %v8115_v29  ;;  %v8134_v29 = vld [vmem:[%s11991_s4 + $0x5d8] sm:$0xff]  }
 0x18b   :  { %6598 = vmatpush3.bf16.msra.mxu0 %v8118_v34  ;;  %v8138_v34 = vld [vmem:[%s11991_s4 + $0x5a0] sm:$0xff]  }
 0x18c   :  { %6599 = vmatprep.subr.bf16.mxu0 %v8120_v27 }
 0x18d   :  { %6624 = vmatpush3.bf16.msra.mxu1 %v8117_v31  ;;  %v8136_v31 = vld [vmem:[%s11991_s4 + $0x618] sm:$0xff]  }
 0x18e   :  { %6625 = vmatprep.subr.bf16.mxu1 %v8119_v8  ;;  %v8139_v8 = vld [vmem:[%s11991_s4 + $0x620] sm:$0xff]  }
 0x18f   :  { %6600 = vmatpush3.bf16.msra.mxu0 %v8122_v55  ;;  %v8143_v55 = vld [vmem:[%s11991_s4 + $0x5f0] sm:$0xff]  }
 0x190   :  { %6641 = vmatprep.subr.bf16.mxu0 %v8124_v59  ;;  %v8144_v59 = vld [vmem:[%s11991_s4 + $0x5b0] sm:$0xff]  }
 0x191   :  { %6626 = vmatpush3.bf16.msra.mxu1 %v8121_v48 }
 0x192   :  { %6627 = vmatprep.subr.bf16.mxu1 %v8123_v41  ;;  %3356 = vmatmul.mubr.bf16.vlgmr.msra.gmra.mrb[84].mxu0 %v7779_v53 }
 0x193   :  { %6642 = vmatpush3.bf16.msra.mxu0 %v8126_v7  ;;  %3363 = vmatprep.mubr.bf16.mxu0 %v7785_v60 }
 0x194   :  { %6643 = vmatprep.subr.bf16.mxu0 %v8128_v11 }
 0x195   :  { %6628 = vmatpush3.bf16.msra.mxu1 %v8125_v20  ;;  %v6283_v62 = vpop.f32.mrb[40].mxu0 }
 0x196   :  { %7391 = vmatprep.subr.bf16.mxu1 %v8127_v6  ;;  %v6284_v27 = vpop.f32.mrb[41].mxu0 }
 0x197   :  { %6644 = vmatpush3.bf16.msra.mxu0 %v8129_v37  ;;  %v6285_v42 = vadd.f32 %v6284_v27, %v6283_v62  ;;  %v6286_v2 = vpop.f32.mrb[42].mxu0  ;;  %v6311_v52 = vpop.f32.mrb[40].mxu1  ;;  %v8151_v62 = vld [vmem:[%s11991_s4 + $0xc0] sm:$0xff]  }
 0x198   :  { %3405 = vmatmul.mubr.bf16.vlgmr.msra.gmra.mrb[88].mxu1 %v7782_v0  ;;  %6645 = vmatprep.subr.bf16.mxu0 %v8131_v19  ;;  %v6287_v48 = vpop.f32.mrb[43].mxu0  ;;  %v6312_v56 = vpop.f32.mrb[41].mxu1 }
 0x199   :  { %7392 = vmatpush3.bf16.msra.mxu1 %v8127_v6  ;;  %3412 = vmatprep.mubr.bf16.mxu1 %v7788_v1  ;;  %v2466_v50 = vadd.f32 %v6285_v42, %v9999_v25  ;;  %v6288_v53 = vadd.f32 %v6287_v48, %v6286_v2  ;;  %v6313_v57 = vadd.f32 %v6312_v56, %v6311_v52  ;;  %v6314_v15 = vpop.f32.mrb[42].mxu1  ;;  %v8145_v25 = vld [vmem:[%s11991_s4 + $0x630] sm:$0xff]   ;;  %v7791_v6 = vld [vmem:[%s11993_s1 + $0x58] ss:$100 sps:$4 sm:$0xff]   ;;  %v8153_v42 = vld [vmem:[%s11991_s4 + $0x80] sm:$0xff]  }
 0x19a   :  { %7393 = vmatprep.subr.bf16.mxu1 %v8130_v17  ;;  %3364 = vmatmul.mubr.bf16.gmra.mrb[88].mxu0 %v7787_v13  ;;  %v6315_v58 = vpop.f32.mrb[43].mxu1  ;;  %v8147_v13 = vld [vmem:[%s11991_s4 + $0x5b8] sm:$0xff]   ;;  %v7798_v2 = vld [vmem:[%s11993_s1 + $0x120] ss:$100 sps:$4 sm:$0xff]   ;;  %v8154_v48 = vld [vmem:[%s11991_s4 + $0x8] sm:$0xff]  }
 0x19b   :  { %6646 = vmatpush3.bf16.msra.mxu0 %v8132_v40  ;;  %3453 = vmatprep.mubr.bf16.mxu0 %v7793_v22  ;;  %v2469_v41 = vadd.f32 %v6288_v53, %v10007_v46  ;;  %v6316_v60 = vadd.f32 %v6315_v58, %v6314_v15  ;;  %v8146_v46 = vld [vmem:[%s11991_s4 + $0x5f8] sm:$0xff]   ;;  %v10134_v0 = vadd.f32 %v6313_v57, %v2466_v50  ;;  %v7796_v40 = vld [vmem:[%s11993_s1 + $0x124] ss:$100 sps:$4 sm:$0xff]   ;;  %v8156_v50 = vld [vmem:[%s11991_s4 + $0x50] sm:$0xff]  }
 0x19c   :  { %6647 = vmatprep.subr.bf16.mxu0 %v8134_v29  ;;  %v7795_v29 = vld [vmem:[%s11993_s1 + $0x128] ss:$100 sps:$4 sm:$0xff]   ;;  %v8159_v56 = vld [vmem:[%s11991_s4 + $0xd0] sm:$0xff]   ;;  %v8162_v15 = vld [vmem:[%s11991_s4 + $0x18] sm:$0xff]  }
 0x19d   :  { %7394 = vmatpush3.bf16.msra.mxu1 %v8130_v17  ;;  %v6289_v45 = vpop.f32.mrb[44].mxu0  ;;  %v10139_v11 = vadd.f32 %v6316_v60, %v2469_v41  ;;  %v8148_v17 = vld [vmem:[%s11991_s4 + $0x638] sm:$0xff]   ;;  %v7801_v52 = vld [vmem:[%s11995_s2 + $0x4] ss:$100 sps:$4 sm:$0xff]   ;;  %v8161_v57 = vld [vmem:[%s11991_s4 + $0x90] sm:$0xff]  }
 0x19e   :  { %7395 = vmatprep.subr.bf16.mxu1 %v8133_v28  ;;  %v6290_v20 = vpop.f32.mrb[45].mxu0  ;;  %v8157_v53 = vld [vmem:[%s11991_s4 + $0x88] sm:$0xff]   ;;  %v8160_v41 = vld [vmem:[%s11991_s4 + $0x58] sm:$0xff]   ;;  %v8166_v60 = vld [vmem:[%s11991_s4 + $0x20] sm:$0xff]  }
 0x19f   :  { %6648 = vmatpush3.bf16.msra.mxu0 %v8135_v30  ;;  %v6291_v1 = vadd.f32 %v6290_v20, %v6289_v45  ;;  %v6292_v7 = vpop.f32.mrb[46].mxu0  ;;  %v6317_v22 = vpop.f32.mrb[44].mxu1  ;;  %v8163_v58 = vld [vmem:[%s11991_s4 + $0xd8] sm:$0xff]   ;;  %v8167_v45 = vld [vmem:[%s11991_s4 + $0xe0] sm:$0xff]  }
 0x1a0   :  { %3413 = vmatmul.mubr.bf16.gmra.mrb[92].mxu1 %v7790_v23  ;;  %6649 = vmatprep.subr.bf16.mxu0 %v8137_v32  ;;  %v6293_v37 = vpop.f32.mrb[47].mxu0  ;;  %v7804_v32 = vld [vmem:[%s11995_s2 + $0xc] ss:$100 sps:$4 sm:$0xff]  }
 0x1a1   :  { %7396 = vmatpush3.bf16.msra.mxu1 %v8133_v28  ;;  %7407 = vmatprep.mubr.bf16.mxu1 %v7794_v24  ;;  %v2474_v19 = vadd.f32 %v6291_v1, %v10044_v61  ;;  %v6294_v23 = vadd.f32 %v6293_v37, %v6292_v7  ;;  %v8149_v24 = vld [vmem:[%s11991_s4 + $0x40] sm:$0xff]   ;;  %v6318_v28 = vpop.f32.mrb[45].mxu1 }
 0x1a2   :  { %7397 = vmatprep.subr.bf16.mxu1 %v8136_v31  ;;  %v6320_v61 = vpop.f32.mrb[46].mxu1  ;;  %v8169_v7 = vld [vmem:[%s11991_s4 + $0xa0] sm:$0xff]  }
 0x1a3   :  { %6650 = vmatpush3.bf16.msra.mxu0 %v8138_v34  ;;  %v2477_v30 = vadd.f32 %v6294_v23, %v10055_v5  ;;  %v6321_v34 = vpop.f32.mrb[47].mxu1 }
 0x1a4   :  { %6651 = vmatprep.subr.bf16.mxu0 %v8140_v38  ;;  %v6322_v5 = vadd.f32 %v6321_v34, %v6320_v61  ;;  %v8152_v38 = vld [vmem:[%s11991_s4 + $0x48] sm:$0xff]   ;;  %v8174_v61 = vld [vmem:[%s11991_s4 + $0x30] sm:$0xff]  }
 0x1a5   :  { %7398 = vmatpush3.bf16.msra.mxu1 %v8136_v31  ;;  %v6319_v31 = vadd.f32 %v6318_v28, %v6317_v22 }
 0x1a6   :  { %7399 = vmatprep.subr.bf16.mxu1 %v8139_v8 }
 0x1a7   :  { %6652 = vmatpush3.bf16.msra.mxu0 %v8141_v47  ;;  %v2523_v27 = vadd.f32 %v6319_v31, %v2474_v19  ;;  %v2526_v47 = vadd.f32 %v6322_v5, %v2477_v30  ;;  %v8171_v19 = vld [vmem:[%s11991_s4 + $0xe8] sm:$0xff]   ;;  %v7799_v5 = vld [vmem:[%s11995_s2] ss:$100 sps:$4 sm:$0xff]  }
 0x1a8   :  { %6653 = vmatprep.subr.bf16.mxu0 %v8143_v55  ;;  %v8158_v55 = vld [vmem:[%s11991_s4 + $0x10] sm:$0xff]  }
 0x1a9   :  { %7400 = vmatpush3.bf16.msra.mxu1 %v8139_v8  ;;  %v8150_v8 = vld [vmem:[%s11991_s4] sm:$0xff]  }
 0x1aa   :  { %7401 = vmatprep.subr.bf16.mxu1 %v8142_v49 }
 0x1ab   :  { %6654 = vmatpush3.bf16.msra.mxu0 %v8144_v59  ;;  %v8164_v59 = vld [vmem:[%s11991_s4 + $0x60] sm:$0xff]  }
 0x1ac   :  { %6655 = vmatprep.subr.bf16.mxu0 %v8146_v46  ;;  %v8168_v46 = vld [vmem:[%s11991_s4 + $0x68] sm:$0xff]  }
 0x1ad   :  { %7402 = vmatpush3.bf16.msra.mxu1 %v8142_v49  ;;  %v8155_v49 = vld [vmem:[%s11991_s4 + $0xc8] sm:$0xff]  }
 0x1ae   :  { %7403 = vmatprep.subr.bf16.mxu1 %v8145_v25 }
 0x1af   :  { %6656 = vmatpush3.bf16.msra.mxu0 %v8147_v13 }
 0x1b0   :  { %6679 = vmatprep.subr.bf16.mxu0 %v8149_v24  ;;  %v8172_v24 = vld [vmem:[%s11991_s4 + $0x70] sm:$0xff]  }
 0x1b1   :  { %7404 = vmatpush3.bf16.msra.mxu1 %v8145_v25  ;;  %v8165_v25 = vld [vmem:[%s11991_s4 + $0x98] sm:$0xff]  }
 0x1b2   :  { %7405 = vmatprep.subr.bf16.mxu1 %v8148_v17  ;;  %3454 = vmatmul.mubr.bf16.vlgmr.msra.gmra.mrb[92].mxu0 %v7791_v6 }
 0x1b3   :  { %6680 = vmatpush3.bf16.msra.mxu0 %v8150_v8  ;;  %3461 = vmatprep.mubr.bf16.mxu0 %v7796_v40  ;;  %v8176_v8 = vld [vmem:[%s11991_s4 + $0x78] sm:$0xff]  }
 0x1b4   :  { %6681 = vmatprep.subr.bf16.mxu0 %v8152_v38  ;;  %v8178_v38 = vld [vmem:[%s11991_s4 + $0x38] sm:$0xff]  }
 0x1b5   :  { %7406 = vmatpush3.bf16.msra.mxu1 %v8148_v17  ;;  %v7389_v20 = vpop.f32.mrb[48].mxu0  ;;  %v8170_v17 = vld [vmem:[%s11991_s4 + $0x28] sm:$0xff]  }
 0x1b6   :  { %6707 = vmatprep.subr.bf16.mxu1 %v8151_v62  ;;  %v10224_v1 = vadd.f32 %v7389_v20, %v2523_v27  ;;  %v2563_v6 = vpop.f32.mrb[49].mxu0  ;;  %v8177_v62 = vld [vmem:[%s11991_s4 + $0xb0] sm:$0xff]   ;;  %v8179_v27 = vld [vmem:[%s11991_s4 + $0xf8] sm:$0xff]  }
 0x1b7   :  { %6682 = vmatpush3.bf16.msra.mxu0 %v8154_v48  ;;  %v10230_v13 = vadd.f32 %v2563_v6, %v10134_v0  ;;  %v7390_v37 = vpop.f32.mrb[50].mxu0  ;;  %v6349_v0 = vpop.f32.mrb[48].mxu1  ;;  %v7802_v48 = vld [vmem:[%s11995_s2 + $0x8] ss:$100 sps:$4 sm:$0xff]   ;;  %v7813_v20 = vld [vmem:[%s11995_s2 + $0x14] ss:$100 sps:$4 sm:$0xff]  }
 0x1b8   :  { %7408 = vmatmul.mubr.bf16.vlgmr.msra.gmra.mrb[96].mxu1 %v7795_v29  ;;  %6683 = vmatprep.subr.bf16.mxu0 %v8156_v50  ;;  %12022 = vst [vmem:[#allocation2_spill] sm:$0xff] %v10224_v1  ;;  %v10238_v22 = vadd.f32 %v7390_v37, %v2526_v47  ;;  %v2566_v23 = vpop.f32.mrb[51].mxu0  ;;  %v6350_v28 = vpop.f32.mrb[49].mxu1  ;;  %v8173_v29 = vld [vmem:[%s11991_s4 + $0xa8] sm:$0xff]   ;;  %v8181_v50 = vld [vmem:[%s11991_s4 + $0xb8] sm:$0xff]   ;;  %v8189_v37 = vld [vmem:[%s11991_s4 + $0x110] sm:$0xff]  }
 0x1b9   :  { %6708 = vmatpush3.bf16.msra.mxu1 %v8153_v42  ;;  %3904 = vmatprep.mubr.bf16.mxu1 %v7804_v32  ;;  %12023 = vst [vmem:[#allocation3_spill] sm:$0xff] %v10230_v13  ;;  %v10244_v40 = vadd.f32 %v2566_v23, %v10139_v11  ;;  %v10249_v30 = vadd.f32 %v6350_v28, %v6349_v0  ;;  %v6352_v31 = vpop.f32.mrb[50].mxu1  ;;  %v8175_v32 = vld [vmem:[%s11991_s4 + $0xf0] sm:$0xff]   ;;  %v8180_v42 = vld [vmem:[%s11991_s4 + $0x140] sm:$0xff]  }
 0x1ba   :  { %6709 = vmatprep.subr.bf16.mxu1 %v8155_v49  ;;  %3462 = vmatmul.mubr.bf16.gmra.mrb[96].mxu0 %v7798_v2  ;;  %12024 = vst [vmem:[#allocation4_spill] sm:$0xff] %v10238_v22  ;;  %v6353_v11 = vpop.f32.mrb[51].mxu1  ;;  %v7805_v47 = vld [vmem:[%s11995_s2 + $0xcc] ss:$100 sps:$4 sm:$0xff]   ;;  %v7816_v6 = vld [vmem:[%s11995_s2 + $0x1c] ss:$100 sps:$4 sm:$0xff]  }
 0x1bb   :  { %6684 = vmatpush3.bf16.msra.mxu0 %v8158_v55  ;;  %3855 = vmatprep.mubr.bf16.mxu0 %v7801_v52  ;;  %12025 = vst [vmem:[#allocation5_spill] sm:$0xff] %v10244_v40  ;;  %v10257_v34 = vadd.f32 %v6353_v11, %v6352_v31  ;;  %v7808_v55 = vld [vmem:[%s11995_s2 + $0xd4] ss:$100 sps:$4 sm:$0xff]  }
 0x1bc   :  { %6685 = vmatprep.subr.bf16.mxu0 %v8160_v41  ;;  %v8183_v41 = vld [vmem:[%s11991_s4 + $0x1c0] sm:$0xff]  }
 0x1bd   :  { %6710 = vmatpush3.bf16.msra.mxu1 %v8157_v53 }
 0x1be   :  { %6711 = vmatprep.subr.bf16.mxu1 %v8159_v56  ;;  %v8182_v56 = vld [vmem:[%s11991_s4 + $0x100] sm:$0xff]  }
 0x1bf   :  { %6686 = vmatpush3.bf16.msra.mxu0 %v8162_v15  ;;  %v6355_v2 = vpop.f32.mrb[52].mxu1  ;;  %v8184_v15 = vld [vmem:[%s11991_s4 + $0x148] sm:$0xff]  }
 0x1c0   :  { %6687 = vmatprep.subr.bf16.mxu0 %v8164_v59  ;;  %v6356_v49 = vpop.f32.mrb[53].mxu1  ;;  %v8185_v59 = vld [vmem:[%s11991_s4 + $0x180] sm:$0xff]  }
 0x1c1   :  { %6712 = vmatpush3.bf16.msra.mxu1 %v8161_v57  ;;  %v10286_v52 = vadd.f32 %v6356_v49, %v6355_v2  ;;  %v6358_v53 = vpop.f32.mrb[54].mxu1 }
 0x1c2   :  { %6713 = vmatprep.subr.bf16.mxu1 %v8163_v58  ;;  %v6359_v57 = vpop.f32.mrb[55].mxu1 }
 0x1c3   :  { %6688 = vmatpush3.bf16.msra.mxu0 %v8166_v60  ;;  %v10300_v58 = vadd.f32 %v6359_v57, %v6358_v53  ;;  %v8186_v60 = vld [vmem:[%s11991_s4 + $0x108] sm:$0xff]   ;;  %v8200_v53 = vld [vmem:[%s11991_s4 + $0x138] sm:$0xff]  }
 0x1c4   :  { %6689 = vmatprep.subr.bf16.mxu0 %v8168_v46  ;;  %v8188_v46 = vld [vmem:[%s11991_s4 + $0x150] sm:$0xff]  }
 0x1c5   :  { %6714 = vmatpush3.bf16.msra.mxu1 %v8165_v25  ;;  %v7807_v25 = vld [vmem:[%s11995_s2 + $0xc8] ss:$100 sps:$4 sm:$0xff]  }
 0x1c6   :  { %6715 = vmatprep.subr.bf16.mxu1 %v8167_v45  ;;  %v8187_v45 = vld [vmem:[%s11991_s4 + $0x1c8] sm:$0xff]  }
 0x1c7   :  { %6690 = vmatpush3.bf16.msra.mxu0 %v8170_v17  ;;  %v8190_v17 = vld [vmem:[%s11991_s4 + $0x158] sm:$0xff]  }
 0x1c8   :  { %6691 = vmatprep.subr.bf16.mxu0 %v8172_v24 }
 0x1c9   :  { %6716 = vmatpush3.bf16.msra.mxu1 %v8169_v7  ;;  %v7810_v7 = vld [vmem:[%s11995_s2 + $0xd0] ss:$100 sps:$4 sm:$0xff]  }
 0x1ca   :  { %6717 = vmatprep.subr.bf16.mxu1 %v8171_v19  ;;  %v8193_v19 = vld [vmem:[%s11991_s4 + $0x120] sm:$0xff]  }
 0x1cb   :  { %6692 = vmatpush3.bf16.msra.mxu0 %v8174_v61 }
 0x1cc   :  { %6693 = vmatprep.subr.bf16.mxu0 %v8176_v8 }
 0x1cd   :  { %6718 = vmatpush3.bf16.msra.mxu1 %v8173_v29 }
 0x1ce   :  { %6719 = vmatprep.subr.bf16.mxu1 %v8175_v32 }
 0x1cf   :  { %6694 = vmatpush3.bf16.msra.mxu0 %v8178_v38 }
 0x1d0   :  { %6735 = vmatprep.subr.bf16.mxu0 %v8180_v42 }
 0x1d1   :  { %6720 = vmatpush3.bf16.msra.mxu1 %v8177_v62 }
 0x1d2   :  { %6721 = vmatprep.subr.bf16.mxu1 %v8179_v27  ;;  %3856 = vmatmul.mubr.bf16.vlgmr.msra.gmra.mrb[100].mxu0 %v7799_v5 }
 0x1d3   :  { %6736 = vmatpush3.bf16.msra.mxu0 %v8182_v56  ;;  %3863 = vmatprep.mubr.bf16.mxu0 %v7805_v47 }
 0x1d4   :  { %6737 = vmatprep.subr.bf16.mxu0 %v8184_v15 }
 0x1d5   :  { %6722 = vmatpush3.bf16.msra.mxu1 %v8181_v50 }
 0x1d6   :  { %6763 = vmatprep.subr.bf16.mxu1 %v8183_v41  ;;  %v8202_v41 = vld [vmem:[%s11991_s4 + $0x240] sm:$0xff]  }
 0x1d7   :  { %6738 = vmatpush3.bf16.msra.mxu0 %v8186_v60  ;;  %v6405_v29 = vpop.f32.mrb[56].mxu1  ;;  %v7814_v60 = vld [vmem:[%s11995_s2 + $0x18] ss:$100 sps:$4 sm:$0xff]  }
 0x1d8   :  { %3905 = vmatmul.mubr.bf16.vlgmr.msra.gmra.mrb[100].mxu1 %v7802_v48  ;;  %6739 = vmatprep.subr.bf16.mxu0 %v8188_v46  ;;  %v6406_v11 = vpop.f32.mrb[57].mxu1  ;;  %v7811_v48 = vld [vmem:[%s11995_s2 + $0x10] ss:$100 sps:$4 sm:$0xff]  }
 0x1d9   :  { %6764 = vmatpush3.bf16.msra.mxu1 %v8185_v59  ;;  %3912 = vmatprep.mubr.bf16.mxu1 %v7808_v55  ;;  %v6407_v8 = vadd.f32 %v6406_v11, %v6405_v29  ;;  %v6408_v62 = vpop.f32.mrb[58].mxu1  ;;  %v8201_v55 = vld [vmem:[%s11991_s4 + $0x1f8] sm:$0xff]   ;;  %v8211_v29 = vld [vmem:[%s11991_s4 + $0x288] sm:$0xff]  }
 0x1da   :  { %6765 = vmatprep.subr.bf16.mxu1 %v8187_v45  ;;  %3864 = vmatmul.mubr.bf16.gmra.mrb[104].mxu0 %v7807_v25  ;;  %v6409_v38 = vpop.f32.mrb[59].mxu1  ;;  %v8216_v11 = vld [vmem:[%s11991_s4 + $0x218] sm:$0xff]  }
 0x1db   :  { %6740 = vmatpush3.bf16.msra.mxu0 %v8189_v37  ;;  %3953 = vmatprep.mubr.bf16.mxu0 %v7813_v20  ;;  %v6410_v42 = vadd.f32 %v6409_v38, %v6408_v62  ;;  %v8203_v20 = vld [vmem:[%s11991_s4 + $0x1b8] sm:$0xff]   ;;  %v8204_v37 = vld [vmem:[%s11991_s4 + $0x200] sm:$0xff]   ;;  %v8220_v38 = vld [vmem:[%s11991_s4 + $0x268] sm:$0xff]  }
 0x1dc   :  { %6741 = vmatprep.subr.bf16.mxu0 %v8190_v17  ;;  %v8205_v17 = vld [vmem:[%s11991_s4 + $0x2c0] sm:$0xff]  }
 0x1dd   :  { %6766 = vmatpush3.bf16.msra.mxu1 %v9494_v43  ;;  %v8191_v43 = vld [vmem:[%s11991_s4 + $0x118] sm:$0xff]   ;;  %v8218_v62 = vld [vmem:[%s11991_s4 + $0x260] sm:$0xff]  }
 0x1de   :  { %6767 = vmatprep.subr.bf16.mxu1 %v9503_v44  ;;  %v8192_v44 = vld [vmem:[%s11991_s4 + $0x160] sm:$0xff]  }
 0x1df   :  { %6742 = vmatpush3.bf16.msra.mxu0 %v8191_v43 }
 0x1e0   :  { %3913 = vmatmul.mubr.bf16.gmra.mrb[104].mxu1 %v7810_v7  ;;  %6743 = vmatprep.subr.bf16.mxu0 %v8192_v44  ;;  %v7820_v7 = vld [vmem:[%s11995_s2 + $0xe4] ss:$100 sps:$4 sm:$0xff]  }
 0x1e1   :  { %6768 = vmatpush3.bf16.msra.mxu1 %v9523_v51  ;;  %4002 = vmatprep.mubr.bf16.mxu1 %v7816_v6  ;;  %v8194_v51 = vld [vmem:[%s11991_s4 + $0x168] sm:$0xff]  }
 0x1e2   :  { %6769 = vmatprep.subr.bf16.mxu1 %v9532_v54  ;;  %v6377_v54 = vpop.f32.mrb[52].mxu0 }
 0x1e3   :  { %6744 = vmatpush3.bf16.msra.mxu0 %v8193_v19  ;;  %v6378_v23 = vpop.f32.mrb[53].mxu0  ;;  %v8206_v19 = vld [vmem:[%s11991_s4 + $0x248] sm:$0xff]  }
 0x1e4   :  { %6745 = vmatprep.subr.bf16.mxu0 %v8194_v51  ;;  %v6379_v0 = vadd.f32 %v6378_v23, %v6377_v54  ;;  %v6380_v28 = vpop.f32.mrb[54].mxu0  ;;  %v8207_v54 = vld [vmem:[%s11991_s4 + $0x280] sm:$0xff]   ;;  %v7819_v23 = vld [vmem:[%s11995_s2 + $0xd8] ss:$100 sps:$4 sm:$0xff]  }
 0x1e5   :  { %6770 = vmatpush3.bf16.msra.mxu1 %v9542_v63  ;;  %v8195_v63 = vld [vmem:[%s11994_s5] ss:$0 sm:$0xff]  ;;  %v6381_v31 = vpop.f32.mrb[55].mxu0 }
 0x1e6   :  { %6771 = vmatprep.subr.bf16.mxu1 %v9551_v3  ;;  %v2917_v24 = vadd.f32 %v8195_v63, %v10249_v30  ;;  %v8196_v3 = vld [vmem:[%s11991_s4 + $0x128] sm:$0xff]   ;;  %v2920_v61 = vadd.f32 %v8195_v63, %v10257_v34  ;;  %v6382_v30 = vadd.f32 %v6381_v31, %v6380_v28  ;;  %v8199_v34 = vld [vmem:[%s11991_s4 + $0x178] sm:$0xff]   ;;  %v2928_v57 = vadd.f32 %v8195_v63, %v10300_v58 }
 0x1e7   :  { %6746 = vmatpush3.bf16.msra.mxu0 %v8196_v3  ;;  %v7825_v28 = vld [vmem:[%s11995_s2 + $0x24] ss:$100 sps:$4 sm:$0xff]   ;;  %v7828_v31 = vld [vmem:[%s11995_s2 + $0x2c] ss:$100 sps:$4 sm:$0xff]  }
 0x1e8   :  { %v2966_v32 = vadd.f32 %v6379_v0, %v2917_v24  ;;  %v2969_v5 = vadd.f32 %v6382_v30, %v2920_v61  ;;  %v8209_v24 = vld [vmem:[%s11991_s4 + $0x2c8] sm:$0xff]   ;;  %v8210_v0 = vld [vmem:[%s11991_s4 + $0x250] sm:$0xff]   ;;  %v7822_v3 = vld [vmem:[%s11995_s2 + $0xe0] ss:$100 sps:$4 sm:$0xff]  }
 0x1e9   :  { %6772 = vmatpush3.bf16.msra.mxu1 %v9563_v10  ;;  %v8197_v10 = vld [vmem:[%s11991_s4 + $0x170] sm:$0xff]  }
 0x1ea   :  { %6773 = vmatprep.subr.bf16.mxu1 %v9574_v12  ;;  %6747 = vmatprep.subr.bf16.mxu0 %v8197_v10  ;;  %v8198_v12 = vld [vmem:[%s11991_s4 + $0x130] sm:$0xff]   ;;  %v10368_v27 = vadd.f32 %v6407_v8, %v2966_v32  ;;  %v10373_v47 = vadd.f32 %v6410_v42, %v2969_v5  ;;  %v8214_v32 = vld [vmem:[%s11991_s4 + $0x258] sm:$0xff]   ;;  %v8219_v5 = vld [vmem:[%s11991_s4 + $0x220] sm:$0xff]  }
 0x1eb   :  { %6748 = vmatpush3.bf16.msra.mxu0 %v8198_v12  ;;  %v8212_v10 = vld [vmem:[%s11991_s4 + $0x210] sm:$0xff]   ;;  %v8217_v8 = vld [vmem:[%s11991_s4 + $0x2d8] sm:$0xff]  }
 0x1ec   :  { %6749 = vmatprep.subr.bf16.mxu0 %v8199_v34  ;;  %v8213_v61 = vld [vmem:[%s11991_s4 + $0x2d0] sm:$0xff]  }
 0x1ed   :  { %6774 = vmatpush3.bf16.msra.mxu1 %v9583_v14  ;;  %v6383_v2 = vpop.f32.mrb[56].mxu0  ;;  %v8215_v30 = vld [vmem:[%s11991_s4 + $0x290] sm:$0xff]  }
 0x1ee   :  { %6775 = vmatprep.subr.bf16.mxu1 %v9592_v16  ;;  %v6384_v14 = vpop.f32.mrb[57].mxu0  ;;  %v2925_v16 = vadd.f32 %v8195_v63, %v10286_v52  ;;  %v7817_v52 = vld [vmem:[%s11995_s2 + $0xdc] ss:$100 sps:$4 sm:$0xff]   ;;  %v8208_v63 = vld [vmem:[%s11991_s4 + $0x208] sm:$0xff]  }
 0x1ef   :  { %v6385_v49 = vadd.f32 %v6384_v14, %v6383_v2  ;;  %v6386_v50 = vpop.f32.mrb[58].mxu0  ;;  %6750 = vmatpush3.bf16.msra.mxu0 %v8200_v53 }
 0x1f0   :  { %v6387_v56 = vpop.f32.mrb[59].mxu0  ;;  %6791 = vmatprep.subr.bf16.mxu0 %v8202_v41 }
 0x1f1   :  { %6776 = vmatpush3.bf16.msra.mxu1 %v9601_v18  ;;  %v6411_v18 = vpop.f32.mrb[60].mxu1  ;;  %v2974_v15 = vadd.f32 %v6385_v49, %v2925_v16  ;;  %v6388_v59 = vadd.f32 %v6387_v56, %v6386_v50 }
 0x1f2   :  { %6777 = vmatprep.subr.bf16.mxu1 %v8201_v55  ;;  %v6412_v25 = vpop.f32.mrb[61].mxu1  ;;  %3954 = vmatmul.mubr.bf16.vlgmr.msra.gmra.mrb[108].mxu0 %v7811_v48  ;;  %v8222_v48 = vld [vmem:[%s11991_s4 + $0x270] sm:$0xff]  }
 0x1f3   :  { %v6413_v45 = vadd.f32 %v6412_v25, %v6411_v18  ;;  %v6414_v46 = vpop.f32.mrb[62].mxu1  ;;  %v2977_v58 = vadd.f32 %v6388_v59, %v2928_v57  ;;  %6792 = vmatpush3.bf16.msra.mxu0 %v8204_v37  ;;  %3961 = vmatprep.mubr.bf16.mxu0 %v7817_v52  ;;  %v7823_v57 = vld [vmem:[%s11995_s2 + $0x20] ss:$100 sps:$4 sm:$0xff]   ;;  %v8225_v59 = vld [vmem:[%s11991_s4 + $0x238] sm:$0xff]  }
 0x1f4   :  { %v6415_v6 = vpop.f32.mrb[63].mxu1  ;;  %6793 = vmatprep.subr.bf16.mxu0 %v8206_v19  ;;  %v8226_v25 = vld [vmem:[%s11991_s4 + $0x2f8] sm:$0xff]  }
 0x1f5   :  { %6778 = vmatpush3.bf16.msra.mxu1 %v8203_v20  ;;  %v10408_v43 = vadd.f32 %v6413_v45, %v2974_v15  ;;  %v6416_v44 = vadd.f32 %v6415_v6, %v6414_v46  ;;  %v7829_v46 = vld [vmem:[%s11995_s2 + $0xec] ss:$100 sps:$4 sm:$0xff]   ;;  %v7832_v19 = vld [vmem:[%s11995_s2 + $0xf4] ss:$100 sps:$4 sm:$0xff]  }
 0x1f6   :  { %6819 = vmatprep.subr.bf16.mxu1 %v8205_v17  ;;  %v7826_v6 = vld [vmem:[%s11995_s2 + $0x28] ss:$100 sps:$4 sm:$0xff]  }
 0x1f7   :  { %v10413_v51 = vadd.f32 %v6416_v44, %v2977_v58  ;;  %6794 = vmatpush3.bf16.msra.mxu0 %v8208_v63  ;;  %v8228_v44 = vld [vmem:[%s11991_s4 + $0x2b8] sm:$0xff]   ;;  %v8230_v63 = vld [vmem:[%s11991_s4 + $0x3c0] sm:$0xff]  }
 0x1f8   :  { %4003 = vmatmul.mubr.bf16.vlgmr.msra.gmra.mrb[108].mxu1 %v7814_v60  ;;  %6795 = vmatprep.subr.bf16.mxu0 %v8210_v0 }
 0x1f9   :  { %6820 = vmatpush3.bf16.msra.mxu1 %v8207_v54  ;;  %4010 = vmatprep.mubr.bf16.mxu1 %v7820_v7 }
 0x1fa   :  { %6821 = vmatprep.subr.bf16.mxu1 %v8209_v24  ;;  %3962 = vmatmul.mubr.bf16.gmra.mrb[112].mxu0 %v7819_v23  ;;  %v8229_v23 = vld [vmem:[%s11991_s4 + $0x300] sm:$0xff]  }
 0x1fb   :  { %6796 = vmatpush3.bf16.msra.mxu0 %v8212_v10  ;;  %4051 = vmatprep.mubr.bf16.mxu0 %v7825_v28  ;;  %v8231_v28 = vld [vmem:[%s11991_s4 + $0x348] sm:$0xff]  }
 0x1fc   :  { %6797 = vmatprep.subr.bf16.mxu0 %v8214_v32  ;;  %v8233_v10 = vld [vmem:[%s11991_s4 + $0x308] sm:$0xff]   ;;  %v7834_v32 = vld [vmem:[%s11995_s2 + $0xf0] ss:$100 sps:$4 sm:$0xff]  }
 0x1fd   :  { %6822 = vmatpush3.bf16.msra.mxu1 %v8211_v29  ;;  %v8232_v29 = vld [vmem:[%s11991_s4 + $0x380] sm:$0xff]  }
 0x1fe   :  { %6823 = vmatprep.subr.bf16.mxu1 %v8213_v61  ;;  %v8234_v61 = vld [vmem:[%s11991_s4 + $0x3c8] sm:$0xff]  }
 0x1ff   :  { %6798 = vmatpush3.bf16.msra.mxu0 %v8216_v11  ;;  %v7840_v11 = vld [vmem:[%s11995_s2 + $0x3c] ss:$100 sps:$4 sm:$0xff]  }
 0x200   :  { %4011 = vmatmul.mubr.bf16.gmra.mrb[112].mxu1 %v7822_v3  ;;  %6799 = vmatprep.subr.bf16.mxu0 %v8218_v62  ;;  %v8237_v62 = vld [vmem:[%s11991_s4 + $0x310] sm:$0xff]  }
 0x201   :  { %6824 = vmatpush3.bf16.msra.mxu1 %v8215_v30  ;;  %4100 = vmatprep.mubr.bf16.mxu1 %v7828_v31  ;;  %v7837_v31 = vld [vmem:[%s11995_s2 + $0x34] ss:$100 sps:$4 sm:$0xff]  }
 0x202   :  { %6825 = vmatprep.subr.bf16.mxu1 %v8217_v8  ;;  %v8235_v30 = vld [vmem:[%s11991_s4 + $0x350] sm:$0xff]   ;;  %v8236_v8 = vld [vmem:[%s11991_s4 + $0x388] sm:$0xff]  }
 0x203   :  { %6800 = vmatpush3.bf16.msra.mxu0 %v8219_v5  ;;  %v6433_v12 = vpop.f32.mrb[60].mxu0  ;;  %v8238_v5 = vld [vmem:[%s11991_s4 + $0x3d0] sm:$0xff]  }
 0x204   :  { %6801 = vmatprep.subr.bf16.mxu0 %v8220_v38  ;;  %v6434_v42 = vpop.f32.mrb[61].mxu0  ;;  %v8239_v38 = vld [vmem:[%s11991_s4 + $0x358] sm:$0xff]  }
 0x205   :  { %6826 = vmatpush3.bf16.msra.mxu1 %v9694_v4  ;;  %v6435_v34 = vadd.f32 %v6434_v42, %v6433_v12  ;;  %v6436_v2 = vpop.f32.mrb[62].mxu0  ;;  %v8221_v4 = vld [vmem:[%s11991_s4 + $0x228] sm:$0xff]   ;;  %v8240_v12 = vld [vmem:[%s11991_s4 + $0x390] sm:$0xff]   ;;  %v10575_v42 = vld [vmem:[%s11991_s4 + $0x318] sm:$0xff]  }
 0x206   :  { %6827 = vmatprep.subr.bf16.mxu1 %v9703_v9  ;;  %v6437_v9 = vpop.f32.mrb[63].mxu0 }
 0x207   :  { %6802 = vmatpush3.bf16.msra.mxu0 %v8221_v4  ;;  %v3064_v16 = vadd.f32 %v6435_v34, %v10368_v27  ;;  %v8224_v27 = vld [vmem:[%s11991_s4 + $0x278] sm:$0xff]  }
 0x208   :  { %6803 = vmatprep.subr.bf16.mxu0 %v8222_v48  ;;  %v8242_v34 = vld [vmem:[%s11991_s4 + $0x3d8] sm:$0xff]   ;;  %v10602_v48 = vld [vmem:[%s11991_s4 + $0x368] sm:$0xff]  }
 0x209   :  { %6828 = vmatpush3.bf16.msra.mxu1 %v9712_v21  ;;  %v6438_v21 = vadd.f32 %v6437_v9, %v6436_v2  ;;  %v10584_v2 = vld [vmem:[%s11991_s4 + $0x360] sm:$0xff]   ;;  %v8244_v4 = vld [vmem:[%s11991_s4 + $0x398] sm:$0xff]  }
 0x20a   :  { %6829 = vmatprep.subr.bf16.mxu1 %v9722_v26  ;;  %v8223_v26 = vld [vmem:[%s11991_s4 + $0x230] sm:$0xff]   ;;  %v8246_v9 = vld [vmem:[%s11991_s4 + $0x3e0] sm:$0xff]  }
 0x20b   :  { %v6461_v14 = vpop.f32.mrb[64].mxu1  ;;  %v3067_v55 = vadd.f32 %v6438_v21, %v10373_v47  ;;  %6804 = vmatpush3.bf16.msra.mxu0 %v8223_v26  ;;  %v6439_v52 = vpop.f32.mrb[64].mxu0 }
 0x20c   :  { %v6462_v49 = vpop.f32.mrb[65].mxu1  ;;  %6805 = vmatprep.subr.bf16.mxu0 %v8224_v27  ;;  %v6440_v47 = vpop.f32.mrb[65].mxu0 }
 0x20d   :  { %v6463_v50 = vadd.f32 %v6462_v49, %v6461_v14  ;;  %v6464_v53 = vpop.f32.mrb[66].mxu1  ;;  %6830 = vmatpush3.bf16.msra.mxu1 %v9734_v35  ;;  %v6441_v15 = vadd.f32 %v6440_v47, %v6439_v52  ;;  %v10593_v14 = vld [vmem:[%s11991_s4 + $0x320] sm:$0xff]  }
 0x20e   :  { %v6465_v18 = vpop.f32.mrb[67].mxu1  ;;  %6831 = vmatprep.subr.bf16.mxu1 %v9743_v36  ;;  %v6442_v36 = vpop.f32.mrb[66].mxu0 }
 0x20f   :  { %v10486_v56 = vadd.f32 %v6463_v50, %v3064_v16  ;;  %v6466_v41 = vadd.f32 %v6465_v18, %v6464_v53  ;;  %6806 = vmatpush3.bf16.msra.mxu0 %v8225_v59  ;;  %v6443_v45 = vpop.f32.mrb[67].mxu0  ;;  %v3072_v20 = vadd.f32 %v6441_v15, %v10408_v43  ;;  %v10609_v53 = vld [vmem:[%s11991_s4 + $0x328] sm:$0xff]  }
 0x210   :  { %v6444_v7 = vadd.f32 %v6443_v45, %v6442_v36  ;;  %v8251_v15 = vld [vmem:[%s11991_s4 + $0x3a8] sm:$0xff]  }
 0x211   :  { %v10491_v35 = vadd.f32 %v6466_v41, %v3067_v55  ;;  %6832 = vmatpush3.bf16.msra.mxu1 %v9754_v39  ;;  %v8227_v39 = vld [vmem:[%s11991_s4 + $0x340] sm:$0xff]   ;;  %v8249_v55 = vld [vmem:[%s11991_s4 + $0x3e8] sm:$0xff]  }
 0x212   :  { %6833 = vmatprep.subr.bf16.mxu1 %v8226_v25  ;;  %6847 = vmatprep.subr.bf16.mxu0 %v8227_v39  ;;  %v3075_v43 = vadd.f32 %v6444_v7, %v10413_v51  ;;  %v7831_v51 = vld [vmem:[%s11995_s2 + $0xe8] ss:$100 sps:$4 sm:$0xff]   ;;  %v10629_v25 = vld [vmem:[%s11991_s4 + $0x330] sm:$0xff]  }
 0x213   :  { %v6467_v60 = vpop.f32.mrb[68].mxu1  ;;  %4052 = vmatmul.mubr.bf16.vlgmr.msra.gmra.mrb[116].mxu0 %v7823_v57 }
 0x214   :  { %v6468_v58 = vpop.f32.mrb[69].mxu1  ;;  %6848 = vmatpush3.bf16.msra.mxu0 %v8229_v23  ;;  %4059 = vmatprep.mubr.bf16.mxu0 %v7829_v46  ;;  %v7841_v23 = vld [vmem:[%s11995_s2 + $0xfc] ss:$100 sps:$4 sm:$0xff]  }
 0x215   :  { %v6469_v37 = vadd.f32 %v6468_v58, %v6467_v60  ;;  %v6470_v17 = vpop.f32.mrb[70].mxu1  ;;  %6834 = vmatpush3.bf16.msra.mxu1 %v8228_v44  ;;  %6849 = vmatprep.subr.bf16.mxu0 %v8231_v28  ;;  %v7835_v58 = vld [vmem:[%s11995_s2 + $0x30] ss:$100 sps:$4 sm:$0xff]   ;;  %v8257_v44 = vld [vmem:[%s11991_s4 + $0x3f8] sm:$0xff]  }
 0x216   :  { %v6471_v54 = vpop.f32.mrb[71].mxu1  ;;  %6875 = vmatprep.subr.bf16.mxu1 %v8230_v63 }
 0x217   :  { %v10526_v24 = vadd.f32 %v6469_v37, %v3072_v20  ;;  %v6472_v0 = vadd.f32 %v6471_v54, %v6470_v17  ;;  %v8255_v20 = vld [vmem:[%s11991_s4 + $0x3b0] sm:$0xff]   ;;  %v10654_v17 = vld [vmem:[%s11991_s4 + $0x338] sm:$0xff]   ;;  %v10663_v54 = vld [vmem:[%s11991_s4 + $0x440] sm:$0xff]  }
 0x218   :  { %4101 = vmatmul.mubr.bf16.vlgmr.msra.gmra.mrb[116].mxu1 %v7826_v6  ;;  %6850 = vmatpush3.bf16.msra.mxu0 %v8233_v10  ;;  %v8259_v10 = vld [vmem:[%s11991_s4 + $0x3b8] sm:$0xff]  }
 0x219   :  { %v10534_v3 = vadd.f32 %v6472_v0, %v3075_v43  ;;  %6876 = vmatpush3.bf16.msra.mxu1 %v8232_v29  ;;  %4108 = vmatprep.mubr.bf16.mxu1 %v7832_v19 }
 0x21a   :  { %6877 = vmatprep.subr.bf16.mxu1 %v8234_v61  ;;  %6851 = vmatprep.subr.bf16.mxu0 %v8235_v30  ;;  %v7844_v61 = vld [vmem:[%s11995_s2 + $0x104] ss:$100 sps:$4 sm:$0xff]  }
 0x21b   :  { %4060 = vmatmul.mubr.bf16.gmra.mrb[120].mxu0 %v7831_v51  ;;  %v7838_v51 = vld [vmem:[%s11995_s2 + $0x38] ss:$100 sps:$4 sm:$0xff]   ;;  %v10683_v30 = vld [vmem:[%s11991_s4 + $0x400] sm:$0xff]  }
 0x21c   :  { %6852 = vmatpush3.bf16.msra.mxu0 %v8237_v62  ;;  %4149 = vmatprep.mubr.bf16.mxu0 %v7837_v31 }
 0x21d   :  { %6878 = vmatpush3.bf16.msra.mxu1 %v8236_v8  ;;  %6853 = vmatprep.subr.bf16.mxu0 %v8239_v38  ;;  %v8263_v38 = vld [vmem:[%s11991_s4 + $0x480] sm:$0xff]  }
 0x21e   :  { %6879 = vmatprep.subr.bf16.mxu1 %v8238_v5 }
 0x220   :  { %4109 = vmatmul.mubr.bf16.gmra.mrb[120].mxu1 %v7834_v32  ;;  %6854 = vmatpush3.bf16.msra.mxu0 %v10575_v42 }
 0x221   :  { %6880 = vmatpush3.bf16.msra.mxu1 %v8240_v12  ;;  %4198 = vmatprep.mubr.bf16.mxu1 %v7840_v11  ;;  %v8261_v11 = vld [vmem:[%s11991_s4 + $0x4c0] sm:$0xff]   ;;  %v7843_v12 = vld [vmem:[%s11995_s2 + $0xf8] ss:$100 sps:$4 sm:$0xff]  }
 0x222   :  { %6881 = vmatprep.subr.bf16.mxu1 %v8242_v34  ;;  %6855 = vmatprep.subr.bf16.mxu0 %v10584_v2  ;;  %v10708_v34 = vld [vmem:[%s11991_s4 + $0x408] sm:$0xff]  }
 0x224   :  { %6856 = vmatpush3.bf16.msra.mxu0 %v10593_v14  ;;  %v6489_v16 = vpop.f32.mrb[68].mxu0 }
 0x225   :  { %6882 = vmatpush3.bf16.msra.mxu1 %v8244_v4  ;;  %6857 = vmatprep.subr.bf16.mxu0 %v10602_v48  ;;  %v6490_v21 = vpop.f32.mrb[69].mxu0  ;;  %v8265_v4 = vld [vmem:[%s11991_s4 + $0x4c8] sm:$0xff]  }
 0x226   :  { %6883 = vmatprep.subr.bf16.mxu1 %v8246_v9  ;;  %v6491_v49 = vadd.f32 %v6490_v21, %v6489_v16  ;;  %v6492_v50 = vpop.f32.mrb[70].mxu0  ;;  %v10717_v9 = vld [vmem:[%s11991_s4 + $0x450] sm:$0xff]   ;;  %v7849_v16 = vld [vmem:[%s11995_s2 + $0x44] ss:$100 sps:$4 sm:$0xff]  }
 0x227   :  { %v6493_v26 = vpop.f32.mrb[71].mxu0  ;;  %v7846_v21 = vld [vmem:[%s11995_s2 + $0x100] ss:$100 sps:$4 sm:$0xff]  }
 0x228   :  { %6858 = vmatpush3.bf16.msra.mxu0 %v10609_v53  ;;  %v3162_v41 = vadd.f32 %v6491_v49, %v10486_v56  ;;  %v6494_v27 = vadd.f32 %v6493_v26, %v6492_v50  ;;  %v8253_v56 = vld [vmem:[%s11991_s4 + $0x3f0] sm:$0xff]   ;;  %v8267_v49 = vld [vmem:[%s11991_s4 + $0x488] sm:$0xff]   ;;  %v10744_v26 = vld [vmem:[%s11991_s4 + $0x458] sm:$0xff]  }
 0x229   :  { %6884 = vmatpush3.bf16.msra.mxu1 %v9857_v33  ;;  %v10618_v33 = vld [vmem:[%s11991_s4 + $0x370] sm:$0xff]  }
 0x22a   :  { %6885 = vmatprep.subr.bf16.mxu1 %v8249_v55  ;;  %6859 = vmatprep.subr.bf16.mxu0 %v10618_v33  ;;  %v3165_v36 = vadd.f32 %v6494_v27, %v10491_v35  ;;  %v10640_v35 = vld [vmem:[%s11991_s4 + $0x378] sm:$0xff]   ;;  %v7852_v50 = vld [vmem:[%s11995_s2 + $0x4c] ss:$100 sps:$4 sm:$0xff]  }
 0x22b   :  { %v6517_v18 = vpop.f32.mrb[72].mxu1  ;;  %v10735_v55 = vld [vmem:[%s11991_s4 + $0x410] sm:$0xff]   ;;  %v10753_v27 = vld [vmem:[%s11991_s4 + $0x418] sm:$0xff]  }
 0x22c   :  { %v6518_v52 = vpop.f32.mrb[73].mxu1  ;;  %6860 = vmatpush3.bf16.msra.mxu0 %v10629_v25 }
 0x22d   :  { %v6519_v47 = vadd.f32 %v6518_v52, %v6517_v18  ;;  %v6520_v57 = vpop.f32.mrb[74].mxu1  ;;  %6886 = vmatpush3.bf16.msra.mxu1 %v8251_v15  ;;  %6861 = vmatprep.subr.bf16.mxu0 %v10640_v35  ;;  %v6495_v39 = vpop.f32.mrb[72].mxu0  ;;  %v8269_v18 = vld [vmem:[%s11991_s4 + $0x4d0] sm:$0xff]   ;;  %v8273_v52 = vld [vmem:[%s11991_s4 + $0x4d8] sm:$0xff]   ;;  %v10771_v15 = vld [vmem:[%s11991_s4 + $0x420] sm:$0xff]  }
 0x22e   :  { %v6521_v59 = vpop.f32.mrb[75].mxu1  ;;  %6887 = vmatprep.subr.bf16.mxu1 %v8253_v56  ;;  %v6496_v7 = vpop.f32.mrb[73].mxu0 }
 0x22f   :  { %v10635_v60 = vadd.f32 %v6519_v47, %v3162_v41  ;;  %v6522_v45 = vadd.f32 %v6521_v59, %v6520_v57  ;;  %v6497_v6 = vadd.f32 %v6496_v7, %v6495_v39  ;;  %v6498_v37 = vpop.f32.mrb[74].mxu0  ;;  %v8271_v41 = vld [vmem:[%s11991_s4 + $0x490] sm:$0xff]   ;;  %v10762_v47 = vld [vmem:[%s11991_s4 + $0x460] sm:$0xff]   ;;  %v8275_v57 = vld [vmem:[%s11991_s4 + $0x498] sm:$0xff]  }
 0x230   :  { %6862 = vmatpush3.bf16.msra.mxu0 %v10654_v17  ;;  %v6499_v43 = vpop.f32.mrb[75].mxu0  ;;  %v10780_v59 = vld [vmem:[%s11991_s4 + $0x468] sm:$0xff]  }
 0x231   :  { %v10643_v46 = vadd.f32 %v6522_v45, %v3165_v36  ;;  %6888 = vmatpush3.bf16.msra.mxu1 %v8255_v20  ;;  %6903 = vmatprep.subr.bf16.mxu0 %v10663_v54  ;;  %v3170_v63 = vadd.f32 %v6497_v6, %v10526_v24  ;;  %v6500_v0 = vadd.f32 %v6499_v43, %v6498_v37  ;;  %v8277_v36 = vld [vmem:[%s11991_s4 + $0x4e0] sm:$0xff]   ;;  %v8281_v6 = vld [vmem:[%s11991_s4 + $0x4e8] sm:$0xff]  }
 0x232   :  { %6889 = vmatprep.subr.bf16.mxu1 %v8257_v44  ;;  %v8279_v45 = vld [vmem:[%s11991_s4 + $0x4a0] sm:$0xff]  }
 0x233   :  { %v6523_v19 = vpop.f32.mrb[76].mxu1  ;;  %4150 = vmatmul.mubr.bf16.vlgmr.msra.gmra.mrb[124].mxu0 %v7835_v58  ;;  %v3173_v24 = vadd.f32 %v6500_v0, %v10534_v3  ;;  %v10694_v3 = vld [vmem:[%s11991_s4 + $0x448] sm:$0xff]  }
 0x234   :  { %v6524_v28 = vpop.f32.mrb[77].mxu1  ;;  %6904 = vmatpush3.bf16.msra.mxu0 %v10683_v30  ;;  %4157 = vmatprep.mubr.bf16.mxu0 %v7841_v23  ;;  %v10789_v58 = vld [vmem:[%s11991_s4 + $0x428] sm:$0xff]  }
 0x235   :  { %v6525_v29 = vadd.f32 %v6524_v28, %v6523_v19  ;;  %v6526_v31 = vpop.f32.mrb[78].mxu1  ;;  %6890 = vmatpush3.bf16.msra.mxu1 %v8259_v10  ;;  %6905 = vmatprep.subr.bf16.mxu0 %v10694_v3  ;;  %v10798_v19 = vld [vmem:[%s11991_s4 + $0x470] sm:$0xff]  }
 0x236   :  { %v6527_v32 = vpop.f32.mrb[79].mxu1  ;;  %6931 = vmatprep.subr.bf16.mxu1 %v8261_v11  ;;  %v10809_v10 = vld [vmem:[%s11991_s4 + $0x430] sm:$0xff]  }
 0x237   :  { %v10689_v8 = vadd.f32 %v6525_v29, %v3170_v63  ;;  %v6528_v62 = vadd.f32 %v6527_v32, %v6526_v31 }
 0x238   :  { %4199 = vmatmul.mubr.bf16.vlgmr.msra.gmra.mrb[124].mxu1 %v7838_v51  ;;  %6906 = vmatpush3.bf16.msra.mxu0 %v10708_v34  ;;  %v8283_v51 = vld [vmem:[%s11991_s4 + $0x4a8] sm:$0xff]  }
 0x239   :  { %v10697_v5 = vadd.f32 %v6528_v62, %v3173_v24  ;;  %6932 = vmatpush3.bf16.msra.mxu1 %v8263_v38  ;;  %4206 = vmatprep.mubr.bf16.mxu1 %v7844_v61  ;;  %v8287_v62 = vld [vmem:[%s11991_s4 + $0x4b0] sm:$0xff]  }
 0x23a   :  { %6933 = vmatprep.subr.bf16.mxu1 %v8265_v4  ;;  %6907 = vmatprep.subr.bf16.mxu0 %v10717_v9 }
 0x23b   :  { %4158 = vmatmul.mubr.bf16.gmra.mrb[128].mxu0 %v7843_v12  ;;  %v7847_v12 = vld [vmem:[%s11995_s2 + $0x40] ss:$100 sps:$4 sm:$0xff]  }
 0x23c   :  { %6908 = vmatpush3.bf16.msra.mxu0 %v10735_v55  ;;  %4247 = vmatprep.mubr.bf16.mxu0 %v7849_v16 }
 0x23d   :  { %6934 = vmatpush3.bf16.msra.mxu1 %v8267_v49  ;;  %6909 = vmatprep.subr.bf16.mxu0 %v10744_v26  ;;  %v8289_v49 = vld [vmem:[%s11991_s4 + $0x4f8] sm:$0xff]  }
 0x23e   :  { %6935 = vmatprep.subr.bf16.mxu1 %v8269_v18 }
 0x240   :  { %4207 = vmatmul.mubr.bf16.gmra.mrb[128].mxu1 %v7846_v21  ;;  %6910 = vmatpush3.bf16.msra.mxu0 %v10753_v27  ;;  %v10834_v21 = vld [vmem:[%s11991_s4 + $0x438] sm:$0xff]  }
 0x241   :  { %6936 = vmatpush3.bf16.msra.mxu1 %v8271_v41  ;;  %4296 = vmatprep.mubr.bf16.mxu1 %v7852_v50  ;;  %v10843_v41 = vld [vmem:[%s11991_s4 + $0x540] sm:$0xff]  }
 0x242   :  { %6937 = vmatprep.subr.bf16.mxu1 %v8273_v52  ;;  %6911 = vmatprep.subr.bf16.mxu0 %v10762_v47  ;;  %v7853_v52 = vld [vmem:[%s11995_s2 + $0x10c] ss:$100 sps:$4 sm:$0xff]  }
 0x244   :  { %6912 = vmatpush3.bf16.msra.mxu0 %v10771_v15 }
 0x245   :  { %6938 = vmatpush3.bf16.msra.mxu1 %v8275_v57  ;;  %6913 = vmatprep.subr.bf16.mxu0 %v10780_v59  ;;  %v6545_v56 = vpop.f32.mrb[76].mxu0 }
 0x246   :  { %6939 = vmatprep.subr.bf16.mxu1 %v8277_v36  ;;  %v6546_v39 = vpop.f32.mrb[77].mxu0 }
 0x247   :  { %v6547_v20 = vadd.f32 %v6546_v39, %v6545_v56  ;;  %v6548_v7 = vpop.f32.mrb[78].mxu0 }
 0x248   :  { %6914 = vmatpush3.bf16.msra.mxu0 %v10789_v58  ;;  %v6549_v44 = vpop.f32.mrb[79].mxu0 }
 0x249   :  { %6940 = vmatpush3.bf16.msra.mxu1 %v8279_v45  ;;  %6915 = vmatprep.subr.bf16.mxu0 %v10798_v19  ;;  %v3260_v43 = vadd.f32 %v6547_v20, %v10635_v60  ;;  %v6550_v23 = vadd.f32 %v6549_v44, %v6548_v7  ;;  %v8285_v60 = vld [vmem:[%s11991_s4 + $0x4f0] sm:$0xff]   ;;  %v7850_v45 = vld [vmem:[%s11995_s2 + $0x48] ss:$100 sps:$4 sm:$0xff]   ;;  %v8291_v7 = vld [vmem:[%s11991_s4 + $0x4b8] sm:$0xff]  }
 0x24a   :  { %6941 = vmatprep.subr.bf16.mxu1 %v8281_v6  ;;  %v7856_v6 = vld [vmem:[%s11995_s2 + $0x114] ss:$100 sps:$4 sm:$0xff]   ;;  %v10863_v44 = vld [vmem:[%s11991_s4 + $0x500] sm:$0xff]  }
 0x24b   :  { %v6573_v37 = vpop.f32.mrb[80].mxu1  ;;  %v3263_v29 = vadd.f32 %v6550_v23, %v10643_v46  ;;  %v10820_v46 = vld [vmem:[%s11991_s4 + $0x478] sm:$0xff]  }
 0x24c   :  { %v6574_v63 = vpop.f32.mrb[81].mxu1  ;;  %6916 = vmatpush3.bf16.msra.mxu0 %v10809_v10 }
 0x24d   :  { %v6575_v0 = vadd.f32 %v6574_v63, %v6573_v37  ;;  %v6576_v28 = vpop.f32.mrb[82].mxu1  ;;  %6942 = vmatpush3.bf16.msra.mxu1 %v8283_v51  ;;  %6917 = vmatprep.subr.bf16.mxu0 %v10820_v46  ;;  %v6551_v32 = vpop.f32.mrb[80].mxu0  ;;  %v7855_v51 = vld [vmem:[%s11995_s2 + $0x108] ss:$100 sps:$4 sm:$0xff]  }
 0x24e   :  { %v6577_v31 = vpop.f32.mrb[83].mxu1  ;;  %6943 = vmatprep.subr.bf16.mxu1 %v8285_v60  ;;  %v6552_v38 = vpop.f32.mrb[81].mxu0  ;;  %v10897_v60 = vld [vmem:[%s11991_s4 + $0x550] sm:$0xff]  }
 0x24f   :  { %v10815_v61 = vadd.f32 %v6575_v0, %v3260_v43  ;;  %v6578_v24 = vadd.f32 %v6577_v31, %v6576_v28  ;;  %v6553_v4 = vadd.f32 %v6552_v38, %v6551_v32  ;;  %v6554_v16 = vpop.f32.mrb[82].mxu0  ;;  %v8293_v43 = vld [vmem:[%s11991_s4 + $0x5c0] sm:$0xff]   ;;  %v8297_v31 = vld [vmem:[%s11991_s4 + $0x5c8] sm:$0xff]   ;;  %v7858_v32 = vld [vmem:[%s11995_s2 + $0x110] ss:$100 sps:$4 sm:$0xff]  }
 0x250   :  { %6918 = vmatpush3.bf16.msra.mxu0 %v10834_v21  ;;  %v6555_v18 = vpop.f32.mrb[83].mxu0  ;;  %v8295_v28 = vld [vmem:[%s11991_s4 + $0x580] sm:$0xff]  }
 0x251   :  { %v10823_v11 = vadd.f32 %v6578_v24, %v3263_v29  ;;  %6944 = vmatpush3.bf16.msra.mxu1 %v8287_v62  ;;  %6959 = vmatprep.subr.bf16.mxu0 %v10843_v41  ;;  %v3268_v57 = vadd.f32 %v6553_v4, %v10689_v8  ;;  %v6556_v36 = vadd.f32 %v6555_v18, %v6554_v16  ;;  %v10888_v29 = vld [vmem:[%s11991_s4 + $0x508] sm:$0xff]   ;;  %v7861_v24 = vld [vmem:[%s11995_s2 + $0x54] ss:$100 sps:$4 sm:$0xff]   ;;  %v7864_v38 = vld [vmem:[%s11995_s2 + $0x5c] ss:$100 sps:$4 sm:$0xff]  }
 0x252   :  { %6945 = vmatprep.subr.bf16.mxu1 %v8289_v49  ;;  %v8299_v62 = vld [vmem:[%s11991_s4 + $0x588] sm:$0xff]   ;;  %v8301_v4 = vld [vmem:[%s11991_s4 + $0x5d0] sm:$0xff]   ;;  %v10924_v16 = vld [vmem:[%s11991_s4 + $0x558] sm:$0xff]  }
 0x253   :  { %v6579_v50 = vpop.f32.mrb[84].mxu1  ;;  %4248 = vmatmul.mubr.bf16.vlgmr.msra.gmra.mrb[132].mxu0 %v7847_v12  ;;  %v3271_v8 = vadd.f32 %v6556_v36, %v10697_v5  ;;  %v10874_v5 = vld [vmem:[%s11991_s4 + $0x548] sm:$0xff]   ;;  %v10915_v12 = vld [vmem:[%s11991_s4 + $0x510] sm:$0xff]   ;;  %v8305_v18 = vld [vmem:[%s11991_s4 + $0x5d8] sm:$0xff]  }
 0x254   :  { %v6580_v56 = vpop.f32.mrb[85].mxu1  ;;  %6960 = vmatpush3.bf16.msra.mxu0 %v10863_v44  ;;  %4255 = vmatprep.mubr.bf16.mxu0 %v7853_v52  ;;  %v8303_v49 = vld [vmem:[%s11991_s4 + $0x590] sm:$0xff]   ;;  %v10942_v52 = vld [vmem:[%s11991_s4 + $0x560] sm:$0xff]  }
 0x255   :  { %v6581_v39 = vadd.f32 %v6580_v56, %v6579_v50  ;;  %v6582_v20 = vpop.f32.mrb[86].mxu1  ;;  %6946 = vmatpush3.bf16.msra.mxu1 %v8291_v7  ;;  %6961 = vmatprep.subr.bf16.mxu0 %v10874_v5  ;;  %v10933_v50 = vld [vmem:[%s11991_s4 + $0x518] sm:$0xff]   ;;  %v10951_v36 = vld [vmem:[%s11991_s4 + $0x520] sm:$0xff]  }
 0x256   :  { %v6583_v37 = vpop.f32.mrb[87].mxu1  ;;  %6987 = vmatprep.subr.bf16.mxu1 %v8293_v43  ;;  %v8309_v56 = vld [vmem:[%s11991_s4 + $0x5e0] sm:$0xff]   ;;  %v8313_v43 = vld [vmem:[%s11991_s4 + $0x5e8] sm:$0xff]  }
 0x257   :  { %v10869_v23 = vadd.f32 %v6581_v39, %v3268_v57  ;;  %v6584_v63 = vadd.f32 %v6583_v37, %v6582_v20  ;;  %v8307_v57 = vld [vmem:[%s11991_s4 + $0x598] sm:$0xff]   ;;  %v8311_v20 = vld [vmem:[%s11991_s4 + $0x5a0] sm:$0xff]   ;;  %v10969_v37 = vld [vmem:[%s11991_s4 + $0x528] sm:$0xff]  }
 0x258   :  { %4297 = vmatmul.mubr.bf16.vlgmr.msra.gmra.mrb[132].mxu1 %v7850_v45  ;;  %6962 = vmatpush3.bf16.msra.mxu0 %v10888_v29  ;;  %v10960_v45 = vld [vmem:[%s11991_s4 + $0x568] sm:$0xff]  }
 0x259   :  { %v10877_v0 = vadd.f32 %v6584_v63, %v3271_v8  ;;  %6988 = vmatpush3.bf16.msra.mxu1 %v8295_v28  ;;  %4304 = vmatprep.mubr.bf16.mxu1 %v7856_v6 }
 0x25a   :  { %6989 = vmatprep.subr.bf16.mxu1 %v8297_v31  ;;  %6963 = vmatprep.subr.bf16.mxu0 %v10897_v60 }
 0x25b   :  { %4256 = vmatmul.mubr.bf16.gmra.mrb[136].mxu0 %v7855_v51  ;;  %v10978_v51 = vld [vmem:[%s11991_s4 + $0x570] sm:$0xff]  }
 0x25c   :  { %6964 = vmatpush3.bf16.msra.mxu0 %v10915_v12  ;;  %4345 = vmatprep.mubr.bf16.mxu0 %v7861_v24 }
 0x25d   :  { %6990 = vmatpush3.bf16.msra.mxu1 %v8299_v62  ;;  %6965 = vmatprep.subr.bf16.mxu0 %v10924_v16 }
 0x25e   :  { %6991 = vmatprep.subr.bf16.mxu1 %v8301_v4  ;;  %v8315_v4 = vld [vmem:[%s11991_s4 + $0x5a8] sm:$0xff]  }
 0x260   :  { %4305 = vmatmul.mubr.bf16.gmra.mrb[136].mxu1 %v7858_v32  ;;  %6966 = vmatpush3.bf16.msra.mxu0 %v10933_v50 }
 0x261   :  { %6992 = vmatpush3.bf16.msra.mxu1 %v8303_v49  ;;  %4394 = vmatprep.mubr.bf16.mxu1 %v7864_v38 }
 0x262   :  { %6993 = vmatprep.subr.bf16.mxu1 %v8305_v18  ;;  %6967 = vmatprep.subr.bf16.mxu0 %v10942_v52 }
 0x264   :  { %6968 = vmatpush3.bf16.msra.mxu0 %v10951_v36 }
 0x265   :  { %6994 = vmatpush3.bf16.msra.mxu1 %v8307_v57  ;;  %6969 = vmatprep.subr.bf16.mxu0 %v10960_v45  ;;  %v6601_v39 = vpop.f32.mrb[84].mxu0  ;;  %v10989_v57 = vld [vmem:[%s11991_s4 + $0x530] sm:$0xff]  }
 0x266   :  { %6995 = vmatprep.subr.bf16.mxu1 %v8309_v56  ;;  %v6602_v7 = vpop.f32.mrb[85].mxu0 }
 0x267   :  { %v6603_v6 = vadd.f32 %v6602_v7, %v6601_v39  ;;  %v6604_v8 = vpop.f32.mrb[86].mxu0 }
 0x268   :  { %6970 = vmatpush3.bf16.msra.mxu0 %v10969_v37  ;;  %v6605_v28 = vpop.f32.mrb[87].mxu0 }
 0x269   :  { %6996 = vmatpush3.bf16.msra.mxu1 %v8311_v20  ;;  %6971 = vmatprep.subr.bf16.mxu0 %v10978_v51  ;;  %v3358_v31 = vadd.f32 %v6603_v6, %v10815_v61  ;;  %v6606_v24 = vadd.f32 %v6605_v28, %v6604_v8  ;;  %v8317_v61 = vld [vmem:[%s11991_s4 + $0x5f0] sm:$0xff]  }
 0x26a   :  { %6997 = vmatprep.subr.bf16.mxu1 %v8313_v43  ;;  %v8319_v6 = vld [vmem:[%s11991_s4 + $0x5b0] sm:$0xff]  }
 0x26b   :  { %v6629_v63 = vpop.f32.mrb[88].mxu1  ;;  %v3361_v49 = vadd.f32 %v6606_v24, %v10823_v11  ;;  %v11000_v11 = vld [vmem:[%s11991_s4 + $0x578] sm:$0xff]   ;;  %v7859_v43 = vld [vmem:[%s11995_s2 + $0x50] ss:$100 sps:$4 sm:$0xff]  }
 0x26c   :  { %v6630_v32 = vpop.f32.mrb[89].mxu1  ;;  %6972 = vmatpush3.bf16.msra.mxu0 %v10989_v57  ;;  %v8321_v24 = vld [vmem:[%s11991_s4 + $0x5f8] sm:$0xff]  }
 0x26d   :  { %v6631_v62 = vadd.f32 %v6630_v32, %v6629_v63  ;;  %v6632_v38 = vpop.f32.mrb[90].mxu1  ;;  %6998 = vmatpush3.bf16.msra.mxu1 %v8315_v4  ;;  %6973 = vmatprep.subr.bf16.mxu0 %v11000_v11  ;;  %v6607_v20 = vpop.f32.mrb[88].mxu0  ;;  %v7865_v4 = vld [vmem:[%s11995_s2 + $0x11c] ss:$100 sps:$4 sm:$0xff]  }
 0x26e   :  { %v6633_v18 = vpop.f32.mrb[91].mxu1  ;;  %6999 = vmatprep.subr.bf16.mxu1 %v8317_v61  ;;  %v6608_v8 = vpop.f32.mrb[89].mxu0 }
 0x26f   :  { %v10995_v56 = vadd.f32 %v6631_v62, %v3358_v31  ;;  %v6634_v39 = vadd.f32 %v6633_v18, %v6632_v38  ;;  %v6609_v63 = vadd.f32 %v6608_v8, %v6607_v20  ;;  %v6610_v28 = vpop.f32.mrb[90].mxu0  ;;  %v11014_v31 = vld [vmem:[%s11991_s4 + $0x538] sm:$0xff]   ;;  %v11023_v38 = vld [vmem:[%s11991_s4 + $0x600] sm:$0xff]  }
 0x270   :  { %6974 = vmatpush3.bf16.msra.mxu0 %v11014_v31  ;;  %v6611_v62 = vpop.f32.mrb[91].mxu0  ;;  %v8323_v8 = vld [vmem:[%s11991_s4 + $0x5b8] sm:$0xff]  }
 0x271   :  { %v11003_v7 = vadd.f32 %v6634_v39, %v3361_v49  ;;  %7000 = vmatpush3.bf16.msra.mxu1 %v8319_v6  ;;  %7411 = vmatprep.subr.bf16.mxu0 %v11023_v38  ;;  %v3366_v49 = vadd.f32 %v6609_v63, %v10869_v23  ;;  %v6612_v18 = vadd.f32 %v6611_v62, %v6610_v28  ;;  %v7862_v39 = vld [vmem:[%s11995_s2 + $0x58] ss:$100 sps:$4 sm:$0xff]   ;;  %v8324_v28 = vld [vmem:[%s11991_s4 + $0x40] sm:$0xff]  }
 0x272   :  { %7001 = vmatprep.subr.bf16.mxu1 %v8321_v24  ;;  %v7868_v24 = vld [vmem:[%s11995_s2 + $0x124] ss:$100 sps:$4 sm:$0xff]  }
 0x273   :  { %v6635_v32 = vpop.f32.mrb[92].mxu1  ;;  %4346 = vmatmul.mubr.bf16.vlgmr.msra.gmra.mrb[140].mxu0 %v7859_v43  ;;  %v3369_v23 = vadd.f32 %v6612_v18, %v10877_v0  ;;  %v11049_v43 = vld [vmem:[%s11991_s4 + $0x608] sm:$0xff]   ;;  %v8326_v18 = vld [vmem:[%s11991_s4] sm:$0xff]  }
 0x274   :  { %v6636_v61 = vpop.f32.mrb[93].mxu1  ;;  %7412 = vmatpush3.bf16.msra.mxu0 %v11023_v38  ;;  %12026 = vst [vmem:[#allocation6_spill] sm:$0xff] %v11049_v43  ;;  %4353 = vmatprep.mubr.bf16.mxu0 %v7865_v4  ;;  %v11067_v4 = vld [vmem:[%s11991_s4 + $0x610] sm:$0xff]  }
 0x275   :  { %v6637_v20 = vadd.f32 %v6636_v61, %v6635_v32  ;;  %v6638_v6 = vpop.f32.mrb[94].mxu1  ;;  %7002 = vmatpush3.bf16.msra.mxu1 %v8323_v8  ;;  %7413 = vmatprep.subr.bf16.mxu0 %v11049_v43  ;;  %v8327_v61 = vld [vmem:[%s11991_s4 + $0x48] sm:$0xff]   ;;  %12027 = vst [vmem:[#allocation7_spill] sm:$0xff] %v11067_v4 }
 0x276   :  { %v6639_v63 = vpop.f32.mrb[95].mxu1  ;;  %7025 = vmatprep.subr.bf16.mxu1 %v8324_v28  ;;  %v7875_v8 = vld [vmem:[%s11996_s3 + $0x4] ss:$100 sps:$4 sm:$0xff]   ;;  %v8333_v28 = vld [vmem:[%s11991_s4 + $0x58] sm:$0xff]  }
 0x277   :  { %v11044_v32 = vadd.f32 %v6637_v20, %v3366_v49  ;;  %v6640_v62 = vadd.f32 %v6639_v63, %v6638_v6  ;;  %v7867_v49 = vld [vmem:[%s11995_s2 + $0x118] ss:$100 sps:$4 sm:$0xff]   ;;  %v7870_v20 = vld [vmem:[%s11995_s2 + $0x120] ss:$100 sps:$4 sm:$0xff]   ;;  %v8329_v6 = vld [vmem:[%s11991_s4 + $0x8] sm:$0xff]  }
 0x278   :  { %4395 = vmatmul.mubr.bf16.vlgmr.msra.gmra.mrb[140].mxu1 %v7862_v39  ;;  %7414 = vmatpush3.bf16.msra.mxu0 %v11049_v43  ;;  %v7871_v39 = vld [vmem:[%s11995_s2 + $0x60] ss:$100 sps:$4 sm:$0xff]   ;;  %v8332_v63 = vld [vmem:[%s11991_s4 + $0x10] sm:$0xff]  }
 0x279   :  { %v11052_v0 = vadd.f32 %v6640_v62, %v3369_v23  ;;  %7026 = vmatpush3.bf16.msra.mxu1 %v8326_v18  ;;  %4402 = vmatprep.mubr.bf16.mxu1 %v7868_v24  ;;  %v8330_v24 = vld [vmem:[%s11991_s4 + $0x50] sm:$0xff]   ;;  %v11089_v23 = vld [vmem:[%s11991_s4 + $0x618] sm:$0xff]   ;;  %v11102_v62 = vld [vmem:[%s11991_s4 + $0x620] sm:$0xff]  }
 0x27a   :  { %7027 = vmatprep.subr.bf16.mxu1 %v8327_v61  ;;  %7415 = vmatprep.subr.bf16.mxu0 %v11067_v4  ;;  %12028 = vst [vmem:[#allocation8_spill] sm:$0xff] %v11089_v23  ;;  %12029 = vst [vmem:[#allocation9_spill] sm:$0xff] %v11102_v62  ;;  %v8335_v18 = vld [vmem:[%s11991_s4 + $0x18] sm:$0xff]   ;;  %v11115_v61 = vld [vmem:[%s11991_s4 + $0x628] sm:$0xff]  }
 0x27b   :  { %4354 = vmatmul.mubr.bf16.gmra.mrb[144].mxu0 %v7867_v49  ;;  %v8336_v49 = vld [vmem:[%s11991_s4 + $0x60] sm:$0xff]   ;;  %12030 = vst [vmem:[#allocation10_spill] sm:$0xff] %v11115_v61 }
 0x27c   :  { %7416 = vmatpush3.bf16.msra.mxu0 %v11067_v4  ;;  %7427 = vmatprep.mubr.bf16.mxu0 %v7871_v39 }
 0x27d   :  { %7028 = vmatpush3.bf16.msra.mxu1 %v8329_v6  ;;  %7417 = vmatprep.subr.bf16.mxu0 %v11089_v23 }
 0x27e   :  { %7029 = vmatprep.subr.bf16.mxu1 %v8330_v24 }
 0x280   :  { %4403 = vmatmul.mubr.bf16.gmra.mrb[144].mxu1 %v7870_v20  ;;  %7418 = vmatpush3.bf16.msra.mxu0 %v11089_v23  ;;  %v8338_v20 = vld [vmem:[%s11991_s4 + $0x20] sm:$0xff]  }
 0x281   :  { %7030 = vmatpush3.bf16.msra.mxu1 %v8332_v63  ;;  %4796 = vmatprep.mubr.bf16.mxu1 %v7875_v8  ;;  %v8339_v63 = vld [vmem:[%s11991_s4 + $0x68] sm:$0xff]  }
 0x282   :  { %7031 = vmatprep.subr.bf16.mxu1 %v8333_v28  ;;  %7419 = vmatprep.subr.bf16.mxu0 %v11102_v62 }
 0x284   :  { %7420 = vmatpush3.bf16.msra.mxu0 %v11102_v62 }
 0x285   :  { %7032 = vmatpush3.bf16.msra.mxu1 %v8335_v18  ;;  %7421 = vmatprep.subr.bf16.mxu0 %v11115_v61  ;;  %v6657_v39 = vpop.f32.mrb[92].mxu0 }
 0x286   :  { %7033 = vmatprep.subr.bf16.mxu1 %v8336_v49  ;;  %v6658_v6 = vpop.f32.mrb[93].mxu0  ;;  %v11128_v49 = vld [vmem:[%s11991_s4 + $0x630] sm:$0xff]  }
 0x287   :  { %v6659_v8 = vadd.f32 %v6658_v6, %v6657_v39  ;;  %v6660_v24 = vpop.f32.mrb[94].mxu0  ;;  %12031 = vst [vmem:[#allocation11_spill] sm:$0xff] %v11128_v49 }
 0x288   :  { %7422 = vmatpush3.bf16.msra.mxu0 %v11115_v61  ;;  %v6661_v28 = vpop.f32.mrb[95].mxu0  ;;  %v8341_v61 = vld [vmem:[%s11991_s4 + $0x28] sm:$0xff]  }
 0x289   :  { %7034 = vmatpush3.bf16.msra.mxu1 %v8338_v20  ;;  %7423 = vmatprep.subr.bf16.mxu0 %v11128_v49  ;;  %v6662_v20 = vadd.f32 %v6661_v28, %v6660_v24  ;;  %v3456_v39 = vadd.f32 %v6659_v8, %v10995_v56  ;;  %v8342_v24 = vld [vmem:[%s11991_s4 + $0x70] sm:$0xff]   ;;  %v11145_v56 = vld [vmem:[%s11991_s4 + $0x638] sm:$0xff]  }
 0x28a   :  { %7035 = vmatprep.subr.bf16.mxu1 %v8339_v63 }
 0x28b   :  { %v7409_v18 = vpop.f32.mrb[96].mxu1  ;;  %v3459_v23 = vadd.f32 %v6662_v20, %v11003_v7 }
 0x28c   :  { %v3504_v6 = vpop.f32.mrb[97].mxu1  ;;  %7424 = vmatpush3.bf16.msra.mxu0 %v11128_v49 }
 0x28d   :  { %7036 = vmatpush3.bf16.msra.mxu1 %v8341_v61  ;;  %v7410_v62 = vpop.f32.mrb[98].mxu1  ;;  %v11135_v63 = vadd.f32 %v3504_v6, %v3456_v39  ;;  %7425 = vmatprep.subr.bf16.mxu0 %v11145_v56  ;;  %v5403_v61 = vmul.f32 %v10230_v13, %v10230_v13  ;;  %v6663_v20 = vpop.f32.mrb[96].mxu0  ;;  %v5404_v39 = vmul.f32 %v10244_v40, %v10244_v40  ;;  %v8344_v6 = vld [vmem:[%s11991_s4 + $0x30] sm:$0xff]  }
 0x28e   :  { %v3507_v4 = vpop.f32.mrb[99].mxu1  ;;  %7037 = vmatprep.subr.bf16.mxu1 %v8342_v24  ;;  %v6664_v24 = vpop.f32.mrb[97].mxu0 }
 0x28f   :  { %12032 = vst [vmem:[#allocation12_spill] sm:$0xff] %v11135_v63  ;;  %v11152_v8 = vadd.f32 %v11135_v63, %v10230_v13  ;;  %v5411_v7 = vmul.f32 %v11135_v63, %v11135_v63  ;;  %v11156_v28 = vadd.f32 %v3507_v4, %v3459_v23  ;;  %v7872_v13 = vld [vmem:[%s11995_s2 + $0x128] ss:$100 sps:$4 sm:$0xff]   ;;  %v6665_v63 = vadd.f32 %v6664_v24, %v6663_v20  ;;  %v6666_v49 = vpop.f32.mrb[98].mxu0 }
 0x290   :  { %7426 = vmatpush3.bf16.msra.mxu0 %v11145_v56  ;;  %v6667_v43 = vpop.f32.mrb[99].mxu0 }
 0x291   :  { %12033 = vst [vmem:[#allocation13_spill] sm:$0xff] %v11152_v8  ;;  %12034 = vst [vmem:[#allocation14_spill] sm:$0xff] %v11156_v28  ;;  %7038 = vmatpush3.bf16.msra.mxu1 %v8344_v6  ;;  %v11166_v8 = vadd.f32 %v5411_v7, %v5403_v61  ;;  %v11170_v4 = vadd.f32 %v11156_v28, %v10244_v40  ;;  %v5412_v23 = vmul.f32 %v11156_v28, %v11156_v28  ;;  %v8345_v6 = vld [vmem:[%s11991_s4 + $0x78] sm:$0xff]   ;;  %v8346_v61 = vld [vmem:[%s11991_s4 + $0xc0] sm:$0xff]  }
 0x292   :  { %7039 = vmatprep.subr.bf16.mxu1 %v8345_v6  ;;  %7053 = vmatprep.subr.bf16.mxu0 %v8346_v61  ;;  %v7881_v7 = vld [vmem:[%s11996_s3 + $0xc] ss:$100 sps:$4 sm:$0xff]   ;;  %v3464_v20 = vadd.f32 %v6665_v63, %v11044_v32  ;;  %v6668_v24 = vadd.f32 %v6667_v43, %v6666_v49  ;;  %v7873_v40 = vld [vmem:[%s11996_s3] ss:$100 sps:$4 sm:$0xff]   ;;  %v8347_v6 = vld [vmem:[%s11991_s4 + $0x38] sm:$0xff]  }
 0x293   :  { %12035 = vst [vmem:[#allocation15_spill] sm:$0xff] %v11166_v8  ;;  %12036 = vst [vmem:[#allocation16_spill] sm:$0xff] %v11170_v4  ;;  %v11184_v28 = vadd.f32 %v5412_v23, %v5404_v39  ;;  %7428 = vmatmul.mubr.bf16.vlgmr.msra.gmra.mrb[148].mxu0 %v7872_v13  ;;  %v7876_v61 = vld [vmem:[%s11996_s3 + $0xcc] ss:$100 sps:$4 sm:$0xff]   ;;  %v8348_v32 = vld [vmem:[%s11991_s4 + $0x80] sm:$0xff]   ;;  %v5406_v23 = vmul.f32 %v10238_v22, %v10238_v22 }
 0x294   :  { %v11196_v4 = vadd.f32 %v7409_v18, %v3464_v20  ;;  %v3467_v39 = vadd.f32 %v6668_v24, %v11052_v0  ;;  %7054 = vmatpush3.bf16.msra.mxu0 %v8348_v32  ;;  %v8349_v43 = vld [vmem:[%s11991_s4 + $0x140] sm:$0xff]   ;;  %v8350_v13 = vld [vmem:[%s11991_s4 + $0xc8] sm:$0xff]   ;;  %4845 = vmatprep.mubr.bf16.mxu0 %v7881_v7  ;;  %v5405_v18 = vmul.f32 %v10224_v1, %v10224_v1 }
 0x295   :  { %12037 = vst [vmem:[#allocation17_spill] sm:$0xff] %v11184_v28  ;;  %7040 = vmatpush3.bf16.msra.mxu1 %v8347_v6  ;;  %7055 = vmatprep.subr.bf16.mxu0 %v8350_v13  ;;  %v8351_v7 = vld [vmem:[%s11991_s4 + $0x100] sm:$0xff]   ;;  %v7884_v13 = vld [vmem:[%s11996_s3 + $0x14] ss:$100 sps:$4 sm:$0xff]  }
 0x296   :  { %12038 = vst [vmem:[#allocation18_spill] sm:$0xff] %v11196_v4  ;;  %7081 = vmatprep.subr.bf16.mxu1 %v8349_v43  ;;  %v5413_v0 = vmul.f32 %v11196_v4, %v11196_v4  ;;  %v11212_v49 = vadd.f32 %v7410_v62, %v3467_v39  ;;  %v11216_v63 = vadd.f32 %v11196_v4, %v10224_v1  ;;  %v8353_v62 = vld [vmem:[%s11991_s4 + $0x148] sm:$0xff]   ;;  %v8381_v8 = vld [vmem:[%s11991_s4 + $0x180] sm:$0xff]  }
 0x297   :  { %v7878_v39 = vld [vmem:[%s11996_s3 + $0xc8] ss:$100 sps:$4 sm:$0xff]  }
 0x298   :  { %12039 = vst [vmem:[#allocation19_spill] sm:$0xff] %v11212_v49  ;;  %4797 = vmatmul.mubr.bf16.vlgmr.msra.gmra.mrb[148].mxu1 %v7873_v40  ;;  %v5414_v20 = vmul.f32 %v11212_v49, %v11212_v49  ;;  %v8352_v40 = vld [vmem:[%s11991_s4 + $0x88] sm:$0xff]   ;;  %v11231_v24 = vadd.f32 %v5413_v0, %v5405_v18  ;;  %v11235_v6 = vadd.f32 %v11212_v49, %v10238_v22  ;;  %v8356_v18 = vld [vmem:[%s11991_s4 + $0x90] sm:$0xff]  }
 0x299   :  { %7082 = vmatpush3.bf16.msra.mxu1 %v8351_v7  ;;  %4804 = vmatprep.mubr.bf16.mxu1 %v7876_v61  ;;  %v8354_v61 = vld [vmem:[%s11991_s4 + $0xd0] sm:$0xff]   ;;  %v8355_v43 = vld [vmem:[%s11991_s4 + $0x108] sm:$0xff]  }
 0x29a   :  { %7056 = vmatpush3.bf16.msra.mxu0 %v8352_v40  ;;  %7083 = vmatprep.subr.bf16.mxu1 %v8353_v62  ;;  %v11243_v32 = vadd.f32 %v5414_v20, %v5406_v23  ;;  %v8357_v0 = vld [vmem:[%s11991_s4 + $0x150] sm:$0xff]   ;;  %v8358_v23 = vld [vmem:[%s11991_s4 + $0xd8] sm:$0xff]   ;;  %v8362_v62 = vld [vmem:[%s11991_s4 + $0xe0] sm:$0xff]  }
 0x29b   :  { %7057 = vmatprep.subr.bf16.mxu0 %v8354_v61  ;;  %v8359_v7 = vld [vmem:[%s11991_s4 + $0x110] sm:$0xff]   ;;  %v8360_v20 = vld [vmem:[%s11991_s4 + $0x98] sm:$0xff]  }
 0x29c   :  { %12040 = vst [vmem:[#allocation20_spill] sm:$0xff] %v11243_v32  ;;  %v8361_v40 = vld [vmem:[%s11991_s4 + $0x158] sm:$0xff]  }
 0x29d   :  { %7084 = vmatpush3.bf16.msra.mxu1 %v8355_v43  ;;  %v8363_v61 = vld [vmem:[%s11991_s4 + $0x118] sm:$0xff]   ;;  %v8365_v43 = vld [vmem:[%s11991_s4 + $0x160] sm:$0xff]  }
 0x29e   :  { %7058 = vmatpush3.bf16.msra.mxu0 %v8356_v18  ;;  %7085 = vmatprep.subr.bf16.mxu1 %v8357_v0  ;;  %v8367_v0 = vld [vmem:[%s11991_s4 + $0x120] sm:$0xff]  }
 0x29f   :  { %7059 = vmatprep.subr.bf16.mxu0 %v8358_v23 }
 0x2a0   :  { %4805 = vmatmul.mubr.bf16.gmra.mrb[152].mxu1 %v7878_v39  ;;  %v8364_v39 = vld [vmem:[%s11991_s4 + $0xa0] sm:$0xff]  }
 0x2a1   :  { %7086 = vmatpush3.bf16.msra.mxu1 %v8359_v7  ;;  %4894 = vmatprep.mubr.bf16.mxu1 %v7884_v13  ;;  %v8366_v13 = vld [vmem:[%s11991_s4 + $0xe8] sm:$0xff]  }
 0x2a2   :  { %7060 = vmatpush3.bf16.msra.mxu0 %v8360_v20  ;;  %7087 = vmatprep.subr.bf16.mxu1 %v8361_v40  ;;  %v8368_v40 = vld [vmem:[%s11991_s4 + $0xa8] sm:$0xff]  }
 0x2a3   :  { %7061 = vmatprep.subr.bf16.mxu0 %v8362_v62  ;;  %v8369_v62 = vld [vmem:[%s11991_s4 + $0x168] sm:$0xff]  }
 0x2a5   :  { %7088 = vmatpush3.bf16.msra.mxu1 %v8363_v61  ;;  %v6695_v18 = vpop.f32.mrb[100].mxu0 }
 0x2a6   :  { %7062 = vmatpush3.bf16.msra.mxu0 %v8364_v39  ;;  %7089 = vmatprep.subr.bf16.mxu1 %v8365_v43  ;;  %v6696_v23 = vpop.f32.mrb[101].mxu0  ;;  %v8370_v43 = vld [vmem:[%s11991_s4 + $0xf0] sm:$0xff]  }
 0x2a7   :  { %7063 = vmatprep.subr.bf16.mxu0 %v8366_v13  ;;  %v6697_v7 = vadd.f32 %v6696_v23, %v6695_v18  ;;  %v6698_v20 = vpop.f32.mrb[102].mxu0  ;;  %v11299_v13 = vld [vmem:[%s11994_s5] ss:$0 sm:$0xff] }
 0x2a8   :  { %v6699_v39 = vpop.f32.mrb[103].mxu0  ;;  %12041 = vst [vmem:[#allocation21_spill] sm:$0xff] %v11299_v13 }
 0x2a9   :  { %7090 = vmatpush3.bf16.msra.mxu1 %v8367_v0  ;;  %v3858_v18 = vadd.f32 %v11299_v13, %v6697_v7  ;;  %v6700_v0 = vadd.f32 %v6699_v39, %v6698_v20  ;;  %v8374_v7 = vld [vmem:[%s11991_s4 + $0x170] sm:$0xff]   ;;  %v8375_v39 = vld [vmem:[%s11991_s4 + $0xf8] sm:$0xff]  }
 0x2aa   :  { %7064 = vmatpush3.bf16.msra.mxu0 %v8368_v40  ;;  %7091 = vmatprep.subr.bf16.mxu1 %v8369_v62  ;;  %v8372_v62 = vld [vmem:[%s11991_s4 + $0x128] sm:$0xff]  }
 0x2ab   :  { %v6723_v61 = vpop.f32.mrb[100].mxu1  ;;  %7065 = vmatprep.subr.bf16.mxu0 %v8370_v43  ;;  %v3861_v4 = vadd.f32 %v11299_v13, %v6700_v0  ;;  %v8373_v43 = vld [vmem:[%s11991_s4 + $0xb0] sm:$0xff]  }
 0x2ac   :  { %v6724_v23 = vpop.f32.mrb[101].mxu1 }
 0x2ad   :  { %v6725_v40 = vadd.f32 %v6724_v23, %v6723_v61  ;;  %v6726_v49 = vpop.f32.mrb[102].mxu1  ;;  %7092 = vmatpush3.bf16.msra.mxu1 %v8372_v62  ;;  %v6701_v0 = vpop.f32.mrb[104].mxu0  ;;  %v8376_v62 = vld [vmem:[%s11991_s4 + $0x130] sm:$0xff]  }
 0x2ae   :  { %v6727_v22 = vpop.f32.mrb[103].mxu1  ;;  %7066 = vmatpush3.bf16.msra.mxu0 %v8373_v43  ;;  %7093 = vmatprep.subr.bf16.mxu1 %v8374_v7  ;;  %v7879_v43 = vld [vmem:[%s11996_s3 + $0x8] ss:$100 sps:$4 sm:$0xff]   ;;  %v8379_v7 = vld [vmem:[%s11991_s4 + $0x1c0] sm:$0xff]  }
 0x2af   :  { %v11312_v20 = vadd.f32 %v6725_v40, %v3858_v18  ;;  %v6728_v61 = vadd.f32 %v6727_v22, %v6726_v49  ;;  %7067 = vmatprep.subr.bf16.mxu0 %v8375_v39  ;;  %v6702_v18 = vpop.f32.mrb[105].mxu0  ;;  %v8377_v22 = vld [vmem:[%s11991_s4 + $0xb8] sm:$0xff]  }
 0x2b0   :  { %v6703_v49 = vadd.f32 %v6702_v18, %v6701_v0  ;;  %v6704_v40 = vpop.f32.mrb[106].mxu0  ;;  %v8380_v18 = vld [vmem:[%s11991_s4 + $0x138] sm:$0xff]  }
 0x2b1   :  { %v11317_v23 = vadd.f32 %v6728_v61, %v3861_v4  ;;  %7094 = vmatpush3.bf16.msra.mxu1 %v8376_v62  ;;  %v8378_v4 = vld [vmem:[%s11991_s4 + $0x178] sm:$0xff]   ;;  %v6705_v62 = vpop.f32.mrb[107].mxu0 }
 0x2b2   :  { %7068 = vmatpush3.bf16.msra.mxu0 %v8377_v22  ;;  %7095 = vmatprep.subr.bf16.mxu1 %v8378_v4  ;;  %v7885_v61 = vld [vmem:[%s11996_s3 + $0xd4] ss:$100 sps:$4 sm:$0xff]   ;;  %v3866_v1 = vadd.f32 %v11299_v13, %v6703_v49  ;;  %v6706_v4 = vadd.f32 %v6705_v62, %v6704_v40  ;;  %v8382_v49 = vld [vmem:[%s11991_s4 + $0x240] sm:$0xff]  }
 0x2b3   :  { %7109 = vmatprep.subr.bf16.mxu0 %v8379_v7  ;;  %v6729_v39 = vpop.f32.mrb[104].mxu1  ;;  %v7882_v22 = vld [vmem:[%s11996_s3 + $0x10] ss:$100 sps:$4 sm:$0xff]   ;;  %v7888_v7 = vld [vmem:[%s11996_s3 + $0xdc] ss:$100 sps:$4 sm:$0xff]  }
 0x2b4   :  { %v6730_v0 = vpop.f32.mrb[105].mxu1  ;;  %v3869_v40 = vadd.f32 %v11299_v13, %v6706_v4  ;;  %v7887_v4 = vld [vmem:[%s11996_s3 + $0xd0] ss:$100 sps:$4 sm:$0xff]  }
 0x2b5   :  { %7096 = vmatpush3.bf16.msra.mxu1 %v8380_v18  ;;  %4846 = vmatmul.mubr.bf16.vlgmr.msra.gmra.mrb[152].mxu0 %v7879_v43  ;;  %v6731_v28 = vadd.f32 %v6730_v0, %v6729_v39  ;;  %v6732_v32 = vpop.f32.mrb[106].mxu1  ;;  %v8383_v43 = vld [vmem:[%s11991_s4 + $0x1c8] sm:$0xff]   ;;  %v8405_v13 = vld [vmem:[%s11991_s4 + $0x1b0] sm:$0xff]  }
 0x2b6   :  { %7110 = vmatpush3.bf16.msra.mxu0 %v8381_v8  ;;  %7137 = vmatprep.subr.bf16.mxu1 %v8382_v49  ;;  %v6733_v62 = vpop.f32.mrb[107].mxu1  ;;  %v8384_v8 = vld [vmem:[%s11991_s4 + $0x200] sm:$0xff]  }
 0x2b7   :  { %7111 = vmatprep.subr.bf16.mxu0 %v8383_v43  ;;  %4853 = vmatprep.mubr.bf16.mxu0 %v7885_v61  ;;  %v11357_v39 = vadd.f32 %v6731_v28, %v3866_v1  ;;  %v6734_v0 = vadd.f32 %v6733_v62, %v6732_v32  ;;  %v8385_v61 = vld [vmem:[%s11991_s4 + $0x188] sm:$0xff]   ;;  %v8387_v28 = vld [vmem:[%s11991_s4 + $0x1d0] sm:$0xff]   ;;  %v7893_v32 = vld [vmem:[%s11996_s3 + $0x1c] ss:$100 sps:$4 sm:$0xff]  }
 0x2b8   :  { %4895 = vmatmul.mubr.bf16.vlgmr.msra.gmra.mrb[156].mxu1 %v7882_v22  ;;  %v8386_v1 = vld [vmem:[%s11991_s4 + $0x248] sm:$0xff]   ;;  %v7890_v22 = vld [vmem:[%s11996_s3 + $0xd8] ss:$100 sps:$4 sm:$0xff]   ;;  %v8390_v62 = vld [vmem:[%s11991_s4 + $0x250] sm:$0xff]  }
 0x2b9   :  { %7138 = vmatpush3.bf16.msra.mxu1 %v8384_v8  ;;  %4902 = vmatprep.mubr.bf16.mxu1 %v7888_v7  ;;  %v11365_v18 = vadd.f32 %v6734_v0, %v3869_v40  ;;  %v8388_v7 = vld [vmem:[%s11991_s4 + $0x208] sm:$0xff]   ;;  %v8389_v40 = vld [vmem:[%s11991_s4 + $0x190] sm:$0xff]   ;;  %v8391_v43 = vld [vmem:[%s11991_s4 + $0x1d8] sm:$0xff]  }
 0x2ba   :  { %7112 = vmatpush3.bf16.msra.mxu0 %v8385_v61  ;;  %7139 = vmatprep.subr.bf16.mxu1 %v8386_v1  ;;  %v7896_v49 = vld [vmem:[%s11996_s3 + $0x24] ss:$100 sps:$4 sm:$0xff]   ;;  %v8392_v0 = vld [vmem:[%s11991_s4 + $0x210] sm:$0xff]   ;;  %v8393_v8 = vld [vmem:[%s11991_s4 + $0x198] sm:$0xff]  }
 0x2bb   :  { %7113 = vmatprep.subr.bf16.mxu0 %v8387_v28  ;;  %v8395_v61 = vld [vmem:[%s11991_s4 + $0x1e0] sm:$0xff]   ;;  %v8396_v1 = vld [vmem:[%s11991_s4 + $0x218] sm:$0xff]  }
 0x2bc   :  { %v8397_v28 = vld [vmem:[%s11991_s4 + $0x1a0] sm:$0xff]  }
 0x2bd   :  { %7140 = vmatpush3.bf16.msra.mxu1 %v8388_v7  ;;  %4854 = vmatmul.mubr.bf16.gmra.mrb[156].mxu0 %v7887_v4  ;;  %v8394_v4 = vld [vmem:[%s11991_s4 + $0x258] sm:$0xff]  }
 0x2be   :  { %7114 = vmatpush3.bf16.msra.mxu0 %v8389_v40  ;;  %7141 = vmatprep.subr.bf16.mxu1 %v8390_v62 }
 0x2bf   :  { %7115 = vmatprep.subr.bf16.mxu0 %v8391_v43  ;;  %4943 = vmatprep.mubr.bf16.mxu0 %v7893_v32  ;;  %v8398_v32 = vld [vmem:[%s11991_s4 + $0x260] sm:$0xff]  }
 0x2c0   :  { %4903 = vmatmul.mubr.bf16.gmra.mrb[160].mxu1 %v7890_v22  ;;  %v8399_v22 = vld [vmem:[%s11991_s4 + $0x1e8] sm:$0xff]  }
 0x2c1   :  { %7142 = vmatpush3.bf16.msra.mxu1 %v8392_v0  ;;  %4992 = vmatprep.mubr.bf16.mxu1 %v7896_v49  ;;  %v8400_v49 = vld [vmem:[%s11991_s4 + $0x220] sm:$0xff]   ;;  %v8401_v0 = vld [vmem:[%s11991_s4 + $0x1a8] sm:$0xff]  }
 0x2c2   :  { %7116 = vmatpush3.bf16.msra.mxu0 %v8393_v8  ;;  %7143 = vmatprep.subr.bf16.mxu1 %v8394_v4  ;;  %v8402_v8 = vld [vmem:[%s11991_s4 + $0x268] sm:$0xff]  }
 0x2c3   :  { %7117 = vmatprep.subr.bf16.mxu0 %v8395_v61 }
 0x2c5   :  { %7144 = vmatpush3.bf16.msra.mxu1 %v8396_v1  ;;  %v6751_v7 = vpop.f32.mrb[108].mxu0  ;;  %v8403_v1 = vld [vmem:[%s11991_s4 + $0x1f0] sm:$0xff]  }
 0x2c6   :  { %7118 = vmatpush3.bf16.msra.mxu0 %v8397_v28  ;;  %7145 = vmatprep.subr.bf16.mxu1 %v8398_v32  ;;  %v6752_v40 = vpop.f32.mrb[109].mxu0 }
 0x2c7   :  { %7119 = vmatprep.subr.bf16.mxu0 %v8399_v22  ;;  %v6753_v62 = vadd.f32 %v6752_v40, %v6751_v7  ;;  %v6754_v43 = vpop.f32.mrb[110].mxu0  ;;  %v8404_v40 = vld [vmem:[%s11991_s4 + $0x228] sm:$0xff]  }
 0x2c8   :  { %v6755_v61 = vpop.f32.mrb[111].mxu0 }
 0x2c9   :  { %7146 = vmatpush3.bf16.msra.mxu1 %v8400_v49  ;;  %v3956_v28 = vadd.f32 %v6753_v62, %v11312_v20  ;;  %v6756_v32 = vadd.f32 %v6755_v61, %v6754_v43  ;;  %v8406_v20 = vld [vmem:[%s11991_s4 + $0x270] sm:$0xff]  }
 0x2ca   :  { %7120 = vmatpush3.bf16.msra.mxu0 %v8401_v0  ;;  %7147 = vmatprep.subr.bf16.mxu1 %v8402_v8 }
 0x2cb   :  { %v6779_v4 = vpop.f32.mrb[108].mxu1  ;;  %7121 = vmatprep.subr.bf16.mxu0 %v8403_v1  ;;  %v3959_v0 = vadd.f32 %v6756_v32, %v11317_v23 }
 0x2cc   :  { %v6780_v22 = vpop.f32.mrb[109].mxu1 }
 0x2cd   :  { %v6781_v7 = vadd.f32 %v6780_v22, %v6779_v4  ;;  %v6782_v49 = vpop.f32.mrb[110].mxu1  ;;  %7148 = vmatpush3.bf16.msra.mxu1 %v8404_v40  ;;  %v8407_v4 = vld [vmem:[%s11991_s4 + $0x1f8] sm:$0xff]   ;;  %v6757_v23 = vpop.f32.mrb[112].mxu0 }
 0x2ce   :  { %v6783_v8 = vpop.f32.mrb[111].mxu1  ;;  %7122 = vmatpush3.bf16.msra.mxu0 %v8405_v13  ;;  %7149 = vmatprep.subr.bf16.mxu1 %v8406_v20  ;;  %v8408_v13 = vld [vmem:[%s11991_s4 + $0x230] sm:$0xff]   ;;  %v6758_v1 = vpop.f32.mrb[113].mxu0  ;;  %v7897_v20 = vld [vmem:[%s11996_s3 + $0xe4] ss:$100 sps:$4 sm:$0xff]  }
 0x2cf   :  { %v11444_v62 = vadd.f32 %v6781_v7, %v3956_v28  ;;  %v6784_v43 = vadd.f32 %v6783_v8, %v6782_v49  ;;  %7123 = vmatprep.subr.bf16.mxu0 %v8407_v4  ;;  %v7891_v28 = vld [vmem:[%s11996_s3 + $0x18] ss:$100 sps:$4 sm:$0xff]   ;;  %v6759_v32 = vadd.f32 %v6758_v1, %v6757_v23  ;;  %v6760_v22 = vpop.f32.mrb[114].mxu0  ;;  %v8411_v8 = vld [vmem:[%s11991_s4 + $0x2c0] sm:$0xff]  }
 0x2d0   :  { %v8409_v7 = vld [vmem:[%s11991_s4 + $0x1b8] sm:$0xff]  }
 0x2d1   :  { %v11449_v61 = vadd.f32 %v6784_v43, %v3959_v0  ;;  %7150 = vmatpush3.bf16.msra.mxu1 %v8408_v13  ;;  %v8410_v49 = vld [vmem:[%s11991_s4 + $0x278] sm:$0xff]   ;;  %v6761_v0 = vpop.f32.mrb[115].mxu0  ;;  %v3964_v43 = vadd.f32 %v6759_v32, %v11357_v39  ;;  %v7894_v13 = vld [vmem:[%s11996_s3 + $0x20] ss:$100 sps:$4 sm:$0xff]  }
 0x2d2   :  { %7124 = vmatpush3.bf16.msra.mxu0 %v8409_v7  ;;  %7151 = vmatprep.subr.bf16.mxu1 %v8410_v49  ;;  %v6762_v4 = vadd.f32 %v6761_v0, %v6760_v22  ;;  %v8412_v49 = vld [vmem:[%s11991_s4 + $0x238] sm:$0xff]   ;;  %v8413_v22 = vld [vmem:[%s11991_s4 + $0x280] sm:$0xff]  }
 0x2d3   :  { %v6785_v40 = vpop.f32.mrb[112].mxu1  ;;  %7165 = vmatprep.subr.bf16.mxu0 %v8411_v8  ;;  %v7900_v8 = vld [vmem:[%s11996_s3 + $0xec] ss:$100 sps:$4 sm:$0xff]  }
 0x2d4   :  { %v6786_v23 = vpop.f32.mrb[113].mxu1  ;;  %v3967_v39 = vadd.f32 %v6762_v4, %v11365_v18  ;;  %v8416_v4 = vld [vmem:[%s11991_s4 + $0x300] sm:$0xff]  }
 0x2d5   :  { %v6787_v1 = vadd.f32 %v6786_v23, %v6785_v40  ;;  %v6788_v7 = vpop.f32.mrb[114].mxu1  ;;  %7152 = vmatpush3.bf16.msra.mxu1 %v8412_v49  ;;  %4944 = vmatmul.mubr.bf16.vlgmr.msra.gmra.mrb[160].mxu0 %v7891_v28  ;;  %v8414_v40 = vld [vmem:[%s11991_s4 + $0x340] sm:$0xff]   ;;  %v8415_v23 = vld [vmem:[%s11991_s4 + $0x2c8] sm:$0xff]  }
 0x2d6   :  { %v6789_v32 = vpop.f32.mrb[115].mxu1  ;;  %7166 = vmatpush3.bf16.msra.mxu0 %v8413_v22  ;;  %7193 = vmatprep.subr.bf16.mxu1 %v8414_v40  ;;  %v7902_v49 = vld [vmem:[%s11996_s3 + $0xe8] ss:$100 sps:$4 sm:$0xff]   ;;  %v8422_v22 = vld [vmem:[%s11991_s4 + $0x350] sm:$0xff]   ;;  %v8423_v40 = vld [vmem:[%s11991_s4 + $0x2d8] sm:$0xff]  }
 0x2d7   :  { %v11486_v0 = vadd.f32 %v6787_v1, %v3964_v43  ;;  %v6790_v28 = vadd.f32 %v6789_v32, %v6788_v7  ;;  %7167 = vmatprep.subr.bf16.mxu0 %v8415_v23  ;;  %4951 = vmatprep.mubr.bf16.mxu0 %v7897_v20  ;;  %v7899_v43 = vld [vmem:[%s11996_s3 + $0xe0] ss:$100 sps:$4 sm:$0xff]   ;;  %v8417_v1 = vld [vmem:[%s11991_s4 + $0x288] sm:$0xff]   ;;  %v8421_v32 = vld [vmem:[%s11991_s4 + $0x290] sm:$0xff]  }
 0x2d8   :  { %4993 = vmatmul.mubr.bf16.vlgmr.msra.gmra.mrb[164].mxu1 %v7894_v13  ;;  %v8418_v20 = vld [vmem:[%s11991_s4 + $0x348] sm:$0xff]   ;;  %v8419_v13 = vld [vmem:[%s11991_s4 + $0x2d0] sm:$0xff]   ;;  %v8425_v23 = vld [vmem:[%s11991_s4 + $0x298] sm:$0xff]  }
 0x2d9   :  { %v11491_v18 = vadd.f32 %v6790_v28, %v3967_v39  ;;  %7194 = vmatpush3.bf16.msra.mxu1 %v8416_v4  ;;  %5000 = vmatprep.mubr.bf16.mxu1 %v7900_v8  ;;  %v7905_v7 = vld [vmem:[%s11996_s3 + $0x2c] ss:$100 sps:$4 sm:$0xff]   ;;  %v7908_v39 = vld [vmem:[%s11996_s3 + $0x34] ss:$100 sps:$4 sm:$0xff]  }
 0x2da   :  { %7168 = vmatpush3.bf16.msra.mxu0 %v8417_v1  ;;  %7195 = vmatprep.subr.bf16.mxu1 %v8418_v20  ;;  %v8420_v8 = vld [vmem:[%s11991_s4 + $0x308] sm:$0xff]   ;;  %v8424_v28 = vld [vmem:[%s11991_s4 + $0x310] sm:$0xff]   ;;  %v8426_v4 = vld [vmem:[%s11991_s4 + $0x358] sm:$0xff]  }
 0x2db   :  { %7169 = vmatprep.subr.bf16.mxu0 %v8419_v13  ;;  %v8428_v1 = vld [vmem:[%s11991_s4 + $0x2a0] sm:$0xff]   ;;  %v8429_v20 = vld [vmem:[%s11991_s4 + $0x2e8] sm:$0xff]  }
 0x2dd   :  { %7196 = vmatpush3.bf16.msra.mxu1 %v8420_v8  ;;  %4952 = vmatmul.mubr.bf16.gmra.mrb[164].mxu0 %v7899_v43  ;;  %v8427_v43 = vld [vmem:[%s11991_s4 + $0x2e0] sm:$0xff]  }
 0x2de   :  { %7170 = vmatpush3.bf16.msra.mxu0 %v8421_v32  ;;  %7197 = vmatprep.subr.bf16.mxu1 %v8422_v22  ;;  %v8431_v32 = vld [vmem:[%s11991_s4 + $0x2f0] sm:$0xff]  }
 0x2df   :  { %7171 = vmatprep.subr.bf16.mxu0 %v8423_v40  ;;  %5041 = vmatprep.mubr.bf16.mxu0 %v7905_v7 }
 0x2e0   :  { %5001 = vmatmul.mubr.bf16.gmra.mrb[168].mxu1 %v7902_v49 }
 0x2e1   :  { %7198 = vmatpush3.bf16.msra.mxu1 %v8424_v28  ;;  %5090 = vmatprep.mubr.bf16.mxu1 %v7908_v39 }
 0x2e2   :  { %7172 = vmatpush3.bf16.msra.mxu0 %v8425_v23  ;;  %7199 = vmatprep.subr.bf16.mxu1 %v8426_v4 }
 0x2e3   :  { %7173 = vmatprep.subr.bf16.mxu0 %v8427_v43 }
 0x2e5   :  { %7200 = vmatpush3.bf16.msra.mxu1 %v10575_v42  ;;  %v8430_v42 = vld [vmem:[%s11991_s4 + $0x2a8] sm:$0xff]  }
 0x2e6   :  { %7174 = vmatpush3.bf16.msra.mxu0 %v8428_v1  ;;  %7201 = vmatprep.subr.bf16.mxu1 %v10584_v2  ;;  %v6807_v13 = vpop.f32.mrb[116].mxu0 }
 0x2e7   :  { %7175 = vmatprep.subr.bf16.mxu0 %v8429_v20  ;;  %v6808_v7 = vpop.f32.mrb[117].mxu0 }
 0x2e8   :  { %v6809_v49 = vadd.f32 %v6808_v7, %v6807_v13  ;;  %v6810_v8 = vpop.f32.mrb[118].mxu0  ;;  %v7903_v7 = vld [vmem:[%s11996_s3 + $0x28] ss:$100 sps:$4 sm:$0xff]  }
 0x2e9   :  { %7202 = vmatpush3.bf16.msra.mxu1 %v10593_v14  ;;  %v6811_v2 = vpop.f32.mrb[119].mxu0 }
 0x2ea   :  { %7176 = vmatpush3.bf16.msra.mxu0 %v8430_v42  ;;  %7203 = vmatprep.subr.bf16.mxu1 %v10602_v48  ;;  %v4054_v22 = vadd.f32 %v6809_v49, %v11444_v62  ;;  %v6812_v14 = vadd.f32 %v6811_v2, %v6810_v8  ;;  %v8432_v48 = vld [vmem:[%s11991_s4 + $0x2b0] sm:$0xff]   ;;  %v8433_v62 = vld [vmem:[%s11991_s4 + $0x2f8] sm:$0xff]  }
 0x2eb   :  { %v6835_v39 = vpop.f32.mrb[116].mxu1  ;;  %7177 = vmatprep.subr.bf16.mxu0 %v8431_v32  ;;  %v8434_v8 = vld [vmem:[%s11991_s4 + $0x2b8] sm:$0xff]  }
 0x2ec   :  { %v6836_v40 = vpop.f32.mrb[117].mxu1  ;;  %v4057_v4 = vadd.f32 %v6812_v14, %v11449_v61  ;;  %v7909_v2 = vld [vmem:[%s11996_s3 + $0xf4] ss:$100 sps:$4 sm:$0xff]  }
 0x2ed   :  { %v6837_v28 = vadd.f32 %v6836_v40, %v6835_v39  ;;  %v6838_v23 = vpop.f32.mrb[118].mxu1  ;;  %7204 = vmatpush3.bf16.msra.mxu1 %v10609_v53  ;;  %v7906_v40 = vld [vmem:[%s11996_s3 + $0x30] ss:$100 sps:$4 sm:$0xff]  }
 0x2ee   :  { %v6839_v43 = vpop.f32.mrb[119].mxu1  ;;  %7178 = vmatpush3.bf16.msra.mxu0 %v8432_v48  ;;  %7205 = vmatprep.subr.bf16.mxu1 %v10618_v33  ;;  %v6813_v13 = vpop.f32.mrb[120].mxu0 }
 0x2ef   :  { %v11564_v1 = vadd.f32 %v6837_v28, %v4054_v22  ;;  %v6840_v20 = vadd.f32 %v6839_v43, %v6838_v23  ;;  %7179 = vmatprep.subr.bf16.mxu0 %v8433_v62  ;;  %v6814_v61 = vpop.f32.mrb[121].mxu0  ;;  %v7912_v23 = vld [vmem:[%s11996_s3 + $0xfc] ss:$100 sps:$4 sm:$0xff]  }
 0x2f0   :  { %v6815_v49 = vadd.f32 %v6814_v61, %v6813_v13  ;;  %v6816_v33 = vpop.f32.mrb[122].mxu0  ;;  %v8439_v13 = vld [vmem:[%s11991_s4 + $0x3d0] sm:$0xff]   ;;  %v7914_v61 = vld [vmem:[%s11996_s3 + $0xf8] ss:$100 sps:$4 sm:$0xff]  }
 0x2f1   :  { %v11569_v53 = vadd.f32 %v6840_v20, %v4057_v4  ;;  %7206 = vmatpush3.bf16.msra.mxu1 %v10629_v25  ;;  %v6817_v39 = vpop.f32.mrb[123].mxu0  ;;  %v8435_v25 = vld [vmem:[%s11991_s4 + $0x3c0] sm:$0xff]  }
 0x2f2   :  { %7180 = vmatpush3.bf16.msra.mxu0 %v8434_v8  ;;  %7207 = vmatprep.subr.bf16.mxu1 %v10640_v35  ;;  %v4062_v32 = vadd.f32 %v6815_v49, %v11486_v0  ;;  %v6818_v22 = vadd.f32 %v6817_v39, %v6816_v33  ;;  %v8436_v0 = vld [vmem:[%s11991_s4 + $0x380] sm:$0xff]   ;;  %v8441_v49 = vld [vmem:[%s11991_s4 + $0x3d8] sm:$0xff]  }
 0x2f3   :  { %v6841_v42 = vpop.f32.mrb[120].mxu1  ;;  %7221 = vmatprep.subr.bf16.mxu0 %v8435_v25  ;;  %v8444_v33 = vld [vmem:[%s11991_s4 + $0x3a0] sm:$0xff]  }
 0x2f4   :  { %v6842_v14 = vpop.f32.mrb[121].mxu1  ;;  %v4065_v4 = vadd.f32 %v6818_v22, %v11491_v18  ;;  %v7911_v18 = vld [vmem:[%s11996_s3 + $0xf0] ss:$100 sps:$4 sm:$0xff]  }
 0x2f5   :  { %v6843_v35 = vadd.f32 %v6842_v14, %v6841_v42  ;;  %v6844_v28 = vpop.f32.mrb[122].mxu1  ;;  %7208 = vmatpush3.bf16.msra.mxu1 %v10654_v17  ;;  %5042 = vmatmul.mubr.bf16.vlgmr.msra.gmra.mrb[168].mxu0 %v7903_v7  ;;  %v8437_v17 = vld [vmem:[%s11991_s4 + $0x3c8] sm:$0xff]   ;;  %v8440_v7 = vld [vmem:[%s11991_s4 + $0x390] sm:$0xff]  }
 0x2f6   :  { %v6845_v43 = vpop.f32.mrb[123].mxu1  ;;  %7222 = vmatpush3.bf16.msra.mxu0 %v8436_v0  ;;  %7249 = vmatprep.subr.bf16.mxu1 %v10663_v54  ;;  %v8438_v54 = vld [vmem:[%s11991_s4 + $0x388] sm:$0xff]   ;;  %v7915_v0 = vld [vmem:[%s11996_s3 + $0x38] ss:$100 sps:$4 sm:$0xff]  }
 0x2f7   :  { %v11598_v48 = vadd.f32 %v6843_v35, %v4062_v32  ;;  %v6846_v20 = vadd.f32 %v6845_v43, %v6844_v28  ;;  %7223 = vmatprep.subr.bf16.mxu0 %v8437_v17  ;;  %5049 = vmatprep.mubr.bf16.mxu0 %v7909_v2  ;;  %v8447_v2 = vld [vmem:[%s11991_s4 + $0x3f0] sm:$0xff]   ;;  %v8450_v17 = vld [vmem:[%s11991_s4 + $0x3b8] sm:$0xff]  }
 0x2f8   :  { %5091 = vmatmul.mubr.bf16.vlgmr.msra.gmra.mrb[172].mxu1 %v7906_v40 }
 0x2f9   :  { %v11603_v62 = vadd.f32 %v6846_v20, %v4065_v4  ;;  %7250 = vmatpush3.bf16.msra.mxu1 %v10683_v30  ;;  %5098 = vmatprep.mubr.bf16.mxu1 %v7912_v23  ;;  %v7917_v30 = vld [vmem:[%s11996_s3 + $0x3c] ss:$100 sps:$4 sm:$0xff]  }
 0x2fa   :  { %7224 = vmatpush3.bf16.msra.mxu0 %v8438_v54  ;;  %7251 = vmatprep.subr.bf16.mxu1 %v10694_v3  ;;  %v7920_v3 = vld [vmem:[%s11996_s3 + $0x44] ss:$100 sps:$4 sm:$0xff]  }
 0x2fb   :  { %7225 = vmatprep.subr.bf16.mxu0 %v8439_v13  ;;  %v7921_v13 = vld [vmem:[%s11996_s3 + $0x104] ss:$100 sps:$4 sm:$0xff]  }
 0x2fd   :  { %7252 = vmatpush3.bf16.msra.mxu1 %v10708_v34  ;;  %5050 = vmatmul.mubr.bf16.gmra.mrb[172].mxu0 %v7911_v18  ;;  %v8442_v34 = vld [vmem:[%s11991_s4 + $0x398] sm:$0xff]  }
 0x2fe   :  { %7226 = vmatpush3.bf16.msra.mxu0 %v8440_v7  ;;  %7253 = vmatprep.subr.bf16.mxu1 %v10717_v9  ;;  %v8443_v9 = vld [vmem:[%s11991_s4 + $0x3e0] sm:$0xff]  }
 0x2ff   :  { %7227 = vmatprep.subr.bf16.mxu0 %v8441_v49  ;;  %5139 = vmatprep.mubr.bf16.mxu0 %v7917_v30  ;;  %v7918_v7 = vld [vmem:[%s11996_s3 + $0x40] ss:$100 sps:$4 sm:$0xff]  }
 0x300   :  { %5099 = vmatmul.mubr.bf16.gmra.mrb[176].mxu1 %v7914_v61 }
 0x301   :  { %7254 = vmatpush3.bf16.msra.mxu1 %v10735_v55  ;;  %5188 = vmatprep.mubr.bf16.mxu1 %v7920_v3  ;;  %v8445_v55 = vld [vmem:[%s11991_s4 + $0x3e8] sm:$0xff]  }
 0x302   :  { %7228 = vmatpush3.bf16.msra.mxu0 %v8442_v34  ;;  %7255 = vmatprep.subr.bf16.mxu1 %v10744_v26  ;;  %v7924_v34 = vld [vmem:[%s11996_s3 + $0x10c] ss:$100 sps:$4 sm:$0xff]  }
 0x303   :  { %7229 = vmatprep.subr.bf16.mxu0 %v8443_v9 }
 0x305   :  { %7256 = vmatpush3.bf16.msra.mxu1 %v10753_v27  ;;  %v8446_v27 = vld [vmem:[%s11991_s4 + $0x3a8] sm:$0xff]  }
 0x306   :  { %7230 = vmatpush3.bf16.msra.mxu0 %v8444_v33  ;;  %7257 = vmatprep.subr.bf16.mxu1 %v10762_v47  ;;  %v6863_v26 = vpop.f32.mrb[124].mxu0 }
 0x307   :  { %7231 = vmatprep.subr.bf16.mxu0 %v8445_v55  ;;  %v6864_v8 = vpop.f32.mrb[125].mxu0 }
 0x308   :  { %v6865_v42 = vadd.f32 %v6864_v8, %v6863_v26  ;;  %v6866_v39 = vpop.f32.mrb[126].mxu0 }
 0x309   :  { %7258 = vmatpush3.bf16.msra.mxu1 %v10771_v15  ;;  %v6867_v47 = vpop.f32.mrb[127].mxu0 }
 0x30a   :  { %7232 = vmatpush3.bf16.msra.mxu0 %v8446_v27  ;;  %7259 = vmatprep.subr.bf16.mxu1 %v10780_v59  ;;  %v4152_v32 = vadd.f32 %v6865_v42, %v11564_v1  ;;  %v6868_v15 = vadd.f32 %v6867_v47, %v6866_v39  ;;  %v8448_v59 = vld [vmem:[%s11991_s4 + $0x3b0] sm:$0xff]   ;;  %v8449_v1 = vld [vmem:[%s11991_s4 + $0x3f8] sm:$0xff]   ;;  %v7926_v39 = vld [vmem:[%s11996_s3 + $0x108] ss:$100 sps:$4 sm:$0xff]  }
 0x30b   :  { %v6891_v25 = vpop.f32.mrb[124].mxu1  ;;  %7233 = vmatprep.subr.bf16.mxu0 %v8447_v2  ;;  %v8455_v42 = vld [vmem:[%s11991_s4 + $0x4d0] sm:$0xff]   ;;  %v8460_v47 = vld [vmem:[%s11991_s4 + $0x4a0] sm:$0xff]  }
 0x30c   :  { %v6892_v22 = vpop.f32.mrb[125].mxu1  ;;  %v4155_v35 = vadd.f32 %v6868_v15, %v11569_v53  ;;  %v8456_v27 = vld [vmem:[%s11991_s4 + $0x490] sm:$0xff]  }
 0x30d   :  { %v6893_v14 = vadd.f32 %v6892_v22, %v6891_v25  ;;  %v6894_v40 = vpop.f32.mrb[126].mxu1  ;;  %7260 = vmatpush3.bf16.msra.mxu1 %v10789_v58  ;;  %v8457_v25 = vld [vmem:[%s11991_s4 + $0x4d8] sm:$0xff]  }
 0x30e   :  { %v6895_v28 = vpop.f32.mrb[127].mxu1  ;;  %7234 = vmatpush3.bf16.msra.mxu0 %v8448_v59  ;;  %7261 = vmatprep.subr.bf16.mxu1 %v10798_v19  ;;  %v6869_v43 = vpop.f32.mrb[128].mxu0 }
 0x30f   :  { %v11664_v23 = vadd.f32 %v6893_v14, %v4152_v32  ;;  %v6896_v4 = vadd.f32 %v6895_v28, %v6894_v40  ;;  %7235 = vmatprep.subr.bf16.mxu0 %v8449_v1  ;;  %v6870_v53 = vpop.f32.mrb[129].mxu0  ;;  %v8463_v14 = vld [vmem:[%s11991_s4 + $0x4f0] sm:$0xff]  }
 0x310   :  { %v6871_v20 = vadd.f32 %v6870_v53, %v6869_v43  ;;  %v6872_v19 = vpop.f32.mrb[130].mxu0 }
 0x311   :  { %v11669_v58 = vadd.f32 %v6896_v4, %v4155_v35  ;;  %7262 = vmatpush3.bf16.msra.mxu1 %v10809_v10  ;;  %v6873_v54 = vpop.f32.mrb[131].mxu0  ;;  %v8451_v10 = vld [vmem:[%s11991_s4 + $0x4c0] sm:$0xff]  }
 0x312   :  { %7236 = vmatpush3.bf16.msra.mxu0 %v8450_v17  ;;  %7263 = vmatprep.subr.bf16.mxu1 %v10820_v46  ;;  %v4160_v30 = vadd.f32 %v6871_v20, %v11598_v48  ;;  %v6874_v61 = vadd.f32 %v6873_v54, %v6872_v19  ;;  %v8452_v48 = vld [vmem:[%s11991_s4 + $0x480] sm:$0xff]   ;;  %v7927_v20 = vld [vmem:[%s11996_s3 + $0x48] ss:$100 sps:$4 sm:$0xff]   ;;  %v8466_v17 = vld [vmem:[%s11991_s4 + $0x4b8] sm:$0xff]  }
 0x313   :  { %v6897_v18 = vpop.f32.mrb[128].mxu1  ;;  %7277 = vmatprep.subr.bf16.mxu0 %v8451_v10  ;;  %v7933_v10 = vld [vmem:[%s11996_s3 + $0x114] ss:$100 sps:$4 sm:$0xff]  }
 0x314   :  { %v6898_v3 = vpop.f32.mrb[129].mxu1  ;;  %v4163_v9 = vadd.f32 %v6874_v61, %v11603_v62  ;;  %v7923_v62 = vld [vmem:[%s11996_s3 + $0x100] ss:$100 sps:$4 sm:$0xff]  }
 0x315   :  { %v6899_v46 = vadd.f32 %v6898_v3, %v6897_v18  ;;  %v6900_v49 = vpop.f32.mrb[130].mxu1  ;;  %7264 = vmatpush3.bf16.msra.mxu1 %v10834_v21  ;;  %5140 = vmatmul.mubr.bf16.vlgmr.msra.gmra.mrb[176].mxu0 %v7915_v0  ;;  %v8453_v21 = vld [vmem:[%s11991_s4 + $0x4c8] sm:$0xff]   ;;  %v7930_v3 = vld [vmem:[%s11996_s3 + $0x50] ss:$100 sps:$4 sm:$0xff]  }
 0x316   :  { %v6901_v33 = vpop.f32.mrb[131].mxu1  ;;  %7278 = vmatpush3.bf16.msra.mxu0 %v8452_v48  ;;  %7305 = vmatprep.subr.bf16.mxu1 %v10843_v41  ;;  %v8454_v41 = vld [vmem:[%s11991_s4 + $0x488] sm:$0xff]  }
 0x317   :  { %v11698_v55 = vadd.f32 %v6899_v46, %v4160_v30  ;;  %v6902_v26 = vadd.f32 %v6901_v33, %v6900_v49  ;;  %7279 = vmatprep.subr.bf16.mxu0 %v8453_v21  ;;  %5147 = vmatprep.mubr.bf16.mxu0 %v7921_v13  ;;  %v7936_v46 = vld [vmem:[%s11996_s3 + $0x11c] ss:$100 sps:$4 sm:$0xff]   ;;  %v8470_v21 = vld [vmem:[%s11991_s4 + $0x588] sm:$0xff]  }
 0x318   :  { %5189 = vmatmul.mubr.bf16.vlgmr.msra.gmra.mrb[180].mxu1 %v7918_v7 }
 0x319   :  { %v11703_v8 = vadd.f32 %v6902_v26, %v4163_v9  ;;  %7306 = vmatpush3.bf16.msra.mxu1 %v10863_v44  ;;  %5196 = vmatprep.mubr.bf16.mxu1 %v7924_v34  ;;  %v7929_v44 = vld [vmem:[%s11996_s3 + $0x4c] ss:$100 sps:$4 sm:$0xff]   ;;  %v8468_v9 = vld [vmem:[%s11991_s4 + $0x580] sm:$0xff]  }
 0x31a   :  { %7280 = vmatpush3.bf16.msra.mxu0 %v8454_v41  ;;  %7307 = vmatprep.subr.bf16.mxu1 %v10874_v5  ;;  %v7932_v5 = vld [vmem:[%s11996_s3 + $0x54] ss:$100 sps:$4 sm:$0xff]  }
 0x31b   :  { %7281 = vmatprep.subr.bf16.mxu0 %v8455_v42  ;;  %v7935_v26 = vld [vmem:[%s11996_s3 + $0x110] ss:$100 sps:$4 sm:$0xff]   ;;  %v7938_v41 = vld [vmem:[%s11996_s3 + $0x118] ss:$100 sps:$4 sm:$0xff]   ;;  %v7942_v42 = vld [vmem:[%s11996_s3 + $0x60] ss:$100 sps:$4 sm:$0xff]  }
 0x31d   :  { %7308 = vmatpush3.bf16.msra.mxu1 %v10888_v29  ;;  %5148 = vmatmul.mubr.bf16.gmra.mrb[180].mxu0 %v7923_v62  ;;  %v8458_v29 = vld [vmem:[%s11991_s4 + $0x498] sm:$0xff]   ;;  %v8471_v62 = vld [vmem:[%s11991_s4 + $0x5d0] sm:$0xff]  }
 0x31e   :  { %7282 = vmatpush3.bf16.msra.mxu0 %v8456_v27  ;;  %7309 = vmatprep.subr.bf16.mxu1 %v10897_v60  ;;  %v8459_v60 = vld [vmem:[%s11991_s4 + $0x4e0] sm:$0xff]   ;;  %v8474_v27 = vld [vmem:[%s11991_s4 + $0x598] sm:$0xff]  }
 0x31f   :  { %7283 = vmatprep.subr.bf16.mxu0 %v8457_v25  ;;  %5237 = vmatprep.mubr.bf16.mxu0 %v7929_v44  ;;  %v8472_v44 = vld [vmem:[%s11991_s4 + $0x590] sm:$0xff]  }
 0x320   :  { %5197 = vmatmul.mubr.bf16.gmra.mrb[184].mxu1 %v7926_v39  ;;  %v12043_v39 = vld [vmem:[#allocation7_spill] sm:$0xff]  ;;  %v12044_v25 = vld [vmem:[#allocation8_spill] sm:$0xff] }
 0x321   :  { %7310 = vmatpush3.bf16.msra.mxu1 %v10915_v12  ;;  %5286 = vmatprep.mubr.bf16.mxu1 %v7932_v5  ;;  %v8461_v12 = vld [vmem:[%s11991_s4 + $0x4e8] sm:$0xff]   ;;  %v8473_v5 = vld [vmem:[%s11991_s4 + $0x5d8] sm:$0xff]  }
 0x322   :  { %7284 = vmatpush3.bf16.msra.mxu0 %v8458_v29  ;;  %7311 = vmatprep.subr.bf16.mxu1 %v10924_v16  ;;  %v8475_v29 = vld [vmem:[%s11991_s4 + $0x5e0] sm:$0xff]  }
 0x323   :  { %7285 = vmatprep.subr.bf16.mxu0 %v8459_v60  ;;  %v8476_v60 = vld [vmem:[%s11991_s4 + $0x5a0] sm:$0xff]  }
 0x325   :  { %7312 = vmatpush3.bf16.msra.mxu1 %v10933_v50  ;;  %v8462_v50 = vld [vmem:[%s11991_s4 + $0x4a8] sm:$0xff]  }
 0x326   :  { %7286 = vmatpush3.bf16.msra.mxu0 %v8460_v47  ;;  %7313 = vmatprep.subr.bf16.mxu1 %v10942_v52  ;;  %v6919_v16 = vpop.f32.mrb[132].mxu0  ;;  %v12045_v47 = vld [vmem:[#allocation9_spill] sm:$0xff] }
 0x327   :  { %7287 = vmatprep.subr.bf16.mxu0 %v8461_v12  ;;  %v6920_v2 = vpop.f32.mrb[133].mxu0  ;;  %v8477_v12 = vld [vmem:[%s11991_s4 + $0x5e8] sm:$0xff]  }
 0x328   :  { %v6921_v32 = vadd.f32 %v6920_v2, %v6919_v16  ;;  %v6922_v15 = vpop.f32.mrb[134].mxu0 }
 0x329   :  { %7314 = vmatpush3.bf16.msra.mxu1 %v10951_v36  ;;  %v6923_v52 = vpop.f32.mrb[135].mxu0 }
 0x32a   :  { %7288 = vmatpush3.bf16.msra.mxu0 %v8462_v50  ;;  %7315 = vmatprep.subr.bf16.mxu1 %v10960_v45  ;;  %v4250_v40 = vadd.f32 %v6921_v32, %v11664_v23  ;;  %v6924_v36 = vadd.f32 %v6923_v52, %v6922_v15  ;;  %v8464_v45 = vld [vmem:[%s11991_s4 + $0x4b0] sm:$0xff]   ;;  %v8465_v23 = vld [vmem:[%s11991_s4 + $0x4f8] sm:$0xff]   ;;  %v8478_v50 = vld [vmem:[%s11991_s4 + $0x5a8] sm:$0xff]  }
 0x32b   :  { %v6947_v22 = vpop.f32.mrb[132].mxu1  ;;  %7289 = vmatprep.subr.bf16.mxu0 %v8463_v14 }
 0x32c   :  { %v6948_v35 = vpop.f32.mrb[133].mxu1  ;;  %v4253_v4 = vadd.f32 %v6924_v36, %v11669_v58 }
 0x32d   :  { %v6949_v28 = vadd.f32 %v6948_v35, %v6947_v22  ;;  %v6950_v59 = vpop.f32.mrb[134].mxu1  ;;  %7316 = vmatpush3.bf16.msra.mxu1 %v10969_v37  ;;  %v12046_v22 = vld [vmem:[#allocation10_spill] sm:$0xff] }
 0x32e   :  { %v6951_v1 = vpop.f32.mrb[135].mxu1  ;;  %7290 = vmatpush3.bf16.msra.mxu0 %v8464_v45  ;;  %7317 = vmatprep.subr.bf16.mxu1 %v10978_v51  ;;  %v6925_v0 = vpop.f32.mrb[136].mxu0 }
 0x32f   :  { %v11764_v43 = vadd.f32 %v6949_v28, %v4250_v40  ;;  %v6952_v53 = vadd.f32 %v6951_v1, %v6950_v59  ;;  %7291 = vmatprep.subr.bf16.mxu0 %v8465_v23  ;;  %v6926_v58 = vpop.f32.mrb[137].mxu0  ;;  %v8479_v40 = vld [vmem:[%s11991_s4 + $0x5f0] sm:$0xff]   ;;  %v12047_v23 = vld [vmem:[#allocation11_spill] sm:$0xff] }
 0x330   :  { %v6927_v19 = vadd.f32 %v6926_v58, %v6925_v0  ;;  %v6928_v51 = vpop.f32.mrb[138].mxu0 }
 0x331   :  { %v11769_v37 = vadd.f32 %v6952_v53, %v4253_v4  ;;  %7318 = vmatpush3.bf16.msra.mxu1 %v10989_v57  ;;  %v6929_v54 = vpop.f32.mrb[139].mxu0  ;;  %v8467_v57 = vld [vmem:[%s11991_s4 + $0x5c0] sm:$0xff]   ;;  %v8480_v53 = vld [vmem:[%s11991_s4 + $0x5b0] sm:$0xff]  }
 0x332   :  { %7292 = vmatpush3.bf16.msra.mxu0 %v8466_v17  ;;  %7319 = vmatprep.subr.bf16.mxu1 %v11000_v11  ;;  %v4258_v13 = vadd.f32 %v6927_v19, %v11698_v55  ;;  %v6930_v30 = vadd.f32 %v6929_v54, %v6928_v51  ;;  %v8482_v54 = vld [vmem:[%s11991_s4 + $0x5b8] sm:$0xff]  }
 0x333   :  { %v6953_v18 = vpop.f32.mrb[136].mxu1  ;;  %7333 = vmatprep.subr.bf16.mxu0 %v8467_v57  ;;  %v7944_v57 = vld [vmem:[%s11996_s3 + $0x124] ss:$100 sps:$4 sm:$0xff]  }
 0x334   :  { %v6954_v61 = vpop.f32.mrb[137].mxu1  ;;  %v4261_v49 = vadd.f32 %v6930_v30, %v11703_v8  ;;  %v12042_v8 = vld [vmem:[#allocation6_spill] sm:$0xff] }
 0x335   :  { %v6955_v11 = vadd.f32 %v6954_v61, %v6953_v18  ;;  %v6956_v7 = vpop.f32.mrb[138].mxu1  ;;  %7320 = vmatpush3.bf16.msra.mxu1 %v11014_v31  ;;  %5238 = vmatmul.mubr.bf16.vlgmr.msra.gmra.mrb[184].mxu0 %v7927_v20  ;;  %v8469_v31 = vld [vmem:[%s11991_s4 + $0x5c8] sm:$0xff]  }
 0x336   :  { %v6957_v34 = vpop.f32.mrb[139].mxu1  ;;  %7334 = vmatpush3.bf16.msra.mxu0 %v8468_v9  ;;  %7431 = vmatprep.subr.bf16.mxu1 %v11023_v38 }
 0x337   :  { %v11798_v33 = vadd.f32 %v6955_v11, %v4258_v13  ;;  %v6958_v48 = vadd.f32 %v6957_v34, %v6956_v7  ;;  %7335 = vmatprep.subr.bf16.mxu0 %v8469_v31  ;;  %5245 = vmatprep.mubr.bf16.mxu0 %v7933_v10  ;;  %v7943_v11 = vld [vmem:[%s11996_s3 + $0x128] ss:$100 sps:$4 sm:$0xff]  }
 0x338   :  { %5287 = vmatmul.mubr.bf16.vlgmr.msra.gmra.mrb[188].mxu1 %v7930_v3 }
 0x339   :  { %v11803_v55 = vadd.f32 %v6958_v48, %v4261_v49  ;;  %7432 = vmatpush3.bf16.msra.mxu1 %v11023_v38  ;;  %5294 = vmatprep.mubr.bf16.mxu1 %v7936_v46  ;;  %v7941_v38 = vld [vmem:[%s11996_s3 + $0x5c] ss:$100 sps:$4 sm:$0xff]  }
 0x33a   :  { %7336 = vmatpush3.bf16.msra.mxu0 %v8470_v21  ;;  %7433 = vmatprep.subr.bf16.mxu1 %v12042_v8 }
 0x33b   :  { %7337 = vmatprep.subr.bf16.mxu0 %v8471_v62 }
 0x33d   :  { %5246 = vmatmul.mubr.bf16.gmra.mrb[188].mxu0 %v7935_v26  ;;  %7434 = vmatpush3.bf16.msra.mxu1 %v12042_v8 }
 0x33e   :  { %7338 = vmatpush3.bf16.msra.mxu0 %v8472_v44  ;;  %7435 = vmatprep.subr.bf16.mxu1 %v12043_v39 }
 0x33f   :  { %7339 = vmatprep.subr.bf16.mxu0 %v8473_v5  ;;  %5335 = vmatprep.mubr.bf16.mxu0 %v7941_v38 }
 0x340   :  { %5295 = vmatmul.mubr.bf16.gmra.mrb[192].mxu1 %v7938_v41 }
 0x341   :  { %7436 = vmatpush3.bf16.msra.mxu1 %v12043_v39  ;;  %7447 = vmatprep.mubr.bf16.mxu1 %v7942_v42  ;;  %v12048_v39 = vld [vmem:[#allocation13_spill] sm:$0xff] }
 0x342   :  { %7340 = vmatpush3.bf16.msra.mxu0 %v8474_v27  ;;  %7437 = vmatprep.subr.bf16.mxu1 %v12044_v25 }
 0x343   :  { %7341 = vmatprep.subr.bf16.mxu0 %v8475_v29 }
 0x345   :  { %7438 = vmatpush3.bf16.msra.mxu1 %v12044_v25 }
 0x346   :  { %7342 = vmatpush3.bf16.msra.mxu0 %v8476_v60  ;;  %7439 = vmatprep.subr.bf16.mxu1 %v12045_v47  ;;  %v6975_v16 = vpop.f32.mrb[140].mxu0 }
 0x347   :  { %7343 = vmatprep.subr.bf16.mxu0 %v8477_v12  ;;  %v6976_v2 = vpop.f32.mrb[141].mxu0 }
 0x348   :  { %v6977_v32 = vadd.f32 %v6976_v2, %v6975_v16  ;;  %v6978_v15 = vpop.f32.mrb[142].mxu0  ;;  %v12049_v2 = vld [vmem:[#allocation15_spill] sm:$0xff] }
 0x349   :  { %7440 = vmatpush3.bf16.msra.mxu1 %v12045_v47  ;;  %v6979_v14 = vpop.f32.mrb[143].mxu0 }
 0x34a   :  { %7344 = vmatpush3.bf16.msra.mxu0 %v8478_v50  ;;  %7441 = vmatprep.subr.bf16.mxu1 %v12046_v22  ;;  %v4348_v36 = vadd.f32 %v6977_v32, %v11764_v43  ;;  %v6980_v35 = vadd.f32 %v6979_v14, %v6978_v15  ;;  %v8481_v43 = vld [vmem:[%s11991_s4 + $0x5f8] sm:$0xff]   ;;  %v12050_v15 = vld [vmem:[#allocation16_spill] sm:$0xff] }
 0x34b   :  { %v7003_v52 = vpop.f32.mrb[140].mxu1  ;;  %7345 = vmatprep.subr.bf16.mxu0 %v8479_v40  ;;  %v12052_v40 = vld [vmem:[#allocation17_spill] sm:$0xff] }
 0x34c   :  { %v7004_v28 = vpop.f32.mrb[141].mxu1  ;;  %v4351_v1 = vadd.f32 %v6980_v35, %v11769_v37  ;;  %v7939_v37 = vld [vmem:[%s11996_s3 + $0x58] ss:$100 sps:$4 sm:$0xff]  }
 0x34d   :  { %v7005_v59 = vadd.f32 %v7004_v28, %v7003_v52  ;;  %v7006_v4 = vpop.f32.mrb[142].mxu1  ;;  %7442 = vmatpush3.bf16.msra.mxu1 %v12046_v22  ;;  %v12051_v52 = vld [vmem:[#allocation20_spill] sm:$0xff] }
 0x34e   :  { %v7007_v45 = vpop.f32.mrb[143].mxu1  ;;  %7346 = vmatpush3.bf16.msra.mxu0 %v8480_v53  ;;  %7443 = vmatprep.subr.bf16.mxu1 %v12047_v23  ;;  %v6981_v20 = vpop.f32.mrb[144].mxu0 }
 0x34f   :  { %v7008_v0 = vadd.f32 %v7007_v45, %v7006_v4  ;;  %7347 = vmatprep.subr.bf16.mxu0 %v8481_v43  ;;  %v4397_v58 = vadd.f32 %v7005_v59, %v4348_v36  ;;  %v6982_v19 = vpop.f32.mrb[145].mxu0 }
 0x350   :  { %v6983_v17 = vadd.f32 %v6982_v19, %v6981_v20  ;;  %v6984_v18 = vpop.f32.mrb[146].mxu0 }
 0x351   :  { %7444 = vmatpush3.bf16.msra.mxu1 %v12047_v23  ;;  %v4400_v51 = vadd.f32 %v7008_v0, %v4351_v1  ;;  %v6985_v13 = vpop.f32.mrb[147].mxu0  ;;  %v12053_v0 = vld [vmem:[#allocation21_spill] sm:$0xff] }
 0x352   :  { %7348 = vmatpush3.bf16.msra.mxu0 %v8482_v54  ;;  %7445 = vmatprep.subr.bf16.mxu1 %v11145_v56  ;;  %v4356_v30 = vadd.f32 %v6983_v17, %v11798_v33  ;;  %v6986_v61 = vadd.f32 %v6985_v13, %v6984_v18  ;;  %v7946_v33 = vld [vmem:[%s11996_s3 + $0x120] ss:$100 sps:$4 sm:$0xff]  }
 0x353   :  { %v7009_v10 = vpop.f32.mrb[144].mxu1 }
 0x354   :  { %v7010_v3 = vpop.f32.mrb[145].mxu1  ;;  %v4359_v49 = vadd.f32 %v6986_v61, %v11803_v55 }
 0x355   :  { %v7011_v7 = vadd.f32 %v7010_v3, %v7009_v10  ;;  %v7012_v46 = vpop.f32.mrb[146].mxu1  ;;  %5336 = vmatmul.mubr.bf16.vlgmr.msra.gmra.mrb[192].mxu0 %v7939_v37  ;;  %7446 = vmatpush3.bf16.msra.mxu1 %v11145_v56 }
 0x356   :  { %v7013_v34 = vpop.f32.mrb[147].mxu1  ;;  %5343 = vmatprep.mubr.bf16.mxu0 %v7944_v57 }
 0x357   :  { %v7014_v9 = vadd.f32 %v7013_v34, %v7012_v46  ;;  %v4405_v48 = vadd.f32 %v7011_v7, %v4356_v30 }
 0x358   :  { %7448 = vmatmul.mubr.bf16.vlgmr.msra.gmra.mrb[196].mxu1 %v7943_v11 }
 0x359   :  { %v4408_v31 = vadd.f32 %v7014_v9, %v4359_v49 }
 0x35d   :  { %5344 = vmatmul.mubr.bf16.gmra.mrb[196].mxu0 %v7946_v33 }
 0x366   :  { %v7429_v26 = vpop.f32.mrb[148].mxu0 }
 0x367   :  { %v11887_v21 = vadd.f32 %v7429_v26, %v4405_v48  ;;  %v4445_v8 = vpop.f32.mrb[149].mxu0 }
 0x368   :  { %v11889_v62 = vadd.f32 %v4445_v8, %v4397_v58  ;;  %v7430_v56 = vpop.f32.mrb[150].mxu0 }
 0x369   :  { %v11893_v55 = vadd.f32 %v11216_v63, %v11887_v21  ;;  %v5425_v38 = vmul.f32 %v11887_v21, %v11887_v21  ;;  %v11897_v41 = vadd.f32 %v7430_v56, %v4408_v31  ;;  %v4448_v42 = vpop.f32.mrb[151].mxu0 }
 0x36a   :  { %v11901_v5 = vadd.f32 %v12048_v39, %v11889_v62  ;;  %v5423_v27 = vmul.f32 %v11889_v62, %v11889_v62  ;;  %v11905_v25 = vadd.f32 %v4448_v42, %v4400_v51 }
 0x36b   :  { %v7041_v44 = vpop.f32.mrb[148].mxu1  ;;  %v11908_v63 = vadd.f32 %v5425_v38, %v11231_v24  ;;  %v11912_v60 = vadd.f32 %v11235_v6, %v11897_v41  ;;  %v5426_v47 = vmul.f32 %v11897_v41, %v11897_v41 }
 0x36c   :  { %v7042_v29 = vpop.f32.mrb[149].mxu1  ;;  %v11917_v32 = vadd.f32 %v5423_v27, %v12049_v2  ;;  %v11921_v50 = vadd.f32 %v12050_v15, %v11905_v25  ;;  %v5424_v24 = vmul.f32 %v11905_v25, %v11905_v25 }
 0x36d   :  { %v7043_v12 = vadd.f32 %v7042_v29, %v7041_v44  ;;  %v7044_v16 = vpop.f32.mrb[150].mxu1  ;;  %v11926_v14 = vadd.f32 %v5426_v47, %v12051_v52 }
 0x36e   :  { %v7045_v22 = vpop.f32.mrb[151].mxu1  ;;  %v11929_v36 = vadd.f32 %v5424_v24, %v12052_v40 }
 0x36f   :  { %v7046_v6 = vadd.f32 %v7045_v22, %v7044_v16  ;;  %v4799_v43 = vadd.f32 %v12053_v0, %v7043_v12 }
 0x371   :  { %v4802_v51 = vadd.f32 %v12053_v0, %v7046_v6 }
 0x373   :  { %v7047_v35 = vpop.f32.mrb[152].mxu1 }
 0x374   :  { %v7048_v28 = vpop.f32.mrb[153].mxu1 }
 0x375   :  { %v7049_v59 = vadd.f32 %v7048_v28, %v7047_v35  ;;  %v7050_v4 = vpop.f32.mrb[154].mxu1 }
 0x376   :  { %v7051_v1 = vpop.f32.mrb[155].mxu1 }
 0x377   :  { %v7052_v45 = vadd.f32 %v7051_v1, %v7050_v4  ;;  %v4807_v49 = vadd.f32 %v12053_v0, %v7049_v59 }
 0x379   :  { %v4810_v31 = vadd.f32 %v12053_v0, %v7052_v45 }
 0x388   :  { %v7069_v53 = vpop.f32.mrb[152].mxu0 }
 0x389   :  { %v7070_v23 = vpop.f32.mrb[153].mxu0 }
 0x38a   :  { %v7071_v58 = vadd.f32 %v7070_v23, %v7069_v53  ;;  %v7072_v20 = vpop.f32.mrb[154].mxu0 }
 0x38b   :  { %v7097_v19 = vpop.f32.mrb[156].mxu1  ;;  %v7073_v37 = vpop.f32.mrb[155].mxu0 }
 0x38c   :  { %v4848_v17 = vadd.f32 %v7071_v58, %v4799_v43  ;;  %v7074_v18 = vadd.f32 %v7073_v37, %v7072_v20  ;;  %v7098_v54 = vpop.f32.mrb[157].mxu1 }
 0x38d   :  { %v7099_v57 = vadd.f32 %v7098_v54, %v7097_v19  ;;  %v7100_v10 = vpop.f32.mrb[158].mxu1 }
 0x38e   :  { %v4851_v13 = vadd.f32 %v7074_v18, %v4802_v51  ;;  %v7101_v30 = vpop.f32.mrb[159].mxu1 }
 0x38f   :  { %v4897_v61 = vadd.f32 %v7099_v57, %v4848_v17  ;;  %v7102_v3 = vadd.f32 %v7101_v30, %v7100_v10 }
 0x390   :  { %v7075_v11 = vpop.f32.mrb[156].mxu0 }
 0x391   :  { %v4900_v7 = vadd.f32 %v7102_v3, %v4851_v13  ;;  %v7076_v46 = vpop.f32.mrb[157].mxu0 }
 0x392   :  { %v7077_v34 = vadd.f32 %v7076_v46, %v7075_v11  ;;  %v7078_v9 = vpop.f32.mrb[158].mxu0 }
 0x393   :  { %v7103_v48 = vpop.f32.mrb[160].mxu1  ;;  %v7079_v33 = vpop.f32.mrb[159].mxu0 }
 0x394   :  { %v4856_v26 = vadd.f32 %v7077_v34, %v4807_v49  ;;  %v7080_v8 = vadd.f32 %v7079_v33, %v7078_v9  ;;  %v7104_v56 = vpop.f32.mrb[161].mxu1 }
 0x395   :  { %v7105_v38 = vadd.f32 %v7104_v56, %v7103_v48  ;;  %v7106_v42 = vpop.f32.mrb[162].mxu1 }
 0x396   :  { %v4859_v44 = vadd.f32 %v7080_v8, %v4810_v31  ;;  %v7107_v39 = vpop.f32.mrb[163].mxu1 }
 0x397   :  { %v4905_v27 = vadd.f32 %v7105_v38, %v4856_v26  ;;  %v7108_v29 = vadd.f32 %v7107_v39, %v7106_v42 }
 0x399   :  { %v4908_v47 = vadd.f32 %v7108_v29, %v4859_v44 }
 0x3a8   :  { %v7125_v12 = vpop.f32.mrb[160].mxu0 }
 0x3a9   :  { %v7126_v16 = vpop.f32.mrb[161].mxu0 }
 0x3aa   :  { %v7127_v2 = vadd.f32 %v7126_v16, %v7125_v12  ;;  %v7128_v15 = vpop.f32.mrb[162].mxu0 }
 0x3ab   :  { %v7153_v24 = vpop.f32.mrb[164].mxu1  ;;  %v7129_v22 = vpop.f32.mrb[163].mxu0 }
 0x3ac   :  { %v4946_v52 = vadd.f32 %v7127_v2, %v4897_v61  ;;  %v7130_v6 = vadd.f32 %v7129_v22, %v7128_v15  ;;  %v7154_v40 = vpop.f32.mrb[165].mxu1 }
 0x3ad   :  { %v7155_v35 = vadd.f32 %v7154_v40, %v7153_v24  ;;  %v7156_v28 = vpop.f32.mrb[166].mxu1 }
 0x3ae   :  { %v4949_v59 = vadd.f32 %v7130_v6, %v4900_v7  ;;  %v7157_v4 = vpop.f32.mrb[167].mxu1 }
 0x3af   :  { %v4995_v1 = vadd.f32 %v7155_v35, %v4946_v52  ;;  %v7158_v45 = vadd.f32 %v7157_v4, %v7156_v28 }
 0x3b0   :  { %v7131_v53 = vpop.f32.mrb[164].mxu0 }
 0x3b1   :  { %v4998_v23 = vadd.f32 %v7158_v45, %v4949_v59  ;;  %v7132_v0 = vpop.f32.mrb[165].mxu0 }
 0x3b2   :  { %v7133_v43 = vadd.f32 %v7132_v0, %v7131_v53  ;;  %v7134_v58 = vpop.f32.mrb[166].mxu0 }
 0x3b3   :  { %v7159_v20 = vpop.f32.mrb[168].mxu1  ;;  %v7135_v19 = vpop.f32.mrb[167].mxu0 }
 0x3b4   :  { %v4954_v37 = vadd.f32 %v7133_v43, %v4905_v27  ;;  %v7136_v51 = vadd.f32 %v7135_v19, %v7134_v58  ;;  %v7160_v17 = vpop.f32.mrb[169].mxu1 }
 0x3b5   :  { %v7161_v18 = vadd.f32 %v7160_v17, %v7159_v20  ;;  %v7162_v54 = vpop.f32.mrb[170].mxu1 }
 0x3b6   :  { %v4957_v57 = vadd.f32 %v7136_v51, %v4908_v47  ;;  %v7163_v10 = vpop.f32.mrb[171].mxu1 }
 0x3b7   :  { %v5003_v13 = vadd.f32 %v7161_v18, %v4954_v37  ;;  %v7164_v30 = vadd.f32 %v7163_v10, %v7162_v54 }
 0x3b9   :  { %v5006_v61 = vadd.f32 %v7164_v30, %v4957_v57 }
 0x3c8   :  { %v7181_v3 = vpop.f32.mrb[168].mxu0 }
 0x3c9   :  { %v7182_v11 = vpop.f32.mrb[169].mxu0 }
 0x3ca   :  { %v7183_v7 = vadd.f32 %v7182_v11, %v7181_v3  ;;  %v7184_v46 = vpop.f32.mrb[170].mxu0 }
 0x3cb   :  { %v7209_v49 = vpop.f32.mrb[172].mxu1  ;;  %v7185_v34 = vpop.f32.mrb[171].mxu0 }
 0x3cc   :  { %v5044_v9 = vadd.f32 %v7183_v7, %v4995_v1  ;;  %v7186_v48 = vadd.f32 %v7185_v34, %v7184_v46  ;;  %v7210_v33 = vpop.f32.mrb[173].mxu1 }
 0x3cd   :  { %v7211_v31 = vadd.f32 %v7210_v33, %v7209_v49  ;;  %v7212_v26 = vpop.f32.mrb[174].mxu1 }
 0x3ce   :  { %v5047_v8 = vadd.f32 %v7186_v48, %v4998_v23  ;;  %v7213_v56 = vpop.f32.mrb[175].mxu1 }
 0x3cf   :  { %v5093_v38 = vadd.f32 %v7211_v31, %v5044_v9  ;;  %v7214_v42 = vadd.f32 %v7213_v56, %v7212_v26 }
 0x3d0   :  { %v7187_v44 = vpop.f32.mrb[172].mxu0 }
 0x3d1   :  { %v5096_v39 = vadd.f32 %v7214_v42, %v5047_v8  ;;  %v7188_v27 = vpop.f32.mrb[173].mxu0 }
 0x3d2   :  { %v7189_v29 = vadd.f32 %v7188_v27, %v7187_v44  ;;  %v7190_v47 = vpop.f32.mrb[174].mxu0 }
 0x3d3   :  { %v7215_v12 = vpop.f32.mrb[176].mxu1  ;;  %v7191_v16 = vpop.f32.mrb[175].mxu0 }
 0x3d4   :  { %v5052_v2 = vadd.f32 %v7189_v29, %v5003_v13  ;;  %v7192_v15 = vadd.f32 %v7191_v16, %v7190_v47  ;;  %v7216_v24 = vpop.f32.mrb[177].mxu1 }
 0x3d5   :  { %v7217_v22 = vadd.f32 %v7216_v24, %v7215_v12  ;;  %v7218_v52 = vpop.f32.mrb[178].mxu1 }
 0x3d6   :  { %v5055_v6 = vadd.f32 %v7192_v15, %v5006_v61  ;;  %v7219_v40 = vpop.f32.mrb[179].mxu1 }
 0x3d7   :  { %v5101_v35 = vadd.f32 %v7217_v22, %v5052_v2  ;;  %v7220_v28 = vadd.f32 %v7219_v40, %v7218_v52 }
 0x3d9   :  { %v5104_v59 = vadd.f32 %v7220_v28, %v5055_v6 }
 0x3e8   :  { %v7237_v4 = vpop.f32.mrb[176].mxu0 }
 0x3e9   :  { %v7238_v1 = vpop.f32.mrb[177].mxu0 }
 0x3ea   :  { %v7239_v45 = vadd.f32 %v7238_v1, %v7237_v4  ;;  %v7240_v53 = vpop.f32.mrb[178].mxu0 }
 0x3eb   :  { %v7265_v23 = vpop.f32.mrb[180].mxu1  ;;  %v7241_v0 = vpop.f32.mrb[179].mxu0 }
 0x3ec   :  { %v5142_v43 = vadd.f32 %v7239_v45, %v5093_v38  ;;  %v7242_v58 = vadd.f32 %v7241_v0, %v7240_v53  ;;  %v7266_v20 = vpop.f32.mrb[181].mxu1 }
 0x3ed   :  { %v7267_v19 = vadd.f32 %v7266_v20, %v7265_v23  ;;  %v7268_v37 = vpop.f32.mrb[182].mxu1 }
 0x3ee   :  { %v5145_v51 = vadd.f32 %v7242_v58, %v5096_v39  ;;  %v7269_v17 = vpop.f32.mrb[183].mxu1 }
 0x3ef   :  { %v5191_v18 = vadd.f32 %v7267_v19, %v5142_v43  ;;  %v7270_v54 = vadd.f32 %v7269_v17, %v7268_v37 }
 0x3f0   :  { %v7243_v57 = vpop.f32.mrb[180].mxu0 }
 0x3f1   :  { %v5194_v10 = vadd.f32 %v7270_v54, %v5145_v51  ;;  %v7244_v13 = vpop.f32.mrb[181].mxu0 }
 0x3f2   :  { %v7245_v30 = vadd.f32 %v7244_v13, %v7243_v57  ;;  %v7246_v61 = vpop.f32.mrb[182].mxu0 }
 0x3f3   :  { %v7271_v3 = vpop.f32.mrb[184].mxu1  ;;  %v7247_v11 = vpop.f32.mrb[183].mxu0 }
 0x3f4   :  { %v5150_v7 = vadd.f32 %v7245_v30, %v5101_v35  ;;  %v7248_v46 = vadd.f32 %v7247_v11, %v7246_v61  ;;  %v7272_v49 = vpop.f32.mrb[185].mxu1 }
 0x3f5   :  { %v7273_v34 = vadd.f32 %v7272_v49, %v7271_v3  ;;  %v7274_v9 = vpop.f32.mrb[186].mxu1 }
 0x3f6   :  { %v5153_v48 = vadd.f32 %v7248_v46, %v5104_v59  ;;  %v7275_v33 = vpop.f32.mrb[187].mxu1 }
 0x3f7   :  { %v5199_v31 = vadd.f32 %v7273_v34, %v5150_v7  ;;  %v7276_v26 = vadd.f32 %v7275_v33, %v7274_v9 }
 0x3f9   :  { %v5202_v8 = vadd.f32 %v7276_v26, %v5153_v48 }
 0x408   :  { %v7293_v56 = vpop.f32.mrb[184].mxu0 }
 0x409   :  { %v7294_v38 = vpop.f32.mrb[185].mxu0 }
 0x40a   :  { %v7295_v42 = vadd.f32 %v7294_v38, %v7293_v56  ;;  %v7296_v44 = vpop.f32.mrb[186].mxu0 }
 0x40b   :  { %v7321_v39 = vpop.f32.mrb[188].mxu1  ;;  %v7297_v27 = vpop.f32.mrb[187].mxu0 }
 0x40c   :  { %v5240_v29 = vadd.f32 %v7295_v42, %v5191_v18  ;;  %v7298_v47 = vadd.f32 %v7297_v27, %v7296_v44  ;;  %v7322_v12 = vpop.f32.mrb[189].mxu1 }
 0x40d   :  { %v7323_v16 = vadd.f32 %v7322_v12, %v7321_v39  ;;  %v7324_v2 = vpop.f32.mrb[190].mxu1 }
 0x40e   :  { %v5243_v15 = vadd.f32 %v7298_v47, %v5194_v10  ;;  %v7325_v24 = vpop.f32.mrb[191].mxu1 }
 0x40f   :  { %v5289_v22 = vadd.f32 %v7323_v16, %v5240_v29  ;;  %v7326_v52 = vadd.f32 %v7325_v24, %v7324_v2 }
 0x410   :  { %v7299_v6 = vpop.f32.mrb[188].mxu0 }
 0x411   :  { %v5292_v40 = vadd.f32 %v7326_v52, %v5243_v15  ;;  %v7300_v35 = vpop.f32.mrb[189].mxu0 }
 0x412   :  { %v7301_v28 = vadd.f32 %v7300_v35, %v7299_v6  ;;  %v7302_v59 = vpop.f32.mrb[190].mxu0 }
 0x413   :  { %v7327_v4 = vpop.f32.mrb[192].mxu1  ;;  %v7303_v1 = vpop.f32.mrb[191].mxu0 }
 0x414   :  { %v5248_v45 = vadd.f32 %v7301_v28, %v5199_v31  ;;  %v7304_v53 = vadd.f32 %v7303_v1, %v7302_v59  ;;  %v7328_v23 = vpop.f32.mrb[193].mxu1 }
 0x415   :  { %v7329_v0 = vadd.f32 %v7328_v23, %v7327_v4  ;;  %v7330_v43 = vpop.f32.mrb[194].mxu1 }
 0x416   :  { %v5251_v58 = vadd.f32 %v7304_v53, %v5202_v8  ;;  %v7331_v20 = vpop.f32.mrb[195].mxu1 }
 0x417   :  { %v5297_v19 = vadd.f32 %v7329_v0, %v5248_v45  ;;  %v7332_v37 = vadd.f32 %v7331_v20, %v7330_v43 }
 0x419   :  { %v5300_v51 = vadd.f32 %v7332_v37, %v5251_v58 }
 0x428   :  { %v7349_v17 = vpop.f32.mrb[192].mxu0 }
 0x429   :  { %v7350_v18 = vpop.f32.mrb[193].mxu0 }
 0x42a   :  { %v7351_v54 = vadd.f32 %v7350_v18, %v7349_v17  ;;  %v7352_v57 = vpop.f32.mrb[194].mxu0  ;;  %v5472_v17 = vlaneseq }
 0x42b   :  { %v7353_v10 = vpop.f32.mrb[195].mxu0  ;;  %v7449_v13 = vpop.f32.mrb[196].mxu1 }
 0x42c   :  { %v7354_v30 = vadd.f32 %v7353_v10, %v7352_v57  ;;  %v5338_v61 = vadd.f32 %v7351_v54, %v5289_v22  ;;  %v5386_v3 = vpop.f32.mrb[197].mxu1  ;;  %v5473_v18 = vshrl.u32 %v5472_v17, 7  ;;  %v5401_v54 = vld [vmem:[%s11997_s6] sm:$0x1] }
 0x42d   :  { %v7450_v11 = vpop.f32.mrb[198].mxu1 }
 0x42e   :  { %v11935_v7 = vadd.f32 %v5386_v3, %v5338_v61  ;;  %v5341_v46 = vadd.f32 %v7354_v30, %v5292_v40  ;;  %v5389_v49 = vpop.f32.mrb[199].mxu1  ;;  %v5474_v57 = vsub.s32 0, %v5473_v18  ;;  %v5402_v30 = vld [vmem:[%s11998_s7] sm:$0x1] }
 0x430   :  { %v5431_v34 = vadd.f32 %v11901_v5, %v11935_v7  ;;  %v5435_v9 = vmul.f32 %v11935_v7, %v11935_v7  ;;  %v11941_v48 = vadd.f32 %v5389_v49, %v5341_v46  ;;  %v7355_v33 = vpop.f32.mrb[196].mxu0  ;;  %v12054_v46 = vld [vmem:[#allocation3_spill] sm:$0xff] }
 0x431   :  { %v7356_v31 = vpop.f32.mrb[197].mxu0 }
 0x432   :  { %v5439_v26 = vadd.f32 %v5435_v9, %v11917_v32  ;;  %v5432_v8 = vadd.f32 %v11921_v50, %v11941_v48  ;;  %v5436_v56 = vmul.f32 %v11941_v48, %v11941_v48  ;;  %v7357_v38 = vadd.f32 %v7356_v31, %v7355_v33  ;;  %v7358_v42 = vpop.f32.mrb[198].mxu0  ;;  %v12056_v33 = vld [vmem:[#allocation2_spill] sm:$0xff] }
 0x433   :  { %v7359_v44 = vpop.f32.mrb[199].mxu0 }
 0x434   :  { %v5440_v5 = vadd.f32 %v5436_v56, %v11929_v36  ;;  %v5443_v39 = vadd.f32 %v5432_v8, %v5431_v34  ;;  %v5346_v27 = vadd.f32 %v7357_v38, %v5297_v19  ;;  %v7360_v29 = vadd.f32 %v7359_v44, %v7358_v42  ;;  %v12055_v34 = vld [vmem:[#allocation5_spill] sm:$0xff]  ;;  %v12058_v56 = vld [vmem:[#allocation12_spill] sm:$0xff]  ;;  %v12059_v42 = vld [vmem:[#allocation14_spill] sm:$0xff] }
 0x436   :  { %v5453_v47 = vadd.f32 %v5440_v5, %v5439_v26  ;;  %v11949_v12 = vadd.f32 %v7449_v13, %v5346_v27  ;;  %v5349_v16 = vadd.f32 %v7360_v29, %v5300_v51  ;;  %v12057_v26 = vld [vmem:[#allocation4_spill] sm:$0xff]  ;;  %v12060_v5 = vld [vmem:[#allocation18_spill] sm:$0xff]  ;;  %v12061_v29 = vld [vmem:[#allocation19_spill] sm:$0xff] }
 0x438   :  { %v5433_v32 = vadd.f32 %v11893_v55, %v11949_v12  ;;  %v5437_v50 = vmul.f32 %v11949_v12, %v11949_v12  ;;  %v11955_v2 = vadd.f32 %v7450_v11, %v5349_v16 }
 0x43a   :  { %v5441_v15 = vadd.f32 %v5437_v50, %v11908_v63  ;;  %v5444_v24 = vadd.f32 %v5443_v39, %v5433_v32  ;;  %v5434_v36 = vadd.f32 %v11912_v60, %v11955_v2  ;;  %v5438_v22 = vmul.f32 %v11955_v2, %v11955_v2 }
 0x43c   :  { %v5454_v52 = vadd.f32 %v5453_v47, %v5441_v15  ;;  %v5442_v6 = vadd.f32 %v5438_v22, %v11926_v14  ;;  %v5445_v40 = vadd.f32 %v5444_v24, %v5434_v36 }
 0x43e   :  { %v5446_v35 = vrot.slane %v5445_v40, 4  ;;  %v5455_v55 = vadd.f32 %v5454_v52, %v5442_v6 }
 0x440   :  { %v5447_v28 = vadd.f32 %v5446_v35, %v5445_v40  ;;  %v5456_v59 = vrot.slane %v5455_v55, 4 }
 0x442   :  { %v5448_v4 = vrot.slane %v5447_v28, 2  ;;  %v5457_v1 = vadd.f32 %v5456_v59, %v5455_v55 }
 0x444   :  { %v5449_v45 = vadd.f32 %v5448_v4, %v5447_v28  ;;  %v5458_v53 = vrot.slane %v5457_v1, 2 }
 0x446   :  { %v5450_v63 = vrot.slane %v5449_v45, 1  ;;  %v5459_v23 = vadd.f32 %v5458_v53, %v5457_v1 }
 0x448   :  { %v5451_v0 = vadd.f32 %v5450_v63, %v5449_v45  ;;  %v5460_v43 = vrot.slane %v5459_v23, 1 }
 0x44a   :  { %v5452_v60 = vmul.f32 0.0078125, %v5451_v0  ;;  %v5461_v58 = vadd.f32 %v5460_v43, %v5459_v23 }
 0x44c   :  { %v5462_v20 = vmul.f32 0.0078125, %v5461_v58  ;;  %v5463_v19 = vmul.f32 %v5452_v60, %v5452_v60 }
 0x44e   :  { %v5464_v37 = vsub.f32 %v5462_v20, %v5463_v19 }
 0x450   :  { %v5465_v51 = vmax.f32 %v5464_v37, 0.0 }
 0x452   :  { %v5466_v14 = vadd.f32 1e-05, %v5465_v51 }
 0x454   :  { %7947 = vrsqrt.f32 %v5466_v14 }
 0x45e   :  { %v7948_v10 = vpop.eup %7947 }
 0x45f   :  { %v5468_v13 = vmul.f32 %v7948_v10, %v5401_v54 }
 0x461   :  { %v5469_v61 = vmul.f32 %v5468_v13, %v5452_v60  ;;  %v5475_v3 = vrot.slane %v5468_v13, %v5474_v57 }
 0x463   :  { %v5470_v11 = vsub.f32 %v5402_v30, %v5469_v61  ;;  %v5477_v49 = vmul.f32 %v5475_v3, %v12054_v46  ;;  %v5478_v9 = vmul.f32 %v5475_v3, %v12055_v34  ;;  %v5479_v31 = vmul.f32 %v5475_v3, %v12056_v33 }
 0x464   :  { %v5480_v8 = vmul.f32 %v5475_v3, %v12057_v26  ;;  %v5495_v38 = vmul.f32 %v5475_v3, %v12058_v56  ;;  %v5496_v44 = vmul.f32 %v5475_v3, %v12059_v42  ;;  %v5497_v39 = vmul.f32 %v5475_v3, %v12060_v5 }
 0x465   :  { %v5485_v27 = vrot.slane %v5470_v11, %v5474_v57  ;;  %v5498_v47 = vmul.f32 %v5475_v3, %v12061_v29  ;;  %v5507_v16 = vmul.f32 %v5475_v3, %v11889_v62  ;;  %v5508_v32 = vmul.f32 %v5475_v3, %v11905_v25 }
 0x466   :  { %v5509_v50 = vmul.f32 %v5475_v3, %v11887_v21  ;;  %v5510_v15 = vmul.f32 %v5475_v3, %v11897_v41  ;;  %v5519_v24 = vmul.f32 %v5475_v3, %v11935_v7  ;;  %v5520_v36 = vmul.f32 %v5475_v3, %v11941_v48 }
 0x467   :  { %v5487_v22 = vadd.f32 %v5485_v27, %v5477_v49  ;;  %v5488_v52 = vadd.f32 %v5485_v27, %v5478_v9  ;;  %v5489_v6 = vadd.f32 %v5485_v27, %v5479_v31  ;;  %v5490_v40 = vadd.f32 %v5485_v27, %v5480_v8 }
 0x468   :  { %v5499_v35 = vadd.f32 %v5495_v38, %v5485_v27  ;;  %v5500_v55 = vadd.f32 %v5496_v44, %v5485_v27  ;;  %v5501_v28 = vadd.f32 %v5497_v39, %v5485_v27  ;;  %v5502_v59 = vadd.f32 %v5498_v47, %v5485_v27 }
 0x469   :  { %v5491_v4 = vmax.f32 %v5487_v22, 0.0  ;;  %v5492_v62 = vmax.f32 %v5488_v52, 0.0  ;;  %v5493_v1 = vmax.f32 %v5489_v6, 0.0  ;;  %v5494_v25 = vmax.f32 %v5490_v40, 0.0 }
 0x46a   :  { %v5503_v45 = vmax.f32 %v5499_v35, 0.0  ;;  %v5504_v21 = vmax.f32 %v5500_v55, 0.0  ;;  %v5505_v53 = vmax.f32 %v5501_v28, 0.0  ;;  %v5506_v41 = vmax.f32 %v5502_v59, 0.0 }
 0x46b   :  { %v5511_v63 = vadd.f32 %v5507_v16, %v5485_v27  ;;  %v5512_v7 = vadd.f32 %v5508_v32, %v5485_v27  ;;  %v5513_v23 = vadd.f32 %v5509_v50, %v5485_v27  ;;  %v5514_v48 = vadd.f32 %v5510_v15, %v5485_v27 }
 0x46c   :  { %v5521_v0 = vmul.f32 %v5475_v3, %v11949_v12  ;;  %v5522_v43 = vmul.f32 %v5475_v3, %v11955_v2  ;;  %v5523_v60 = vadd.f32 %v5519_v24, %v5485_v27  ;;  %v5524_v58 = vadd.f32 %v5520_v36, %v5485_v27 }
 0x46d   :  { %v5515_v20 = vmax.f32 %v5511_v63, 0.0  ;;  %v5516_v19 = vmax.f32 %v5512_v7, 0.0  ;;  %v5517_v37 = vmax.f32 %v5513_v23, 0.0  ;;  %v5518_v51 = vmax.f32 %v5514_v48, 0.0 }
 0x46e   :  { %v5525_v14 = vadd.f32 %v5521_v0, %v5485_v27  ;;  %v5526_v17 = vadd.f32 %v5522_v43, %v5485_v27  ;;  %v5527_v18 = vmax.f32 %v5523_v60, 0.0  ;;  %v5528_v54 = vmax.f32 %v5524_v58, 0.0 }
 0x46f   :  { %v5531_v57 = vmax.f32 %v5491_v4, %v5503_v45  ;;  %v5532_v10 = vmax.f32 %v5492_v62, %v5504_v21  ;;  %v5533_v13 = vmax.f32 %v5493_v1, %v5505_v53  ;;  %v5534_v30 = vmax.f32 %v5494_v25, %v5506_v41 }
 0x470   :  { %v5529_v61 = vmax.f32 %v5525_v14, 0.0  ;;  %v5530_v11 = vmax.f32 %v5526_v17, 0.0  ;;  %v5535_v46 = vmax.f32 %v5515_v20, %v5527_v18  ;;  %v5536_v12 = vmax.f32 %v5516_v19, %v5528_v54 }
 0x472   :  { %v5537_v49 = vmax.f32 %v5517_v37, %v5529_v61  ;;  %v5538_v2 = vmax.f32 %v5518_v51, %v5530_v11  ;;  %v5539_v3 = vmax.f32 %v5531_v57, %v5535_v46  ;;  %v5540_v34 = vmax.f32 %v5532_v10, %v5536_v12 }
 0x474   :  { %v5541_v9 = vmax.f32 %v5533_v13, %v5537_v49  ;;  %v5542_v33 = vmax.f32 %v5534_v30, %v5538_v2  ;;  %v5979_v31 = vpack.c.bf16 %v5540_v34, %v5539_v3 }
 0x476   :  { %5980 = vst [vmem:[%s11999_s8] sm:$0xff] %v5979_v31   ;;  %v5984_v26 = vpack.c.bf16 %v5542_v33, %v5541_v9 }
 0x478   :  { %5986 = vst [vmem:[%s11999_s8 + $0x8] sm:$0xff] %v5984_v26  }

</bundles_post_ra>
